<compile_context>
chip_gen: v7x
topology: tpu7x:2x2x1
jax: 0.10.0
libtpu: 0.0.40
codegen_flags: <defaults>
</compile_context>

<pallas_src>
import jax
import jax.numpy as jnp
from jax.experimental import pallas as pl
from jax.experimental.pallas import tpu as pltpu


def _round_up(x, m):
    return (x + m - 1) // m * m


def _pick_tile(dim, prefs):
    for t in prefs:
        if t <= dim and dim % t == 0:
            return t
    return dim   # full-extent block (always a legal block shape)


# ----------------------------------------------------------------------------
# Tiled MXU matmul with K accumulation + fused bias / ReLU epilogue
# ----------------------------------------------------------------------------
def _make_mm_kernel(has_bias, relu):
    def kernel(*refs):
        if has_bias:
            a_ref, b_ref, bias_ref, o_ref, acc_ref = refs
        else:
            a_ref, b_ref, o_ref, acc_ref = refs

        @pl.when(pl.program_id(2) == 0)
        def _():
            acc_ref[...] = jnp.zeros_like(acc_ref)

        acc_ref[...] += jnp.dot(a_ref[...], b_ref[...],
                                preferred_element_type=jnp.float32)

        @pl.when(pl.program_id(2) == pl.num_programs(2) - 1)
        def _():
            y = acc_ref[...]
            if has_bias:
                y = y + bias_ref[...]
            if relu:
                y = jnp.maximum(y, 0.0)
            o_ref[...] = y.astype(o_ref.dtype)

    return kernel


def pallas_matmul(a, b, bias=None, relu=False, out_dtype=jnp.float32):
    """a: (M, K), b: (Kp, N) with Kp = round_up(K, 128) (zero-padded rows)."""
    M, K = a.shape
    Kp, N = b.shape
    a = a.astype(jnp.bfloat16)
    b = b.astype(jnp.bfloat16)
    if Kp != K:                      # align contraction dim (real zeros)
        a = jnp.pad(a, ((0, 0), (0, Kp - K)))

    tm = _pick_tile(M, (256, 128, 64, 32, 16, 8))
    tn = _pick_tile(N, (256, 128))
    tk = _pick_tile(Kp, (512, 256, 128))
    gm, gn, gk = M // tm, N // tn, Kp // tk

    in_specs = [pl.BlockSpec((tm, tk), lambda i, j, k: (i, k)),
                pl.BlockSpec((tk, tn), lambda i, j, k: (k, j))]
    args = [a, b]
    if bias is not None:
        in_specs.append(pl.BlockSpec((1, tn), lambda i, j, k: (0, j)))
        args.append(bias.reshape(1, N).astype(jnp.float32))

    return pl.pallas_call(
        _make_mm_kernel(bias is not None, relu),
        out_shape=jax.ShapeDtypeStruct((M, N), out_dtype),
        grid=(gm, gn, gk),
        in_specs=in_specs,
        out_specs=pl.BlockSpec((tm, tn), lambda i, j, k: (i, j)),
        scratch_shapes=[pltpu.VMEM((tm, tn), jnp.float32)],
        compiler_params=pltpu.CompilerParams(
            dimension_semantics=("parallel", "parallel", "arbitrary")),
    )(*args)


# ----------------------------------------------------------------------------
# BatchNorm batch statistics: one-pass per-channel sum / sum-of-squares
# ----------------------------------------------------------------------------
def _stats_kernel(x_ref, sum_ref, sq_ref):
    @pl.when(pl.program_id(0) == 0)
    def _():
        sum_ref[...] = jnp.zeros_like(sum_ref)
        sq_ref[...] = jnp.zeros_like(sq_ref)

    x = x_ref[...]
    sum_ref[...] += jnp.sum(x, axis=0, keepdims=True)
    sq_ref[...] += jnp.sum(x * x, axis=0, keepdims=True)


def pallas_channel_stats(x2d):
    M, C = x2d.shape
    Mp = _round_up(M, 8)
    if Mp != M:                      # zero rows do not perturb sum / sumsq
        x2d = jnp.pad(x2d, ((0, Mp - M), (0, 0)))
    tm = _pick_tile(Mp, (512, 256, 128, 64, 32, 16, 8))
    gm = Mp // tm
    s, sq = pl.pallas_call(
        _stats_kernel,
        out_shape=(jax.ShapeDtypeStruct((1, C), jnp.float32),
                   jax.ShapeDtypeStruct((1, C), jnp.float32)),
        grid=(gm,),
        in_specs=[pl.BlockSpec((tm, C), lambda i: (i, 0))],
        out_specs=(pl.BlockSpec((1, C), lambda i: (0, 0)),
                   pl.BlockSpec((1, C), lambda i: (0, 0))),
        compiler_params=pltpu.CompilerParams(
            dimension_semantics=("arbitrary",)),
    )(x2d)
    return s, sq


# ----------------------------------------------------------------------------
# Fused BN scale/shift (+ residual add) (+ ReLU), row-tiled, parallel
# ----------------------------------------------------------------------------
def _make_bn_apply_kernel(relu, has_res):
    def kernel(*refs):
        if has_res:
            x_ref, sc_ref, sh_ref, r_ref, o_ref = refs
        else:
            x_ref, sc_ref, sh_ref, o_ref = refs
        y = x_ref[...] * sc_ref[...] + sh_ref[...]
        if has_res:
            y = y + r_ref[...]
        if relu:
            y = jnp.maximum(y, 0.0)
        o_ref[...] = y

    return kernel


def pallas_bn_apply(x2d, scale, shift, residual, relu):
    M, C = x2d.shape
    tm = _pick_tile(M, (512, 256, 128, 64, 32, 16, 8))
    gm = M // tm
    in_specs = [pl.BlockSpec((tm, C), lambda i: (i, 0)),
                pl.BlockSpec((1, C), lambda i: (0, 0)),
                pl.BlockSpec((1, C), lambda i: (0, 0))]
    args = [x2d, scale, shift]
    if residual is not None:
        in_specs.append(pl.BlockSpec((tm, C), lambda i: (i, 0)))
        args.append(residual)
    return pl.pallas_call(
        _make_bn_apply_kernel(relu, residual is not None),
        out_shape=jax.ShapeDtypeStruct((M, C), jnp.float32),
        grid=(gm,),
        in_specs=in_specs,
        out_specs=pl.BlockSpec((tm, C), lambda i: (i, 0)),
        compiler_params=pltpu.CompilerParams(
            dimension_semantics=("parallel",)),
    )(*args)


def batchnorm_act(x_nhwc, bn, relu=True, residual=None, eps=1e-5):
    """Training-mode BatchNorm (batch statistics) + optional add + ReLU."""
    N, H, W, C = x_nhwc.shape
    M = N * H * W
    x2 = x_nhwc.reshape(M, C)
    s, sq = pallas_channel_stats(x2)
    mean = s / M
    var = jnp.maximum(sq / M - mean * mean, 0.0)    # biased var (PyTorch train BN)
    scale = bn["gamma"] * jax.lax.rsqrt(var + eps)
    shift = bn["beta"] - mean * scale
    res2 = residual.reshape(M, C) if residual is not None else None
    y = pallas_bn_apply(x2, scale, shift, res2, relu)
    return y.reshape(N, H, W, C)


# ----------------------------------------------------------------------------
# Convolution = bf16 im2col (JAX glue) + tiled Pallas matmul
# ----------------------------------------------------------------------------
def conv2d(x_nhwc, w_mat, ksize, stride, padding):
    N, H, W, C = x_nhwc.shape
    cout = w_mat.shape[1]
    Ho = (H + 2 * padding - ksize) // stride + 1
    Wo = (W + 2 * padding - ksize) // stride + 1
    if ksize == 1 and padding == 0:
        xs = x_nhwc[:, ::stride, ::stride, :] if stride > 1 else x_nhwc
        a = xs.reshape(N * Ho * Wo, C).astype(jnp.bfloat16)
    else:
        # TODO(synk): replace the materialized im2col with in-kernel per-tap
        # accumulation (needs element-offset halo blocks) to cut HBM traffic.
        xp = jnp.pad(x_nhwc.astype(jnp.bfloat16),
                     ((0, 0), (padding, padding), (padding, padding), (0, 0)))
        cols = []
        for di in range(ksize):
            for dj in range(ksize):
                cols.append(xp[:, di:di + stride * (Ho - 1) + 1:stride,
                               dj:dj + stride * (Wo - 1) + 1:stride, :])
        a = jnp.stack(cols, axis=3).reshape(N * Ho * Wo, ksize * ksize * C)
    out = pallas_matmul(a, w_mat)
    return out.reshape(N, Ho, Wo, cout)


# ----------------------------------------------------------------------------
# Max-pool 3x3 / stride 2 / pad 1: gridded VPU max over de-interleaved views
# ----------------------------------------------------------------------------
def _maxpool_kernel(ee_ref, eo_ref, oe_ref, oo_ref, o_ref):
    Ho, Wo = o_ref.shape[1], o_ref.shape[2]
    ee = ee_ref[0]
    eo = eo_ref[0]
    oe = oe_ref[0]
    oo = oo_ref[0]
    m = ee[:Ho, :Wo]
    m = jnp.maximum(m, ee[:Ho, 1:Wo + 1])
    m = jnp.maximum(m, ee[1:Ho + 1, :Wo])
    m = jnp.maximum(m, ee[1:Ho + 1, 1:Wo + 1])
    m = jnp.maximum(m, eo[:Ho, :Wo])
    m = jnp.maximum(m, eo[1:Ho + 1, :Wo])
    m = jnp.maximum(m, oe[:Ho, :Wo])
    m = jnp.maximum(m, oe[:Ho, 1:Wo + 1])
    m = jnp.maximum(m, oo[:Ho, :Wo])
    o_ref[0] = m


def maxpool_3x3_s2_p1(x_nhwc):
    N, H, W, C = x_nhwc.shape
    Ho = (H + 2 - 3) // 2 + 1
    Wo = (W + 2 - 3) // 2 + 1
    Hp, Wp = 2 * Ho + 2, 2 * Wo + 2
    xp = jnp.pad(x_nhwc, ((0, 0), (1, Hp - 1 - H), (1, Wp - 1 - W), (0, 0)),
                 constant_values=-jnp.inf)
    ee = xp[:, 0::2, 0::2, :]     # rows 2i,   cols 2j
    eo = xp[:, 0::2, 1::2, :]     # rows 2i,   cols 2j+1
    oe = xp[:, 1::2, 0::2, :]     # rows 2i+1, cols 2j
    oo = xp[:, 1::2, 1::2, :]     # rows 2i+1, cols 2j+1
    in_spec = pl.BlockSpec((1, Ho + 1, Wo + 1, C), lambda n: (n, 0, 0, 0))
    return pl.pallas_call(
        _maxpool_kernel,
        out_shape=jax.ShapeDtypeStruct((N, Ho, Wo, C), x_nhwc.dtype),
        grid=(N,),
        in_specs=[in_spec] * 4,
        out_specs=pl.BlockSpec((1, Ho, Wo, C), lambda n: (n, 0, 0, 0)),
        compiler_params=pltpu.CompilerParams(
            dimension_semantics=("parallel",)),
    )(ee, eo, oe, oo)


# ----------------------------------------------------------------------------
# Parameters (deterministic synthetic init; shapes match torchvision resnet34).
# Conv weights are stored ONCE as (round_up(k*k*cin,128), cout) bf16 matrices.
# ----------------------------------------------------------------------------
def init_params(key, in_channels, num_classes):
    keys = iter(jax.random.split(key, 64))

    def conv_mat(cout, cin, k):
        w = jax.random.normal(next(keys), (cout, cin, k, k), jnp.float32) * 0.05
        mat = jnp.transpose(w, (2, 3, 1, 0)).reshape(k * k * cin, cout)
        kp = _round_up(k * k * cin, 128)
        if kp != mat.shape[0]:
            mat = jnp.pad(mat, ((0, kp - mat.shape[0]), (0, 0)))
        return mat.astype(jnp.bfloat16)

    def bn_p(c):
        return {"gamma": jnp.ones((1, c), jnp.float32),
                "beta": jnp.zeros((1, c), jnp.float32)}

    params = {"conv1": conv_mat(64, in_channels, 7), "bn1": bn_p(64)}
    cfg = [(64, 3), (128, 4), (256, 6), (512, 3)]     # resnet34 block counts
    in_c = 64
    layers = []
    for li, (c, nblocks) in enumerate(cfg):
        blocks = []
        for b in range(nblocks):
            stride = (2 if li > 0 else 1) if b == 0 else 1
            blk = {"conv1": conv_mat(c, in_c, 3), "bn1": bn_p(c),
                   "conv2": conv_mat(c, c, 3), "bn2": bn_p(c)}
            if stride != 1 or in_c != c:
                blk["down_conv"] = conv_mat(c, in_c, 1)
                blk["down_bn"] = bn_p(c)
            blocks.append(blk)
            in_c = c
        layers.append(blocks)
    params["layers"] = layers

    fc_w = jax.random.normal(next(keys), (512, num_classes), jnp.float32) * 0.05
    params["fc_w"] = fc_w.astype(jnp.bfloat16)
    params["fc_b"] = jnp.zeros((1, num_classes), jnp.float32)
    return params


# ----------------------------------------------------------------------------
# Forward pass
# ----------------------------------------------------------------------------
def basic_block(x, blk, stride):
    identity = x
    out = conv2d(x, blk["conv1"], ksize=3, stride=stride, padding=1)
    out = batchnorm_act(out, blk["bn1"], relu=True)
    out = conv2d(out, blk["conv2"], ksize=3, stride=1, padding=1)
    if "down_conv" in blk:
        identity = conv2d(x, blk["down_conv"], ksize=1, stride=stride, padding=0)
        identity = batchnorm_act(identity, blk["down_bn"], relu=False)
    out = batchnorm_act(out, blk["bn2"], relu=True, residual=identity)
    return out


def forward(params, x_nchw):
    x = jnp.transpose(x_nchw, (0, 2, 3, 1)).astype(jnp.float32)   # NCHW -> NHWC
    x = conv2d(x, params["conv1"], ksize=7, stride=2, padding=3)
    x = batchnorm_act(x, params["bn1"], relu=True)
    x = maxpool_3x3_s2_p1(x)
    for li, blocks in enumerate(params["layers"]):
        for bi, blk in enumerate(blocks):
            stride = (2 if li > 0 else 1) if bi == 0 else 1
            x = basic_block(x, blk, stride)
    feat = x.mean(axis=(1, 2))            # global average pool (tiny; JAX glue)
    logits = pallas_matmul(feat, params["fc_w"], bias=params["fc_b"], relu=False)
    return logits


if __name__ == "__main__":
    key = jax.random.PRNGKey(0)
    kp, kx = jax.random.split(key)

    in_channels, num_classes = 4, 10
    batch, spatial = 2, 16

    params = init_params(kp, in_channels, num_classes)
    x = jax.random.normal(kx, (batch, in_channels, spatial, spatial), jnp.float32)

    out = jax.jit(forward)(params, x)
    out = jax.block_until_ready(out)
    assert out.shape == (batch, num_classes)
    assert jnp.all(jnp.isfinite(out))
    print("KERNEL_OK")
</pallas_src>

<mosaic_0001>
module attributes {stable_mosaic.version = 11 : i64} {
  func.func @kernel(%arg0: i32, %arg1: i32, %arg2: i32, %arg3: memref<128x256xbf16, #tpu.memory_space<vmem>>, %arg4: memref<256x64xbf16, #tpu.memory_space<vmem>>, %arg5: memref<128x64xf32, #tpu.memory_space<vmem>>, %arg6: memref<128x64xf32, #tpu.memory_space<vmem>>) attributes {dimension_semantics = [#tpu.dimension_semantics<parallel>, #tpu.dimension_semantics<parallel>, #tpu.dimension_semantics<arbitrary>], iteration_bounds = array<i64: 1, 1, 1>, scalar_prefetch = 0 : i64, scratch_operands = 1 : i64, tpu.core_type = #tpu.core_type<tc>, window_params = [{transform_indices = @transform_0, window_bounds = array<i64: 128, 256>}, {transform_indices = @transform_1, window_bounds = array<i64: 256, 64>}, {transform_indices = @transform_2, window_bounds = array<i64: 128, 64>}]} {
    %c0_i32 = arith.constant 0 : i32
    %0 = arith.cmpi eq, %arg2, %c0_i32 : i32
    %1 = arith.extui %0 : i1 to i32
    %c0_i32_0 = arith.constant 0 : i32
    %2 = arith.cmpi ne, %1, %c0_i32_0 : i32
    scf.if %2 {
      %cst_10 = arith.constant 0.000000e+00 : f32
      %12 = vector.broadcast %cst_10 : f32 to vector<128x64xf32>
      %c0_11 = arith.constant 0 : index
      %c0_12 = arith.constant 0 : index
      %13 = vector.load %arg6[%c0_11, %c0_12] : memref<128x64xf32, #tpu.memory_space<vmem>>, vector<128x64xf32>
      tpu.vector_store %arg6[%c0_11, %c0_12], %12 {strides = array<i32>} : memref<128x64xf32, #tpu.memory_space<vmem>>, vector<128x64xf32>,
    } else {
    }
    %c0 = arith.constant 0 : index
    %c0_1 = arith.constant 0 : index
    %3 = vector.load %arg6[%c0, %c0_1] : memref<128x64xf32, #tpu.memory_space<vmem>>, vector<128x64xf32>
    %c0_2 = arith.constant 0 : index
    %c0_3 = arith.constant 0 : index
    %4 = vector.load %arg3[%c0_2, %c0_3] : memref<128x256xbf16, #tpu.memory_space<vmem>>, vector<128x256xbf16>
    %c0_4 = arith.constant 0 : index
    %c0_5 = arith.constant 0 : index
    %5 = vector.load %arg4[%c0_4, %c0_5] : memref<256x64xbf16, #tpu.memory_space<vmem>>, vector<256x64xbf16>
    %cst = arith.constant dense<0.000000e+00> : vector<128x64xf32>
    %6 = tpu.matmul %4, %5, %cst {dimension_numbers = #tpu.dot_dimension_numbers<[1], [0], [0], [1], [0, 0, 1, 1], [], []>} : vector<128x256xbf16>, vector<256x64xbf16>, vector<128x64xf32> -> vector<128x64xf32>
    %7 = arith.addf %3, %6 : vector<128x64xf32>
    %c0_6 = arith.constant 0 : index
    %c0_7 = arith.constant 0 : index
    %8 = vector.load %arg6[%c0_6, %c0_7] : memref<128x64xf32, #tpu.memory_space<vmem>>, vector<128x64xf32>
    tpu.vector_store %arg6[%c0_6, %c0_7], %7 {strides = array<i32>} : memref<128x64xf32, #tpu.memory_space<vmem>>, vector<128x64xf32>,
    %c0_i32_8 = arith.constant 0 : i32
    %9 = arith.cmpi eq, %arg2, %c0_i32_8 : i32
    %10 = arith.extui %9 : i1 to i32
    %c0_i32_9 = arith.constant 0 : i32
    %11 = arith.cmpi ne, %10, %c0_i32_9 : i32
    scf.if %11 {
      %c0_10 = arith.constant 0 : index
      %c0_11 = arith.constant 0 : index
      %12 = vector.load %arg6[%c0_10, %c0_11] : memref<128x64xf32, #tpu.memory_space<vmem>>, vector<128x64xf32>
      %c0_12 = arith.constant 0 : index
      %c0_13 = arith.constant 0 : index
      %13 = vector.load %arg5[%c0_12, %c0_13] : memref<128x64xf32, #tpu.memory_space<vmem>>, vector<128x64xf32>
      tpu.vector_store %arg5[%c0_12, %c0_13], %12 {strides = array<i32>} : memref<128x64xf32, #tpu.memory_space<vmem>>, vector<128x64xf32>,
    } else {
    }
    return
  }
  func.func @transform_0(%arg0: i32, %arg1: i32, %arg2: i32) -> (i32, i32) {
    %c0_i32 = arith.constant 0 : i32
    return %arg0, %arg2 : i32, i32
  }
  func.func @transform_1(%arg0: i32, %arg1: i32, %arg2: i32) -> (i32, i32) {
    %c0_i32 = arith.constant 0 : i32
    return %arg2, %arg1 : i32, i32
  }
  func.func @transform_2(%arg0: i32, %arg1: i32, %arg2: i32) -> (i32, i32) {
    %c0_i32 = arith.constant 0 : i32
    return %arg0, %arg1 : i32, i32
  }
}

module attributes {stable_mosaic.version = 11 : i64} {
  func.func @_stats_kernel(%arg0: i32, %arg1: memref<128x64xf32, #tpu.memory_space<vmem>>, %arg2: memref<1x64xf32, #tpu.memory_space<vmem>>, %arg3: memref<1x64xf32, #tpu.memory_space<vmem>>) attributes {dimension_semantics = [#tpu.dimension_semantics<arbitrary>], iteration_bounds = array<i64: 1>, scalar_prefetch = 0 : i64, scratch_operands = 0 : i64, tpu.core_type = #tpu.core_type<tc>, window_params = [{transform_indices = @transform_0, window_bounds = array<i64: 128, 64>}, {pipeline_mode = #tpu.pipeline_mode<synchronous>, transform_indices = @transform_1, window_bounds = array<i64: 1, 64>}, {pipeline_mode = #tpu.pipeline_mode<synchronous>, transform_indices = @transform_2, window_bounds = array<i64: 1, 64>}]} {
    %c0_i32 = arith.constant 0 : i32
    %0 = arith.cmpi eq, %arg0, %c0_i32 : i32
    %1 = arith.extui %0 : i1 to i32
    %c0_i32_0 = arith.constant 0 : i32
    %2 = arith.cmpi ne, %1, %c0_i32_0 : i32
    scf.if %2 {
      %cst_11 = arith.constant 0.000000e+00 : f32
      %15 = vector.broadcast %cst_11 : f32 to vector<1x64xf32>
      %c0_12 = arith.constant 0 : index
      %c0_13 = arith.constant 0 : index
      %16 = vector.load %arg2[%c0_12, %c0_13] : memref<1x64xf32, #tpu.memory_space<vmem>>, vector<1x64xf32>
      tpu.vector_store %arg2[%c0_12, %c0_13], %15 {strides = array<i32>} : memref<1x64xf32, #tpu.memory_space<vmem>>, vector<1x64xf32>,
      %cst_14 = arith.constant 0.000000e+00 : f32
      %17 = vector.broadcast %cst_14 : f32 to vector<1x64xf32>
      %c0_15 = arith.constant 0 : index
      %c0_16 = arith.constant 0 : index
      %18 = vector.load %arg3[%c0_15, %c0_16] : memref<1x64xf32, #tpu.memory_space<vmem>>, vector<1x64xf32>
      tpu.vector_store %arg3[%c0_15, %c0_16], %17 {strides = array<i32>} : memref<1x64xf32, #tpu.memory_space<vmem>>, vector<1x64xf32>,
    } else {
    }
    %c0 = arith.constant 0 : index
    %c0_1 = arith.constant 0 : index
    %3 = vector.load %arg1[%c0, %c0_1] : memref<128x64xf32, #tpu.memory_space<vmem>>, vector<128x64xf32>
    %c0_2 = arith.constant 0 : index
    %c0_3 = arith.constant 0 : index
    %4 = vector.load %arg2[%c0_2, %c0_3] : memref<1x64xf32, #tpu.memory_space<vmem>>, vector<1x64xf32>
    %cst = arith.constant dense<0.000000e+00> : vector<64xf32>
    %5 = vector.multi_reduction <add>, %3, %cst [0] : vector<128x64xf32> to vector<64xf32>
    %6 = vector.shape_cast %5 : vector<64xf32> to vector<1x64xf32>
    %7 = arith.addf %4, %6 : vector<1x64xf32>
    %c0_4 = arith.constant 0 : index
    %c0_5 = arith.constant 0 : index
    %8 = vector.load %arg2[%c0_4, %c0_5] : memref<1x64xf32, #tpu.memory_space<vmem>>, vector<1x64xf32>
    tpu.vector_store %arg2[%c0_4, %c0_5], %7 {strides = array<i32>} : memref<1x64xf32, #tpu.memory_space<vmem>>, vector<1x64xf32>,
    %c0_6 = arith.constant 0 : index
    %c0_7 = arith.constant 0 : index
    %9 = vector.load %arg3[%c0_6, %c0_7] : memref<1x64xf32, #tpu.memory_space<vmem>>, vector<1x64xf32>
    %10 = arith.mulf %3, %3 : vector<128x64xf32>
    %cst_8 = arith.constant dense<0.000000e+00> : vector<64xf32>
    %11 = vector.multi_reduction <add>, %10, %cst_8 [0] : vector<128x64xf32> to vector<64xf32>
    %12 = vector.shape_cast %11 : vector<64xf32> to vector<1x64xf32>
    %13 = arith.addf %9, %12 : vector<1x64xf32>
    %c0_9 = arith.constant 0 : index
    %c0_10 = arith.constant 0 : index
    %14 = vector.load %arg3[%c0_9, %c0_10] : memref<1x64xf32, #tpu.memory_space<vmem>>, vector<1x64xf32>
    tpu.vector_store %arg3[%c0_9, %c0_10], %13 {strides = array<i32>} : memref<1x64xf32, #tpu.memory_space<vmem>>, vector<1x64xf32>,
    return
  }
  func.func @transform_0(%arg0: i32) -> (i32, i32) {
    %c0_i32 = arith.constant 0 : i32
    %c0_i32_0 = arith.constant 0 : i32
    return %arg0, %c0_i32 : i32, i32
  }
  func.func @transform_1(%arg0: i32) -> (i32, i32) {
    %c0_i32 = arith.constant 0 : i32
    %c0_i32_0 = arith.constant 0 : i32
    %c0_i32_1 = arith.constant 0 : i32
    return %c0_i32, %c0_i32_0 : i32, i32
  }
  func.func @transform_2(%arg0: i32) -> (i32, i32) {
    %c0_i32 = arith.constant 0 : i32
    %c0_i32_0 = arith.constant 0 : i32
    %c0_i32_1 = arith.constant 0 : i32
    return %c0_i32, %c0_i32_0 : i32, i32
  }
}

module attributes {stable_mosaic.version = 11 : i64} {
  func.func @kernel(%arg0: i32, %arg1: memref<128x64xf32, #tpu.memory_space<vmem>>, %arg2: memref<1x64xf32, #tpu.memory_space<vmem>>, %arg3: memref<1x64xf32, #tpu.memory_space<vmem>>, %arg4: memref<128x64xf32, #tpu.memory_space<vmem>>) attributes {dimension_semantics = [#tpu.dimension_semantics<parallel>], iteration_bounds = array<i64: 1>, scalar_prefetch = 0 : i64, scratch_operands = 0 : i64, tpu.core_type = #tpu.core_type<tc>, window_params = [{transform_indices = @transform_0, window_bounds = array<i64: 128, 64>}, {pipeline_mode = #tpu.pipeline_mode<synchronous>, transform_indices = @transform_1, window_bounds = array<i64: 1, 64>}, {pipeline_mode = #tpu.pipeline_mode<synchronous>, transform_indices = @transform_2, window_bounds = array<i64: 1, 64>}, {transform_indices = @transform_3, window_bounds = array<i64: 128, 64>}]} {
    %c0 = arith.constant 0 : index
    %c0_0 = arith.constant 0 : index
    %0 = vector.load %arg1[%c0, %c0_0] : memref<128x64xf32, #tpu.memory_space<vmem>>, vector<128x64xf32>
    %c0_1 = arith.constant 0 : index
    %c0_2 = arith.constant 0 : index
    %1 = vector.load %arg2[%c0_1, %c0_2] : memref<1x64xf32, #tpu.memory_space<vmem>>, vector<1x64xf32>
    %2 = vector.broadcast %1 : vector<1x64xf32> to vector<128x64xf32>
    %3 = arith.mulf %0, %2 : vector<128x64xf32>
    %c0_3 = arith.constant 0 : index
    %c0_4 = arith.constant 0 : index
    %4 = vector.load %arg3[%c0_3, %c0_4] : memref<1x64xf32, #tpu.memory_space<vmem>>, vector<1x64xf32>
    %5 = vector.broadcast %4 : vector<1x64xf32> to vector<128x64xf32>
    %6 = arith.addf %3, %5 : vector<128x64xf32>
    %cst = arith.constant 0.000000e+00 : f32
    %7 = vector.broadcast %cst : f32 to vector<128x64xf32>
    %8 = arith.maximumf %6, %7 : vector<128x64xf32>
    %c0_5 = arith.constant 0 : index
    %c0_6 = arith.constant 0 : index
    %9 = vector.load %arg4[%c0_5, %c0_6] : memref<128x64xf32, #tpu.memory_space<vmem>>, vector<128x64xf32>
    tpu.vector_store %arg4[%c0_5, %c0_6], %8 {strides = array<i32>} : memref<128x64xf32, #tpu.memory_space<vmem>>, vector<128x64xf32>,
    return
  }
  func.func @transform_0(%arg0: i32) -> (i32, i32) {
    %c0_i32 = arith.constant 0 : i32
    %c0_i32_0 = arith.constant 0 : i32
    return %arg0, %c0_i32 : i32, i32
  }
  func.func @transform_1(%arg0: i32) -> (i32, i32) {
    %c0_i32 = arith.constant 0 : i32
    %c0_i32_0 = arith.constant 0 : i32
    %c0_i32_1 = arith.constant 0 : i32
    return %c0_i32, %c0_i32_0 : i32, i32
  }
  func.func @transform_2(%arg0: i32) -> (i32, i32) {
    %c0_i32 = arith.constant 0 : i32
    %c0_i32_0 = arith.constant 0 : i32
    %c0_i32_1 = arith.constant 0 : i32
    return %c0_i32, %c0_i32_0 : i32, i32
  }
  func.func @transform_3(%arg0: i32) -> (i32, i32) {
    %c0_i32 = arith.constant 0 : i32
    %c0_i32_0 = arith.constant 0 : i32
    return %arg0, %c0_i32 : i32, i32
  }
}

module attributes {stable_mosaic.version = 11 : i64} {
  func.func @_maxpool_kernel(%arg0: i32, %arg1: memref<1x5x5x64xf32, #tpu.memory_space<vmem>>, %arg2: memref<1x5x5x64xf32, #tpu.memory_space<vmem>>, %arg3: memref<1x5x5x64xf32, #tpu.memory_space<vmem>>, %arg4: memref<1x5x5x64xf32, #tpu.memory_space<vmem>>, %arg5: memref<1x4x4x64xf32, #tpu.memory_space<vmem>>) attributes {dimension_semantics = [#tpu.dimension_semantics<parallel>], iteration_bounds = array<i64: 2>, scalar_prefetch = 0 : i64, scratch_operands = 0 : i64, tpu.core_type = #tpu.core_type<tc>, window_params = [{transform_indices = @transform_0, window_bounds = array<i64: 1, 5, 5, 64>}, {transform_indices = @transform_1, window_bounds = array<i64: 1, 5, 5, 64>}, {transform_indices = @transform_2, window_bounds = array<i64: 1, 5, 5, 64>}, {transform_indices = @transform_3, window_bounds = array<i64: 1, 5, 5, 64>}, {transform_indices = @transform_4, window_bounds = array<i64: 1, 4, 4, 64>}]} {
    %c0 = arith.constant 0 : index
    %c0_0 = arith.constant 0 : index
    %c0_1 = arith.constant 0 : index
    %c0_2 = arith.constant 0 : index
    %0 = vector.load %arg1[%c0, %c0_0, %c0_1, %c0_2] : memref<1x5x5x64xf32, #tpu.memory_space<vmem>>, vector<1x5x5x64xf32>
    %1 = vector.shape_cast %0 : vector<1x5x5x64xf32> to vector<5x5x64xf32>
    %c0_3 = arith.constant 0 : index
    %c0_4 = arith.constant 0 : index
    %c0_5 = arith.constant 0 : index
    %c0_6 = arith.constant 0 : index
    %2 = vector.load %arg2[%c0_3, %c0_4, %c0_5, %c0_6] : memref<1x5x5x64xf32, #tpu.memory_space<vmem>>, vector<1x5x5x64xf32>
    %3 = vector.shape_cast %2 : vector<1x5x5x64xf32> to vector<5x5x64xf32>
    %c0_7 = arith.constant 0 : index
    %c0_8 = arith.constant 0 : index
    %c0_9 = arith.constant 0 : index
    %c0_10 = arith.constant 0 : index
    %4 = vector.load %arg3[%c0_7, %c0_8, %c0_9, %c0_10] : memref<1x5x5x64xf32, #tpu.memory_space<vmem>>, vector<1x5x5x64xf32>
    %5 = vector.shape_cast %4 : vector<1x5x5x64xf32> to vector<5x5x64xf32>
    %c0_11 = arith.constant 0 : index
    %c0_12 = arith.constant 0 : index
    %c0_13 = arith.constant 0 : index
    %c0_14 = arith.constant 0 : index
    %6 = vector.load %arg4[%c0_11, %c0_12, %c0_13, %c0_14] : memref<1x5x5x64xf32, #tpu.memory_space<vmem>>, vector<1x5x5x64xf32>
    %7 = vector.shape_cast %6 : vector<1x5x5x64xf32> to vector<5x5x64xf32>
    %8 = vector.extract_strided_slice %1 {offsets = [0, 0, 0], sizes = [4, 4, 64], strides = [1, 1, 1]} : vector<5x5x64xf32> to vector<4x4x64xf32>
    %9 = vector.extract_strided_slice %1 {offsets = [0, 1, 0], sizes = [4, 4, 64], strides = [1, 1, 1]} : vector<5x5x64xf32> to vector<4x4x64xf32>
    %10 = arith.maximumf %8, %9 : vector<4x4x64xf32>
    %11 = vector.extract_strided_slice %1 {offsets = [1, 0, 0], sizes = [4, 4, 64], strides = [1, 1, 1]} : vector<5x5x64xf32> to vector<4x4x64xf32>
    %12 = arith.maximumf %10, %11 : vector<4x4x64xf32>
    %13 = vector.extract_strided_slice %1 {offsets = [1, 1, 0], sizes = [4, 4, 64], strides = [1, 1, 1]} : vector<5x5x64xf32> to vector<4x4x64xf32>
    %14 = arith.maximumf %12, %13 : vector<4x4x64xf32>
    %15 = vector.extract_strided_slice %3 {offsets = [0, 0, 0], sizes = [4, 4, 64], strides = [1, 1, 1]} : vector<5x5x64xf32> to vector<4x4x64xf32>
    %16 = arith.maximumf %14, %15 : vector<4x4x64xf32>
    %17 = vector.extract_strided_slice %3 {offsets = [1, 0, 0], sizes = [4, 4, 64], strides = [1, 1, 1]} : vector<5x5x64xf32> to vector<4x4x64xf32>
    %18 = arith.maximumf %16, %17 : vector<4x4x64xf32>
    %19 = vector.extract_strided_slice %5 {offsets = [0, 0, 0], sizes = [4, 4, 64], strides = [1, 1, 1]} : vector<5x5x64xf32> to vector<4x4x64xf32>
    %20 = arith.maximumf %18, %19 : vector<4x4x64xf32>
    %21 = vector.extract_strided_slice %5 {offsets = [0, 1, 0], sizes = [4, 4, 64], strides = [1, 1, 1]} : vector<5x5x64xf32> to vector<4x4x64xf32>
    %22 = arith.maximumf %20, %21 : vector<4x4x64xf32>
    %23 = vector.extract_strided_slice %7 {offsets = [0, 0, 0], sizes = [4, 4, 64], strides = [1, 1, 1]} : vector<5x5x64xf32> to vector<4x4x64xf32>
    %24 = arith.maximumf %22, %23 : vector<4x4x64xf32>
    %c0_15 = arith.constant 0 : index
    %c0_16 = arith.constant 0 : index
    %c0_17 = arith.constant 0 : index
    %c0_18 = arith.constant 0 : index
    %25 = vector.load %arg5[%c0_15, %c0_16, %c0_17, %c0_18] : memref<1x4x4x64xf32, #tpu.memory_space<vmem>>, vector<1x4x4x64xf32>
    %26 = vector.shape_cast %25 : vector<1x4x4x64xf32> to vector<4x4x64xf32>
    %27 = vector.shape_cast %24 : vector<4x4x64xf32> to vector<1x4x4x64xf32>
    tpu.vector_store %arg5[%c0_15, %c0_16, %c0_17, %c0_18], %27 {strides = array<i32>} : memref<1x4x4x64xf32, #tpu.memory_space<vmem>>, vector<1x4x4x64xf32>,
    return
  }
  func.func @transform_0(%arg0: i32) -> (i32, i32, i32, i32) {
    %c0_i32 = arith.constant 0 : i32
    %c0_i32_0 = arith.constant 0 : i32
    %c0_i32_1 = arith.constant 0 : i32
    %c0_i32_2 = arith.constant 0 : i32
    return %arg0, %c0_i32, %c0_i32_0, %c0_i32_1 : i32, i32, i32, i32
  }
  func.func @transform_1(%arg0: i32) -> (i32, i32, i32, i32) {
    %c0_i32 = arith.constant 0 : i32
    %c0_i32_0 = arith.constant 0 : i32
    %c0_i32_1 = arith.constant 0 : i32
    %c0_i32_2 = arith.constant 0 : i32
    return %arg0, %c0_i32, %c0_i32_0, %c0_i32_1 : i32, i32, i32, i32
  }
  func.func @transform_2(%arg0: i32) -> (i32, i32, i32, i32) {
    %c0_i32 = arith.constant 0 : i32
    %c0_i32_0 = arith.constant 0 : i32
    %c0_i32_1 = arith.constant 0 : i32
    %c0_i32_2 = arith.constant 0 : i32
    return %arg0, %c0_i32, %c0_i32_0, %c0_i32_1 : i32, i32, i32, i32
  }
  func.func @transform_3(%arg0: i32) -> (i32, i32, i32, i32) {
    %c0_i32 = arith.constant 0 : i32
    %c0_i32_0 = arith.constant 0 : i32
    %c0_i32_1 = arith.constant 0 : i32
    %c0_i32_2 = arith.constant 0 : i32
    return %arg0, %c0_i32, %c0_i32_0, %c0_i32_1 : i32, i32, i32, i32
  }
  func.func @transform_4(%arg0: i32) -> (i32, i32, i32, i32) {
    %c0_i32 = arith.constant 0 : i32
    %c0_i32_0 = arith.constant 0 : i32
    %c0_i32_1 = arith.constant 0 : i32
    %c0_i32_2 = arith.constant 0 : i32
    return %arg0, %c0_i32, %c0_i32_0, %c0_i32_1 : i32, i32, i32, i32
  }
}

module attributes {stable_mosaic.version = 11 : i64} {
  func.func @kernel(%arg0: i32, %arg1: i32, %arg2: i32, %arg3: memref<32x128xbf16, #tpu.memory_space<vmem>>, %arg4: memref<128x64xbf16, #tpu.memory_space<vmem>>, %arg5: memref<32x64xf32, #tpu.memory_space<vmem>>, %arg6: memref<32x64xf32, #tpu.memory_space<vmem>>) attributes {dimension_semantics = [#tpu.dimension_semantics<parallel>, #tpu.dimension_semantics<parallel>, #tpu.dimension_semantics<arbitrary>], iteration_bounds = array<i64: 1, 1, 5>, scalar_prefetch = 0 : i64, scratch_operands = 1 : i64, tpu.core_type = #tpu.core_type<tc>, window_params = [{transform_indices = @transform_0, window_bounds = array<i64: 32, 128>}, {transform_indices = @transform_1, window_bounds = array<i64: 128, 64>}, {transform_indices = @transform_2, window_bounds = array<i64: 32, 64>}]} {
    %c0_i32 = arith.constant 0 : i32
    %0 = arith.cmpi eq, %arg2, %c0_i32 : i32
    %1 = arith.extui %0 : i1 to i32
    %c0_i32_0 = arith.constant 0 : i32
    %2 = arith.cmpi ne, %1, %c0_i32_0 : i32
    scf.if %2 {
      %cst_9 = arith.constant 0.000000e+00 : f32
      %12 = vector.broadcast %cst_9 : f32 to vector<32x64xf32>
      %c0_10 = arith.constant 0 : index
      %c0_11 = arith.constant 0 : index
      %13 = vector.load %arg6[%c0_10, %c0_11] : memref<32x64xf32, #tpu.memory_space<vmem>>, vector<32x64xf32>
      tpu.vector_store %arg6[%c0_10, %c0_11], %12 {strides = array<i32>} : memref<32x64xf32, #tpu.memory_space<vmem>>, vector<32x64xf32>,
    } else {
    }
    %c0 = arith.constant 0 : index
    %c0_1 = arith.constant 0 : index
    %3 = vector.load %arg6[%c0, %c0_1] : memref<32x64xf32, #tpu.memory_space<vmem>>, vector<32x64xf32>
    %c0_2 = arith.constant 0 : index
    %c0_3 = arith.constant 0 : index
    %4 = vector.load %arg3[%c0_2, %c0_3] : memref<32x128xbf16, #tpu.memory_space<vmem>>, vector<32x128xbf16>
    %c0_4 = arith.constant 0 : index
    %c0_5 = arith.constant 0 : index
    %5 = vector.load %arg4[%c0_4, %c0_5] : memref<128x64xbf16, #tpu.memory_space<vmem>>, vector<128x64xbf16>
    %cst = arith.constant dense<0.000000e+00> : vector<32x64xf32>
    %6 = tpu.matmul %4, %5, %cst {dimension_numbers = #tpu.dot_dimension_numbers<[1], [0], [0], [1], [0, 0, 1, 1], [], []>} : vector<32x128xbf16>, vector<128x64xbf16>, vector<32x64xf32> -> vector<32x64xf32>
    %7 = arith.addf %3, %6 : vector<32x64xf32>
    %c0_6 = arith.constant 0 : index
    %c0_7 = arith.constant 0 : index
    %8 = vector.load %arg6[%c0_6, %c0_7] : memref<32x64xf32, #tpu.memory_space<vmem>>, vector<32x64xf32>
    tpu.vector_store %arg6[%c0_6, %c0_7], %7 {strides = array<i32>} : memref<32x64xf32, #tpu.memory_space<vmem>>, vector<32x64xf32>,
    %c4_i32 = arith.constant 4 : i32
    %9 = arith.cmpi eq, %arg2, %c4_i32 : i32
    %10 = arith.extui %9 : i1 to i32
    %c0_i32_8 = arith.constant 0 : i32
    %11 = arith.cmpi ne, %10, %c0_i32_8 : i32
    scf.if %11 {
      %c0_9 = arith.constant 0 : index
      %c0_10 = arith.constant 0 : index
      %12 = vector.load %arg6[%c0_9, %c0_10] : memref<32x64xf32, #tpu.memory_space<vmem>>, vector<32x64xf32>
      %c0_11 = arith.constant 0 : index
      %c0_12 = arith.constant 0 : index
      %13 = vector.load %arg5[%c0_11, %c0_12] : memref<32x64xf32, #tpu.memory_space<vmem>>, vector<32x64xf32>
      tpu.vector_store %arg5[%c0_11, %c0_12], %12 {strides = array<i32>} : memref<32x64xf32, #tpu.memory_space<vmem>>, vector<32x64xf32>,
    } else {
    }
    return
  }
  func.func @transform_0(%arg0: i32, %arg1: i32, %arg2: i32) -> (i32, i32) {
    %c0_i32 = arith.constant 0 : i32
    return %arg0, %arg2 : i32, i32
  }
  func.func @transform_1(%arg0: i32, %arg1: i32, %arg2: i32) -> (i32, i32) {
    %c0_i32 = arith.constant 0 : i32
    return %arg2, %arg1 : i32, i32
  }
  func.func @transform_2(%arg0: i32, %arg1: i32, %arg2: i32) -> (i32, i32) {
    %c0_i32 = arith.constant 0 : i32
    return %arg0, %arg1 : i32, i32
  }
}

module attributes {stable_mosaic.version = 11 : i64} {
  func.func @_stats_kernel(%arg0: i32, %arg1: memref<32x64xf32, #tpu.memory_space<vmem>>, %arg2: memref<1x64xf32, #tpu.memory_space<vmem>>, %arg3: memref<1x64xf32, #tpu.memory_space<vmem>>) attributes {dimension_semantics = [#tpu.dimension_semantics<arbitrary>], iteration_bounds = array<i64: 1>, scalar_prefetch = 0 : i64, scratch_operands = 0 : i64, tpu.core_type = #tpu.core_type<tc>, window_params = [{transform_indices = @transform_0, window_bounds = array<i64: 32, 64>}, {pipeline_mode = #tpu.pipeline_mode<synchronous>, transform_indices = @transform_1, window_bounds = array<i64: 1, 64>}, {pipeline_mode = #tpu.pipeline_mode<synchronous>, transform_indices = @transform_2, window_bounds = array<i64: 1, 64>}]} {
    %c0_i32 = arith.constant 0 : i32
    %0 = arith.cmpi eq, %arg0, %c0_i32 : i32
    %1 = arith.extui %0 : i1 to i32
    %c0_i32_0 = arith.constant 0 : i32
    %2 = arith.cmpi ne, %1, %c0_i32_0 : i32
    scf.if %2 {
      %cst_11 = arith.constant 0.000000e+00 : f32
      %15 = vector.broadcast %cst_11 : f32 to vector<1x64xf32>
      %c0_12 = arith.constant 0 : index
      %c0_13 = arith.constant 0 : index
      %16 = vector.load %arg2[%c0_12, %c0_13] : memref<1x64xf32, #tpu.memory_space<vmem>>, vector<1x64xf32>
      tpu.vector_store %arg2[%c0_12, %c0_13], %15 {strides = array<i32>} : memref<1x64xf32, #tpu.memory_space<vmem>>, vector<1x64xf32>,
      %cst_14 = arith.constant 0.000000e+00 : f32
      %17 = vector.broadcast %cst_14 : f32 to vector<1x64xf32>
      %c0_15 = arith.constant 0 : index
      %c0_16 = arith.constant 0 : index
      %18 = vector.load %arg3[%c0_15, %c0_16] : memref<1x64xf32, #tpu.memory_space<vmem>>, vector<1x64xf32>
      tpu.vector_store %arg3[%c0_15, %c0_16], %17 {strides = array<i32>} : memref<1x64xf32, #tpu.memory_space<vmem>>, vector<1x64xf32>,
    } else {
    }
    %c0 = arith.constant 0 : index
    %c0_1 = arith.constant 0 : index
    %3 = vector.load %arg1[%c0, %c0_1] : memref<32x64xf32, #tpu.memory_space<vmem>>, vector<32x64xf32>
    %c0_2 = arith.constant 0 : index
    %c0_3 = arith.constant 0 : index
    %4 = vector.load %arg2[%c0_2, %c0_3] : memref<1x64xf32, #tpu.memory_space<vmem>>, vector<1x64xf32>
    %cst = arith.constant dense<0.000000e+00> : vector<64xf32>
    %5 = vector.multi_reduction <add>, %3, %cst [0] : vector<32x64xf32> to vector<64xf32>
    %6 = vector.shape_cast %5 : vector<64xf32> to vector<1x64xf32>
    %7 = arith.addf %4, %6 : vector<1x64xf32>
    %c0_4 = arith.constant 0 : index
    %c0_5 = arith.constant 0 : index
    %8 = vector.load %arg2[%c0_4, %c0_5] : memref<1x64xf32, #tpu.memory_space<vmem>>, vector<1x64xf32>
    tpu.vector_store %arg2[%c0_4, %c0_5], %7 {strides = array<i32>} : memref<1x64xf32, #tpu.memory_space<vmem>>, vector<1x64xf32>,
    %c0_6 = arith.constant 0 : index
    %c0_7 = arith.constant 0 : index
    %9 = vector.load %arg3[%c0_6, %c0_7] : memref<1x64xf32, #tpu.memory_space<vmem>>, vector<1x64xf32>
    %10 = arith.mulf %3, %3 : vector<32x64xf32>
    %cst_8 = arith.constant dense<0.000000e+00> : vector<64xf32>
    %11 = vector.multi_reduction <add>, %10, %cst_8 [0] : vector<32x64xf32> to vector<64xf32>
    %12 = vector.shape_cast %11 : vector<64xf32> to vector<1x64xf32>
    %13 = arith.addf %9, %12 : vector<1x64xf32>
    %c0_9 = arith.constant 0 : index
    %c0_10 = arith.constant 0 : index
    %14 = vector.load %arg3[%c0_9, %c0_10] : memref<1x64xf32, #tpu.memory_space<vmem>>, vector<1x64xf32>
    tpu.vector_store %arg3[%c0_9, %c0_10], %13 {strides = array<i32>} : memref<1x64xf32, #tpu.memory_space<vmem>>, vector<1x64xf32>,
    return
  }
  func.func @transform_0(%arg0: i32) -> (i32, i32) {
    %c0_i32 = arith.constant 0 : i32
    %c0_i32_0 = arith.constant 0 : i32
    return %arg0, %c0_i32 : i32, i32
  }
  func.func @transform_1(%arg0: i32) -> (i32, i32) {
    %c0_i32 = arith.constant 0 : i32
    %c0_i32_0 = arith.constant 0 : i32
    %c0_i32_1 = arith.constant 0 : i32
    return %c0_i32, %c0_i32_0 : i32, i32
  }
  func.func @transform_2(%arg0: i32) -> (i32, i32) {
    %c0_i32 = arith.constant 0 : i32
    %c0_i32_0 = arith.constant 0 : i32
    %c0_i32_1 = arith.constant 0 : i32
    return %c0_i32, %c0_i32_0 : i32, i32
  }
}

module attributes {stable_mosaic.version = 11 : i64} {
  func.func @kernel(%arg0: i32, %arg1: memref<32x64xf32, #tpu.memory_space<vmem>>, %arg2: memref<1x64xf32, #tpu.memory_space<vmem>>, %arg3: memref<1x64xf32, #tpu.memory_space<vmem>>, %arg4: memref<32x64xf32, #tpu.memory_space<vmem>>) attributes {dimension_semantics = [#tpu.dimension_semantics<parallel>], iteration_bounds = array<i64: 1>, scalar_prefetch = 0 : i64, scratch_operands = 0 : i64, tpu.core_type = #tpu.core_type<tc>, window_params = [{transform_indices = @transform_0, window_bounds = array<i64: 32, 64>}, {pipeline_mode = #tpu.pipeline_mode<synchronous>, transform_indices = @transform_1, window_bounds = array<i64: 1, 64>}, {pipeline_mode = #tpu.pipeline_mode<synchronous>, transform_indices = @transform_2, window_bounds = array<i64: 1, 64>}, {transform_indices = @transform_3, window_bounds = array<i64: 32, 64>}]} {
    %c0 = arith.constant 0 : index
    %c0_0 = arith.constant 0 : index
    %0 = vector.load %arg1[%c0, %c0_0] : memref<32x64xf32, #tpu.memory_space<vmem>>, vector<32x64xf32>
    %c0_1 = arith.constant 0 : index
    %c0_2 = arith.constant 0 : index
    %1 = vector.load %arg2[%c0_1, %c0_2] : memref<1x64xf32, #tpu.memory_space<vmem>>, vector<1x64xf32>
    %2 = vector.broadcast %1 : vector<1x64xf32> to vector<32x64xf32>
    %3 = arith.mulf %0, %2 : vector<32x64xf32>
    %c0_3 = arith.constant 0 : index
    %c0_4 = arith.constant 0 : index
    %4 = vector.load %arg3[%c0_3, %c0_4] : memref<1x64xf32, #tpu.memory_space<vmem>>, vector<1x64xf32>
    %5 = vector.broadcast %4 : vector<1x64xf32> to vector<32x64xf32>
    %6 = arith.addf %3, %5 : vector<32x64xf32>
    %cst = arith.constant 0.000000e+00 : f32
    %7 = vector.broadcast %cst : f32 to vector<32x64xf32>
    %8 = arith.maximumf %6, %7 : vector<32x64xf32>
    %c0_5 = arith.constant 0 : index
    %c0_6 = arith.constant 0 : index
    %9 = vector.load %arg4[%c0_5, %c0_6] : memref<32x64xf32, #tpu.memory_space<vmem>>, vector<32x64xf32>
    tpu.vector_store %arg4[%c0_5, %c0_6], %8 {strides = array<i32>} : memref<32x64xf32, #tpu.memory_space<vmem>>, vector<32x64xf32>,
    return
  }
  func.func @transform_0(%arg0: i32) -> (i32, i32) {
    %c0_i32 = arith.constant 0 : i32
    %c0_i32_0 = arith.constant 0 : i32
    return %arg0, %c0_i32 : i32, i32
  }
  func.func @transform_1(%arg0: i32) -> (i32, i32) {
    %c0_i32 = arith.constant 0 : i32
    %c0_i32_0 = arith.constant 0 : i32
    %c0_i32_1 = arith.constant 0 : i32
    return %c0_i32, %c0_i32_0 : i32, i32
  }
  func.func @transform_2(%arg0: i32) -> (i32, i32) {
    %c0_i32 = arith.constant 0 : i32
    %c0_i32_0 = arith.constant 0 : i32
    %c0_i32_1 = arith.constant 0 : i32
    return %c0_i32, %c0_i32_0 : i32, i32
  }
  func.func @transform_3(%arg0: i32) -> (i32, i32) {
    %c0_i32 = arith.constant 0 : i32
    %c0_i32_0 = arith.constant 0 : i32
    return %arg0, %c0_i32 : i32, i32
  }
}

module attributes {stable_mosaic.version = 11 : i64} {
  func.func @kernel(%arg0: i32, %arg1: memref<32x64xf32, #tpu.memory_space<vmem>>, %arg2: memref<1x64xf32, #tpu.memory_space<vmem>>, %arg3: memref<1x64xf32, #tpu.memory_space<vmem>>, %arg4: memref<32x64xf32, #tpu.memory_space<vmem>>, %arg5: memref<32x64xf32, #tpu.memory_space<vmem>>) attributes {dimension_semantics = [#tpu.dimension_semantics<parallel>], iteration_bounds = array<i64: 1>, scalar_prefetch = 0 : i64, scratch_operands = 0 : i64, tpu.core_type = #tpu.core_type<tc>, window_params = [{transform_indices = @transform_0, window_bounds = array<i64: 32, 64>}, {pipeline_mode = #tpu.pipeline_mode<synchronous>, transform_indices = @transform_1, window_bounds = array<i64: 1, 64>}, {pipeline_mode = #tpu.pipeline_mode<synchronous>, transform_indices = @transform_2, window_bounds = array<i64: 1, 64>}, {transform_indices = @transform_3, window_bounds = array<i64: 32, 64>}, {transform_indices = @transform_4, window_bounds = array<i64: 32, 64>}]} {
    %c0 = arith.constant 0 : index
    %c0_0 = arith.constant 0 : index
    %0 = vector.load %arg1[%c0, %c0_0] : memref<32x64xf32, #tpu.memory_space<vmem>>, vector<32x64xf32>
    %c0_1 = arith.constant 0 : index
    %c0_2 = arith.constant 0 : index
    %1 = vector.load %arg2[%c0_1, %c0_2] : memref<1x64xf32, #tpu.memory_space<vmem>>, vector<1x64xf32>
    %2 = vector.broadcast %1 : vector<1x64xf32> to vector<32x64xf32>
    %3 = arith.mulf %0, %2 : vector<32x64xf32>
    %c0_3 = arith.constant 0 : index
    %c0_4 = arith.constant 0 : index
    %4 = vector.load %arg3[%c0_3, %c0_4] : memref<1x64xf32, #tpu.memory_space<vmem>>, vector<1x64xf32>
    %5 = vector.broadcast %4 : vector<1x64xf32> to vector<32x64xf32>
    %6 = arith.addf %3, %5 : vector<32x64xf32>
    %c0_5 = arith.constant 0 : index
    %c0_6 = arith.constant 0 : index
    %7 = vector.load %arg4[%c0_5, %c0_6] : memref<32x64xf32, #tpu.memory_space<vmem>>, vector<32x64xf32>
    %8 = arith.addf %6, %7 : vector<32x64xf32>
    %cst = arith.constant 0.000000e+00 : f32
    %9 = vector.broadcast %cst : f32 to vector<32x64xf32>
    %10 = arith.maximumf %8, %9 : vector<32x64xf32>
    %c0_7 = arith.constant 0 : index
    %c0_8 = arith.constant 0 : index
    %11 = vector.load %arg5[%c0_7, %c0_8] : memref<32x64xf32, #tpu.memory_space<vmem>>, vector<32x64xf32>
    tpu.vector_store %arg5[%c0_7, %c0_8], %10 {strides = array<i32>} : memref<32x64xf32, #tpu.memory_space<vmem>>, vector<32x64xf32>,
    return
  }
  func.func @transform_0(%arg0: i32) -> (i32, i32) {
    %c0_i32 = arith.constant 0 : i32
    %c0_i32_0 = arith.constant 0 : i32
    return %arg0, %c0_i32 : i32, i32
  }
  func.func @transform_1(%arg0: i32) -> (i32, i32) {
    %c0_i32 = arith.constant 0 : i32
    %c0_i32_0 = arith.constant 0 : i32
    %c0_i32_1 = arith.constant 0 : i32
    return %c0_i32, %c0_i32_0 : i32, i32
  }
  func.func @transform_2(%arg0: i32) -> (i32, i32) {
    %c0_i32 = arith.constant 0 : i32
    %c0_i32_0 = arith.constant 0 : i32
    %c0_i32_1 = arith.constant 0 : i32
    return %c0_i32, %c0_i32_0 : i32, i32
  }
  func.func @transform_3(%arg0: i32) -> (i32, i32) {
    %c0_i32 = arith.constant 0 : i32
    %c0_i32_0 = arith.constant 0 : i32
    return %arg0, %c0_i32 : i32, i32
  }
  func.func @transform_4(%arg0: i32) -> (i32, i32) {
    %c0_i32 = arith.constant 0 : i32
    %c0_i32_0 = arith.constant 0 : i32
    return %arg0, %c0_i32 : i32, i32
  }
}

module attributes {stable_mosaic.version = 11 : i64} {
  func.func @_stats_kernel(%arg0: i32, %arg1: memref<8x128xf32, #tpu.memory_space<vmem>>, %arg2: memref<1x128xf32, #tpu.memory_space<vmem>>, %arg3: memref<1x128xf32, #tpu.memory_space<vmem>>) attributes {dimension_semantics = [#tpu.dimension_semantics<arbitrary>], iteration_bounds = array<i64: 1>, scalar_prefetch = 0 : i64, scratch_operands = 0 : i64, tpu.core_type = #tpu.core_type<tc>, window_params = [{transform_indices = @transform_0, window_bounds = array<i64: 8, 128>}, {pipeline_mode = #tpu.pipeline_mode<synchronous>, transform_indices = @transform_1, window_bounds = array<i64: 1, 128>}, {pipeline_mode = #tpu.pipeline_mode<synchronous>, transform_indices = @transform_2, window_bounds = array<i64: 1, 128>}]} {
    %c0_i32 = arith.constant 0 : i32
    %0 = arith.cmpi eq, %arg0, %c0_i32 : i32
    %1 = arith.extui %0 : i1 to i32
    %c0_i32_0 = arith.constant 0 : i32
    %2 = arith.cmpi ne, %1, %c0_i32_0 : i32
    scf.if %2 {
      %cst_11 = arith.constant 0.000000e+00 : f32
      %15 = vector.broadcast %cst_11 : f32 to vector<1x128xf32>
      %c0_12 = arith.constant 0 : index
      %c0_13 = arith.constant 0 : index
      %16 = vector.load %arg2[%c0_12, %c0_13] : memref<1x128xf32, #tpu.memory_space<vmem>>, vector<1x128xf32>
      tpu.vector_store %arg2[%c0_12, %c0_13], %15 {strides = array<i32>} : memref<1x128xf32, #tpu.memory_space<vmem>>, vector<1x128xf32>,
      %cst_14 = arith.constant 0.000000e+00 : f32
      %17 = vector.broadcast %cst_14 : f32 to vector<1x128xf32>
      %c0_15 = arith.constant 0 : index
      %c0_16 = arith.constant 0 : index
      %18 = vector.load %arg3[%c0_15, %c0_16] : memref<1x128xf32, #tpu.memory_space<vmem>>, vector<1x128xf32>
      tpu.vector_store %arg3[%c0_15, %c0_16], %17 {strides = array<i32>} : memref<1x128xf32, #tpu.memory_space<vmem>>, vector<1x128xf32>,
    } else {
    }
    %c0 = arith.constant 0 : index
    %c0_1 = arith.constant 0 : index
    %3 = vector.load %arg1[%c0, %c0_1] : memref<8x128xf32, #tpu.memory_space<vmem>>, vector<8x128xf32>
    %c0_2 = arith.constant 0 : index
    %c0_3 = arith.constant 0 : index
    %4 = vector.load %arg2[%c0_2, %c0_3] : memref<1x128xf32, #tpu.memory_space<vmem>>, vector<1x128xf32>
    %cst = arith.constant dense<0.000000e+00> : vector<128xf32>
    %5 = vector.multi_reduction <add>, %3, %cst [0] : vector<8x128xf32> to vector<128xf32>
    %6 = vector.shape_cast %5 : vector<128xf32> to vector<1x128xf32>
    %7 = arith.addf %4, %6 : vector<1x128xf32>
    %c0_4 = arith.constant 0 : index
    %c0_5 = arith.constant 0 : index
    %8 = vector.load %arg2[%c0_4, %c0_5] : memref<1x128xf32, #tpu.memory_space<vmem>>, vector<1x128xf32>
    tpu.vector_store %arg2[%c0_4, %c0_5], %7 {strides = array<i32>} : memref<1x128xf32, #tpu.memory_space<vmem>>, vector<1x128xf32>,
    %c0_6 = arith.constant 0 : index
    %c0_7 = arith.constant 0 : index
    %9 = vector.load %arg3[%c0_6, %c0_7] : memref<1x128xf32, #tpu.memory_space<vmem>>, vector<1x128xf32>
    %10 = arith.mulf %3, %3 : vector<8x128xf32>
    %cst_8 = arith.constant dense<0.000000e+00> : vector<128xf32>
    %11 = vector.multi_reduction <add>, %10, %cst_8 [0] : vector<8x128xf32> to vector<128xf32>
    %12 = vector.shape_cast %11 : vector<128xf32> to vector<1x128xf32>
    %13 = arith.addf %9, %12 : vector<1x128xf32>
    %c0_9 = arith.constant 0 : index
    %c0_10 = arith.constant 0 : index
    %14 = vector.load %arg3[%c0_9, %c0_10] : memref<1x128xf32, #tpu.memory_space<vmem>>, vector<1x128xf32>
    tpu.vector_store %arg3[%c0_9, %c0_10], %13 {strides = array<i32>} : memref<1x128xf32, #tpu.memory_space<vmem>>, vector<1x128xf32>,
    return
  }
  func.func @transform_0(%arg0: i32) -> (i32, i32) {
    %c0_i32 = arith.constant 0 : i32
    %c0_i32_0 = arith.constant 0 : i32
    return %arg0, %c0_i32 : i32, i32
  }
  func.func @transform_1(%arg0: i32) -> (i32, i32) {
    %c0_i32 = arith.constant 0 : i32
    %c0_i32_0 = arith.constant 0 : i32
    %c0_i32_1 = arith.constant 0 : i32
    return %c0_i32, %c0_i32_0 : i32, i32
  }
  func.func @transform_2(%arg0: i32) -> (i32, i32) {
    %c0_i32 = arith.constant 0 : i32
    %c0_i32_0 = arith.constant 0 : i32
    %c0_i32_1 = arith.constant 0 : i32
    return %c0_i32, %c0_i32_0 : i32, i32
  }
}

module attributes {stable_mosaic.version = 11 : i64} {
  func.func @kernel(%arg0: i32, %arg1: i32, %arg2: i32, %arg3: memref<8x128xbf16, #tpu.memory_space<vmem>>, %arg4: memref<128x128xbf16, #tpu.memory_space<vmem>>, %arg5: memref<8x128xf32, #tpu.memory_space<vmem>>, %arg6: memref<8x128xf32, #tpu.memory_space<vmem>>) attributes {dimension_semantics = [#tpu.dimension_semantics<parallel>, #tpu.dimension_semantics<parallel>, #tpu.dimension_semantics<arbitrary>], iteration_bounds = array<i64: 1, 1, 1>, scalar_prefetch = 0 : i64, scratch_operands = 1 : i64, tpu.core_type = #tpu.core_type<tc>, window_params = [{transform_indices = @transform_0, window_bounds = array<i64: 8, 128>}, {transform_indices = @transform_1, window_bounds = array<i64: 128, 128>}, {transform_indices = @transform_2, window_bounds = array<i64: 8, 128>}]} {
    %c0_i32 = arith.constant 0 : i32
    %0 = arith.cmpi eq, %arg2, %c0_i32 : i32
    %1 = arith.extui %0 : i1 to i32
    %c0_i32_0 = arith.constant 0 : i32
    %2 = arith.cmpi ne, %1, %c0_i32_0 : i32
    scf.if %2 {
      %cst_10 = arith.constant 0.000000e+00 : f32
      %12 = vector.broadcast %cst_10 : f32 to vector<8x128xf32>
      %c0_11 = arith.constant 0 : index
      %c0_12 = arith.constant 0 : index
      %13 = vector.load %arg6[%c0_11, %c0_12] : memref<8x128xf32, #tpu.memory_space<vmem>>, vector<8x128xf32>
      tpu.vector_store %arg6[%c0_11, %c0_12], %12 {strides = array<i32>} : memref<8x128xf32, #tpu.memory_space<vmem>>, vector<8x128xf32>,
    } else {
    }
    %c0 = arith.constant 0 : index
    %c0_1 = arith.constant 0 : index
    %3 = vector.load %arg6[%c0, %c0_1] : memref<8x128xf32, #tpu.memory_space<vmem>>, vector<8x128xf32>
    %c0_2 = arith.constant 0 : index
    %c0_3 = arith.constant 0 : index
    %4 = vector.load %arg3[%c0_2, %c0_3] : memref<8x128xbf16, #tpu.memory_space<vmem>>, vector<8x128xbf16>
    %c0_4 = arith.constant 0 : index
    %c0_5 = arith.constant 0 : index
    %5 = vector.load %arg4[%c0_4, %c0_5] : memref<128x128xbf16, #tpu.memory_space<vmem>>, vector<128x128xbf16>
    %cst = arith.constant dense<0.000000e+00> : vector<8x128xf32>
    %6 = tpu.matmul %4, %5, %cst {dimension_numbers = #tpu.dot_dimension_numbers<[1], [0], [0], [1], [0, 0, 1, 1], [], []>} : vector<8x128xbf16>, vector<128x128xbf16>, vector<8x128xf32> -> vector<8x128xf32>
    %7 = arith.addf %3, %6 : vector<8x128xf32>
    %c0_6 = arith.constant 0 : index
    %c0_7 = arith.constant 0 : index
    %8 = vector.load %arg6[%c0_6, %c0_7] : memref<8x128xf32, #tpu.memory_space<vmem>>, vector<8x128xf32>
    tpu.vector_store %arg6[%c0_6, %c0_7], %7 {strides = array<i32>} : memref<8x128xf32, #tpu.memory_space<vmem>>, vector<8x128xf32>,
    %c0_i32_8 = arith.constant 0 : i32
    %9 = arith.cmpi eq, %arg2, %c0_i32_8 : i32
    %10 = arith.extui %9 : i1 to i32
    %c0_i32_9 = arith.constant 0 : i32
    %11 = arith.cmpi ne, %10, %c0_i32_9 : i32
    scf.if %11 {
      %c0_10 = arith.constant 0 : index
      %c0_11 = arith.constant 0 : index
      %12 = vector.load %arg6[%c0_10, %c0_11] : memref<8x128xf32, #tpu.memory_space<vmem>>, vector<8x128xf32>
      %c0_12 = arith.constant 0 : index
      %c0_13 = arith.constant 0 : index
      %13 = vector.load %arg5[%c0_12, %c0_13] : memref<8x128xf32, #tpu.memory_space<vmem>>, vector<8x128xf32>
      tpu.vector_store %arg5[%c0_12, %c0_13], %12 {strides = array<i32>} : memref<8x128xf32, #tpu.memory_space<vmem>>, vector<8x128xf32>,
    } else {
    }
    return
  }
  func.func @transform_0(%arg0: i32, %arg1: i32, %arg2: i32) -> (i32, i32) {
    %c0_i32 = arith.constant 0 : i32
    return %arg0, %arg2 : i32, i32
  }
  func.func @transform_1(%arg0: i32, %arg1: i32, %arg2: i32) -> (i32, i32) {
    %c0_i32 = arith.constant 0 : i32
    return %arg2, %arg1 : i32, i32
  }
  func.func @transform_2(%arg0: i32, %arg1: i32, %arg2: i32) -> (i32, i32) {
    %c0_i32 = arith.constant 0 : i32
    return %arg0, %arg1 : i32, i32
  }
}

module attributes {stable_mosaic.version = 11 : i64} {
  func.func @kernel(%arg0: i32, %arg1: memref<8x128xf32, #tpu.memory_space<vmem>>, %arg2: memref<1x128xf32, #tpu.memory_space<vmem>>, %arg3: memref<1x128xf32, #tpu.memory_space<vmem>>, %arg4: memref<8x128xf32, #tpu.memory_space<vmem>>) attributes {dimension_semantics = [#tpu.dimension_semantics<parallel>], iteration_bounds = array<i64: 1>, scalar_prefetch = 0 : i64, scratch_operands = 0 : i64, tpu.core_type = #tpu.core_type<tc>, window_params = [{transform_indices = @transform_0, window_bounds = array<i64: 8, 128>}, {pipeline_mode = #tpu.pipeline_mode<synchronous>, transform_indices = @transform_1, window_bounds = array<i64: 1, 128>}, {pipeline_mode = #tpu.pipeline_mode<synchronous>, transform_indices = @transform_2, window_bounds = array<i64: 1, 128>}, {transform_indices = @transform_3, window_bounds = array<i64: 8, 128>}]} {
    %c0 = arith.constant 0 : index
    %c0_0 = arith.constant 0 : index
    %0 = vector.load %arg1[%c0, %c0_0] : memref<8x128xf32, #tpu.memory_space<vmem>>, vector<8x128xf32>
    %c0_1 = arith.constant 0 : index
    %c0_2 = arith.constant 0 : index
    %1 = vector.load %arg2[%c0_1, %c0_2] : memref<1x128xf32, #tpu.memory_space<vmem>>, vector<1x128xf32>
    %2 = vector.broadcast %1 : vector<1x128xf32> to vector<8x128xf32>
    %3 = arith.mulf %0, %2 : vector<8x128xf32>
    %c0_3 = arith.constant 0 : index
    %c0_4 = arith.constant 0 : index
    %4 = vector.load %arg3[%c0_3, %c0_4] : memref<1x128xf32, #tpu.memory_space<vmem>>, vector<1x128xf32>
    %5 = vector.broadcast %4 : vector<1x128xf32> to vector<8x128xf32>
    %6 = arith.addf %3, %5 : vector<8x128xf32>
    %c0_5 = arith.constant 0 : index
    %c0_6 = arith.constant 0 : index
    %7 = vector.load %arg4[%c0_5, %c0_6] : memref<8x128xf32, #tpu.memory_space<vmem>>, vector<8x128xf32>
    tpu.vector_store %arg4[%c0_5, %c0_6], %6 {strides = array<i32>} : memref<8x128xf32, #tpu.memory_space<vmem>>, vector<8x128xf32>,
    return
  }
  func.func @transform_0(%arg0: i32) -> (i32, i32) {
    %c0_i32 = arith.constant 0 : i32
    %c0_i32_0 = arith.constant 0 : i32
    return %arg0, %c0_i32 : i32, i32
  }
  func.func @transform_1(%arg0: i32) -> (i32, i32) {
    %c0_i32 = arith.constant 0 : i32
    %c0_i32_0 = arith.constant 0 : i32
    %c0_i32_1 = arith.constant 0 : i32
    return %c0_i32, %c0_i32_0 : i32, i32
  }
  func.func @transform_2(%arg0: i32) -> (i32, i32) {
    %c0_i32 = arith.constant 0 : i32
    %c0_i32_0 = arith.constant 0 : i32
    %c0_i32_1 = arith.constant 0 : i32
    return %c0_i32, %c0_i32_0 : i32, i32
  }
  func.func @transform_3(%arg0: i32) -> (i32, i32) {
    %c0_i32 = arith.constant 0 : i32
    %c0_i32_0 = arith.constant 0 : i32
    return %arg0, %c0_i32 : i32, i32
  }
}

module attributes {stable_mosaic.version = 11 : i64} {
  func.func @kernel(%arg0: i32, %arg1: i32, %arg2: i32, %arg3: memref<8x128xbf16, #tpu.memory_space<vmem>>, %arg4: memref<128x128xbf16, #tpu.memory_space<vmem>>, %arg5: memref<8x128xf32, #tpu.memory_space<vmem>>, %arg6: memref<8x128xf32, #tpu.memory_space<vmem>>) attributes {dimension_semantics = [#tpu.dimension_semantics<parallel>, #tpu.dimension_semantics<parallel>, #tpu.dimension_semantics<arbitrary>], iteration_bounds = array<i64: 1, 1, 5>, scalar_prefetch = 0 : i64, scratch_operands = 1 : i64, tpu.core_type = #tpu.core_type<tc>, window_params = [{transform_indices = @transform_0, window_bounds = array<i64: 8, 128>}, {transform_indices = @transform_1, window_bounds = array<i64: 128, 128>}, {transform_indices = @transform_2, window_bounds = array<i64: 8, 128>}]} {
    %c0_i32 = arith.constant 0 : i32
    %0 = arith.cmpi eq, %arg2, %c0_i32 : i32
    %1 = arith.extui %0 : i1 to i32
    %c0_i32_0 = arith.constant 0 : i32
    %2 = arith.cmpi ne, %1, %c0_i32_0 : i32
    scf.if %2 {
      %cst_9 = arith.constant 0.000000e+00 : f32
      %12 = vector.broadcast %cst_9 : f32 to vector<8x128xf32>
      %c0_10 = arith.constant 0 : index
      %c0_11 = arith.constant 0 : index
      %13 = vector.load %arg6[%c0_10, %c0_11] : memref<8x128xf32, #tpu.memory_space<vmem>>, vector<8x128xf32>
      tpu.vector_store %arg6[%c0_10, %c0_11], %12 {strides = array<i32>} : memref<8x128xf32, #tpu.memory_space<vmem>>, vector<8x128xf32>,
    } else {
    }
    %c0 = arith.constant 0 : index
    %c0_1 = arith.constant 0 : index
    %3 = vector.load %arg6[%c0, %c0_1] : memref<8x128xf32, #tpu.memory_space<vmem>>, vector<8x128xf32>
    %c0_2 = arith.constant 0 : index
    %c0_3 = arith.constant 0 : index
    %4 = vector.load %arg3[%c0_2, %c0_3] : memref<8x128xbf16, #tpu.memory_space<vmem>>, vector<8x128xbf16>
    %c0_4 = arith.constant 0 : index
    %c0_5 = arith.constant 0 : index
    %5 = vector.load %arg4[%c0_4, %c0_5] : memref<128x128xbf16, #tpu.memory_space<vmem>>, vector<128x128xbf16>
    %cst = arith.constant dense<0.000000e+00> : vector<8x128xf32>
    %6 = tpu.matmul %4, %5, %cst {dimension_numbers = #tpu.dot_dimension_numbers<[1], [0], [0], [1], [0, 0, 1, 1], [], []>} : vector<8x128xbf16>, vector<128x128xbf16>, vector<8x128xf32> -> vector<8x128xf32>
    %7 = arith.addf %3, %6 : vector<8x128xf32>
    %c0_6 = arith.constant 0 : index
    %c0_7 = arith.constant 0 : index
    %8 = vector.load %arg6[%c0_6, %c0_7] : memref<8x128xf32, #tpu.memory_space<vmem>>, vector<8x128xf32>
    tpu.vector_store %arg6[%c0_6, %c0_7], %7 {strides = array<i32>} : memref<8x128xf32, #tpu.memory_space<vmem>>, vector<8x128xf32>,
    %c4_i32 = arith.constant 4 : i32
    %9 = arith.cmpi eq, %arg2, %c4_i32 : i32
    %10 = arith.extui %9 : i1 to i32
    %c0_i32_8 = arith.constant 0 : i32
    %11 = arith.cmpi ne, %10, %c0_i32_8 : i32
    scf.if %11 {
      %c0_9 = arith.constant 0 : index
      %c0_10 = arith.constant 0 : index
      %12 = vector.load %arg6[%c0_9, %c0_10] : memref<8x128xf32, #tpu.memory_space<vmem>>, vector<8x128xf32>
      %c0_11 = arith.constant 0 : index
      %c0_12 = arith.constant 0 : index
      %13 = vector.load %arg5[%c0_11, %c0_12] : memref<8x128xf32, #tpu.memory_space<vmem>>, vector<8x128xf32>
      tpu.vector_store %arg5[%c0_11, %c0_12], %12 {strides = array<i32>} : memref<8x128xf32, #tpu.memory_space<vmem>>, vector<8x128xf32>,
    } else {
    }
    return
  }
  func.func @transform_0(%arg0: i32, %arg1: i32, %arg2: i32) -> (i32, i32) {
    %c0_i32 = arith.constant 0 : i32
    return %arg0, %arg2 : i32, i32
  }
  func.func @transform_1(%arg0: i32, %arg1: i32, %arg2: i32) -> (i32, i32) {
    %c0_i32 = arith.constant 0 : i32
    return %arg2, %arg1 : i32, i32
  }
  func.func @transform_2(%arg0: i32, %arg1: i32, %arg2: i32) -> (i32, i32) {
    %c0_i32 = arith.constant 0 : i32
    return %arg0, %arg1 : i32, i32
  }
}

module attributes {stable_mosaic.version = 11 : i64} {
  func.func @kernel(%arg0: i32, %arg1: memref<8x128xf32, #tpu.memory_space<vmem>>, %arg2: memref<1x128xf32, #tpu.memory_space<vmem>>, %arg3: memref<1x128xf32, #tpu.memory_space<vmem>>, %arg4: memref<8x128xf32, #tpu.memory_space<vmem>>) attributes {dimension_semantics = [#tpu.dimension_semantics<parallel>], iteration_bounds = array<i64: 1>, scalar_prefetch = 0 : i64, scratch_operands = 0 : i64, tpu.core_type = #tpu.core_type<tc>, window_params = [{transform_indices = @transform_0, window_bounds = array<i64: 8, 128>}, {pipeline_mode = #tpu.pipeline_mode<synchronous>, transform_indices = @transform_1, window_bounds = array<i64: 1, 128>}, {pipeline_mode = #tpu.pipeline_mode<synchronous>, transform_indices = @transform_2, window_bounds = array<i64: 1, 128>}, {transform_indices = @transform_3, window_bounds = array<i64: 8, 128>}]} {
    %c0 = arith.constant 0 : index
    %c0_0 = arith.constant 0 : index
    %0 = vector.load %arg1[%c0, %c0_0] : memref<8x128xf32, #tpu.memory_space<vmem>>, vector<8x128xf32>
    %c0_1 = arith.constant 0 : index
    %c0_2 = arith.constant 0 : index
    %1 = vector.load %arg2[%c0_1, %c0_2] : memref<1x128xf32, #tpu.memory_space<vmem>>, vector<1x128xf32>
    %2 = vector.broadcast %1 : vector<1x128xf32> to vector<8x128xf32>
    %3 = arith.mulf %0, %2 : vector<8x128xf32>
    %c0_3 = arith.constant 0 : index
    %c0_4 = arith.constant 0 : index
    %4 = vector.load %arg3[%c0_3, %c0_4] : memref<1x128xf32, #tpu.memory_space<vmem>>, vector<1x128xf32>
    %5 = vector.broadcast %4 : vector<1x128xf32> to vector<8x128xf32>
    %6 = arith.addf %3, %5 : vector<8x128xf32>
    %cst = arith.constant 0.000000e+00 : f32
    %7 = vector.broadcast %cst : f32 to vector<8x128xf32>
    %8 = arith.maximumf %6, %7 : vector<8x128xf32>
    %c0_5 = arith.constant 0 : index
    %c0_6 = arith.constant 0 : index
    %9 = vector.load %arg4[%c0_5, %c0_6] : memref<8x128xf32, #tpu.memory_space<vmem>>, vector<8x128xf32>
    tpu.vector_store %arg4[%c0_5, %c0_6], %8 {strides = array<i32>} : memref<8x128xf32, #tpu.memory_space<vmem>>, vector<8x128xf32>,
    return
  }
  func.func @transform_0(%arg0: i32) -> (i32, i32) {
    %c0_i32 = arith.constant 0 : i32
    %c0_i32_0 = arith.constant 0 : i32
    return %arg0, %c0_i32 : i32, i32
  }
  func.func @transform_1(%arg0: i32) -> (i32, i32) {
    %c0_i32 = arith.constant 0 : i32
    %c0_i32_0 = arith.constant 0 : i32
    %c0_i32_1 = arith.constant 0 : i32
    return %c0_i32, %c0_i32_0 : i32, i32
  }
  func.func @transform_2(%arg0: i32) -> (i32, i32) {
    %c0_i32 = arith.constant 0 : i32
    %c0_i32_0 = arith.constant 0 : i32
    %c0_i32_1 = arith.constant 0 : i32
    return %c0_i32, %c0_i32_0 : i32, i32
  }
  func.func @transform_3(%arg0: i32) -> (i32, i32) {
    %c0_i32 = arith.constant 0 : i32
    %c0_i32_0 = arith.constant 0 : i32
    return %arg0, %c0_i32 : i32, i32
  }
}

module attributes {stable_mosaic.version = 11 : i64} {
  func.func @kernel(%arg0: i32, %arg1: memref<8x128xf32, #tpu.memory_space<vmem>>, %arg2: memref<1x128xf32, #tpu.memory_space<vmem>>, %arg3: memref<1x128xf32, #tpu.memory_space<vmem>>, %arg4: memref<8x128xf32, #tpu.memory_space<vmem>>, %arg5: memref<8x128xf32, #tpu.memory_space<vmem>>) attributes {dimension_semantics = [#tpu.dimension_semantics<parallel>], iteration_bounds = array<i64: 1>, scalar_prefetch = 0 : i64, scratch_operands = 0 : i64, tpu.core_type = #tpu.core_type<tc>, window_params = [{transform_indices = @transform_0, window_bounds = array<i64: 8, 128>}, {pipeline_mode = #tpu.pipeline_mode<synchronous>, transform_indices = @transform_1, window_bounds = array<i64: 1, 128>}, {pipeline_mode = #tpu.pipeline_mode<synchronous>, transform_indices = @transform_2, window_bounds = array<i64: 1, 128>}, {transform_indices = @transform_3, window_bounds = array<i64: 8, 128>}, {transform_indices = @transform_4, window_bounds = array<i64: 8, 128>}]} {
    %c0 = arith.constant 0 : index
    %c0_0 = arith.constant 0 : index
    %0 = vector.load %arg1[%c0, %c0_0] : memref<8x128xf32, #tpu.memory_space<vmem>>, vector<8x128xf32>
    %c0_1 = arith.constant 0 : index
    %c0_2 = arith.constant 0 : index
    %1 = vector.load %arg2[%c0_1, %c0_2] : memref<1x128xf32, #tpu.memory_space<vmem>>, vector<1x128xf32>
    %2 = vector.broadcast %1 : vector<1x128xf32> to vector<8x128xf32>
    %3 = arith.mulf %0, %2 : vector<8x128xf32>
    %c0_3 = arith.constant 0 : index
    %c0_4 = arith.constant 0 : index
    %4 = vector.load %arg3[%c0_3, %c0_4] : memref<1x128xf32, #tpu.memory_space<vmem>>, vector<1x128xf32>
    %5 = vector.broadcast %4 : vector<1x128xf32> to vector<8x128xf32>
    %6 = arith.addf %3, %5 : vector<8x128xf32>
    %c0_5 = arith.constant 0 : index
    %c0_6 = arith.constant 0 : index
    %7 = vector.load %arg4[%c0_5, %c0_6] : memref<8x128xf32, #tpu.memory_space<vmem>>, vector<8x128xf32>
    %8 = arith.addf %6, %7 : vector<8x128xf32>
    %cst = arith.constant 0.000000e+00 : f32
    %9 = vector.broadcast %cst : f32 to vector<8x128xf32>
    %10 = arith.maximumf %8, %9 : vector<8x128xf32>
    %c0_7 = arith.constant 0 : index
    %c0_8 = arith.constant 0 : index
    %11 = vector.load %arg5[%c0_7, %c0_8] : memref<8x128xf32, #tpu.memory_space<vmem>>, vector<8x128xf32>
    tpu.vector_store %arg5[%c0_7, %c0_8], %10 {strides = array<i32>} : memref<8x128xf32, #tpu.memory_space<vmem>>, vector<8x128xf32>,
    return
  }
  func.func @transform_0(%arg0: i32) -> (i32, i32) {
    %c0_i32 = arith.constant 0 : i32
    %c0_i32_0 = arith.constant 0 : i32
    return %arg0, %c0_i32 : i32, i32
  }
  func.func @transform_1(%arg0: i32) -> (i32, i32) {
    %c0_i32 = arith.constant 0 : i32
    %c0_i32_0 = arith.constant 0 : i32
    %c0_i32_1 = arith.constant 0 : i32
    return %c0_i32, %c0_i32_0 : i32, i32
  }
  func.func @transform_2(%arg0: i32) -> (i32, i32) {
    %c0_i32 = arith.constant 0 : i32
    %c0_i32_0 = arith.constant 0 : i32
    %c0_i32_1 = arith.constant 0 : i32
    return %c0_i32, %c0_i32_0 : i32, i32
  }
  func.func @transform_3(%arg0: i32) -> (i32, i32) {
    %c0_i32 = arith.constant 0 : i32
    %c0_i32_0 = arith.constant 0 : i32
    return %arg0, %c0_i32 : i32, i32
  }
  func.func @transform_4(%arg0: i32) -> (i32, i32) {
    %c0_i32 = arith.constant 0 : i32
    %c0_i32_0 = arith.constant 0 : i32
    return %arg0, %c0_i32 : i32, i32
  }
}

module attributes {stable_mosaic.version = 11 : i64} {
  func.func @kernel(%arg0: i32, %arg1: i32, %arg2: i32, %arg3: memref<2x128xbf16, #tpu.memory_space<vmem>>, %arg4: memref<128x256xbf16, #tpu.memory_space<vmem>>, %arg5: memref<2x256xf32, #tpu.memory_space<vmem>>, %arg6: memref<2x256xf32, #tpu.memory_space<vmem>>) attributes {dimension_semantics = [#tpu.dimension_semantics<parallel>, #tpu.dimension_semantics<parallel>, #tpu.dimension_semantics<arbitrary>], iteration_bounds = array<i64: 1, 1, 1>, scalar_prefetch = 0 : i64, scratch_operands = 1 : i64, tpu.core_type = #tpu.core_type<tc>, window_params = [{transform_indices = @transform_0, window_bounds = array<i64: 2, 128>}, {transform_indices = @transform_1, window_bounds = array<i64: 128, 256>}, {transform_indices = @transform_2, window_bounds = array<i64: 2, 256>}]} {
    %c0_i32 = arith.constant 0 : i32
    %0 = arith.cmpi eq, %arg2, %c0_i32 : i32
    %1 = arith.extui %0 : i1 to i32
    %c0_i32_0 = arith.constant 0 : i32
    %2 = arith.cmpi ne, %1, %c0_i32_0 : i32
    scf.if %2 {
      %cst_10 = arith.constant 0.000000e+00 : f32
      %12 = vector.broadcast %cst_10 : f32 to vector<2x256xf32>
      %c0_11 = arith.constant 0 : index
      %c0_12 = arith.constant 0 : index
      %13 = vector.load %arg6[%c0_11, %c0_12] : memref<2x256xf32, #tpu.memory_space<vmem>>, vector<2x256xf32>
      tpu.vector_store %arg6[%c0_11, %c0_12], %12 {strides = array<i32>} : memref<2x256xf32, #tpu.memory_space<vmem>>, vector<2x256xf32>,
    } else {
    }
    %c0 = arith.constant 0 : index
    %c0_1 = arith.constant 0 : index
    %3 = vector.load %arg6[%c0, %c0_1] : memref<2x256xf32, #tpu.memory_space<vmem>>, vector<2x256xf32>
    %c0_2 = arith.constant 0 : index
    %c0_3 = arith.constant 0 : index
    %4 = vector.load %arg3[%c0_2, %c0_3] : memref<2x128xbf16, #tpu.memory_space<vmem>>, vector<2x128xbf16>
    %c0_4 = arith.constant 0 : index
    %c0_5 = arith.constant 0 : index
    %5 = vector.load %arg4[%c0_4, %c0_5] : memref<128x256xbf16, #tpu.memory_space<vmem>>, vector<128x256xbf16>
    %cst = arith.constant dense<0.000000e+00> : vector<2x256xf32>
    %6 = tpu.matmul %4, %5, %cst {dimension_numbers = #tpu.dot_dimension_numbers<[1], [0], [0], [1], [0, 0, 1, 1], [], []>} : vector<2x128xbf16>, vector<128x256xbf16>, vector<2x256xf32> -> vector<2x256xf32>
    %7 = arith.addf %3, %6 : vector<2x256xf32>
    %c0_6 = arith.constant 0 : index
    %c0_7 = arith.constant 0 : index
    %8 = vector.load %arg6[%c0_6, %c0_7] : memref<2x256xf32, #tpu.memory_space<vmem>>, vector<2x256xf32>
    tpu.vector_store %arg6[%c0_6, %c0_7], %7 {strides = array<i32>} : memref<2x256xf32, #tpu.memory_space<vmem>>, vector<2x256xf32>,
    %c0_i32_8 = arith.constant 0 : i32
    %9 = arith.cmpi eq, %arg2, %c0_i32_8 : i32
    %10 = arith.extui %9 : i1 to i32
    %c0_i32_9 = arith.constant 0 : i32
    %11 = arith.cmpi ne, %10, %c0_i32_9 : i32
    scf.if %11 {
      %c0_10 = arith.constant 0 : index
      %c0_11 = arith.constant 0 : index
      %12 = vector.load %arg6[%c0_10, %c0_11] : memref<2x256xf32, #tpu.memory_space<vmem>>, vector<2x256xf32>
      %c0_12 = arith.constant 0 : index
      %c0_13 = arith.constant 0 : index
      %13 = vector.load %arg5[%c0_12, %c0_13] : memref<2x256xf32, #tpu.memory_space<vmem>>, vector<2x256xf32>
      tpu.vector_store %arg5[%c0_12, %c0_13], %12 {strides = array<i32>} : memref<2x256xf32, #tpu.memory_space<vmem>>, vector<2x256xf32>,
    } else {
    }
    return
  }
  func.func @transform_0(%arg0: i32, %arg1: i32, %arg2: i32) -> (i32, i32) {
    %c0_i32 = arith.constant 0 : i32
    return %arg0, %arg2 : i32, i32
  }
  func.func @transform_1(%arg0: i32, %arg1: i32, %arg2: i32) -> (i32, i32) {
    %c0_i32 = arith.constant 0 : i32
    return %arg2, %arg1 : i32, i32
  }
  func.func @transform_2(%arg0: i32, %arg1: i32, %arg2: i32) -> (i32, i32) {
    %c0_i32 = arith.constant 0 : i32
    return %arg0, %arg1 : i32, i32
  }
}

module attributes {stable_mosaic.version = 11 : i64} {
  func.func @kernel(%arg0: i32, %arg1: i32, %arg2: i32, %arg3: memref<8x128xbf16, #tpu.memory_space<vmem>>, %arg4: memref<128x128xbf16, #tpu.memory_space<vmem>>, %arg5: memref<8x128xf32, #tpu.memory_space<vmem>>, %arg6: memref<8x128xf32, #tpu.memory_space<vmem>>) attributes {dimension_semantics = [#tpu.dimension_semantics<parallel>, #tpu.dimension_semantics<parallel>, #tpu.dimension_semantics<arbitrary>], iteration_bounds = array<i64: 1, 1, 9>, scalar_prefetch = 0 : i64, scratch_operands = 1 : i64, tpu.core_type = #tpu.core_type<tc>, window_params = [{transform_indices = @transform_0, window_bounds = array<i64: 8, 128>}, {transform_indices = @transform_1, window_bounds = array<i64: 128, 128>}, {transform_indices = @transform_2, window_bounds = array<i64: 8, 128>}]} {
    %c0_i32 = arith.constant 0 : i32
    %0 = arith.cmpi eq, %arg2, %c0_i32 : i32
    %1 = arith.extui %0 : i1 to i32
    %c0_i32_0 = arith.constant 0 : i32
    %2 = arith.cmpi ne, %1, %c0_i32_0 : i32
    scf.if %2 {
      %cst_9 = arith.constant 0.000000e+00 : f32
      %12 = vector.broadcast %cst_9 : f32 to vector<8x128xf32>
      %c0_10 = arith.constant 0 : index
      %c0_11 = arith.constant 0 : index
      %13 = vector.load %arg6[%c0_10, %c0_11] : memref<8x128xf32, #tpu.memory_space<vmem>>, vector<8x128xf32>
      tpu.vector_store %arg6[%c0_10, %c0_11], %12 {strides = array<i32>} : memref<8x128xf32, #tpu.memory_space<vmem>>, vector<8x128xf32>,
    } else {
    }
    %c0 = arith.constant 0 : index
    %c0_1 = arith.constant 0 : index
    %3 = vector.load %arg6[%c0, %c0_1] : memref<8x128xf32, #tpu.memory_space<vmem>>, vector<8x128xf32>
    %c0_2 = arith.constant 0 : index
    %c0_3 = arith.constant 0 : index
    %4 = vector.load %arg3[%c0_2, %c0_3] : memref<8x128xbf16, #tpu.memory_space<vmem>>, vector<8x128xbf16>
    %c0_4 = arith.constant 0 : index
    %c0_5 = arith.constant 0 : index
    %5 = vector.load %arg4[%c0_4, %c0_5] : memref<128x128xbf16, #tpu.memory_space<vmem>>, vector<128x128xbf16>
    %cst = arith.constant dense<0.000000e+00> : vector<8x128xf32>
    %6 = tpu.matmul %4, %5, %cst {dimension_numbers = #tpu.dot_dimension_numbers<[1], [0], [0], [1], [0, 0, 1, 1], [], []>} : vector<8x128xbf16>, vector<128x128xbf16>, vector<8x128xf32> -> vector<8x128xf32>
    %7 = arith.addf %3, %6 : vector<8x128xf32>
    %c0_6 = arith.constant 0 : index
    %c0_7 = arith.constant 0 : index
    %8 = vector.load %arg6[%c0_6, %c0_7] : memref<8x128xf32, #tpu.memory_space<vmem>>, vector<8x128xf32>
    tpu.vector_store %arg6[%c0_6, %c0_7], %7 {strides = array<i32>} : memref<8x128xf32, #tpu.memory_space<vmem>>, vector<8x128xf32>,
    %c8_i32 = arith.constant 8 : i32
    %9 = arith.cmpi eq, %arg2, %c8_i32 : i32
    %10 = arith.extui %9 : i1 to i32
    %c0_i32_8 = arith.constant 0 : i32
    %11 = arith.cmpi ne, %10, %c0_i32_8 : i32
    scf.if %11 {
      %c0_9 = arith.constant 0 : index
      %c0_10 = arith.constant 0 : index
      %12 = vector.load %arg6[%c0_9, %c0_10] : memref<8x128xf32, #tpu.memory_space<vmem>>, vector<8x128xf32>
      %c0_11 = arith.constant 0 : index
      %c0_12 = arith.constant 0 : index
      %13 = vector.load %arg5[%c0_11, %c0_12] : memref<8x128xf32, #tpu.memory_space<vmem>>, vector<8x128xf32>
      tpu.vector_store %arg5[%c0_11, %c0_12], %12 {strides = array<i32>} : memref<8x128xf32, #tpu.memory_space<vmem>>, vector<8x128xf32>,
    } else {
    }
    return
  }
  func.func @transform_0(%arg0: i32, %arg1: i32, %arg2: i32) -> (i32, i32) {
    %c0_i32 = arith.constant 0 : i32
    return %arg0, %arg2 : i32, i32
  }
  func.func @transform_1(%arg0: i32, %arg1: i32, %arg2: i32) -> (i32, i32) {
    %c0_i32 = arith.constant 0 : i32
    return %arg2, %arg1 : i32, i32
  }
  func.func @transform_2(%arg0: i32, %arg1: i32, %arg2: i32) -> (i32, i32) {
    %c0_i32 = arith.constant 0 : i32
    return %arg0, %arg1 : i32, i32
  }
}

module attributes {stable_mosaic.version = 11 : i64} {
  func.func @_stats_kernel(%arg0: i32, %arg1: memref<8x256xf32, #tpu.memory_space<vmem>>, %arg2: memref<1x256xf32, #tpu.memory_space<vmem>>, %arg3: memref<1x256xf32, #tpu.memory_space<vmem>>) attributes {dimension_semantics = [#tpu.dimension_semantics<arbitrary>], iteration_bounds = array<i64: 1>, scalar_prefetch = 0 : i64, scratch_operands = 0 : i64, tpu.core_type = #tpu.core_type<tc>, window_params = [{transform_indices = @transform_0, window_bounds = array<i64: 8, 256>}, {pipeline_mode = #tpu.pipeline_mode<synchronous>, transform_indices = @transform_1, window_bounds = array<i64: 1, 256>}, {pipeline_mode = #tpu.pipeline_mode<synchronous>, transform_indices = @transform_2, window_bounds = array<i64: 1, 256>}]} {
    %c0_i32 = arith.constant 0 : i32
    %0 = arith.cmpi eq, %arg0, %c0_i32 : i32
    %1 = arith.extui %0 : i1 to i32
    %c0_i32_0 = arith.constant 0 : i32
    %2 = arith.cmpi ne, %1, %c0_i32_0 : i32
    scf.if %2 {
      %cst_11 = arith.constant 0.000000e+00 : f32
      %15 = vector.broadcast %cst_11 : f32 to vector<1x256xf32>
      %c0_12 = arith.constant 0 : index
      %c0_13 = arith.constant 0 : index
      %16 = vector.load %arg2[%c0_12, %c0_13] : memref<1x256xf32, #tpu.memory_space<vmem>>, vector<1x256xf32>
      tpu.vector_store %arg2[%c0_12, %c0_13], %15 {strides = array<i32>} : memref<1x256xf32, #tpu.memory_space<vmem>>, vector<1x256xf32>,
      %cst_14 = arith.constant 0.000000e+00 : f32
      %17 = vector.broadcast %cst_14 : f32 to vector<1x256xf32>
      %c0_15 = arith.constant 0 : index
      %c0_16 = arith.constant 0 : index
      %18 = vector.load %arg3[%c0_15, %c0_16] : memref<1x256xf32, #tpu.memory_space<vmem>>, vector<1x256xf32>
      tpu.vector_store %arg3[%c0_15, %c0_16], %17 {strides = array<i32>} : memref<1x256xf32, #tpu.memory_space<vmem>>, vector<1x256xf32>,
    } else {
    }
    %c0 = arith.constant 0 : index
    %c0_1 = arith.constant 0 : index
    %3 = vector.load %arg1[%c0, %c0_1] : memref<8x256xf32, #tpu.memory_space<vmem>>, vector<8x256xf32>
    %c0_2 = arith.constant 0 : index
    %c0_3 = arith.constant 0 : index
    %4 = vector.load %arg2[%c0_2, %c0_3] : memref<1x256xf32, #tpu.memory_space<vmem>>, vector<1x256xf32>
    %cst = arith.constant dense<0.000000e+00> : vector<256xf32>
    %5 = vector.multi_reduction <add>, %3, %cst [0] : vector<8x256xf32> to vector<256xf32>
    %6 = vector.shape_cast %5 : vector<256xf32> to vector<1x256xf32>
    %7 = arith.addf %4, %6 : vector<1x256xf32>
    %c0_4 = arith.constant 0 : index
    %c0_5 = arith.constant 0 : index
    %8 = vector.load %arg2[%c0_4, %c0_5] : memref<1x256xf32, #tpu.memory_space<vmem>>, vector<1x256xf32>
    tpu.vector_store %arg2[%c0_4, %c0_5], %7 {strides = array<i32>} : memref<1x256xf32, #tpu.memory_space<vmem>>, vector<1x256xf32>,
    %c0_6 = arith.constant 0 : index
    %c0_7 = arith.constant 0 : index
    %9 = vector.load %arg3[%c0_6, %c0_7] : memref<1x256xf32, #tpu.memory_space<vmem>>, vector<1x256xf32>
    %10 = arith.mulf %3, %3 : vector<8x256xf32>
    %cst_8 = arith.constant dense<0.000000e+00> : vector<256xf32>
    %11 = vector.multi_reduction <add>, %10, %cst_8 [0] : vector<8x256xf32> to vector<256xf32>
    %12 = vector.shape_cast %11 : vector<256xf32> to vector<1x256xf32>
    %13 = arith.addf %9, %12 : vector<1x256xf32>
    %c0_9 = arith.constant 0 : index
    %c0_10 = arith.constant 0 : index
    %14 = vector.load %arg3[%c0_9, %c0_10] : memref<1x256xf32, #tpu.memory_space<vmem>>, vector<1x256xf32>
    tpu.vector_store %arg3[%c0_9, %c0_10], %13 {strides = array<i32>} : memref<1x256xf32, #tpu.memory_space<vmem>>, vector<1x256xf32>,
    return
  }
  func.func @transform_0(%arg0: i32) -> (i32, i32) {
    %c0_i32 = arith.constant 0 : i32
    %c0_i32_0 = arith.constant 0 : i32
    return %arg0, %c0_i32 : i32, i32
  }
  func.func @transform_1(%arg0: i32) -> (i32, i32) {
    %c0_i32 = arith.constant 0 : i32
    %c0_i32_0 = arith.constant 0 : i32
    %c0_i32_1 = arith.constant 0 : i32
    return %c0_i32, %c0_i32_0 : i32, i32
  }
  func.func @transform_2(%arg0: i32) -> (i32, i32) {
    %c0_i32 = arith.constant 0 : i32
    %c0_i32_0 = arith.constant 0 : i32
    %c0_i32_1 = arith.constant 0 : i32
    return %c0_i32, %c0_i32_0 : i32, i32
  }
}

module attributes {stable_mosaic.version = 11 : i64} {
  func.func @kernel(%arg0: i32, %arg1: memref<2x256xf32, #tpu.memory_space<vmem>>, %arg2: memref<1x256xf32, #tpu.memory_space<vmem>>, %arg3: memref<1x256xf32, #tpu.memory_space<vmem>>, %arg4: memref<2x256xf32, #tpu.memory_space<vmem>>) attributes {dimension_semantics = [#tpu.dimension_semantics<parallel>], iteration_bounds = array<i64: 1>, scalar_prefetch = 0 : i64, scratch_operands = 0 : i64, tpu.core_type = #tpu.core_type<tc>, window_params = [{transform_indices = @transform_0, window_bounds = array<i64: 2, 256>}, {pipeline_mode = #tpu.pipeline_mode<synchronous>, transform_indices = @transform_1, window_bounds = array<i64: 1, 256>}, {pipeline_mode = #tpu.pipeline_mode<synchronous>, transform_indices = @transform_2, window_bounds = array<i64: 1, 256>}, {transform_indices = @transform_3, window_bounds = array<i64: 2, 256>}]} {
    %c0 = arith.constant 0 : index
    %c0_0 = arith.constant 0 : index
    %0 = vector.load %arg1[%c0, %c0_0] : memref<2x256xf32, #tpu.memory_space<vmem>>, vector<2x256xf32>
    %c0_1 = arith.constant 0 : index
    %c0_2 = arith.constant 0 : index
    %1 = vector.load %arg2[%c0_1, %c0_2] : memref<1x256xf32, #tpu.memory_space<vmem>>, vector<1x256xf32>
    %2 = vector.broadcast %1 : vector<1x256xf32> to vector<2x256xf32>
    %3 = arith.mulf %0, %2 : vector<2x256xf32>
    %c0_3 = arith.constant 0 : index
    %c0_4 = arith.constant 0 : index
    %4 = vector.load %arg3[%c0_3, %c0_4] : memref<1x256xf32, #tpu.memory_space<vmem>>, vector<1x256xf32>
    %5 = vector.broadcast %4 : vector<1x256xf32> to vector<2x256xf32>
    %6 = arith.addf %3, %5 : vector<2x256xf32>
    %c0_5 = arith.constant 0 : index
    %c0_6 = arith.constant 0 : index
    %7 = vector.load %arg4[%c0_5, %c0_6] : memref<2x256xf32, #tpu.memory_space<vmem>>, vector<2x256xf32>
    tpu.vector_store %arg4[%c0_5, %c0_6], %6 {strides = array<i32>} : memref<2x256xf32, #tpu.memory_space<vmem>>, vector<2x256xf32>,
    return
  }
  func.func @transform_0(%arg0: i32) -> (i32, i32) {
    %c0_i32 = arith.constant 0 : i32
    %c0_i32_0 = arith.constant 0 : i32
    return %arg0, %c0_i32 : i32, i32
  }
  func.func @transform_1(%arg0: i32) -> (i32, i32) {
    %c0_i32 = arith.constant 0 : i32
    %c0_i32_0 = arith.constant 0 : i32
    %c0_i32_1 = arith.constant 0 : i32
    return %c0_i32, %c0_i32_0 : i32, i32
  }
  func.func @transform_2(%arg0: i32) -> (i32, i32) {
    %c0_i32 = arith.constant 0 : i32
    %c0_i32_0 = arith.constant 0 : i32
    %c0_i32_1 = arith.constant 0 : i32
    return %c0_i32, %c0_i32_0 : i32, i32
  }
  func.func @transform_3(%arg0: i32) -> (i32, i32) {
    %c0_i32 = arith.constant 0 : i32
    %c0_i32_0 = arith.constant 0 : i32
    return %arg0, %c0_i32 : i32, i32
  }
}

module attributes {stable_mosaic.version = 11 : i64} {
  func.func @kernel(%arg0: i32, %arg1: i32, %arg2: i32, %arg3: memref<2x256xbf16, #tpu.memory_space<vmem>>, %arg4: memref<256x256xbf16, #tpu.memory_space<vmem>>, %arg5: memref<2x256xf32, #tpu.memory_space<vmem>>, %arg6: memref<2x256xf32, #tpu.memory_space<vmem>>) attributes {dimension_semantics = [#tpu.dimension_semantics<parallel>, #tpu.dimension_semantics<parallel>, #tpu.dimension_semantics<arbitrary>], iteration_bounds = array<i64: 1, 1, 9>, scalar_prefetch = 0 : i64, scratch_operands = 1 : i64, tpu.core_type = #tpu.core_type<tc>, window_params = [{transform_indices = @transform_0, window_bounds = array<i64: 2, 256>}, {transform_indices = @transform_1, window_bounds = array<i64: 256, 256>}, {transform_indices = @transform_2, window_bounds = array<i64: 2, 256>}]} {
    %c0_i32 = arith.constant 0 : i32
    %0 = arith.cmpi eq, %arg2, %c0_i32 : i32
    %1 = arith.extui %0 : i1 to i32
    %c0_i32_0 = arith.constant 0 : i32
    %2 = arith.cmpi ne, %1, %c0_i32_0 : i32
    scf.if %2 {
      %cst_9 = arith.constant 0.000000e+00 : f32
      %12 = vector.broadcast %cst_9 : f32 to vector<2x256xf32>
      %c0_10 = arith.constant 0 : index
      %c0_11 = arith.constant 0 : index
      %13 = vector.load %arg6[%c0_10, %c0_11] : memref<2x256xf32, #tpu.memory_space<vmem>>, vector<2x256xf32>
      tpu.vector_store %arg6[%c0_10, %c0_11], %12 {strides = array<i32>} : memref<2x256xf32, #tpu.memory_space<vmem>>, vector<2x256xf32>,
    } else {
    }
    %c0 = arith.constant 0 : index
    %c0_1 = arith.constant 0 : index
    %3 = vector.load %arg6[%c0, %c0_1] : memref<2x256xf32, #tpu.memory_space<vmem>>, vector<2x256xf32>
    %c0_2 = arith.constant 0 : index
    %c0_3 = arith.constant 0 : index
    %4 = vector.load %arg3[%c0_2, %c0_3] : memref<2x256xbf16, #tpu.memory_space<vmem>>, vector<2x256xbf16>
    %c0_4 = arith.constant 0 : index
    %c0_5 = arith.constant 0 : index
    %5 = vector.load %arg4[%c0_4, %c0_5] : memref<256x256xbf16, #tpu.memory_space<vmem>>, vector<256x256xbf16>
    %cst = arith.constant dense<0.000000e+00> : vector<2x256xf32>
    %6 = tpu.matmul %4, %5, %cst {dimension_numbers = #tpu.dot_dimension_numbers<[1], [0], [0], [1], [0, 0, 1, 1], [], []>} : vector<2x256xbf16>, vector<256x256xbf16>, vector<2x256xf32> -> vector<2x256xf32>
    %7 = arith.addf %3, %6 : vector<2x256xf32>
    %c0_6 = arith.constant 0 : index
    %c0_7 = arith.constant 0 : index
    %8 = vector.load %arg6[%c0_6, %c0_7] : memref<2x256xf32, #tpu.memory_space<vmem>>, vector<2x256xf32>
    tpu.vector_store %arg6[%c0_6, %c0_7], %7 {strides = array<i32>} : memref<2x256xf32, #tpu.memory_space<vmem>>, vector<2x256xf32>,
    %c8_i32 = arith.constant 8 : i32
    %9 = arith.cmpi eq, %arg2, %c8_i32 : i32
    %10 = arith.extui %9 : i1 to i32
    %c0_i32_8 = arith.constant 0 : i32
    %11 = arith.cmpi ne, %10, %c0_i32_8 : i32
    scf.if %11 {
      %c0_9 = arith.constant 0 : index
      %c0_10 = arith.constant 0 : index
      %12 = vector.load %arg6[%c0_9, %c0_10] : memref<2x256xf32, #tpu.memory_space<vmem>>, vector<2x256xf32>
      %c0_11 = arith.constant 0 : index
      %c0_12 = arith.constant 0 : index
      %13 = vector.load %arg5[%c0_11, %c0_12] : memref<2x256xf32, #tpu.memory_space<vmem>>, vector<2x256xf32>
      tpu.vector_store %arg5[%c0_11, %c0_12], %12 {strides = array<i32>} : memref<2x256xf32, #tpu.memory_space<vmem>>, vector<2x256xf32>,
    } else {
    }
    return
  }
  func.func @transform_0(%arg0: i32, %arg1: i32, %arg2: i32) -> (i32, i32) {
    %c0_i32 = arith.constant 0 : i32
    return %arg0, %arg2 : i32, i32
  }
  func.func @transform_1(%arg0: i32, %arg1: i32, %arg2: i32) -> (i32, i32) {
    %c0_i32 = arith.constant 0 : i32
    return %arg2, %arg1 : i32, i32
  }
  func.func @transform_2(%arg0: i32, %arg1: i32, %arg2: i32) -> (i32, i32) {
    %c0_i32 = arith.constant 0 : i32
    return %arg0, %arg1 : i32, i32
  }
}

module attributes {stable_mosaic.version = 11 : i64} {
  func.func @kernel(%arg0: i32, %arg1: i32, %arg2: i32, %arg3: memref<2x128xbf16, #tpu.memory_space<vmem>>, %arg4: memref<128x256xbf16, #tpu.memory_space<vmem>>, %arg5: memref<2x256xf32, #tpu.memory_space<vmem>>, %arg6: memref<2x256xf32, #tpu.memory_space<vmem>>) attributes {dimension_semantics = [#tpu.dimension_semantics<parallel>, #tpu.dimension_semantics<parallel>, #tpu.dimension_semantics<arbitrary>], iteration_bounds = array<i64: 1, 1, 9>, scalar_prefetch = 0 : i64, scratch_operands = 1 : i64, tpu.core_type = #tpu.core_type<tc>, window_params = [{transform_indices = @transform_0, window_bounds = array<i64: 2, 128>}, {transform_indices = @transform_1, window_bounds = array<i64: 128, 256>}, {transform_indices = @transform_2, window_bounds = array<i64: 2, 256>}]} {
    %c0_i32 = arith.constant 0 : i32
    %0 = arith.cmpi eq, %arg2, %c0_i32 : i32
    %1 = arith.extui %0 : i1 to i32
    %c0_i32_0 = arith.constant 0 : i32
    %2 = arith.cmpi ne, %1, %c0_i32_0 : i32
    scf.if %2 {
      %cst_9 = arith.constant 0.000000e+00 : f32
      %12 = vector.broadcast %cst_9 : f32 to vector<2x256xf32>
      %c0_10 = arith.constant 0 : index
      %c0_11 = arith.constant 0 : index
      %13 = vector.load %arg6[%c0_10, %c0_11] : memref<2x256xf32, #tpu.memory_space<vmem>>, vector<2x256xf32>
      tpu.vector_store %arg6[%c0_10, %c0_11], %12 {strides = array<i32>} : memref<2x256xf32, #tpu.memory_space<vmem>>, vector<2x256xf32>,
    } else {
    }
    %c0 = arith.constant 0 : index
    %c0_1 = arith.constant 0 : index
    %3 = vector.load %arg6[%c0, %c0_1] : memref<2x256xf32, #tpu.memory_space<vmem>>, vector<2x256xf32>
    %c0_2 = arith.constant 0 : index
    %c0_3 = arith.constant 0 : index
    %4 = vector.load %arg3[%c0_2, %c0_3] : memref<2x128xbf16, #tpu.memory_space<vmem>>, vector<2x128xbf16>
    %c0_4 = arith.constant 0 : index
    %c0_5 = arith.constant 0 : index
    %5 = vector.load %arg4[%c0_4, %c0_5] : memref<128x256xbf16, #tpu.memory_space<vmem>>, vector<128x256xbf16>
    %cst = arith.constant dense<0.000000e+00> : vector<2x256xf32>
    %6 = tpu.matmul %4, %5, %cst {dimension_numbers = #tpu.dot_dimension_numbers<[1], [0], [0], [1], [0, 0, 1, 1], [], []>} : vector<2x128xbf16>, vector<128x256xbf16>, vector<2x256xf32> -> vector<2x256xf32>
    %7 = arith.addf %3, %6 : vector<2x256xf32>
    %c0_6 = arith.constant 0 : index
    %c0_7 = arith.constant 0 : index
    %8 = vector.load %arg6[%c0_6, %c0_7] : memref<2x256xf32, #tpu.memory_space<vmem>>, vector<2x256xf32>
    tpu.vector_store %arg6[%c0_6, %c0_7], %7 {strides = array<i32>} : memref<2x256xf32, #tpu.memory_space<vmem>>, vector<2x256xf32>,
    %c8_i32 = arith.constant 8 : i32
    %9 = arith.cmpi eq, %arg2, %c8_i32 : i32
    %10 = arith.extui %9 : i1 to i32
    %c0_i32_8 = arith.constant 0 : i32
    %11 = arith.cmpi ne, %10, %c0_i32_8 : i32
    scf.if %11 {
      %c0_9 = arith.constant 0 : index
      %c0_10 = arith.constant 0 : index
      %12 = vector.load %arg6[%c0_9, %c0_10] : memref<2x256xf32, #tpu.memory_space<vmem>>, vector<2x256xf32>
      %c0_11 = arith.constant 0 : index
      %c0_12 = arith.constant 0 : index
      %13 = vector.load %arg5[%c0_11, %c0_12] : memref<2x256xf32, #tpu.memory_space<vmem>>, vector<2x256xf32>
      tpu.vector_store %arg5[%c0_11, %c0_12], %12 {strides = array<i32>} : memref<2x256xf32, #tpu.memory_space<vmem>>, vector<2x256xf32>,
    } else {
    }
    return
  }
  func.func @transform_0(%arg0: i32, %arg1: i32, %arg2: i32) -> (i32, i32) {
    %c0_i32 = arith.constant 0 : i32
    return %arg0, %arg2 : i32, i32
  }
  func.func @transform_1(%arg0: i32, %arg1: i32, %arg2: i32) -> (i32, i32) {
    %c0_i32 = arith.constant 0 : i32
    return %arg2, %arg1 : i32, i32
  }
  func.func @transform_2(%arg0: i32, %arg1: i32, %arg2: i32) -> (i32, i32) {
    %c0_i32 = arith.constant 0 : i32
    return %arg0, %arg1 : i32, i32
  }
}

module attributes {stable_mosaic.version = 11 : i64} {
  func.func @kernel(%arg0: i32, %arg1: memref<2x256xf32, #tpu.memory_space<vmem>>, %arg2: memref<1x256xf32, #tpu.memory_space<vmem>>, %arg3: memref<1x256xf32, #tpu.memory_space<vmem>>, %arg4: memref<2x256xf32, #tpu.memory_space<vmem>>) attributes {dimension_semantics = [#tpu.dimension_semantics<parallel>], iteration_bounds = array<i64: 1>, scalar_prefetch = 0 : i64, scratch_operands = 0 : i64, tpu.core_type = #tpu.core_type<tc>, window_params = [{transform_indices = @transform_0, window_bounds = array<i64: 2, 256>}, {pipeline_mode = #tpu.pipeline_mode<synchronous>, transform_indices = @transform_1, window_bounds = array<i64: 1, 256>}, {pipeline_mode = #tpu.pipeline_mode<synchronous>, transform_indices = @transform_2, window_bounds = array<i64: 1, 256>}, {transform_indices = @transform_3, window_bounds = array<i64: 2, 256>}]} {
    %c0 = arith.constant 0 : index
    %c0_0 = arith.constant 0 : index
    %0 = vector.load %arg1[%c0, %c0_0] : memref<2x256xf32, #tpu.memory_space<vmem>>, vector<2x256xf32>
    %c0_1 = arith.constant 0 : index
    %c0_2 = arith.constant 0 : index
    %1 = vector.load %arg2[%c0_1, %c0_2] : memref<1x256xf32, #tpu.memory_space<vmem>>, vector<1x256xf32>
    %2 = vector.broadcast %1 : vector<1x256xf32> to vector<2x256xf32>
    %3 = arith.mulf %0, %2 : vector<2x256xf32>
    %c0_3 = arith.constant 0 : index
    %c0_4 = arith.constant 0 : index
    %4 = vector.load %arg3[%c0_3, %c0_4] : memref<1x256xf32, #tpu.memory_space<vmem>>, vector<1x256xf32>
    %5 = vector.broadcast %4 : vector<1x256xf32> to vector<2x256xf32>
    %6 = arith.addf %3, %5 : vector<2x256xf32>
    %cst = arith.constant 0.000000e+00 : f32
    %7 = vector.broadcast %cst : f32 to vector<2x256xf32>
    %8 = arith.maximumf %6, %7 : vector<2x256xf32>
    %c0_5 = arith.constant 0 : index
    %c0_6 = arith.constant 0 : index
    %9 = vector.load %arg4[%c0_5, %c0_6] : memref<2x256xf32, #tpu.memory_space<vmem>>, vector<2x256xf32>
    tpu.vector_store %arg4[%c0_5, %c0_6], %8 {strides = array<i32>} : memref<2x256xf32, #tpu.memory_space<vmem>>, vector<2x256xf32>,
    return
  }
  func.func @transform_0(%arg0: i32) -> (i32, i32) {
    %c0_i32 = arith.constant 0 : i32
    %c0_i32_0 = arith.constant 0 : i32
    return %arg0, %c0_i32 : i32, i32
  }
  func.func @transform_1(%arg0: i32) -> (i32, i32) {
    %c0_i32 = arith.constant 0 : i32
    %c0_i32_0 = arith.constant 0 : i32
    %c0_i32_1 = arith.constant 0 : i32
    return %c0_i32, %c0_i32_0 : i32, i32
  }
  func.func @transform_2(%arg0: i32) -> (i32, i32) {
    %c0_i32 = arith.constant 0 : i32
    %c0_i32_0 = arith.constant 0 : i32
    %c0_i32_1 = arith.constant 0 : i32
    return %c0_i32, %c0_i32_0 : i32, i32
  }
  func.func @transform_3(%arg0: i32) -> (i32, i32) {
    %c0_i32 = arith.constant 0 : i32
    %c0_i32_0 = arith.constant 0 : i32
    return %arg0, %c0_i32 : i32, i32
  }
}

module attributes {stable_mosaic.version = 11 : i64} {
  func.func @kernel(%arg0: i32, %arg1: memref<2x256xf32, #tpu.memory_space<vmem>>, %arg2: memref<1x256xf32, #tpu.memory_space<vmem>>, %arg3: memref<1x256xf32, #tpu.memory_space<vmem>>, %arg4: memref<2x256xf32, #tpu.memory_space<vmem>>, %arg5: memref<2x256xf32, #tpu.memory_space<vmem>>) attributes {dimension_semantics = [#tpu.dimension_semantics<parallel>], iteration_bounds = array<i64: 1>, scalar_prefetch = 0 : i64, scratch_operands = 0 : i64, tpu.core_type = #tpu.core_type<tc>, window_params = [{transform_indices = @transform_0, window_bounds = array<i64: 2, 256>}, {pipeline_mode = #tpu.pipeline_mode<synchronous>, transform_indices = @transform_1, window_bounds = array<i64: 1, 256>}, {pipeline_mode = #tpu.pipeline_mode<synchronous>, transform_indices = @transform_2, window_bounds = array<i64: 1, 256>}, {transform_indices = @transform_3, window_bounds = array<i64: 2, 256>}, {transform_indices = @transform_4, window_bounds = array<i64: 2, 256>}]} {
    %c0 = arith.constant 0 : index
    %c0_0 = arith.constant 0 : index
    %0 = vector.load %arg1[%c0, %c0_0] : memref<2x256xf32, #tpu.memory_space<vmem>>, vector<2x256xf32>
    %c0_1 = arith.constant 0 : index
    %c0_2 = arith.constant 0 : index
    %1 = vector.load %arg2[%c0_1, %c0_2] : memref<1x256xf32, #tpu.memory_space<vmem>>, vector<1x256xf32>
    %2 = vector.broadcast %1 : vector<1x256xf32> to vector<2x256xf32>
    %3 = arith.mulf %0, %2 : vector<2x256xf32>
    %c0_3 = arith.constant 0 : index
    %c0_4 = arith.constant 0 : index
    %4 = vector.load %arg3[%c0_3, %c0_4] : memref<1x256xf32, #tpu.memory_space<vmem>>, vector<1x256xf32>
    %5 = vector.broadcast %4 : vector<1x256xf32> to vector<2x256xf32>
    %6 = arith.addf %3, %5 : vector<2x256xf32>
    %c0_5 = arith.constant 0 : index
    %c0_6 = arith.constant 0 : index
    %7 = vector.load %arg4[%c0_5, %c0_6] : memref<2x256xf32, #tpu.memory_space<vmem>>, vector<2x256xf32>
    %8 = arith.addf %6, %7 : vector<2x256xf32>
    %cst = arith.constant 0.000000e+00 : f32
    %9 = vector.broadcast %cst : f32 to vector<2x256xf32>
    %10 = arith.maximumf %8, %9 : vector<2x256xf32>
    %c0_7 = arith.constant 0 : index
    %c0_8 = arith.constant 0 : index
    %11 = vector.load %arg5[%c0_7, %c0_8] : memref<2x256xf32, #tpu.memory_space<vmem>>, vector<2x256xf32>
    tpu.vector_store %arg5[%c0_7, %c0_8], %10 {strides = array<i32>} : memref<2x256xf32, #tpu.memory_space<vmem>>, vector<2x256xf32>,
    return
  }
  func.func @transform_0(%arg0: i32) -> (i32, i32) {
    %c0_i32 = arith.constant 0 : i32
    %c0_i32_0 = arith.constant 0 : i32
    return %arg0, %c0_i32 : i32, i32
  }
  func.func @transform_1(%arg0: i32) -> (i32, i32) {
    %c0_i32 = arith.constant 0 : i32
    %c0_i32_0 = arith.constant 0 : i32
    %c0_i32_1 = arith.constant 0 : i32
    return %c0_i32, %c0_i32_0 : i32, i32
  }
  func.func @transform_2(%arg0: i32) -> (i32, i32) {
    %c0_i32 = arith.constant 0 : i32
    %c0_i32_0 = arith.constant 0 : i32
    %c0_i32_1 = arith.constant 0 : i32
    return %c0_i32, %c0_i32_0 : i32, i32
  }
  func.func @transform_3(%arg0: i32) -> (i32, i32) {
    %c0_i32 = arith.constant 0 : i32
    %c0_i32_0 = arith.constant 0 : i32
    return %arg0, %c0_i32 : i32, i32
  }
  func.func @transform_4(%arg0: i32) -> (i32, i32) {
    %c0_i32 = arith.constant 0 : i32
    %c0_i32_0 = arith.constant 0 : i32
    return %arg0, %c0_i32 : i32, i32
  }
}

module attributes {stable_mosaic.version = 11 : i64} {
  func.func @_stats_kernel(%arg0: i32, %arg1: memref<8x512xf32, #tpu.memory_space<vmem>>, %arg2: memref<1x512xf32, #tpu.memory_space<vmem>>, %arg3: memref<1x512xf32, #tpu.memory_space<vmem>>) attributes {dimension_semantics = [#tpu.dimension_semantics<arbitrary>], iteration_bounds = array<i64: 1>, scalar_prefetch = 0 : i64, scratch_operands = 0 : i64, tpu.core_type = #tpu.core_type<tc>, window_params = [{transform_indices = @transform_0, window_bounds = array<i64: 8, 512>}, {pipeline_mode = #tpu.pipeline_mode<synchronous>, transform_indices = @transform_1, window_bounds = array<i64: 1, 512>}, {pipeline_mode = #tpu.pipeline_mode<synchronous>, transform_indices = @transform_2, window_bounds = array<i64: 1, 512>}]} {
    %c0_i32 = arith.constant 0 : i32
    %0 = arith.cmpi eq, %arg0, %c0_i32 : i32
    %1 = arith.extui %0 : i1 to i32
    %c0_i32_0 = arith.constant 0 : i32
    %2 = arith.cmpi ne, %1, %c0_i32_0 : i32
    scf.if %2 {
      %cst_11 = arith.constant 0.000000e+00 : f32
      %15 = vector.broadcast %cst_11 : f32 to vector<1x512xf32>
      %c0_12 = arith.constant 0 : index
      %c0_13 = arith.constant 0 : index
      %16 = vector.load %arg2[%c0_12, %c0_13] : memref<1x512xf32, #tpu.memory_space<vmem>>, vector<1x512xf32>
      tpu.vector_store %arg2[%c0_12, %c0_13], %15 {strides = array<i32>} : memref<1x512xf32, #tpu.memory_space<vmem>>, vector<1x512xf32>,
      %cst_14 = arith.constant 0.000000e+00 : f32
      %17 = vector.broadcast %cst_14 : f32 to vector<1x512xf32>
      %c0_15 = arith.constant 0 : index
      %c0_16 = arith.constant 0 : index
      %18 = vector.load %arg3[%c0_15, %c0_16] : memref<1x512xf32, #tpu.memory_space<vmem>>, vector<1x512xf32>
      tpu.vector_store %arg3[%c0_15, %c0_16], %17 {strides = array<i32>} : memref<1x512xf32, #tpu.memory_space<vmem>>, vector<1x512xf32>,
    } else {
    }
    %c0 = arith.constant 0 : index
    %c0_1 = arith.constant 0 : index
    %3 = vector.load %arg1[%c0, %c0_1] : memref<8x512xf32, #tpu.memory_space<vmem>>, vector<8x512xf32>
    %c0_2 = arith.constant 0 : index
    %c0_3 = arith.constant 0 : index
    %4 = vector.load %arg2[%c0_2, %c0_3] : memref<1x512xf32, #tpu.memory_space<vmem>>, vector<1x512xf32>
    %cst = arith.constant dense<0.000000e+00> : vector<512xf32>
    %5 = vector.multi_reduction <add>, %3, %cst [0] : vector<8x512xf32> to vector<512xf32>
    %6 = vector.shape_cast %5 : vector<512xf32> to vector<1x512xf32>
    %7 = arith.addf %4, %6 : vector<1x512xf32>
    %c0_4 = arith.constant 0 : index
    %c0_5 = arith.constant 0 : index
    %8 = vector.load %arg2[%c0_4, %c0_5] : memref<1x512xf32, #tpu.memory_space<vmem>>, vector<1x512xf32>
    tpu.vector_store %arg2[%c0_4, %c0_5], %7 {strides = array<i32>} : memref<1x512xf32, #tpu.memory_space<vmem>>, vector<1x512xf32>,
    %c0_6 = arith.constant 0 : index
    %c0_7 = arith.constant 0 : index
    %9 = vector.load %arg3[%c0_6, %c0_7] : memref<1x512xf32, #tpu.memory_space<vmem>>, vector<1x512xf32>
    %10 = arith.mulf %3, %3 : vector<8x512xf32>
    %cst_8 = arith.constant dense<0.000000e+00> : vector<512xf32>
    %11 = vector.multi_reduction <add>, %10, %cst_8 [0] : vector<8x512xf32> to vector<512xf32>
    %12 = vector.shape_cast %11 : vector<512xf32> to vector<1x512xf32>
    %13 = arith.addf %9, %12 : vector<1x512xf32>
    %c0_9 = arith.constant 0 : index
    %c0_10 = arith.constant 0 : index
    %14 = vector.load %arg3[%c0_9, %c0_10] : memref<1x512xf32, #tpu.memory_space<vmem>>, vector<1x512xf32>
    tpu.vector_store %arg3[%c0_9, %c0_10], %13 {strides = array<i32>} : memref<1x512xf32, #tpu.memory_space<vmem>>, vector<1x512xf32>,
    return
  }
  func.func @transform_0(%arg0: i32) -> (i32, i32) {
    %c0_i32 = arith.constant 0 : i32
    %c0_i32_0 = arith.constant 0 : i32
    return %arg0, %c0_i32 : i32, i32
  }
  func.func @transform_1(%arg0: i32) -> (i32, i32) {
    %c0_i32 = arith.constant 0 : i32
    %c0_i32_0 = arith.constant 0 : i32
    %c0_i32_1 = arith.constant 0 : i32
    return %c0_i32, %c0_i32_0 : i32, i32
  }
  func.func @transform_2(%arg0: i32) -> (i32, i32) {
    %c0_i32 = arith.constant 0 : i32
    %c0_i32_0 = arith.constant 0 : i32
    %c0_i32_1 = arith.constant 0 : i32
    return %c0_i32, %c0_i32_0 : i32, i32
  }
}

module attributes {stable_mosaic.version = 11 : i64} {
  func.func @kernel(%arg0: i32, %arg1: i32, %arg2: i32, %arg3: memref<2x256xbf16, #tpu.memory_space<vmem>>, %arg4: memref<256x256xbf16, #tpu.memory_space<vmem>>, %arg5: memref<2x256xf32, #tpu.memory_space<vmem>>, %arg6: memref<2x256xf32, #tpu.memory_space<vmem>>) attributes {dimension_semantics = [#tpu.dimension_semantics<parallel>, #tpu.dimension_semantics<parallel>, #tpu.dimension_semantics<arbitrary>], iteration_bounds = array<i64: 1, 2, 1>, scalar_prefetch = 0 : i64, scratch_operands = 1 : i64, tpu.core_type = #tpu.core_type<tc>, window_params = [{transform_indices = @transform_0, window_bounds = array<i64: 2, 256>}, {transform_indices = @transform_1, window_bounds = array<i64: 256, 256>}, {transform_indices = @transform_2, window_bounds = array<i64: 2, 256>}]} {
    %c0_i32 = arith.constant 0 : i32
    %0 = arith.cmpi eq, %arg2, %c0_i32 : i32
    %1 = arith.extui %0 : i1 to i32
    %c0_i32_0 = arith.constant 0 : i32
    %2 = arith.cmpi ne, %1, %c0_i32_0 : i32
    scf.if %2 {
      %cst_10 = arith.constant 0.000000e+00 : f32
      %12 = vector.broadcast %cst_10 : f32 to vector<2x256xf32>
      %c0_11 = arith.constant 0 : index
      %c0_12 = arith.constant 0 : index
      %13 = vector.load %arg6[%c0_11, %c0_12] : memref<2x256xf32, #tpu.memory_space<vmem>>, vector<2x256xf32>
      tpu.vector_store %arg6[%c0_11, %c0_12], %12 {strides = array<i32>} : memref<2x256xf32, #tpu.memory_space<vmem>>, vector<2x256xf32>,
    } else {
    }
    %c0 = arith.constant 0 : index
    %c0_1 = arith.constant 0 : index
    %3 = vector.load %arg6[%c0, %c0_1] : memref<2x256xf32, #tpu.memory_space<vmem>>, vector<2x256xf32>
    %c0_2 = arith.constant 0 : index
    %c0_3 = arith.constant 0 : index
    %4 = vector.load %arg3[%c0_2, %c0_3] : memref<2x256xbf16, #tpu.memory_space<vmem>>, vector<2x256xbf16>
    %c0_4 = arith.constant 0 : index
    %c0_5 = arith.constant 0 : index
    %5 = vector.load %arg4[%c0_4, %c0_5] : memref<256x256xbf16, #tpu.memory_space<vmem>>, vector<256x256xbf16>
    %cst = arith.constant dense<0.000000e+00> : vector<2x256xf32>
    %6 = tpu.matmul %4, %5, %cst {dimension_numbers = #tpu.dot_dimension_numbers<[1], [0], [0], [1], [0, 0, 1, 1], [], []>} : vector<2x256xbf16>, vector<256x256xbf16>, vector<2x256xf32> -> vector<2x256xf32>
    %7 = arith.addf %3, %6 : vector<2x256xf32>
    %c0_6 = arith.constant 0 : index
    %c0_7 = arith.constant 0 : index
    %8 = vector.load %arg6[%c0_6, %c0_7] : memref<2x256xf32, #tpu.memory_space<vmem>>, vector<2x256xf32>
    tpu.vector_store %arg6[%c0_6, %c0_7], %7 {strides = array<i32>} : memref<2x256xf32, #tpu.memory_space<vmem>>, vector<2x256xf32>,
    %c0_i32_8 = arith.constant 0 : i32
    %9 = arith.cmpi eq, %arg2, %c0_i32_8 : i32
    %10 = arith.extui %9 : i1 to i32
    %c0_i32_9 = arith.constant 0 : i32
    %11 = arith.cmpi ne, %10, %c0_i32_9 : i32
    scf.if %11 {
      %c0_10 = arith.constant 0 : index
      %c0_11 = arith.constant 0 : index
      %12 = vector.load %arg6[%c0_10, %c0_11] : memref<2x256xf32, #tpu.memory_space<vmem>>, vector<2x256xf32>
      %c0_12 = arith.constant 0 : index
      %c0_13 = arith.constant 0 : index
      %13 = vector.load %arg5[%c0_12, %c0_13] : memref<2x256xf32, #tpu.memory_space<vmem>>, vector<2x256xf32>
      tpu.vector_store %arg5[%c0_12, %c0_13], %12 {strides = array<i32>} : memref<2x256xf32, #tpu.memory_space<vmem>>, vector<2x256xf32>,
    } else {
    }
    return
  }
  func.func @transform_0(%arg0: i32, %arg1: i32, %arg2: i32) -> (i32, i32) {
    %c0_i32 = arith.constant 0 : i32
    return %arg0, %arg2 : i32, i32
  }
  func.func @transform_1(%arg0: i32, %arg1: i32, %arg2: i32) -> (i32, i32) {
    %c0_i32 = arith.constant 0 : i32
    return %arg2, %arg1 : i32, i32
  }
  func.func @transform_2(%arg0: i32, %arg1: i32, %arg2: i32) -> (i32, i32) {
    %c0_i32 = arith.constant 0 : i32
    return %arg0, %arg1 : i32, i32
  }
}

module attributes {stable_mosaic.version = 11 : i64} {
  func.func @kernel(%arg0: i32, %arg1: memref<2x512xf32, #tpu.memory_space<vmem>>, %arg2: memref<1x512xf32, #tpu.memory_space<vmem>>, %arg3: memref<1x512xf32, #tpu.memory_space<vmem>>, %arg4: memref<2x512xf32, #tpu.memory_space<vmem>>) attributes {dimension_semantics = [#tpu.dimension_semantics<parallel>], iteration_bounds = array<i64: 1>, scalar_prefetch = 0 : i64, scratch_operands = 0 : i64, tpu.core_type = #tpu.core_type<tc>, window_params = [{transform_indices = @transform_0, window_bounds = array<i64: 2, 512>}, {pipeline_mode = #tpu.pipeline_mode<synchronous>, transform_indices = @transform_1, window_bounds = array<i64: 1, 512>}, {pipeline_mode = #tpu.pipeline_mode<synchronous>, transform_indices = @transform_2, window_bounds = array<i64: 1, 512>}, {transform_indices = @transform_3, window_bounds = array<i64: 2, 512>}]} {
    %c0 = arith.constant 0 : index
    %c0_0 = arith.constant 0 : index
    %0 = vector.load %arg1[%c0, %c0_0] : memref<2x512xf32, #tpu.memory_space<vmem>>, vector<2x512xf32>
    %c0_1 = arith.constant 0 : index
    %c0_2 = arith.constant 0 : index
    %1 = vector.load %arg2[%c0_1, %c0_2] : memref<1x512xf32, #tpu.memory_space<vmem>>, vector<1x512xf32>
    %2 = vector.broadcast %1 : vector<1x512xf32> to vector<2x512xf32>
    %3 = arith.mulf %0, %2 : vector<2x512xf32>
    %c0_3 = arith.constant 0 : index
    %c0_4 = arith.constant 0 : index
    %4 = vector.load %arg3[%c0_3, %c0_4] : memref<1x512xf32, #tpu.memory_space<vmem>>, vector<1x512xf32>
    %5 = vector.broadcast %4 : vector<1x512xf32> to vector<2x512xf32>
    %6 = arith.addf %3, %5 : vector<2x512xf32>
    %cst = arith.constant 0.000000e+00 : f32
    %7 = vector.broadcast %cst : f32 to vector<2x512xf32>
    %8 = arith.maximumf %6, %7 : vector<2x512xf32>
    %c0_5 = arith.constant 0 : index
    %c0_6 = arith.constant 0 : index
    %9 = vector.load %arg4[%c0_5, %c0_6] : memref<2x512xf32, #tpu.memory_space<vmem>>, vector<2x512xf32>
    tpu.vector_store %arg4[%c0_5, %c0_6], %8 {strides = array<i32>} : memref<2x512xf32, #tpu.memory_space<vmem>>, vector<2x512xf32>,
    return
  }
  func.func @transform_0(%arg0: i32) -> (i32, i32) {
    %c0_i32 = arith.constant 0 : i32
    %c0_i32_0 = arith.constant 0 : i32
    return %arg0, %c0_i32 : i32, i32
  }
  func.func @transform_1(%arg0: i32) -> (i32, i32) {
    %c0_i32 = arith.constant 0 : i32
    %c0_i32_0 = arith.constant 0 : i32
    %c0_i32_1 = arith.constant 0 : i32
    return %c0_i32, %c0_i32_0 : i32, i32
  }
  func.func @transform_2(%arg0: i32) -> (i32, i32) {
    %c0_i32 = arith.constant 0 : i32
    %c0_i32_0 = arith.constant 0 : i32
    %c0_i32_1 = arith.constant 0 : i32
    return %c0_i32, %c0_i32_0 : i32, i32
  }
  func.func @transform_3(%arg0: i32) -> (i32, i32) {
    %c0_i32 = arith.constant 0 : i32
    %c0_i32_0 = arith.constant 0 : i32
    return %arg0, %c0_i32 : i32, i32
  }
}

module attributes {stable_mosaic.version = 11 : i64} {
  func.func @kernel(%arg0: i32, %arg1: memref<2x512xf32, #tpu.memory_space<vmem>>, %arg2: memref<1x512xf32, #tpu.memory_space<vmem>>, %arg3: memref<1x512xf32, #tpu.memory_space<vmem>>, %arg4: memref<2x512xf32, #tpu.memory_space<vmem>>) attributes {dimension_semantics = [#tpu.dimension_semantics<parallel>], iteration_bounds = array<i64: 1>, scalar_prefetch = 0 : i64, scratch_operands = 0 : i64, tpu.core_type = #tpu.core_type<tc>, window_params = [{transform_indices = @transform_0, window_bounds = array<i64: 2, 512>}, {pipeline_mode = #tpu.pipeline_mode<synchronous>, transform_indices = @transform_1, window_bounds = array<i64: 1, 512>}, {pipeline_mode = #tpu.pipeline_mode<synchronous>, transform_indices = @transform_2, window_bounds = array<i64: 1, 512>}, {transform_indices = @transform_3, window_bounds = array<i64: 2, 512>}]} {
    %c0 = arith.constant 0 : index
    %c0_0 = arith.constant 0 : index
    %0 = vector.load %arg1[%c0, %c0_0] : memref<2x512xf32, #tpu.memory_space<vmem>>, vector<2x512xf32>
    %c0_1 = arith.constant 0 : index
    %c0_2 = arith.constant 0 : index
    %1 = vector.load %arg2[%c0_1, %c0_2] : memref<1x512xf32, #tpu.memory_space<vmem>>, vector<1x512xf32>
    %2 = vector.broadcast %1 : vector<1x512xf32> to vector<2x512xf32>
    %3 = arith.mulf %0, %2 : vector<2x512xf32>
    %c0_3 = arith.constant 0 : index
    %c0_4 = arith.constant 0 : index
    %4 = vector.load %arg3[%c0_3, %c0_4] : memref<1x512xf32, #tpu.memory_space<vmem>>, vector<1x512xf32>
    %5 = vector.broadcast %4 : vector<1x512xf32> to vector<2x512xf32>
    %6 = arith.addf %3, %5 : vector<2x512xf32>
    %c0_5 = arith.constant 0 : index
    %c0_6 = arith.constant 0 : index
    %7 = vector.load %arg4[%c0_5, %c0_6] : memref<2x512xf32, #tpu.memory_space<vmem>>, vector<2x512xf32>
    tpu.vector_store %arg4[%c0_5, %c0_6], %6 {strides = array<i32>} : memref<2x512xf32, #tpu.memory_space<vmem>>, vector<2x512xf32>,
    return
  }
  func.func @transform_0(%arg0: i32) -> (i32, i32) {
    %c0_i32 = arith.constant 0 : i32
    %c0_i32_0 = arith.constant 0 : i32
    return %arg0, %c0_i32 : i32, i32
  }
  func.func @transform_1(%arg0: i32) -> (i32, i32) {
    %c0_i32 = arith.constant 0 : i32
    %c0_i32_0 = arith.constant 0 : i32
    %c0_i32_1 = arith.constant 0 : i32
    return %c0_i32, %c0_i32_0 : i32, i32
  }
  func.func @transform_2(%arg0: i32) -> (i32, i32) {
    %c0_i32 = arith.constant 0 : i32
    %c0_i32_0 = arith.constant 0 : i32
    %c0_i32_1 = arith.constant 0 : i32
    return %c0_i32, %c0_i32_0 : i32, i32
  }
  func.func @transform_3(%arg0: i32) -> (i32, i32) {
    %c0_i32 = arith.constant 0 : i32
    %c0_i32_0 = arith.constant 0 : i32
    return %arg0, %c0_i32 : i32, i32
  }
}

module attributes {stable_mosaic.version = 11 : i64} {
  func.func @kernel(%arg0: i32, %arg1: i32, %arg2: i32, %arg3: memref<2x256xbf16, #tpu.memory_space<vmem>>, %arg4: memref<256x256xbf16, #tpu.memory_space<vmem>>, %arg5: memref<2x256xf32, #tpu.memory_space<vmem>>, %arg6: memref<2x256xf32, #tpu.memory_space<vmem>>) attributes {dimension_semantics = [#tpu.dimension_semantics<parallel>, #tpu.dimension_semantics<parallel>, #tpu.dimension_semantics<arbitrary>], iteration_bounds = array<i64: 1, 2, 9>, scalar_prefetch = 0 : i64, scratch_operands = 1 : i64, tpu.core_type = #tpu.core_type<tc>, window_params = [{transform_indices = @transform_0, window_bounds = array<i64: 2, 256>}, {transform_indices = @transform_1, window_bounds = array<i64: 256, 256>}, {transform_indices = @transform_2, window_bounds = array<i64: 2, 256>}]} {
    %c0_i32 = arith.constant 0 : i32
    %0 = arith.cmpi eq, %arg2, %c0_i32 : i32
    %1 = arith.extui %0 : i1 to i32
    %c0_i32_0 = arith.constant 0 : i32
    %2 = arith.cmpi ne, %1, %c0_i32_0 : i32
    scf.if %2 {
      %cst_9 = arith.constant 0.000000e+00 : f32
      %12 = vector.broadcast %cst_9 : f32 to vector<2x256xf32>
      %c0_10 = arith.constant 0 : index
      %c0_11 = arith.constant 0 : index
      %13 = vector.load %arg6[%c0_10, %c0_11] : memref<2x256xf32, #tpu.memory_space<vmem>>, vector<2x256xf32>
      tpu.vector_store %arg6[%c0_10, %c0_11], %12 {strides = array<i32>} : memref<2x256xf32, #tpu.memory_space<vmem>>, vector<2x256xf32>,
    } else {
    }
    %c0 = arith.constant 0 : index
    %c0_1 = arith.constant 0 : index
    %3 = vector.load %arg6[%c0, %c0_1] : memref<2x256xf32, #tpu.memory_space<vmem>>, vector<2x256xf32>
    %c0_2 = arith.constant 0 : index
    %c0_3 = arith.constant 0 : index
    %4 = vector.load %arg3[%c0_2, %c0_3] : memref<2x256xbf16, #tpu.memory_space<vmem>>, vector<2x256xbf16>
    %c0_4 = arith.constant 0 : index
    %c0_5 = arith.constant 0 : index
    %5 = vector.load %arg4[%c0_4, %c0_5] : memref<256x256xbf16, #tpu.memory_space<vmem>>, vector<256x256xbf16>
    %cst = arith.constant dense<0.000000e+00> : vector<2x256xf32>
    %6 = tpu.matmul %4, %5, %cst {dimension_numbers = #tpu.dot_dimension_numbers<[1], [0], [0], [1], [0, 0, 1, 1], [], []>} : vector<2x256xbf16>, vector<256x256xbf16>, vector<2x256xf32> -> vector<2x256xf32>
    %7 = arith.addf %3, %6 : vector<2x256xf32>
    %c0_6 = arith.constant 0 : index
    %c0_7 = arith.constant 0 : index
    %8 = vector.load %arg6[%c0_6, %c0_7] : memref<2x256xf32, #tpu.memory_space<vmem>>, vector<2x256xf32>
    tpu.vector_store %arg6[%c0_6, %c0_7], %7 {strides = array<i32>} : memref<2x256xf32, #tpu.memory_space<vmem>>, vector<2x256xf32>,
    %c8_i32 = arith.constant 8 : i32
    %9 = arith.cmpi eq, %arg2, %c8_i32 : i32
    %10 = arith.extui %9 : i1 to i32
    %c0_i32_8 = arith.constant 0 : i32
    %11 = arith.cmpi ne, %10, %c0_i32_8 : i32
    scf.if %11 {
      %c0_9 = arith.constant 0 : index
      %c0_10 = arith.constant 0 : index
      %12 = vector.load %arg6[%c0_9, %c0_10] : memref<2x256xf32, #tpu.memory_space<vmem>>, vector<2x256xf32>
      %c0_11 = arith.constant 0 : index
      %c0_12 = arith.constant 0 : index
      %13 = vector.load %arg5[%c0_11, %c0_12] : memref<2x256xf32, #tpu.memory_space<vmem>>, vector<2x256xf32>
      tpu.vector_store %arg5[%c0_11, %c0_12], %12 {strides = array<i32>} : memref<2x256xf32, #tpu.memory_space<vmem>>, vector<2x256xf32>,
    } else {
    }
    return
  }
  func.func @transform_0(%arg0: i32, %arg1: i32, %arg2: i32) -> (i32, i32) {
    %c0_i32 = arith.constant 0 : i32
    return %arg0, %arg2 : i32, i32
  }
  func.func @transform_1(%arg0: i32, %arg1: i32, %arg2: i32) -> (i32, i32) {
    %c0_i32 = arith.constant 0 : i32
    return %arg2, %arg1 : i32, i32
  }
  func.func @transform_2(%arg0: i32, %arg1: i32, %arg2: i32) -> (i32, i32) {
    %c0_i32 = arith.constant 0 : i32
    return %arg0, %arg1 : i32, i32
  }
}

module attributes {stable_mosaic.version = 11 : i64} {
  func.func @kernel(%arg0: i32, %arg1: memref<2x512xf32, #tpu.memory_space<vmem>>, %arg2: memref<1x512xf32, #tpu.memory_space<vmem>>, %arg3: memref<1x512xf32, #tpu.memory_space<vmem>>, %arg4: memref<2x512xf32, #tpu.memory_space<vmem>>, %arg5: memref<2x512xf32, #tpu.memory_space<vmem>>) attributes {dimension_semantics = [#tpu.dimension_semantics<parallel>], iteration_bounds = array<i64: 1>, scalar_prefetch = 0 : i64, scratch_operands = 0 : i64, tpu.core_type = #tpu.core_type<tc>, window_params = [{transform_indices = @transform_0, window_bounds = array<i64: 2, 512>}, {pipeline_mode = #tpu.pipeline_mode<synchronous>, transform_indices = @transform_1, window_bounds = array<i64: 1, 512>}, {pipeline_mode = #tpu.pipeline_mode<synchronous>, transform_indices = @transform_2, window_bounds = array<i64: 1, 512>}, {transform_indices = @transform_3, window_bounds = array<i64: 2, 512>}, {transform_indices = @transform_4, window_bounds = array<i64: 2, 512>}]} {
    %c0 = arith.constant 0 : index
    %c0_0 = arith.constant 0 : index
    %0 = vector.load %arg1[%c0, %c0_0] : memref<2x512xf32, #tpu.memory_space<vmem>>, vector<2x512xf32>
    %c0_1 = arith.constant 0 : index
    %c0_2 = arith.constant 0 : index
    %1 = vector.load %arg2[%c0_1, %c0_2] : memref<1x512xf32, #tpu.memory_space<vmem>>, vector<1x512xf32>
    %2 = vector.broadcast %1 : vector<1x512xf32> to vector<2x512xf32>
    %3 = arith.mulf %0, %2 : vector<2x512xf32>
    %c0_3 = arith.constant 0 : index
    %c0_4 = arith.constant 0 : index
    %4 = vector.load %arg3[%c0_3, %c0_4] : memref<1x512xf32, #tpu.memory_space<vmem>>, vector<1x512xf32>
    %5 = vector.broadcast %4 : vector<1x512xf32> to vector<2x512xf32>
    %6 = arith.addf %3, %5 : vector<2x512xf32>
    %c0_5 = arith.constant 0 : index
    %c0_6 = arith.constant 0 : index
    %7 = vector.load %arg4[%c0_5, %c0_6] : memref<2x512xf32, #tpu.memory_space<vmem>>, vector<2x512xf32>
    %8 = arith.addf %6, %7 : vector<2x512xf32>
    %cst = arith.constant 0.000000e+00 : f32
    %9 = vector.broadcast %cst : f32 to vector<2x512xf32>
    %10 = arith.maximumf %8, %9 : vector<2x512xf32>
    %c0_7 = arith.constant 0 : index
    %c0_8 = arith.constant 0 : index
    %11 = vector.load %arg5[%c0_7, %c0_8] : memref<2x512xf32, #tpu.memory_space<vmem>>, vector<2x512xf32>
    tpu.vector_store %arg5[%c0_7, %c0_8], %10 {strides = array<i32>} : memref<2x512xf32, #tpu.memory_space<vmem>>, vector<2x512xf32>,
    return
  }
  func.func @transform_0(%arg0: i32) -> (i32, i32) {
    %c0_i32 = arith.constant 0 : i32
    %c0_i32_0 = arith.constant 0 : i32
    return %arg0, %c0_i32 : i32, i32
  }
  func.func @transform_1(%arg0: i32) -> (i32, i32) {
    %c0_i32 = arith.constant 0 : i32
    %c0_i32_0 = arith.constant 0 : i32
    %c0_i32_1 = arith.constant 0 : i32
    return %c0_i32, %c0_i32_0 : i32, i32
  }
  func.func @transform_2(%arg0: i32) -> (i32, i32) {
    %c0_i32 = arith.constant 0 : i32
    %c0_i32_0 = arith.constant 0 : i32
    %c0_i32_1 = arith.constant 0 : i32
    return %c0_i32, %c0_i32_0 : i32, i32
  }
  func.func @transform_3(%arg0: i32) -> (i32, i32) {
    %c0_i32 = arith.constant 0 : i32
    %c0_i32_0 = arith.constant 0 : i32
    return %arg0, %c0_i32 : i32, i32
  }
  func.func @transform_4(%arg0: i32) -> (i32, i32) {
    %c0_i32 = arith.constant 0 : i32
    %c0_i32_0 = arith.constant 0 : i32
    return %arg0, %c0_i32 : i32, i32
  }
}

module attributes {stable_mosaic.version = 11 : i64} {
  func.func @kernel(%arg0: i32, %arg1: i32, %arg2: i32, %arg3: memref<2x512xbf16, #tpu.memory_space<vmem>>, %arg4: memref<512x256xbf16, #tpu.memory_space<vmem>>, %arg5: memref<2x256xf32, #tpu.memory_space<vmem>>, %arg6: memref<2x256xf32, #tpu.memory_space<vmem>>) attributes {dimension_semantics = [#tpu.dimension_semantics<parallel>, #tpu.dimension_semantics<parallel>, #tpu.dimension_semantics<arbitrary>], iteration_bounds = array<i64: 1, 2, 9>, scalar_prefetch = 0 : i64, scratch_operands = 1 : i64, tpu.core_type = #tpu.core_type<tc>, window_params = [{transform_indices = @transform_0, window_bounds = array<i64: 2, 512>}, {transform_indices = @transform_1, window_bounds = array<i64: 512, 256>}, {transform_indices = @transform_2, window_bounds = array<i64: 2, 256>}]} {
    %c0_i32 = arith.constant 0 : i32
    %0 = arith.cmpi eq, %arg2, %c0_i32 : i32
    %1 = arith.extui %0 : i1 to i32
    %c0_i32_0 = arith.constant 0 : i32
    %2 = arith.cmpi ne, %1, %c0_i32_0 : i32
    scf.if %2 {
      %cst_9 = arith.constant 0.000000e+00 : f32
      %12 = vector.broadcast %cst_9 : f32 to vector<2x256xf32>
      %c0_10 = arith.constant 0 : index
      %c0_11 = arith.constant 0 : index
      %13 = vector.load %arg6[%c0_10, %c0_11] : memref<2x256xf32, #tpu.memory_space<vmem>>, vector<2x256xf32>
      tpu.vector_store %arg6[%c0_10, %c0_11], %12 {strides = array<i32>} : memref<2x256xf32, #tpu.memory_space<vmem>>, vector<2x256xf32>,
    } else {
    }
    %c0 = arith.constant 0 : index
    %c0_1 = arith.constant 0 : index
    %3 = vector.load %arg6[%c0, %c0_1] : memref<2x256xf32, #tpu.memory_space<vmem>>, vector<2x256xf32>
    %c0_2 = arith.constant 0 : index
    %c0_3 = arith.constant 0 : index
    %4 = vector.load %arg3[%c0_2, %c0_3] : memref<2x512xbf16, #tpu.memory_space<vmem>>, vector<2x512xbf16>
    %c0_4 = arith.constant 0 : index
    %c0_5 = arith.constant 0 : index
    %5 = vector.load %arg4[%c0_4, %c0_5] : memref<512x256xbf16, #tpu.memory_space<vmem>>, vector<512x256xbf16>
    %cst = arith.constant dense<0.000000e+00> : vector<2x256xf32>
    %6 = tpu.matmul %4, %5, %cst {dimension_numbers = #tpu.dot_dimension_numbers<[1], [0], [0], [1], [0, 0, 1, 1], [], []>} : vector<2x512xbf16>, vector<512x256xbf16>, vector<2x256xf32> -> vector<2x256xf32>
    %7 = arith.addf %3, %6 : vector<2x256xf32>
    %c0_6 = arith.constant 0 : index
    %c0_7 = arith.constant 0 : index
    %8 = vector.load %arg6[%c0_6, %c0_7] : memref<2x256xf32, #tpu.memory_space<vmem>>, vector<2x256xf32>
    tpu.vector_store %arg6[%c0_6, %c0_7], %7 {strides = array<i32>} : memref<2x256xf32, #tpu.memory_space<vmem>>, vector<2x256xf32>,
    %c8_i32 = arith.constant 8 : i32
    %9 = arith.cmpi eq, %arg2, %c8_i32 : i32
    %10 = arith.extui %9 : i1 to i32
    %c0_i32_8 = arith.constant 0 : i32
    %11 = arith.cmpi ne, %10, %c0_i32_8 : i32
    scf.if %11 {
      %c0_9 = arith.constant 0 : index
      %c0_10 = arith.constant 0 : index
      %12 = vector.load %arg6[%c0_9, %c0_10] : memref<2x256xf32, #tpu.memory_space<vmem>>, vector<2x256xf32>
      %c0_11 = arith.constant 0 : index
      %c0_12 = arith.constant 0 : index
      %13 = vector.load %arg5[%c0_11, %c0_12] : memref<2x256xf32, #tpu.memory_space<vmem>>, vector<2x256xf32>
      tpu.vector_store %arg5[%c0_11, %c0_12], %12 {strides = array<i32>} : memref<2x256xf32, #tpu.memory_space<vmem>>, vector<2x256xf32>,
    } else {
    }
    return
  }
  func.func @transform_0(%arg0: i32, %arg1: i32, %arg2: i32) -> (i32, i32) {
    %c0_i32 = arith.constant 0 : i32
    return %arg0, %arg2 : i32, i32
  }
  func.func @transform_1(%arg0: i32, %arg1: i32, %arg2: i32) -> (i32, i32) {
    %c0_i32 = arith.constant 0 : i32
    return %arg2, %arg1 : i32, i32
  }
  func.func @transform_2(%arg0: i32, %arg1: i32, %arg2: i32) -> (i32, i32) {
    %c0_i32 = arith.constant 0 : i32
    return %arg0, %arg1 : i32, i32
  }
}

module attributes {stable_mosaic.version = 11 : i64} {
  func.func @kernel(%arg0: i32, %arg1: i32, %arg2: i32, %arg3: memref<2x512xbf16, #tpu.memory_space<vmem>>, %arg4: memref<512x10xbf16, #tpu.memory_space<vmem>>, %arg5: memref<1x10xf32, #tpu.memory_space<vmem>>, %arg6: memref<2x10xf32, #tpu.memory_space<vmem>>, %arg7: memref<2x10xf32, #tpu.memory_space<vmem>>) attributes {dimension_semantics = [#tpu.dimension_semantics<parallel>, #tpu.dimension_semantics<parallel>, #tpu.dimension_semantics<arbitrary>], iteration_bounds = array<i64: 1, 1, 1>, scalar_prefetch = 0 : i64, scratch_operands = 1 : i64, tpu.core_type = #tpu.core_type<tc>, window_params = [{transform_indices = @transform_0, window_bounds = array<i64: 2, 512>}, {transform_indices = @transform_1, window_bounds = array<i64: 512, 10>}, {transform_indices = @transform_2, window_bounds = array<i64: 1, 10>}, {transform_indices = @transform_3, window_bounds = array<i64: 2, 10>}]} {
    %c0_i32 = arith.constant 0 : i32
    %0 = arith.cmpi eq, %arg2, %c0_i32 : i32
    %1 = arith.extui %0 : i1 to i32
    %c0_i32_0 = arith.constant 0 : i32
    %2 = arith.cmpi ne, %1, %c0_i32_0 : i32
    scf.if %2 {
      %cst_10 = arith.constant 0.000000e+00 : f32
      %12 = vector.broadcast %cst_10 : f32 to vector<2x10xf32>
      %c0_11 = arith.constant 0 : index
      %c0_12 = arith.constant 0 : index
      %13 = vector.load %arg7[%c0_11, %c0_12] : memref<2x10xf32, #tpu.memory_space<vmem>>, vector<2x10xf32>
      tpu.vector_store %arg7[%c0_11, %c0_12], %12 {strides = array<i32>} : memref<2x10xf32, #tpu.memory_space<vmem>>, vector<2x10xf32>,
    } else {
    }
    %c0 = arith.constant 0 : index
    %c0_1 = arith.constant 0 : index
    %3 = vector.load %arg7[%c0, %c0_1] : memref<2x10xf32, #tpu.memory_space<vmem>>, vector<2x10xf32>
    %c0_2 = arith.constant 0 : index
    %c0_3 = arith.constant 0 : index
    %4 = vector.load %arg3[%c0_2, %c0_3] : memref<2x512xbf16, #tpu.memory_space<vmem>>, vector<2x512xbf16>
    %c0_4 = arith.constant 0 : index
    %c0_5 = arith.constant 0 : index
    %5 = vector.load %arg4[%c0_4, %c0_5] : memref<512x10xbf16, #tpu.memory_space<vmem>>, vector<512x10xbf16>
    %cst = arith.constant dense<0.000000e+00> : vector<2x10xf32>
    %6 = tpu.matmul %4, %5, %cst {dimension_numbers = #tpu.dot_dimension_numbers<[1], [0], [0], [1], [0, 0, 1, 1], [], []>} : vector<2x512xbf16>, vector<512x10xbf16>, vector<2x10xf32> -> vector<2x10xf32>
    %7 = arith.addf %3, %6 : vector<2x10xf32>
    %c0_6 = arith.constant 0 : index
    %c0_7 = arith.constant 0 : index
    %8 = vector.load %arg7[%c0_6, %c0_7] : memref<2x10xf32, #tpu.memory_space<vmem>>, vector<2x10xf32>
    tpu.vector_store %arg7[%c0_6, %c0_7], %7 {strides = array<i32>} : memref<2x10xf32, #tpu.memory_space<vmem>>, vector<2x10xf32>,
    %c0_i32_8 = arith.constant 0 : i32
    %9 = arith.cmpi eq, %arg2, %c0_i32_8 : i32
    %10 = arith.extui %9 : i1 to i32
    %c0_i32_9 = arith.constant 0 : i32
    %11 = arith.cmpi ne, %10, %c0_i32_9 : i32
    scf.if %11 {
      %c0_10 = arith.constant 0 : index
      %c0_11 = arith.constant 0 : index
      %12 = vector.load %arg7[%c0_10, %c0_11] : memref<2x10xf32, #tpu.memory_space<vmem>>, vector<2x10xf32>
      %c0_12 = arith.constant 0 : index
      %c0_13 = arith.constant 0 : index
      %13 = vector.load %arg5[%c0_12, %c0_13] : memref<1x10xf32, #tpu.memory_space<vmem>>, vector<1x10xf32>
      %14 = vector.broadcast %13 : vector<1x10xf32> to vector<2x10xf32>
      %15 = arith.addf %12, %14 : vector<2x10xf32>
      %c0_14 = arith.constant 0 : index
      %c0_15 = arith.constant 0 : index
      %16 = vector.load %arg6[%c0_14, %c0_15] : memref<2x10xf32, #tpu.memory_space<vmem>>, vector<2x10xf32>
      tpu.vector_store %arg6[%c0_14, %c0_15], %15 {strides = array<i32>} : memref<2x10xf32, #tpu.memory_space<vmem>>, vector<2x10xf32>,
    } else {
    }
    return
  }
  func.func @transform_0(%arg0: i32, %arg1: i32, %arg2: i32) -> (i32, i32) {
    %c0_i32 = arith.constant 0 : i32
    return %arg0, %arg2 : i32, i32
  }
  func.func @transform_1(%arg0: i32, %arg1: i32, %arg2: i32) -> (i32, i32) {
    %c0_i32 = arith.constant 0 : i32
    return %arg2, %arg1 : i32, i32
  }
  func.func @transform_2(%arg0: i32, %arg1: i32, %arg2: i32) -> (i32, i32) {
    %c0_i32 = arith.constant 0 : i32
    %c0_i32_0 = arith.constant 0 : i32
    return %c0_i32, %arg1 : i32, i32
  }
  func.func @transform_3(%arg0: i32, %arg1: i32, %arg2: i32) -> (i32, i32) {
    %c0_i32 = arith.constant 0 : i32
    return %arg0, %arg1 : i32, i32
  }
}

</mosaic_0001>

<bundles_post_ra>
// kernel: forward.111
= control target key start
LH: loop header
LB: loop body
LE: loop exit
PB: predicated region body
PF: predicated region fallthrough
CT: control target
= control target key end

     0   :  { %vm14_vm0 = vcmask 516096   ;;  %vm34_vm1 = vcmask 523264   ;;  %v140_v0 = vmov 0.0   ;;  %s258_s0 = inlined_call_operand.vmem [shape: f32[128,64], index: 0, kind: input, shape index: {}]   ;;  %s259_s1 = inlined_call_operand.vmem [shape: f32[1,64], index: 1, kind: output, shape index: {0}]   ;;  %s260_s2 = inlined_call_operand.vmem [shape: f32[1,64], index: 2, kind: output, shape index: {1}]  }
   0x1   :  { %15 = vst.msk [vmem:[%s259_s1] sm:$0x1] %vm14_vm0, %v140_v0  ;;  %v17_v1 = vld [vmem:[%s258_s0] sm:$0xff]  ;;  %v18_v2 = vld [vmem:[%s258_s0 + $0x8] sm:$0xff]  ;;  %v19_v3 = vld [vmem:[%s258_s0 + $0x10] sm:$0xff] }
   0x2   :  { %16 = vst.msk [vmem:[%s260_s2] sm:$0x1] %vm14_vm0, %v140_v0  ;;  %v35_v4 = vsel %vm34_vm1, %v17_v1, 0.0  ;;  %v36_v5 = vsel %vm34_vm1, %v18_v2, 0.0  ;;  %v38_v6 = vsel %vm34_vm1, %v19_v3, 0.0  ;;  %v20_v7 = vld [vmem:[%s258_s0 + $0x18] sm:$0xff]  ;;  %v76_v15 = vmul.f32 %v17_v1, %v17_v1 }
   0x3   :  { %v37_v8 = vadd.f32 %v36_v5, %v35_v4  ;;  %v40_v9 = vsel %vm34_vm1, %v20_v7, 0.0  ;;  %v21_v10 = vld [vmem:[%s258_s0 + $0x20] sm:$0xff]  ;;  %v22_v13 = vld [vmem:[%s258_s0 + $0x28] sm:$0xff]  ;;  %v77_v16 = vmul.f32 %v18_v2, %v18_v2  ;;  %v78_v17 = vmul.f32 %v19_v3, %v19_v3  ;;  %v23_v19 = vld [vmem:[%s258_s0 + $0x30] sm:$0xff] }
   0x4   :  { %v42_v12 = vsel %vm34_vm1, %v21_v10, 0.0  ;;  %v44_v18 = vsel %vm34_vm1, %v22_v13, 0.0  ;;  %v79_v21 = vmul.f32 %v20_v7, %v20_v7  ;;  %v46_v22 = vsel %vm34_vm1, %v23_v19, 0.0  ;;  %v24_v24 = vld [vmem:[%s258_s0 + $0x38] sm:$0xff]  ;;  %v25_v31 = vld [vmem:[%s258_s0 + $0x40] sm:$0xff]  ;;  %v26_v37 = vld [vmem:[%s258_s0 + $0x48] sm:$0xff] }
   0x5   :  { %v39_v11 = vadd.f32 %v38_v6, %v37_v8  ;;  %v80_v23 = vmul.f32 %v21_v10, %v21_v10  ;;  %v92_v26 = vsel %vm34_vm1, %v76_v15, 0.0  ;;  %v93_v27 = vsel %vm34_vm1, %v77_v16, 0.0  ;;  %v27_v43 = vld [vmem:[%s258_s0 + $0x50] sm:$0xff]  ;;  %v28_v49 = vld [vmem:[%s258_s0 + $0x58] sm:$0xff]  ;;  %v29_v55 = vld [vmem:[%s258_s0 + $0x60] sm:$0xff] }
   0x6   :  { %v95_v28 = vsel %vm34_vm1, %v78_v17, 0.0  ;;  %v48_v29 = vsel %vm34_vm1, %v24_v24, 0.0  ;;  %v94_v30 = vadd.f32 %v93_v27, %v92_v26  ;;  %v81_v33 = vmul.f32 %v22_v13, %v22_v13  ;;  %v30_v61 = vld [vmem:[%s258_s0 + $0x68] sm:$0xff]  ;;  %v31_v3 = vld [vmem:[%s258_s0 + $0x70] sm:$0xff] }
   0x7   :  { %v41_v14 = vadd.f32 %v40_v9, %v39_v11  ;;  %v97_v34 = vsel %vm34_vm1, %v79_v21, 0.0  ;;  %v50_v35 = vsel %vm34_vm1, %v25_v31, 0.0  ;;  %v82_v39 = vmul.f32 %v23_v19, %v23_v19  ;;  %v32_v9 = vld [vmem:[%s258_s0 + $0x78] sm:$0xff] }
   0x8   :  { %v96_v36 = vadd.f32 %v95_v28, %v94_v30  ;;  %v99_v40 = vsel %vm34_vm1, %v80_v23, 0.0  ;;  %v52_v41 = vsel %vm34_vm1, %v26_v37, 0.0  ;;  %v83_v45 = vmul.f32 %v24_v24, %v24_v24 }
   0x9   :  { %v43_v20 = vadd.f32 %v42_v12, %v41_v14  ;;  %v101_v46 = vsel %vm34_vm1, %v81_v33, 0.0  ;;  %v54_v47 = vsel %vm34_vm1, %v27_v43, 0.0  ;;  %v84_v51 = vmul.f32 %v25_v31, %v25_v31 }
   0xa   :  { %v98_v42 = vadd.f32 %v97_v34, %v96_v36  ;;  %v103_v52 = vsel %vm34_vm1, %v82_v39, 0.0  ;;  %v56_v53 = vsel %vm34_vm1, %v28_v49, 0.0  ;;  %v85_v57 = vmul.f32 %v26_v37, %v26_v37  ;;  %v33_v36 = vld [vmem:[%s259_s1] sm:$0x1] }
   0xb   :  { %v45_v25 = vadd.f32 %v44_v18, %v43_v20  ;;  %v105_v58 = vsel %vm34_vm1, %v83_v45, 0.0  ;;  %v58_v59 = vsel %vm34_vm1, %v29_v55, 0.0  ;;  %v86_v63 = vmul.f32 %v27_v43, %v27_v43 }
   0xc   :  { %v100_v48 = vadd.f32 %v99_v40, %v98_v42  ;;  %v107_v0 = vsel %vm34_vm1, %v84_v51, 0.0  ;;  %v60_v1 = vsel %vm34_vm1, %v30_v61, 0.0  ;;  %v87_v5 = vmul.f32 %v28_v49, %v28_v49 }
   0xd   :  { %v47_v32 = vadd.f32 %v46_v22, %v45_v25  ;;  %v109_v6 = vsel %vm34_vm1, %v85_v57, 0.0  ;;  %v62_v7 = vsel %vm34_vm1, %v31_v3, 0.0  ;;  %v88_v11 = vmul.f32 %v29_v55, %v29_v55 }
   0xe   :  { %v102_v54 = vadd.f32 %v101_v46, %v100_v48  ;;  %v111_v12 = vsel %vm34_vm1, %v86_v63, 0.0  ;;  %v64_v13 = vsel %vm34_vm1, %v32_v9, 0.0  ;;  %v89_v16 = vmul.f32 %v30_v61, %v30_v61 }
   0xf   :  { %v49_v38 = vadd.f32 %v48_v29, %v47_v32  ;;  %v113_v17 = vsel %vm34_vm1, %v87_v5, 0.0  ;;  %v90_v20 = vmul.f32 %v31_v3, %v31_v3  ;;  %v115_v21 = vsel %vm34_vm1, %v88_v11, 0.0 }
  0x10   :  { %v104_v60 = vadd.f32 %v103_v52, %v102_v54  ;;  %v91_v24 = vmul.f32 %v32_v9, %v32_v9  ;;  %v117_v25 = vsel %vm34_vm1, %v89_v16, 0.0 }
  0x11   :  { %v51_v44 = vadd.f32 %v50_v35, %v49_v38  ;;  %v119_v28 = vsel %vm34_vm1, %v90_v20, 0.0 }
  0x12   :  { %v106_v2 = vadd.f32 %v105_v58, %v104_v60  ;;  %v121_v31 = vsel %vm34_vm1, %v91_v24, 0.0 }
  0x13   :  { %v53_v50 = vadd.f32 %v52_v41, %v51_v44  ;;  %v75_v44 = vld [vmem:[%s260_s2] sm:$0x1] }
  0x14   :  { %v108_v8 = vadd.f32 %v107_v0, %v106_v2 }
  0x15   :  { %v55_v56 = vadd.f32 %v54_v47, %v53_v50 }
  0x16   :  { %v110_v14 = vadd.f32 %v109_v6, %v108_v8 }
  0x17   :  { %v57_v62 = vadd.f32 %v56_v53, %v55_v56 }
  0x18   :  { %v112_v18 = vadd.f32 %v111_v12, %v110_v14 }
  0x19   :  { %v59_v4 = vadd.f32 %v58_v59, %v57_v62 }
  0x1a   :  { %v114_v22 = vadd.f32 %v113_v17, %v112_v18 }
  0x1b   :  { %v61_v10 = vadd.f32 %v60_v1, %v59_v4 }
  0x1c   :  { %v116_v26 = vadd.f32 %v115_v21, %v114_v22 }
  0x1d   :  { %v63_v15 = vadd.f32 %v62_v7, %v61_v10 }
  0x1e   :  { %v118_v29 = vadd.f32 %v117_v25, %v116_v26 }
  0x1f   :  { %v65_v19 = vadd.f32 %v64_v13, %v63_v15 }
  0x20   :  { %v120_v32 = vadd.f32 %v119_v28, %v118_v29 }
  0x21   :  { %v66_v23 = vrot.slane %v65_v19, 4 }
  0x22   :  { %v122_v34 = vadd.f32 %v121_v31, %v120_v32 }
  0x23   :  { %v67_v27 = vadd.f32 %v66_v23, %v65_v19 }
  0x24   :  { %v123_v37 = vrot.slane %v122_v34, 4 }
  0x25   :  { %v68_v30 = vrot.slane %v67_v27, 2 }
  0x26   :  { %v124_v39 = vadd.f32 %v123_v37, %v122_v34 }
  0x27   :  { %v69_v33 = vadd.f32 %v68_v30, %v67_v27 }
  0x28   :  { %v125_v41 = vrot.slane %v124_v39, 2 }
  0x29   :  { %v70_v35 = vrot.slane %v69_v33, 1 }
  0x2a   :  { %v126_v42 = vadd.f32 %v125_v41, %v124_v39 }
  0x2b   :  { %v71_v38 = vadd.f32 %v70_v35, %v69_v33 }
  0x2c   :  { %v127_v43 = vrot.slane %v126_v42, 1 }
  0x2d   :  { %v72_v40 = vadd.f32 %v71_v38, %v33_v36 }
  0x2e   :  { %v128_v45 = vadd.f32 %v127_v43, %v126_v42 }
  0x2f   :  { %74 = vst.msk [vmem:[%s259_s1] sm:$0x1] %vm14_vm0, %v72_v40 }
  0x30   :  { %v129_v46 = vadd.f32 %v128_v45, %v75_v44 }
  0x32   :  { %130 = vst.msk [vmem:[%s260_s2] sm:$0x1] %vm14_vm0, %v129_v46 }

// kernel: forward.112
= control target key start
LH: loop header
LB: loop body
LE: loop exit
PB: predicated region body
PF: predicated region fallthrough
CT: control target
= control target key end

     0   :  { %vm92_vm0 = vcmask 523264   ;;  %s271_s0 = inlined_call_operand.vmem [shape: f32[128,64], index: 0, kind: input, shape index: {}]   ;;  %s272_s1 = inlined_call_operand.vmem [shape: f32[1,64], index: 1, kind: input, shape index: {}]   ;;  %s273_s2 = inlined_call_operand.vmem [shape: f32[1,64], index: 2, kind: input, shape index: {}]   ;;  %s274_s3 = inlined_call_operand.vmem [shape: f32[128,64], index: 3, kind: output, shape index: {}]  }
   0x1   :  { %v14_v0 = vld [vmem:[%s271_s0] sm:$0xff]  ;;  %v15_v4 = vld [vmem:[%s271_s0 + $0x8] sm:$0xff]  ;;  %v16_v5 = vld [vmem:[%s271_s0 + $0x10] sm:$0xff] }
   0x2   :  { %v113_v1 = vld [vmem:[%s272_s1] ss:$0 sm:$0xff]  ;;  %v17_v6 = vld [vmem:[%s271_s0 + $0x18] sm:$0xff]  ;;  %v19_v11 = vld [vmem:[%s271_s0 + $0x28] sm:$0xff] }
   0x3   :  { %v144_v2 = vld [vmem:[%s273_s2] ss:$0 sm:$0xff]  ;;  %v37_v3 = vmul.f32 %v113_v1, %v14_v0  ;;  %v38_v7 = vmul.f32 %v113_v1, %v15_v4  ;;  %v39_v8 = vmul.f32 %v113_v1, %v16_v5  ;;  %v40_v9 = vmul.f32 %v113_v1, %v17_v6  ;;  %v20_v12 = vld [vmem:[%s271_s0 + $0x30] sm:$0xff]  ;;  %v21_v17 = vld [vmem:[%s271_s0 + $0x38] sm:$0xff] }
   0x4   :  { %v18_v10 = vld [vmem:[%s271_s0 + $0x20] sm:$0xff]  ;;  %v42_v15 = vmul.f32 %v113_v1, %v19_v11  ;;  %v43_v16 = vmul.f32 %v113_v1, %v20_v12  ;;  %v44_v21 = vmul.f32 %v113_v1, %v21_v17  ;;  %v23_v27 = vld [vmem:[%s271_s0 + $0x48] sm:$0xff]  ;;  %v24_v28 = vld [vmem:[%s271_s0 + $0x50] sm:$0xff] }
   0x5   :  { %v60_v13 = vadd.f32 %v144_v2, %v37_v3  ;;  %v41_v14 = vmul.f32 %v113_v1, %v18_v10  ;;  %v61_v18 = vadd.f32 %v144_v2, %v38_v7  ;;  %v62_v19 = vadd.f32 %v144_v2, %v39_v8  ;;  %v22_v22 = vld [vmem:[%s271_s0 + $0x40] sm:$0xff]  ;;  %v25_v29 = vld [vmem:[%s271_s0 + $0x58] sm:$0xff]  ;;  %v27_v35 = vld [vmem:[%s271_s0 + $0x68] sm:$0xff] }
   0x6   :  { %v63_v20 = vadd.f32 %v144_v2, %v40_v9  ;;  %v65_v25 = vadd.f32 %v144_v2, %v42_v15  ;;  %v66_v26 = vadd.f32 %v144_v2, %v43_v16  ;;  %v67_v33 = vadd.f32 %v144_v2, %v44_v21  ;;  %v26_v34 = vld [vmem:[%s271_s0 + $0x60] sm:$0xff]  ;;  %v28_v36 = vld [vmem:[%s271_s0 + $0x70] sm:$0xff]  ;;  %v29_v41 = vld [vmem:[%s271_s0 + $0x78] sm:$0xff] }
   0x7   :  { %v76_v23 = vmax.f32 %v60_v13, 0.0  ;;  %v64_v24 = vadd.f32 %v144_v2, %v41_v14  ;;  %v77_v30 = vmax.f32 %v61_v18, 0.0  ;;  %v78_v31 = vmax.f32 %v62_v19, 0.0 }
   0x8   :  { %v79_v32 = vmax.f32 %v63_v20, 0.0  ;;  %v81_v38 = vmax.f32 %v65_v25, 0.0  ;;  %v82_v39 = vmax.f32 %v66_v26, 0.0  ;;  %v45_v40 = vmul.f32 %v113_v1, %v22_v22 }
   0x9   :  { %93 = vst.msk [vmem:[%s274_s3] sm:$0xff] %vm92_vm0, %v76_v23  ;;  %v80_v37 = vmax.f32 %v64_v24, 0.0  ;;  %94 = vst.msk [vmem:[%s274_s3 + $0x8] sm:$0xff] %vm92_vm0, %v77_v30  ;;  %v83_v42 = vmax.f32 %v67_v33, 0.0  ;;  %v46_v43 = vmul.f32 %v113_v1, %v23_v27  ;;  %v47_v44 = vmul.f32 %v113_v1, %v24_v28 }
   0xa   :  { %95 = vst.msk [vmem:[%s274_s3 + $0x10] sm:$0xff] %vm92_vm0, %v78_v31  ;;  %96 = vst.msk [vmem:[%s274_s3 + $0x18] sm:$0xff] %vm92_vm0, %v79_v32  ;;  %v48_v45 = vmul.f32 %v113_v1, %v25_v29  ;;  %v68_v46 = vadd.f32 %v144_v2, %v45_v40  ;;  %v49_v47 = vmul.f32 %v113_v1, %v26_v34 }
   0xb   :  { %97 = vst.msk [vmem:[%s274_s3 + $0x20] sm:$0xff] %vm92_vm0, %v80_v37  ;;  %98 = vst.msk [vmem:[%s274_s3 + $0x28] sm:$0xff] %vm92_vm0, %v81_v38  ;;  %v50_v48 = vmul.f32 %v113_v1, %v27_v35  ;;  %v51_v49 = vmul.f32 %v113_v1, %v28_v36  ;;  %v69_v50 = vadd.f32 %v144_v2, %v46_v43 }
   0xc   :  { %99 = vst.msk [vmem:[%s274_s3 + $0x30] sm:$0xff] %vm92_vm0, %v82_v39  ;;  %100 = vst.msk [vmem:[%s274_s3 + $0x38] sm:$0xff] %vm92_vm0, %v83_v42  ;;  %v70_v51 = vadd.f32 %v144_v2, %v47_v44  ;;  %v71_v52 = vadd.f32 %v144_v2, %v48_v45  ;;  %v52_v53 = vmul.f32 %v113_v1, %v29_v41  ;;  %v84_v54 = vmax.f32 %v68_v46, 0.0 }
   0xd   :  { %v72_v55 = vadd.f32 %v144_v2, %v49_v47  ;;  %v73_v56 = vadd.f32 %v144_v2, %v50_v48  ;;  %v74_v57 = vadd.f32 %v144_v2, %v51_v49  ;;  %v85_v58 = vmax.f32 %v69_v50, 0.0 }
   0xe   :  { %v86_v59 = vmax.f32 %v70_v51, 0.0  ;;  %v87_v60 = vmax.f32 %v71_v52, 0.0  ;;  %v75_v61 = vadd.f32 %v144_v2, %v52_v53  ;;  %101 = vst.msk [vmem:[%s274_s3 + $0x40] sm:$0xff] %vm92_vm0, %v84_v54 }
   0xf   :  { %v88_v62 = vmax.f32 %v72_v55, 0.0  ;;  %v89_v63 = vmax.f32 %v73_v56, 0.0  ;;  %v90_v0 = vmax.f32 %v74_v57, 0.0  ;;  %102 = vst.msk [vmem:[%s274_s3 + $0x48] sm:$0xff] %vm92_vm0, %v85_v58 }
  0x10   :  { %103 = vst.msk [vmem:[%s274_s3 + $0x50] sm:$0xff] %vm92_vm0, %v86_v59  ;;  %104 = vst.msk [vmem:[%s274_s3 + $0x58] sm:$0xff] %vm92_vm0, %v87_v60  ;;  %v91_v1 = vmax.f32 %v75_v61, 0.0 }
  0x11   :  { %105 = vst.msk [vmem:[%s274_s3 + $0x60] sm:$0xff] %vm92_vm0, %v88_v62  ;;  %106 = vst.msk [vmem:[%s274_s3 + $0x68] sm:$0xff] %vm92_vm0, %v89_v63 }
  0x12   :  { %107 = vst.msk [vmem:[%s274_s3 + $0x70] sm:$0xff] %vm92_vm0, %v90_v0  ;;  %108 = vst.msk [vmem:[%s274_s3 + $0x78] sm:$0xff] %vm92_vm0, %v91_v1 }

// kernel: forward.110
= control target key start
LH: loop header
LB: loop body
LE: loop exit
PB: predicated region body
PF: predicated region fallthrough
CT: control target
= control target key end

     0   :  { %vm16_vm0 = vcmask 523264   ;;  %v595_v32 = vmov 0.0   ;;  %s803_s1 = inlined_call_operand.vmem [shape: bf16[256,64], index: 1, kind: input, shape index: {}]   ;;  %s804_s0 = inlined_call_operand.vmem [shape: bf16[128,256], index: 0, kind: input, shape index: {}]   ;;  %s805_s2 = inlined_call_operand.vmem [shape: f32[128,64], index: 2, kind: output, shape index: {}]  }
   0x1   :  { %v555_v0 = vld [vmem:[%s803_s1 + $0x40] sm:$0xff]   ;;  %v557_v2 = vld [vmem:[%s803_s1 + $0x48] sm:$0xff]   ;;  %v559_v4 = vld [vmem:[%s803_s1 + $0x50] sm:$0xff]   ;;  %17 = vst.msk [vmem:[#allocation2] sm:$0xff] %vm16_vm0, %v595_v32 }
   0x2   :  { %v556_v1 = vld [vmem:[%s803_s1] sm:$0xff]   ;;  %474 = vmatprep.subr.bf16.mxu0 %v555_v0  ;;  %538 = vmatprep.subr.bf16.mxu1 %v555_v0  ;;  %v558_v3 = vld [vmem:[%s803_s1 + $0x8] sm:$0xff]   ;;  %v560_v5 = vld [vmem:[%s803_s1 + $0x10] sm:$0xff]   ;;  %18 = vst.msk [vmem:[#allocation2 + $0x8] sm:$0xff] %vm16_vm0, %v595_v32 }
   0x3   :  { %475 = vmatpush3.bf16.msra.mxu0 %v556_v1  ;;  %546 = vmatpush3.bf16.msra.mxu1 %v556_v1  ;;  %v561_v6 = vld [vmem:[%s803_s1 + $0x58] sm:$0xff]   ;;  %v563_v8 = vld [vmem:[%s803_s1 + $0x60] sm:$0xff]   ;;  %v565_v10 = vld [vmem:[%s803_s1 + $0x68] sm:$0xff]   ;;  %19 = vst.msk [vmem:[#allocation2 + $0x10] sm:$0xff] %vm16_vm0, %v595_v32 }
   0x4   :  { %476 = vmatprep.subr.bf16.mxu0 %v557_v2  ;;  %539 = vmatprep.subr.bf16.mxu1 %v557_v2  ;;  %v562_v7 = vld [vmem:[%s803_s1 + $0x18] sm:$0xff]   ;;  %v564_v9 = vld [vmem:[%s803_s1 + $0x20] sm:$0xff]   ;;  %v566_v13 = vld [vmem:[%s803_s1 + $0x28] sm:$0xff]   ;;  %20 = vst.msk [vmem:[#allocation2 + $0x18] sm:$0xff] %vm16_vm0, %v595_v32 }
   0x5   :  { %v573_v11 = vld [vmem:[%s804_s0 + $0x4] ss:$8 sps:$4 sm:$0xff]   ;;  %v567_v14 = vld [vmem:[%s803_s1 + $0x70] sm:$0xff]   ;;  %v569_v16 = vld [vmem:[%s803_s1 + $0x78] sm:$0xff]   ;;  %21 = vst.msk [vmem:[#allocation2 + $0x20] sm:$0xff] %vm16_vm0, %v595_v32 }
   0x6   :  { %v576_v12 = vld [vmem:[%s804_s0 + $0x44] ss:$8 sps:$4 sm:$0xff]   ;;  %305 = vmatprep.mubr.bf16.mxu0 %v573_v11  ;;  %v568_v15 = vld [vmem:[%s803_s1 + $0x30] sm:$0xff]   ;;  %v570_v17 = vld [vmem:[%s803_s1 + $0x38] sm:$0xff]   ;;  %22 = vst.msk [vmem:[#allocation2 + $0x28] sm:$0xff] %vm16_vm0, %v595_v32 }
   0x7   :  { %477 = vmatpush3.bf16.msra.mxu0 %v558_v3  ;;  %547 = vmatpush3.bf16.msra.mxu1 %v558_v3  ;;  %v571_v18 = vld [vmem:[%s804_s0] ss:$8 sps:$4 sm:$0xff]   ;;  %v577_v20 = vld [vmem:[%s804_s0 + $0x14] ss:$8 sps:$4 sm:$0xff]   ;;  %v581_v22 = vld [vmem:[%s804_s0 + $0x10] ss:$8 sps:$4 sm:$0xff]  }
   0x8   :  { %478 = vmatprep.subr.bf16.mxu0 %v559_v4  ;;  %540 = vmatprep.subr.bf16.mxu1 %v559_v4  ;;  %v574_v19 = vld [vmem:[%s804_s0 + $0x40] ss:$8 sps:$4 sm:$0xff]   ;;  %v579_v21 = vld [vmem:[%s804_s0 + $0x54] ss:$8 sps:$4 sm:$0xff]   ;;  %v582_v23 = vld [vmem:[%s804_s0 + $0x50] ss:$8 sps:$4 sm:$0xff]  }
   0x9   :  { %337 = vmatprep.mubr.bf16.mxu1 %v576_v12  ;;  %v583_v24 = vld [vmem:[%s804_s0 + $0x24] ss:$8 sps:$4 sm:$0xff]   ;;  %v587_v26 = vld [vmem:[%s804_s0 + $0x20] ss:$8 sps:$4 sm:$0xff]   ;;  %v589_v28 = vld [vmem:[%s804_s0 + $0x34] ss:$8 sps:$4 sm:$0xff]  }
   0xa   :  { %v585_v25 = vld [vmem:[%s804_s0 + $0x64] ss:$8 sps:$4 sm:$0xff]   ;;  %v588_v27 = vld [vmem:[%s804_s0 + $0x60] ss:$8 sps:$4 sm:$0xff]   ;;  %v591_v29 = vld [vmem:[%s804_s0 + $0x74] ss:$8 sps:$4 sm:$0xff]  }
   0xb   :  { %479 = vmatpush3.bf16.msra.mxu0 %v560_v5  ;;  %548 = vmatpush3.bf16.msra.mxu1 %v560_v5  ;;  %v593_v30 = vld [vmem:[%s804_s0 + $0x30] ss:$8 sps:$4 sm:$0xff]   ;;  %23 = vst.msk [vmem:[#allocation2 + $0x30] sm:$0xff] %vm16_vm0, %v595_v32  ;;  %24 = vst.msk [vmem:[#allocation2 + $0x38] sm:$0xff] %vm16_vm0, %v595_v32  ;;  %v33_v35 = vld [vmem:[#allocation2] sm:$0xff] }
   0xc   :  { %480 = vmatprep.subr.bf16.mxu0 %v561_v6  ;;  %541 = vmatprep.subr.bf16.mxu1 %v561_v6  ;;  %v594_v31 = vld [vmem:[%s804_s0 + $0x70] ss:$8 sps:$4 sm:$0xff]   ;;  %25 = vst.msk [vmem:[#allocation2 + $0x40] sm:$0xff] %vm16_vm0, %v595_v32  ;;  %26 = vst.msk [vmem:[#allocation2 + $0x48] sm:$0xff] %vm16_vm0, %v595_v32  ;;  %v34_v43 = vld [vmem:[#allocation2 + $0x8] sm:$0xff] }
   0xd   :  { %27 = vst.msk [vmem:[#allocation2 + $0x50] sm:$0xff] %vm16_vm0, %v595_v32  ;;  %28 = vst.msk [vmem:[#allocation2 + $0x58] sm:$0xff] %vm16_vm0, %v595_v32  ;;  %v35_v55 = vld [vmem:[#allocation2 + $0x10] sm:$0xff]  ;;  %v36_v63 = vld [vmem:[#allocation2 + $0x18] sm:$0xff] }
   0xe   :  { %29 = vst.msk [vmem:[#allocation2 + $0x60] sm:$0xff] %vm16_vm0, %v595_v32  ;;  %30 = vst.msk [vmem:[#allocation2 + $0x68] sm:$0xff] %vm16_vm0, %v595_v32 }
   0xf   :  { %481 = vmatpush3.bf16.msra.mxu0 %v562_v7  ;;  %549 = vmatpush3.bf16.msra.mxu1 %v562_v7  ;;  %31 = vst.msk [vmem:[#allocation2 + $0x70] sm:$0xff] %vm16_vm0, %v595_v32  ;;  %32 = vst.msk [vmem:[#allocation2 + $0x78] sm:$0xff] %vm16_vm0, %v595_v32 }
  0x10   :  { %482 = vmatprep.subr.bf16.mxu0 %v563_v8  ;;  %542 = vmatprep.subr.bf16.mxu1 %v563_v8 }
  0x13   :  { %483 = vmatpush3.bf16.msra.mxu0 %v564_v9  ;;  %550 = vmatpush3.bf16.msra.mxu1 %v564_v9  ;;  %v41_v37 = vld [vmem:[#allocation2 + $0x40] sm:$0xff]  ;;  %v42_v45 = vld [vmem:[#allocation2 + $0x48] sm:$0xff] }
  0x14   :  { %484 = vmatprep.subr.bf16.mxu0 %v565_v10  ;;  %543 = vmatprep.subr.bf16.mxu1 %v565_v10  ;;  %v43_v57 = vld [vmem:[#allocation2 + $0x50] sm:$0xff]  ;;  %v44_v1 = vld [vmem:[#allocation2 + $0x58] sm:$0xff] }
  0x17   :  { %485 = vmatpush3.bf16.msra.mxu0 %v566_v13  ;;  %551 = vmatpush3.bf16.msra.mxu1 %v566_v13 }
  0x18   :  { %486 = vmatprep.subr.bf16.mxu0 %v567_v14  ;;  %544 = vmatprep.subr.bf16.mxu1 %v567_v14 }
  0x1b   :  { %487 = vmatpush3.bf16.msra.mxu0 %v568_v15  ;;  %552 = vmatpush3.bf16.msra.mxu1 %v568_v15  ;;  %v37_v15 = vld [vmem:[#allocation2 + $0x20] sm:$0xff] }
  0x1c   :  { %488 = vmatprep.subr.bf16.mxu0 %v569_v16  ;;  %545 = vmatprep.subr.bf16.mxu1 %v569_v16 }
  0x1f   :  { %489 = vmatpush3.bf16.msra.mxu0 %v570_v17  ;;  %553 = vmatpush3.bf16.msra.mxu1 %v570_v17  ;;  %v45_v17 = vld [vmem:[#allocation2 + $0x60] sm:$0xff] }
  0x22   :  { %306 = vmatmul.mubr.bf16.vlgmr.msra.gmra.mrb[0].mxu0 %v571_v18  ;;  %338 = vmatmul.mubr.bf16.vlgmr.msra.gmra.mrb[0].mxu1 %v574_v19 }
  0x23   :  { %313 = vmatprep.mubr.bf16.mxu0 %v577_v20  ;;  %345 = vmatprep.mubr.bf16.mxu1 %v579_v21 }
  0x2a   :  { %314 = vmatmul.mubr.bf16.gmra.mrb[4].mxu0 %v581_v22  ;;  %346 = vmatmul.mubr.bf16.gmra.mrb[4].mxu1 %v582_v23  ;;  %v38_v23 = vld [vmem:[#allocation2 + $0x28] sm:$0xff] }
  0x2b   :  { %321 = vmatprep.mubr.bf16.mxu0 %v583_v24  ;;  %353 = vmatprep.mubr.bf16.mxu1 %v585_v25  ;;  %v46_v25 = vld [vmem:[#allocation2 + $0x68] sm:$0xff] }
  0x32   :  { %322 = vmatmul.mubr.bf16.gmra.mrb[8].mxu0 %v587_v26  ;;  %354 = vmatmul.mubr.bf16.gmra.mrb[8].mxu1 %v588_v27 }
  0x33   :  { %329 = vmatprep.mubr.bf16.mxu0 %v589_v28  ;;  %361 = vmatprep.mubr.bf16.mxu1 %v591_v29 }
  0x3a   :  { %330 = vmatmul.mubr.bf16.gmra.mrb[12].mxu0 %v593_v30  ;;  %362 = vmatmul.mubr.bf16.gmra.mrb[12].mxu1 %v594_v31 }
  0xf5   :  { %v490_v33 = vpop.f32.mrb[0].mxu0  ;;  %v514_v34 = vpop.f32.mrb[0].mxu1 }
  0xf6   :  { %v491_v36 = vpop.f32.mrb[1].mxu0  ;;  %v515_v38 = vpop.f32.mrb[1].mxu1 }
  0xf7   :  { %v492_v39 = vadd.f32 %v491_v36, %v490_v33  ;;  %v516_v40 = vadd.f32 %v515_v38, %v514_v34  ;;  %v493_v41 = vpop.f32.mrb[2].mxu0  ;;  %v517_v42 = vpop.f32.mrb[2].mxu1 }
  0xf8   :  { %v494_v44 = vpop.f32.mrb[3].mxu0  ;;  %v518_v46 = vpop.f32.mrb[3].mxu1 }
  0xf9   :  { %v370_v47 = vadd.f32 %v492_v39, %v33_v35  ;;  %v378_v48 = vadd.f32 %v516_v40, %v41_v37  ;;  %v495_v49 = vadd.f32 %v494_v44, %v493_v41  ;;  %v519_v50 = vadd.f32 %v518_v46, %v517_v42  ;;  %v39_v39 = vld [vmem:[#allocation2 + $0x30] sm:$0xff] }
  0xfa   :  { %v47_v41 = vld [vmem:[#allocation2 + $0x70] sm:$0xff] }
  0xfb   :  { %387 = vst.msk [vmem:[#allocation2] sm:$0xff] %vm16_vm0, %v370_v47  ;;  %395 = vst.msk [vmem:[#allocation2 + $0x40] sm:$0xff] %vm16_vm0, %v378_v48  ;;  %v371_v51 = vadd.f32 %v495_v49, %v34_v43  ;;  %v379_v52 = vadd.f32 %v519_v50, %v42_v45  ;;  %v40_v47 = vld [vmem:[#allocation2 + $0x38] sm:$0xff] }
  0xfc   :  { %v48_v49 = vld [vmem:[#allocation2 + $0x78] sm:$0xff] }
  0xfd   :  { %388 = vst.msk [vmem:[#allocation2 + $0x8] sm:$0xff] %vm16_vm0, %v371_v51  ;;  %396 = vst.msk [vmem:[#allocation2 + $0x48] sm:$0xff] %vm16_vm0, %v379_v52  ;;  %v496_v53 = vpop.f32.mrb[4].mxu0  ;;  %v520_v54 = vpop.f32.mrb[4].mxu1 }
  0xfe   :  { %v497_v56 = vpop.f32.mrb[5].mxu0  ;;  %v521_v58 = vpop.f32.mrb[5].mxu1 }
  0xff   :  { %v498_v59 = vadd.f32 %v497_v56, %v496_v53  ;;  %v522_v60 = vadd.f32 %v521_v58, %v520_v54  ;;  %v499_v61 = vpop.f32.mrb[6].mxu0  ;;  %v523_v62 = vpop.f32.mrb[6].mxu1 }
 0x100   :  { %v500_v0 = vpop.f32.mrb[7].mxu0  ;;  %v524_v2 = vpop.f32.mrb[7].mxu1 }
 0x101   :  { %v372_v3 = vadd.f32 %v498_v59, %v35_v55  ;;  %v380_v4 = vadd.f32 %v522_v60, %v43_v57  ;;  %v501_v5 = vadd.f32 %v500_v0, %v499_v61  ;;  %v525_v6 = vadd.f32 %v524_v2, %v523_v62 }
 0x102   :  { %v406_v7 = vld [vmem:[#allocation2] sm:$0xff] }
 0x103   :  { %v414_v8 = vld [vmem:[#allocation2 + $0x40] sm:$0xff]  ;;  %422 = vst.msk [vmem:[%s805_s2] sm:$0xff] %vm16_vm0, %v406_v7  ;;  %389 = vst.msk [vmem:[#allocation2 + $0x10] sm:$0xff] %vm16_vm0, %v372_v3  ;;  %v373_v9 = vadd.f32 %v501_v5, %v36_v63  ;;  %v381_v10 = vadd.f32 %v525_v6, %v44_v1 }
 0x104   :  { %430 = vst.msk [vmem:[%s805_s2 + $0x40] sm:$0xff] %vm16_vm0, %v414_v8  ;;  %397 = vst.msk [vmem:[#allocation2 + $0x50] sm:$0xff] %vm16_vm0, %v380_v4  ;;  %v407_v11 = vld [vmem:[#allocation2 + $0x8] sm:$0xff] }
 0x105   :  { %v415_v12 = vld [vmem:[#allocation2 + $0x48] sm:$0xff]  ;;  %423 = vst.msk [vmem:[%s805_s2 + $0x8] sm:$0xff] %vm16_vm0, %v407_v11  ;;  %390 = vst.msk [vmem:[#allocation2 + $0x18] sm:$0xff] %vm16_vm0, %v373_v9  ;;  %v502_v13 = vpop.f32.mrb[8].mxu0  ;;  %v526_v14 = vpop.f32.mrb[8].mxu1 }
 0x106   :  { %431 = vst.msk [vmem:[%s805_s2 + $0x48] sm:$0xff] %vm16_vm0, %v415_v12  ;;  %398 = vst.msk [vmem:[#allocation2 + $0x58] sm:$0xff] %vm16_vm0, %v381_v10  ;;  %v503_v16 = vpop.f32.mrb[9].mxu0  ;;  %v527_v18 = vpop.f32.mrb[9].mxu1 }
 0x107   :  { %v504_v19 = vadd.f32 %v503_v16, %v502_v13  ;;  %v528_v20 = vadd.f32 %v527_v18, %v526_v14  ;;  %v505_v21 = vpop.f32.mrb[10].mxu0  ;;  %v529_v22 = vpop.f32.mrb[10].mxu1 }
 0x108   :  { %v506_v24 = vpop.f32.mrb[11].mxu0  ;;  %v530_v26 = vpop.f32.mrb[11].mxu1 }
 0x109   :  { %v374_v27 = vadd.f32 %v504_v19, %v37_v15  ;;  %v382_v28 = vadd.f32 %v528_v20, %v45_v17  ;;  %v507_v29 = vadd.f32 %v506_v24, %v505_v21  ;;  %v531_v30 = vadd.f32 %v530_v26, %v529_v22 }
 0x10a   :  { %v408_v31 = vld [vmem:[#allocation2 + $0x10] sm:$0xff] }
 0x10b   :  { %v416_v32 = vld [vmem:[#allocation2 + $0x50] sm:$0xff]  ;;  %424 = vst.msk [vmem:[%s805_s2 + $0x10] sm:$0xff] %vm16_vm0, %v408_v31  ;;  %391 = vst.msk [vmem:[#allocation2 + $0x20] sm:$0xff] %vm16_vm0, %v374_v27  ;;  %v375_v33 = vadd.f32 %v507_v29, %v38_v23  ;;  %v383_v34 = vadd.f32 %v531_v30, %v46_v25 }
 0x10c   :  { %432 = vst.msk [vmem:[%s805_s2 + $0x50] sm:$0xff] %vm16_vm0, %v416_v32  ;;  %399 = vst.msk [vmem:[#allocation2 + $0x60] sm:$0xff] %vm16_vm0, %v382_v28  ;;  %v409_v35 = vld [vmem:[#allocation2 + $0x18] sm:$0xff] }
 0x10d   :  { %v417_v36 = vld [vmem:[#allocation2 + $0x58] sm:$0xff]  ;;  %425 = vst.msk [vmem:[%s805_s2 + $0x18] sm:$0xff] %vm16_vm0, %v409_v35  ;;  %392 = vst.msk [vmem:[#allocation2 + $0x28] sm:$0xff] %vm16_vm0, %v375_v33  ;;  %v508_v37 = vpop.f32.mrb[12].mxu0  ;;  %v532_v38 = vpop.f32.mrb[12].mxu1 }
 0x10e   :  { %433 = vst.msk [vmem:[%s805_s2 + $0x58] sm:$0xff] %vm16_vm0, %v417_v36  ;;  %400 = vst.msk [vmem:[#allocation2 + $0x68] sm:$0xff] %vm16_vm0, %v383_v34  ;;  %v509_v40 = vpop.f32.mrb[13].mxu0  ;;  %v533_v42 = vpop.f32.mrb[13].mxu1 }
 0x10f   :  { %v510_v43 = vadd.f32 %v509_v40, %v508_v37  ;;  %v534_v44 = vadd.f32 %v533_v42, %v532_v38  ;;  %v511_v45 = vpop.f32.mrb[14].mxu0  ;;  %v535_v46 = vpop.f32.mrb[14].mxu1 }
 0x110   :  { %v512_v48 = vpop.f32.mrb[15].mxu0  ;;  %v536_v50 = vpop.f32.mrb[15].mxu1 }
 0x111   :  { %v376_v51 = vadd.f32 %v510_v43, %v39_v39  ;;  %v384_v52 = vadd.f32 %v534_v44, %v47_v41  ;;  %v513_v53 = vadd.f32 %v512_v48, %v511_v45  ;;  %v537_v54 = vadd.f32 %v536_v50, %v535_v46 }
 0x112   :  { %v410_v55 = vld [vmem:[#allocation2 + $0x20] sm:$0xff] }
 0x113   :  { %v418_v56 = vld [vmem:[#allocation2 + $0x60] sm:$0xff]  ;;  %426 = vst.msk [vmem:[%s805_s2 + $0x20] sm:$0xff] %vm16_vm0, %v410_v55  ;;  %393 = vst.msk [vmem:[#allocation2 + $0x30] sm:$0xff] %vm16_vm0, %v376_v51  ;;  %v377_v57 = vadd.f32 %v513_v53, %v40_v47  ;;  %v385_v58 = vadd.f32 %v537_v54, %v48_v49 }
 0x114   :  { %434 = vst.msk [vmem:[%s805_s2 + $0x60] sm:$0xff] %vm16_vm0, %v418_v56  ;;  %401 = vst.msk [vmem:[#allocation2 + $0x70] sm:$0xff] %vm16_vm0, %v384_v52  ;;  %v411_v59 = vld [vmem:[#allocation2 + $0x28] sm:$0xff] }
 0x115   :  { %v419_v60 = vld [vmem:[#allocation2 + $0x68] sm:$0xff]  ;;  %427 = vst.msk [vmem:[%s805_s2 + $0x28] sm:$0xff] %vm16_vm0, %v411_v59  ;;  %394 = vst.msk [vmem:[#allocation2 + $0x38] sm:$0xff] %vm16_vm0, %v377_v57 }
 0x116   :  { %435 = vst.msk [vmem:[%s805_s2 + $0x68] sm:$0xff] %vm16_vm0, %v419_v60  ;;  %402 = vst.msk [vmem:[#allocation2 + $0x78] sm:$0xff] %vm16_vm0, %v385_v58 }
 0x11a   :  { %v412_v61 = vld [vmem:[#allocation2 + $0x30] sm:$0xff] }
 0x11b   :  { %v420_v62 = vld [vmem:[#allocation2 + $0x70] sm:$0xff]  ;;  %428 = vst.msk [vmem:[%s805_s2 + $0x30] sm:$0xff] %vm16_vm0, %v412_v61 }
 0x11c   :  { %436 = vst.msk [vmem:[%s805_s2 + $0x70] sm:$0xff] %vm16_vm0, %v420_v62  ;;  %v413_v63 = vld [vmem:[#allocation2 + $0x38] sm:$0xff] }
 0x11d   :  { %v421_v0 = vld [vmem:[#allocation2 + $0x78] sm:$0xff]  ;;  %429 = vst.msk [vmem:[%s805_s2 + $0x38] sm:$0xff] %vm16_vm0, %v413_v63 }
 0x11e   :  { %437 = vst.msk [vmem:[%s805_s2 + $0x78] sm:$0xff] %vm16_vm0, %v421_v0 }

// kernel: forward.113
= control target key start
LH: loop header
LB: loop body
LE: loop exit
PB: predicated region body
PF: predicated region fallthrough
CT: control target
= control target key end

     0   :  { %s487_s15 = smov 0   ;;  %s536_s0 = inlined_call_operand.vmem [shape: f32[2,5,5,64], index: 0, kind: input, shape index: {}]   ;;  %s537_s1 = inlined_call_operand.vmem [shape: f32[2,5,5,64], index: 1, kind: input, shape index: {}]   ;;  %s538_s2 = inlined_call_operand.vmem [shape: f32[2,5,5,64], index: 2, kind: input, shape index: {}]   ;;  %s539_s3 = inlined_call_operand.vmem [shape: f32[2,5,5,64], index: 3, kind: input, shape index: {}]   ;;  %s540_s4 = inlined_call_operand.vmem [shape: f32[2,4,4,64], index: 4, kind: output, shape index: {}]  }
   0x1 LB: > { %s431_s16 = sadd.s32 4294967295, %s460_s15   ;;  %p435_p0 = scmp.ge.s32.totalorder %s460_s15, 1  ;;  %s460_s15 = sphi %s487_s15, %s14_s15  }
   0x2   : > { %p192_p1 = scmp.lt.s32.totalorder %s460_s15, 3 }
   0x4   : > { %p193_p2 = pnand %p435_p0, %p192_p1 }
   0x5   : > { %p233_p3 = scmp.lt.s32.totalorder (!%p193_p2), %s431_s16, 1  ;;  %vm335_vm0 = vcmask (!%p193_p2), 519168  }
   0x6   : > { %196 = sbr.rel (%p193_p2) target bundleno = 38 (0x26), region = 36 }
   0xd   : > { %s542_s16 = smov (!%p233_p3, %s431_s16), 1 }
   0xe   : > { %s498_s17 = smul.u32 40, %s542_s16  ;;  %s444_s30 = sshll.u32 %s542_s16, 4 }
   0xf   : > { %s257_s7 = scalar_lea.vmem %s540_s4, %s444_s30 }
  0x10   : > { %s237_s20 = scalar_lea.vmem %s536_s0, %s498_s17  ;;  %s508_s23 = scalar_lea.vmem %s537_s1, %s498_s17 }
  0x11   : > { %v258_v0 = vld [vmem:[%s237_s20] sm:$0x1f]  ;;  %v259_v1 = vld [vmem:[%s237_s20 + $0x8] sm:$0x1f]  ;;  %v260_v4 = vld [vmem:[%s237_s20 + $0x10] sm:$0x1f]  ;;  %s514_s26 = scalar_lea.vmem %s538_s2, %s498_s17  ;;  %s252_s29 = scalar_lea.vmem %s539_s3, %s498_s17 }
  0x12   : > { %v280_v2 = vrot.slane %v258_v0, 1  ;;  %v281_v3 = vrot.slane %v259_v1, 1  ;;  %v282_v6 = vrot.slane %v260_v4, 1  ;;  %v261_v8 = vld [vmem:[%s237_s20 + $0x18] sm:$0x1f] }
  0x13   : > { %v283_v9 = vrot.slane %v261_v8, 1  ;;  %v262_v13 = vld [vmem:[%s237_s20 + $0x20] sm:$0x1f]  ;;  %v264_v15 = vld [vmem:[%s508_s23 + $0x8] sm:$0x1f] }
  0x14   : > { %v288_v5 = vmax.f32 %v258_v0, %v280_v2  ;;  %v289_v7 = vmax.f32 %v259_v1, %v281_v3  ;;  %v290_v12 = vmax.f32 %v260_v4, %v282_v6  ;;  %v263_v14 = vld [vmem:[%s508_s23] sm:$0x1f]  ;;  %v297_v17 = vrot.slane %v262_v13, 1  ;;  %v265_v22 = vld [vmem:[%s508_s23 + $0x10] sm:$0x1f] }
  0x15   : > { %v291_v16 = vmax.f32 %v261_v8, %v283_v9  ;;  %v268_v18 = vld [vmem:[%s514_s26] sm:$0x1f]  ;;  %v269_v23 = vld [vmem:[%s514_s26 + $0x8] sm:$0x1f]  ;;  %v266_v27 = vld [vmem:[%s508_s23 + $0x18] sm:$0x1f] }
  0x16   : > { %v292_v10 = vmax.f32 %v288_v5, %v259_v1  ;;  %v293_v11 = vmax.f32 %v289_v7, %v260_v4  ;;  %v294_v21 = vmax.f32 %v290_v12, %v261_v8  ;;  %v319_v29 = vrot.slane %v268_v18, 1  ;;  %v270_v30 = vld [vmem:[%s514_s26 + $0x10] sm:$0x1f]  ;;  %v267_v36 = vld [vmem:[%s508_s23 + $0x20] sm:$0x1f] }
  0x17   : > { %v295_v24 = vmax.f32 %v291_v16, %v262_v13  ;;  %v320_v34 = vrot.slane %v269_v23, 1  ;;  %v271_v37 = vld [vmem:[%s514_s26 + $0x18] sm:$0x1f]  ;;  %v321_v42 = vrot.slane %v270_v30, 1  ;;  %v272_v43 = vld [vmem:[%s252_s29] sm:$0x1f] }
  0x18   : > { %v299_v19 = vmax.f32 %v292_v10, %v281_v3  ;;  %v300_v20 = vmax.f32 %v293_v11, %v282_v6  ;;  %v301_v28 = vmax.f32 %v294_v21, %v283_v9  ;;  %v273_v44 = vld [vmem:[%s252_s29 + $0x8] sm:$0x1f]  ;;  %v322_v46 = vrot.slane %v271_v37, 1  ;;  %v274_v50 = vld [vmem:[%s252_s29 + $0x10] sm:$0x1f] }
  0x19   : > { %v302_v31 = vmax.f32 %v295_v24, %v297_v17  ;;  %v275_v55 = vld [vmem:[%s252_s29 + $0x18] sm:$0x1f] }
  0x1a   : > { %v303_v25 = vmax.f32 %v299_v19, %v263_v14  ;;  %v304_v26 = vmax.f32 %v300_v20, %v264_v15  ;;  %v305_v35 = vmax.f32 %v301_v28, %v265_v22 }
  0x1b   : > { %v306_v38 = vmax.f32 %v302_v31, %v266_v27 }
  0x1c   : > { %v307_v32 = vmax.f32 %v303_v25, %v264_v15  ;;  %v308_v33 = vmax.f32 %v304_v26, %v265_v22  ;;  %v309_v41 = vmax.f32 %v305_v35, %v266_v27 }
  0x1d   : > { %v310_v45 = vmax.f32 %v306_v38, %v267_v36 }
  0x1e   : > { %v311_v39 = vmax.f32 %v307_v32, %v268_v18  ;;  %v312_v40 = vmax.f32 %v308_v33, %v269_v23  ;;  %v313_v49 = vmax.f32 %v309_v41, %v270_v30 }
  0x1f   : > { %v314_v51 = vmax.f32 %v310_v45, %v271_v37 }
  0x20   : > { %v327_v47 = vmax.f32 %v311_v39, %v319_v29  ;;  %v328_v48 = vmax.f32 %v312_v40, %v320_v34  ;;  %v329_v54 = vmax.f32 %v313_v49, %v321_v42 }
  0x21   : > { %v330_v56 = vmax.f32 %v314_v51, %v322_v46 }
  0x22   : > { %v331_v52 = vmax.f32 %v327_v47, %v272_v43  ;;  %v332_v53 = vmax.f32 %v328_v48, %v273_v44  ;;  %v333_v57 = vmax.f32 %v329_v54, %v274_v50 }
  0x23   : > { %v334_v58 = vmax.f32 %v330_v56, %v275_v55 }
  0x24   : > { %336 = vst.msk [vmem:[%s257_s7] sm:$0xf] %vm335_vm0, %v331_v52  ;;  %337 = vst.msk [vmem:[%s257_s7 + $0x4] sm:$0xf] %vm335_vm0, %v332_v53 }
  0x25   : > { %338 = vst.msk [vmem:[%s257_s7 + $0x8] sm:$0xf] %vm335_vm0, %v333_v57  ;;  %339 = vst.msk [vmem:[%s257_s7 + $0xc] sm:$0xf] %vm335_vm0, %v334_v58 }
  0x26 PF: > { %s14_s15 = sadd.s32 1, %s460_s15  }
  0x27   : > { %p11_p4 = scmp.ge.s32.totalorder %s14_s15, 4  }
  0x29   :  { %13 = sbr.rel (!%p11_p4) target bundleno = 1 (0x1), region = 75 }

// kernel: forward.115
= control target key start
LH: loop header
LB: loop body
LE: loop exit
PB: predicated region body
PF: predicated region fallthrough
CT: control target
= control target key end

     0   :  { %vm14_vm0 = vcmask 516096   ;;  %vm22_vm1 = vcmask 523264   ;;  %v68_v0 = vmov 0.0   ;;  %s126_s0 = inlined_call_operand.vmem [shape: f32[32,64], index: 0, kind: input, shape index: {}]   ;;  %s127_s1 = inlined_call_operand.vmem [shape: f32[1,64], index: 1, kind: output, shape index: {0}]   ;;  %s128_s2 = inlined_call_operand.vmem [shape: f32[1,64], index: 2, kind: output, shape index: {1}]  }
   0x1   :  { %15 = vst.msk [vmem:[%s127_s1] sm:$0x1] %vm14_vm0, %v68_v0  ;;  %v17_v1 = vld [vmem:[%s126_s0] sm:$0xff]  ;;  %v18_v2 = vld [vmem:[%s126_s0 + $0x8] sm:$0xff]  ;;  %v19_v3 = vld [vmem:[%s126_s0 + $0x10] sm:$0xff] }
   0x2   :  { %16 = vst.msk [vmem:[%s128_s2] sm:$0x1] %vm14_vm0, %v68_v0  ;;  %v20_v4 = vld [vmem:[%s126_s0 + $0x18] sm:$0xff]  ;;  %v23_v5 = vsel %vm22_vm1, %v17_v1, 0.0  ;;  %v24_v6 = vsel %vm22_vm1, %v18_v2, 0.0  ;;  %v26_v7 = vsel %vm22_vm1, %v19_v3, 0.0  ;;  %v40_v8 = vmul.f32 %v17_v1, %v17_v1 }
   0x3   :  { %v25_v9 = vadd.f32 %v24_v6, %v23_v5  ;;  %v41_v10 = vmul.f32 %v18_v2, %v18_v2  ;;  %v42_v11 = vmul.f32 %v19_v3, %v19_v3  ;;  %v28_v12 = vsel %vm22_vm1, %v20_v4, 0.0 }
   0x4   :  { %v43_v13 = vmul.f32 %v20_v4, %v20_v4  ;;  %v44_v14 = vsel %vm22_vm1, %v40_v8, 0.0 }
   0x5   :  { %v27_v15 = vadd.f32 %v26_v7, %v25_v9  ;;  %v45_v16 = vsel %vm22_vm1, %v41_v10, 0.0  ;;  %v47_v17 = vsel %vm22_vm1, %v42_v11, 0.0 }
   0x6   :  { %v46_v18 = vadd.f32 %v45_v16, %v44_v14  ;;  %v49_v20 = vsel %vm22_vm1, %v43_v13, 0.0 }
   0x7   :  { %v29_v19 = vadd.f32 %v28_v12, %v27_v15 }
   0x8   :  { %v48_v21 = vadd.f32 %v47_v17, %v46_v18  ;;  %v21_v31 = vld [vmem:[%s127_s1] sm:$0x1] }
   0x9   :  { %v30_v22 = vrot.slane %v29_v19, 4  ;;  %v39_v36 = vld [vmem:[%s128_s2] sm:$0x1] }
   0xa   :  { %v50_v23 = vadd.f32 %v49_v20, %v48_v21 }
   0xb   :  { %v31_v24 = vadd.f32 %v30_v22, %v29_v19 }
   0xc   :  { %v51_v25 = vrot.slane %v50_v23, 4 }
   0xd   :  { %v32_v26 = vrot.slane %v31_v24, 2 }
   0xe   :  { %v52_v27 = vadd.f32 %v51_v25, %v50_v23 }
   0xf   :  { %v33_v28 = vadd.f32 %v32_v26, %v31_v24 }
  0x10   :  { %v53_v29 = vrot.slane %v52_v27, 2 }
  0x11   :  { %v34_v30 = vrot.slane %v33_v28, 1 }
  0x12   :  { %v54_v32 = vadd.f32 %v53_v29, %v52_v27 }
  0x13   :  { %v35_v33 = vadd.f32 %v34_v30, %v33_v28 }
  0x14   :  { %v55_v34 = vrot.slane %v54_v32, 1 }
  0x15   :  { %v36_v35 = vadd.f32 %v35_v33, %v21_v31 }
  0x16   :  { %v56_v37 = vadd.f32 %v55_v34, %v54_v32 }
  0x17   :  { %38 = vst.msk [vmem:[%s127_s1] sm:$0x1] %vm14_vm0, %v36_v35 }
  0x18   :  { %v57_v38 = vadd.f32 %v56_v37, %v39_v36 }
  0x1a   :  { %58 = vst.msk [vmem:[%s128_s2] sm:$0x1] %vm14_vm0, %v57_v38 }

// kernel: forward.114
= control target key start
LH: loop header
LB: loop body
LE: loop exit
PB: predicated region body
PF: predicated region fallthrough
CT: control target
= control target key end

     0   :  { %s688_s9 = smov 0   ;;  %s690_s10 = smov 0   ;;  %s792_s0 = inlined_call_operand.vmem [shape: bf16[32,640], index: 0, kind: input, shape index: {}]   ;;  %s793_s1 = inlined_call_operand.vmem [shape: bf16[640,64], index: 1, kind: input, shape index: {}]   ;;  %s794_s2 = inlined_call_operand.vmem [shape: f32[32,64], index: 2, kind: output, shape index: {}]  }
   0x1   :  { %s692_s11 = smov 0   ;;  %s694_s12 = smov 0  }
   0x2   :  { %s696_s13 = smov 0  }
   0x3 LB: > { %s24_s14 = sadd.s32 1, %s666_s12  ;;  %p47_p1 = scmp.ne.s32.totalorder %s658_s10, %s654_s9  ;;  %s670_s13 = sphi %s696_s13, %s12_s13   ;;  %s666_s12 = sphi %s694_s12, %s798_s12   ;;  %s662_s11 = sphi %s692_s11, %s797_s11   ;;  %s658_s10 = sphi %s690_s10, %s796_s10   ;;  %s654_s9 = sphi %s688_s9, %s795_s9  }
   0x4   : > { %p25_p0 = scmp.ge.s32.totalorder %s24_s14, 5  ;;  %p48_p2 = scmp.eq.s32.totalorder %s670_s13, 0 }
   0x5   : > { %s40_s16 = sadd.s32 1, %s658_s10  ;;  %p528_p5 = scmp.ge.s32.totalorder %s670_s13, 5 }
   0x6   : > { %s800_s14 = smov (%p25_p0, %s24_s14), 0  ;;  %p49_p3 = por %p48_p2, %p47_p1 }
   0x7   : > { %s36_s15 = ssub.s32 %s666_s12, %s800_s14  ;;  %129 = sbr.rel (%p528_p5) target bundleno = 21 (0x15), region = 16 }
   0x8   : > { %p38_p4 = scmp.eq.s32.totalorder %s36_s15, 0 }
   0xa   : > { %s723_s17 = scalar_select %p38_p4, %s658_s10, %s40_s16  }
   0xe   : > { %132 = sbr.rel (!%p49_p3) target bundleno = 21 (0x15), region = 20  ;;  %s134_s18 = sand.u32 (%p49_p3), 1, %s658_s10  }
   0xf   : > { %s530_s19 = sshll.u32 (%p49_p3), %s666_s12, 2  ;;  %s529_s20 = sshll.u32 (%p49_p3), %s134_s18, 4 }
  0x10   : > { %s141_s23 = scalar_lea.vmem (%p49_p3), %s792_s0, %s530_s19  ;;  %s136_s24 = scalar_lea.vmem (%p49_p3), [#allocation3], %s529_s20 }
  0x11   : > { %v157_v0 = vld [vmem:[%s141_s23] sm:$0xf] (%p49_p3)  ;;  %v159_v1 = vld [vmem:[%s141_s23 + $0x14] sm:$0xf] (%p49_p3)  ;;  %v161_v2 = vld [vmem:[%s141_s23 + $0x28] sm:$0xf] (%p49_p3) }
  0x12   : > { %158 = vst [vmem:[%s136_s24] sm:$0xf] (%p49_p3), %v157_v0  ;;  %160 = vst [vmem:[%s136_s24 + $0x4] sm:$0xf] (%p49_p3), %v159_v1  ;;  %v163_v3 = vld [vmem:[%s141_s23 + $0x3c] sm:$0xf] (%p49_p3) }
  0x13   : > { %162 = vst [vmem:[%s136_s24 + $0x8] sm:$0xf] (%p49_p3), %v161_v2  ;;  %164 = vst [vmem:[%s136_s24 + $0xc] sm:$0xf] (%p49_p3), %v163_v3 }
  0x15 PF: > { %p531_p6 = scmp.ge.s32.totalorder %s670_s13, 1  ;;  %p206_p7 = scmp.lt.s32.totalorder %s670_s13, 6 }
  0x17   : > { %p207_p8 = pnand %p531_p6, %p206_p7 }
  0x18   : > { %s213_s25 = sand.u32 (!%p207_p8), 1, %s654_s9   ;;  %s533_s26 = sshll.u32 (!%p207_p8), %s662_s11, 4 }
  0x19   : > { %210 = sbr.rel (%p207_p8) target bundleno = 298 (0x12a), region = 65  ;;  %s735_s27 = sshll.u32 (!%p207_p8), %s213_s25, 4 }
  0x1a   : > { %p247_p9 = scmp.lt.s32.totalorder (!%p207_p8), %s533_s26, 79  ;;  %s215_s4 = scalar_lea.vmem (!%p207_p8), [#allocation3], %s735_s27 }
  0x1b   : > { %p535_p10 = scmp.ne.s32.totalorder (!%p207_p8), %s662_s11, 0 }
  0x20   : > { %s802_s26 = smov (!%p247_p9, %s533_s26), 79  ;;  %268 = sbr.rel (%p535_p10) target bundleno = 39 (0x27), region = 73 }
  0x21   : > { %s534_s28 = sshll.u32 %s802_s26, 2  ;;  %vm269_vm0 = vcmask (!%p535_p10), 523264   ;;  %v672_v4 = vmov (!%p535_p10), 0.0  }
  0x22   : > { %s740_s3 = scalar_lea.vmem %s793_s1, %s534_s28  ;;  %270 = vst.msk [vmem:[#allocation2] sm:$0xff] (!%p535_p10), %vm269_vm0, %v672_v4  ;;  %271 = vst.msk [vmem:[#allocation2 + $0x8] sm:$0xff] (!%p535_p10), %vm269_vm0, %v672_v4 }
  0x23   : > { %272 = vst.msk [vmem:[#allocation2 + $0x10] sm:$0xff] (!%p535_p10), %vm269_vm0, %v672_v4  ;;  %273 = vst.msk [vmem:[#allocation2 + $0x18] sm:$0xff] (!%p535_p10), %vm269_vm0, %v672_v4 }
  0x27 PF: > { %v622_v5 = vld [vmem:[%s740_s3] sm:$0xff]   ;;  %v623_v6 = vld [vmem:[%s740_s3 + $0x8] sm:$0xff]   ;;  %v624_v7 = vld [vmem:[%s740_s3 + $0x10] sm:$0xff]   ;;  %vm411_vm1 = vcmask 523264   ;;  %p546_p11 = scmp.ne.s32.totalorder %s662_s11, 4 }
  0x28   : > { %561 = vmatprep.subr.bf16.mxu0 %v622_v5  ;;  %v625_v8 = vld [vmem:[%s740_s3 + $0x18] sm:$0xff]   ;;  %v630_v9 = vld [vmem:[%s215_s4] sm:$0xff]   ;;  %v627_v11 = vld [vmem:[%s740_s3 + $0x28] sm:$0xff]  }
  0x29   : > { %562 = vmatpush3.bf16.msra.mxu0 %v622_v5  ;;  %577 = vmatprep.mubr.bf16.mxu0 %v630_v9  ;;  %v626_v10 = vld [vmem:[%s740_s3 + $0x20] sm:$0xff]   ;;  %v628_v12 = vld [vmem:[%s740_s3 + $0x30] sm:$0xff]   ;;  %v629_v13 = vld [vmem:[%s740_s3 + $0x38] sm:$0xff]  }
  0x2a   : > { %563 = vmatprep.subr.bf16.mxu0 %v623_v6  ;;  %v631_v14 = vld [vmem:[%s215_s4 + $0x8] sm:$0xff]   ;;  %v276_v15 = vld [vmem:[#allocation2 + $0x10] sm:$0xff]  ;;  %v274_v16 = vld [vmem:[#allocation2] sm:$0xff] }
  0x2b   : > { %v277_v18 = vld [vmem:[#allocation2 + $0x18] sm:$0xff]  ;;  %v275_v21 = vld [vmem:[#allocation2 + $0x8] sm:$0xff] }
  0x2d   : > { %564 = vmatpush3.bf16.msra.mxu0 %v623_v6 }
  0x2e   : > { %565 = vmatprep.subr.bf16.mxu0 %v624_v7 }
  0x31   : > { %566 = vmatpush3.bf16.msra.mxu0 %v624_v7 }
  0x32   : > { %567 = vmatprep.subr.bf16.mxu0 %v625_v8 }
  0x35   : > { %568 = vmatpush3.bf16.msra.mxu0 %v625_v8 }
  0x36   : > { %569 = vmatprep.subr.bf16.mxu0 %v626_v10 }
  0x39   : > { %570 = vmatpush3.bf16.msra.mxu0 %v626_v10 }
  0x3a   : > { %571 = vmatprep.subr.bf16.mxu0 %v627_v11 }
  0x3d   : > { %572 = vmatpush3.bf16.msra.mxu0 %v627_v11 }
  0x3e   : > { %573 = vmatprep.subr.bf16.mxu0 %v628_v12 }
  0x41   : > { %574 = vmatpush3.bf16.msra.mxu0 %v628_v12 }
  0x42   : > { %575 = vmatprep.subr.bf16.mxu0 %v629_v13 }
  0x45   : > { %576 = vmatpush3.bf16.msra.mxu0 %v629_v13 }
  0x48   : > { %578 = vmatmul.mubr.bf16.vlgmr.msra.gmra.mrb[0].mxu0 %v631_v14 }
 0x11b   : > { %v579_v17 = vpop.f32.mrb[0].mxu0  ;;  %419 = sbr.rel (%p546_p11) target bundleno = 298 (0x12a), region = 77 }
 0x11c   : > { %v409_v19 = vadd.f32 %v579_v17, %v276_v15  ;;  %v392_v20 = vpop.f32.mrb[1].mxu0 }
 0x11d   : > { %v407_v22 = vadd.f32 %v392_v20, %v274_v16  ;;  %v580_v23 = vpop.f32.mrb[2].mxu0 }
 0x11e   : > { %414 = vst.msk [vmem:[#allocation2 + $0x10] sm:$0xff] %vm411_vm1, %v409_v19  ;;  %v410_v24 = vadd.f32 %v580_v23, %v277_v18  ;;  %v395_v25 = vpop.f32.mrb[3].mxu0 }
 0x11f   : > { %412 = vst.msk [vmem:[#allocation2] sm:$0xff] %vm411_vm1, %v407_v22  ;;  %v408_v26 = vadd.f32 %v395_v25, %v275_v21 }
 0x120   : > { %415 = vst.msk [vmem:[#allocation2 + $0x18] sm:$0xff] %vm411_vm1, %v410_v24 }
 0x121   : > { %413 = vst.msk [vmem:[#allocation2 + $0x8] sm:$0xff] %vm411_vm1, %v408_v26 }
 0x125   : > { %v422_v29 = vld [vmem:[#allocation2 + $0x10] sm:$0xff] }
 0x126   : > { %v420_v27 = vld [vmem:[#allocation2] sm:$0xff]  ;;  %426 = vst.msk [vmem:[%s794_s2 + $0x10] sm:$0xff] %vm411_vm1, %v422_v29 }
 0x127   : > { %424 = vst.msk [vmem:[%s794_s2] sm:$0xff] %vm411_vm1, %v420_v27  ;;  %v423_v30 = vld [vmem:[#allocation2 + $0x18] sm:$0xff] }
 0x128   : > { %v421_v28 = vld [vmem:[#allocation2 + $0x8] sm:$0xff]  ;;  %427 = vst.msk [vmem:[%s794_s2 + $0x18] sm:$0xff] %vm411_vm1, %v423_v30 }
 0x129   : > { %425 = vst.msk [vmem:[%s794_s2 + $0x8] sm:$0xff] %vm411_vm1, %v421_v28 }
 0x12a PF: > { %s12_s13 = sadd.s32 1, %s670_s13   ;;  %s795_s9 = smov %s658_s10 }
 0x12b   : > { %p9_p12 = scmp.ge.s32.totalorder %s12_s13, 7   ;;  %s796_s10 = smov %s723_s17 }
 0x12c   : > { %s797_s11 = smov %s666_s12  ;;  %s798_s12 = smov %s800_s14 }
 0x12d   :  { %11 = sbr.rel (!%p9_p12) target bundleno = 3 (0x3), region = 115 }

// kernel: forward.116
= control target key start
LH: loop header
LB: loop body
LE: loop exit
PB: predicated region body
PF: predicated region fallthrough
CT: control target
= control target key end

     0   :  { %vm44_vm0 = vcmask 523264   ;;  %s105_s0 = inlined_call_operand.vmem [shape: f32[32,64], index: 0, kind: input, shape index: {}]   ;;  %s106_s1 = inlined_call_operand.vmem [shape: f32[1,64], index: 1, kind: input, shape index: {}]   ;;  %s107_s2 = inlined_call_operand.vmem [shape: f32[1,64], index: 2, kind: input, shape index: {}]   ;;  %s108_s3 = inlined_call_operand.vmem [shape: f32[32,64], index: 3, kind: output, shape index: {}]  }
   0x1   :  { %v14_v0 = vld [vmem:[%s105_s0] sm:$0xff]  ;;  %v15_v4 = vld [vmem:[%s105_s0 + $0x8] sm:$0xff]  ;;  %v16_v5 = vld [vmem:[%s105_s0 + $0x10] sm:$0xff] }
   0x2   :  { %v53_v1 = vld [vmem:[%s106_s1] ss:$0 sm:$0xff]  ;;  %v17_v6 = vld [vmem:[%s105_s0 + $0x18] sm:$0xff] }
   0x3   :  { %v54_v2 = vld [vmem:[%s107_s2] ss:$0 sm:$0xff]  ;;  %v25_v3 = vmul.f32 %v53_v1, %v14_v0  ;;  %v26_v7 = vmul.f32 %v53_v1, %v15_v4  ;;  %v27_v8 = vmul.f32 %v53_v1, %v16_v5  ;;  %v28_v9 = vmul.f32 %v53_v1, %v17_v6 }
   0x5   :  { %v36_v10 = vadd.f32 %v54_v2, %v25_v3  ;;  %v37_v11 = vadd.f32 %v54_v2, %v26_v7  ;;  %v38_v12 = vadd.f32 %v54_v2, %v27_v8  ;;  %v39_v13 = vadd.f32 %v54_v2, %v28_v9 }
   0x7   :  { %v40_v14 = vmax.f32 %v36_v10, 0.0  ;;  %v41_v15 = vmax.f32 %v37_v11, 0.0  ;;  %v42_v16 = vmax.f32 %v38_v12, 0.0  ;;  %v43_v17 = vmax.f32 %v39_v13, 0.0 }
   0x9   :  { %45 = vst.msk [vmem:[%s108_s3] sm:$0xff] %vm44_vm0, %v40_v14  ;;  %46 = vst.msk [vmem:[%s108_s3 + $0x8] sm:$0xff] %vm44_vm0, %v41_v15 }
   0xa   :  { %47 = vst.msk [vmem:[%s108_s3 + $0x10] sm:$0xff] %vm44_vm0, %v42_v16  ;;  %48 = vst.msk [vmem:[%s108_s3 + $0x18] sm:$0xff] %vm44_vm0, %v43_v17 }

// kernel: forward.119
= control target key start
LH: loop header
LB: loop body
LE: loop exit
PB: predicated region body
PF: predicated region fallthrough
CT: control target
= control target key end

     0   :  { %vm55_vm0 = vcmask 523264   ;;  %s133_s0 = inlined_call_operand.vmem [shape: f32[32,64], index: 0, kind: input, shape index: {}]   ;;  %s134_s1 = inlined_call_operand.vmem [shape: f32[1,64], index: 1, kind: input, shape index: {}]   ;;  %s135_s2 = inlined_call_operand.vmem [shape: f32[1,64], index: 2, kind: input, shape index: {}]   ;;  %s136_s3 = inlined_call_operand.vmem [shape: f32[32,64], index: 3, kind: input, shape index: {}]   ;;  %s137_s4 = inlined_call_operand.vmem [shape: f32[32,64], index: 4, kind: output, shape index: {}]  }
   0x1   :  { %v17_v0 = vld [vmem:[%s133_s0] sm:$0xff]  ;;  %v18_v4 = vld [vmem:[%s133_s0 + $0x8] sm:$0xff]  ;;  %v19_v7 = vld [vmem:[%s133_s0 + $0x10] sm:$0xff] }
   0x2   :  { %v64_v1 = vld [vmem:[%s134_s1] ss:$0 sm:$0xff]  ;;  %v20_v8 = vld [vmem:[%s133_s0 + $0x18] sm:$0xff]  ;;  %v44_v10 = vld [vmem:[%s136_s3 + $0x8] sm:$0xff] }
   0x3   :  { %v65_v2 = vld [vmem:[%s135_s2] ss:$0 sm:$0xff]  ;;  %v28_v3 = vmul.f32 %v64_v1, %v17_v0  ;;  %v29_v6 = vmul.f32 %v64_v1, %v18_v4  ;;  %v30_v11 = vmul.f32 %v64_v1, %v19_v7  ;;  %v31_v12 = vmul.f32 %v64_v1, %v20_v8  ;;  %v45_v14 = vld [vmem:[%s136_s3 + $0x10] sm:$0xff]  ;;  %v46_v15 = vld [vmem:[%s136_s3 + $0x18] sm:$0xff] }
   0x4   :  { %v43_v5 = vld [vmem:[%s136_s3] sm:$0xff] }
   0x5   :  { %v39_v9 = vadd.f32 %v65_v2, %v28_v3  ;;  %v40_v13 = vadd.f32 %v65_v2, %v29_v6  ;;  %v41_v17 = vadd.f32 %v65_v2, %v30_v11  ;;  %v42_v18 = vadd.f32 %v65_v2, %v31_v12 }
   0x7   :  { %v47_v16 = vadd.f32 %v43_v5, %v39_v9  ;;  %v48_v19 = vadd.f32 %v44_v10, %v40_v13  ;;  %v49_v21 = vadd.f32 %v45_v14, %v41_v17  ;;  %v50_v22 = vadd.f32 %v46_v15, %v42_v18 }
   0x9   :  { %v51_v20 = vmax.f32 %v47_v16, 0.0  ;;  %v52_v23 = vmax.f32 %v48_v19, 0.0  ;;  %v53_v24 = vmax.f32 %v49_v21, 0.0  ;;  %v54_v25 = vmax.f32 %v50_v22, 0.0 }
   0xb   :  { %56 = vst.msk [vmem:[%s137_s4] sm:$0xff] %vm55_vm0, %v51_v20  ;;  %57 = vst.msk [vmem:[%s137_s4 + $0x8] sm:$0xff] %vm55_vm0, %v52_v23 }
   0xc   :  { %58 = vst.msk [vmem:[%s137_s4 + $0x10] sm:$0xff] %vm55_vm0, %v53_v24  ;;  %59 = vst.msk [vmem:[%s137_s4 + $0x18] sm:$0xff] %vm55_vm0, %v54_v25 }

// kernel: forward.137
= control target key start
LH: loop header
LB: loop body
LE: loop exit
PB: predicated region body
PF: predicated region fallthrough
CT: control target
= control target key end

     0   :  { %v45_v0 = vmov 0.0   ;;  %s82_s1 = inlined_call_operand.vmem [shape: f32[1,128], index: 1, kind: output, shape index: {0}]   ;;  %s83_s2 = inlined_call_operand.vmem [shape: f32[1,128], index: 2, kind: output, shape index: {1}]   ;;  %s84_s0 = inlined_call_operand.vmem [shape: f32[8,128], index: 0, kind: input, shape index: {}]  }
   0x1   :  { %14 = vst [vmem:[%s82_s1] sm:$0x1] %v45_v0  ;;  %15 = vst [vmem:[%s83_s2] sm:$0x1] %v45_v0  ;;  %v16_v1 = vld [vmem:[%s84_s0] sm:$0xff] }
   0x2   :  { %v18_v2 = vrot.slane %v16_v1, 4  ;;  %v27_v3 = vmul.f32 %v16_v1, %v16_v1 }
   0x4   :  { %v19_v4 = vadd.f32 %v18_v2, %v16_v1  ;;  %v28_v5 = vrot.slane %v27_v3, 4 }
   0x6   :  { %v20_v6 = vrot.slane %v19_v4, 2  ;;  %v29_v7 = vadd.f32 %v28_v5, %v27_v3 }
   0x8   :  { %v21_v8 = vadd.f32 %v20_v6, %v19_v4  ;;  %v30_v9 = vrot.slane %v29_v7, 2  ;;  %v17_v12 = vld [vmem:[%s82_s1] sm:$0x1] }
   0x9   :  { %v26_v15 = vld [vmem:[%s83_s2] sm:$0x1] }
   0xa   :  { %v22_v10 = vrot.slane %v21_v8, 1  ;;  %v31_v11 = vadd.f32 %v30_v9, %v29_v7 }
   0xc   :  { %v23_v13 = vadd.f32 %v22_v10, %v21_v8  ;;  %v32_v14 = vrot.slane %v31_v11, 1 }
   0xe   :  { %v24_v16 = vadd.f32 %v23_v13, %v17_v12  ;;  %v33_v17 = vadd.f32 %v32_v14, %v31_v11 }
  0x10   :  { %25 = vst [vmem:[%s82_s1] sm:$0x1] %v24_v16  ;;  %v34_v18 = vadd.f32 %v33_v17, %v26_v15 }
  0x12   :  { %35 = vst [vmem:[%s83_s2] sm:$0x1] %v34_v18 }

// kernel: forward.136
= control target key start
LH: loop header
LB: loop body
LE: loop exit
PB: predicated region body
PF: predicated region fallthrough
CT: control target
= control target key end

     0   :  { %v181_v0 = vmov 0.0   ;;  %vm182_vm0 = vmmov 0   ;;  %s228_s1 = inlined_call_operand.vmem [shape: bf16[128,128], index: 1, kind: input, shape index: {}]   ;;  %s229_s0 = inlined_call_operand.vmem [shape: bf16[8,128], index: 0, kind: input, shape index: {}]   ;;  %s230_s2 = inlined_call_operand.vmem [shape: f32[8,128], index: 2, kind: output, shape index: {}]  }
   0x1   :  { %151 = vmatprep.subr.bf16.mxu0 %v181_v0  ;;  %v173_v1 = vld [vmem:[%s228_s1] sm:$0xff]   ;;  %167 = vmatprep.mubr.msk.bf16.mxu0 %vm182_vm0, %v181_v0  ;;  %v174_v2 = vld [vmem:[%s228_s1 + $0x8] sm:$0xff]   ;;  %v175_v3 = vld [vmem:[%s228_s1 + $0x10] sm:$0xff]  }
   0x2   :  { %152 = vmatpush3.bf16.msra.mxu0 %v173_v1  ;;  %v176_v4 = vld [vmem:[%s228_s1 + $0x18] sm:$0xff]   ;;  %v177_v5 = vld [vmem:[%s228_s1 + $0x20] sm:$0xff]   ;;  %v178_v6 = vld [vmem:[%s228_s1 + $0x28] sm:$0xff]  }
   0x3   :  { %153 = vmatprep.subr.bf16.mxu0 %v181_v0  ;;  %v179_v7 = vld [vmem:[%s228_s1 + $0x30] sm:$0xff]   ;;  %v180_v8 = vld [vmem:[%s228_s1 + $0x38] sm:$0xff]   ;;  %v18_v9 = vld [vmem:[%s229_s0] sm:$0xf] }
   0x6   :  { %154 = vmatpush3.bf16.msra.mxu0 %v174_v2 }
   0x7   :  { %155 = vmatprep.subr.bf16.mxu0 %v181_v0 }
   0xa   :  { %156 = vmatpush3.bf16.msra.mxu0 %v175_v3 }
   0xb   :  { %157 = vmatprep.subr.bf16.mxu0 %v181_v0 }
   0xe   :  { %158 = vmatpush3.bf16.msra.mxu0 %v176_v4 }
   0xf   :  { %159 = vmatprep.subr.bf16.mxu0 %v181_v0 }
  0x12   :  { %160 = vmatpush3.bf16.msra.mxu0 %v177_v5 }
  0x13   :  { %161 = vmatprep.subr.bf16.mxu0 %v181_v0 }
  0x16   :  { %162 = vmatpush3.bf16.msra.mxu0 %v178_v6 }
  0x17   :  { %163 = vmatprep.subr.bf16.mxu0 %v181_v0 }
  0x1a   :  { %164 = vmatpush3.bf16.msra.mxu0 %v179_v7 }
  0x1b   :  { %165 = vmatprep.subr.bf16.mxu0 %v181_v0 }
  0x1e   :  { %166 = vmatpush3.bf16.msra.mxu0 %v180_v8 }
  0x21   :  { %168 = vmatmul.mubr.bf16.vlgmr.msra.gmra.mrb[0].mxu0 %v18_v9 }
  0xf4   :  { %v117_v10 = vpop.f32.mrb[0].mxu0 }
  0xf5   :  { %129 = vst [vmem:[%s230_s2] sm:$0xff] %v117_v10  ;;  %v169_v11 = vpop.f32.mrb[1].mxu0 }
  0xf6   :  { %v120_v12 = vpop.f32.mrb[2].mxu0 }
  0xf7   :  { %v170_v13 = vpop.f32.mrb[3].mxu0 }

// kernel: forward.138
= control target key start
LH: loop header
LB: loop body
LE: loop exit
PB: predicated region body
PF: predicated region fallthrough
CT: control target
= control target key end

     0   :  { %s70_s0 = inlined_call_operand.vmem [shape: f32[8,128], index: 0, kind: input, shape index: {}]   ;;  %s71_s1 = inlined_call_operand.vmem [shape: f32[1,128], index: 1, kind: input, shape index: {}]   ;;  %s72_s2 = inlined_call_operand.vmem [shape: f32[1,128], index: 2, kind: input, shape index: {}]   ;;  %s73_s3 = inlined_call_operand.vmem [shape: f32[8,128], index: 3, kind: output, shape index: {}]  }
   0x1   :  { %v14_v0 = vld [vmem:[%s70_s0] sm:$0xff] }
   0x2   :  { %v36_v1 = vld [vmem:[%s71_s1] ss:$0 sm:$0xff] }
   0x3   :  { %v37_v2 = vld [vmem:[%s72_s2] ss:$0 sm:$0xff]  ;;  %v22_v3 = vmul.f32 %v36_v1, %v14_v0 }
   0x5   :  { %v30_v4 = vadd.f32 %v37_v2, %v22_v3 }
   0x7   :  { %31 = vst [vmem:[%s73_s3] sm:$0xff] %v30_v4 }

// kernel: forward.140
= control target key start
LH: loop header
LB: loop body
LE: loop exit
PB: predicated region body
PF: predicated region fallthrough
CT: control target
= control target key end

     0   :  { %s84_s0 = inlined_call_operand.vmem [shape: f32[8,128], index: 0, kind: input, shape index: {}]   ;;  %s85_s1 = inlined_call_operand.vmem [shape: f32[1,128], index: 1, kind: input, shape index: {}]   ;;  %s86_s2 = inlined_call_operand.vmem [shape: f32[1,128], index: 2, kind: input, shape index: {}]   ;;  %s87_s3 = inlined_call_operand.vmem [shape: f32[8,128], index: 3, kind: input, shape index: {}]   ;;  %s88_s4 = inlined_call_operand.vmem [shape: f32[8,128], index: 4, kind: output, shape index: {}]  }
   0x1   :  { %v17_v0 = vld [vmem:[%s84_s0] sm:$0xff] }
   0x2   :  { %v42_v1 = vld [vmem:[%s85_s1] ss:$0 sm:$0xff] }
   0x3   :  { %v43_v2 = vld [vmem:[%s86_s2] ss:$0 sm:$0xff]  ;;  %v25_v3 = vmul.f32 %v42_v1, %v17_v0 }
   0x4   :  { %v34_v4 = vld [vmem:[%s87_s3] sm:$0xff] }
   0x5   :  { %v33_v5 = vadd.f32 %v43_v2, %v25_v3 }
   0x7   :  { %v35_v6 = vadd.f32 %v34_v4, %v33_v5 }
   0x9   :  { %v36_v7 = vmax.f32 %v35_v6, 0.0 }
   0xb   :  { %37 = vst [vmem:[%s88_s4] sm:$0xff] %v36_v7 }

// kernel: forward.134
= control target key start
LH: loop header
LB: loop body
LE: loop exit
PB: predicated region body
PF: predicated region fallthrough
CT: control target
= control target key end

     0   :  { %s71_s0 = inlined_call_operand.vmem [shape: f32[8,128], index: 0, kind: input, shape index: {}]   ;;  %s72_s1 = inlined_call_operand.vmem [shape: f32[1,128], index: 1, kind: input, shape index: {}]   ;;  %s73_s2 = inlined_call_operand.vmem [shape: f32[1,128], index: 2, kind: input, shape index: {}]   ;;  %s74_s3 = inlined_call_operand.vmem [shape: f32[8,128], index: 3, kind: output, shape index: {}]  }
   0x1   :  { %v14_v0 = vld [vmem:[%s71_s0] sm:$0xff] }
   0x2   :  { %v37_v1 = vld [vmem:[%s72_s1] ss:$0 sm:$0xff] }
   0x3   :  { %v38_v2 = vld [vmem:[%s73_s2] ss:$0 sm:$0xff]  ;;  %v22_v3 = vmul.f32 %v37_v1, %v14_v0 }
   0x5   :  { %v30_v4 = vadd.f32 %v38_v2, %v22_v3 }
   0x7   :  { %v31_v5 = vmax.f32 %v30_v4, 0.0 }
   0x9   :  { %32 = vst [vmem:[%s74_s3] sm:$0xff] %v31_v5 }

// kernel: forward.132
= control target key start
LH: loop header
LB: loop body
LE: loop exit
PB: predicated region body
PF: predicated region fallthrough
CT: control target
= control target key end

     0   :  { %s552_s9 = smov 0   ;;  %s554_s10 = smov 0   ;;  %s598_s0 = inlined_call_operand.vmem [shape: bf16[8,640], index: 0, kind: input, shape index: {}]   ;;  %s599_s1 = inlined_call_operand.vmem [shape: bf16[640,128], index: 1, kind: input, shape index: {}]   ;;  %s600_s2 = inlined_call_operand.vmem [shape: f32[8,128], index: 2, kind: output, shape index: {}]  }
   0x1   :  { %s556_s11 = smov 0  }
   0x2 LB: > { %s24_s12 = sadd.s32 1, %s528_s10  ;;  %p429_p0 = scmp.ge.s32.totalorder %s532_s11, 1  ;;  %s532_s11 = sphi %s556_s11, %s12_s11   ;;  %s528_s10 = sphi %s554_s10, %s602_s10   ;;  %s524_s9 = sphi %s552_s9, %s601_s9  }
   0x3   : > { %p25_p1 = scmp.ge.s32.totalorder %s24_s12, 5  ;;  %p154_p2 = scmp.lt.s32.totalorder %s532_s11, 6 }
   0x5   : > { %s604_s12 = smov (%p25_p1, %s24_s12), 0  ;;  %p155_p3 = pnand %p429_p0, %p154_p2 }
   0x6   : > { %p191_p4 = scmp.lt.s32.totalorder (!%p155_p3), %s524_s9, 4  ;;  %s431_s13 = sshll.u32 (!%p155_p3), %s524_s9, 4 }
   0x7   : > { %158 = sbr.rel (%p155_p3) target bundleno = 278 (0x116), region = 28  ;;  %p198_p5 = scmp.lt.s32.totalorder (!%p155_p3), %s431_s13, 79 }
   0x8   : > { %p433_p6 = scmp.ne.s32.totalorder (!%p155_p3), %s524_s9, 0 }
   0xe   : > { %s192_s14 = scalar_select %p191_p4, %s524_s9, 4 }
   0xf   : > { %s606_s13 = smov (!%p198_p5, %s431_s13), 79  ;;  %217 = sbr.rel (%p433_p6) target bundleno = 22 (0x16), region = 32 }
  0x10   : > { %s430_s15 = sshll.u32 %s192_s14, 2  ;;  %s432_s19 = sshll.u32 %s606_s13, 2  ;;  %v534_v0 = vmov (!%p433_p6), 0.0  }
  0x11   : > { %s578_s18 = scalar_lea.vmem %s598_s0, %s430_s15  ;;  %s204_s22 = scalar_lea.vmem %s599_s1, %s432_s19  ;;  %218 = vst [vmem:[#allocation2] sm:$0xff] (!%p433_p6), %v534_v0 }
  0x16 PF: > { %v502_v1 = vld [vmem:[%s204_s22] sm:$0xff]   ;;  %v535_v2 = vmov 0.0   ;;  %v503_v3 = vld [vmem:[%s204_s22 + $0x8] sm:$0xff]   ;;  %vm536_vm0 = vmmov 0   ;;  %v504_v4 = vld [vmem:[%s204_s22 + $0x10] sm:$0xff]   ;;  %p442_p7 = scmp.ne.s32.totalorder %s524_s9, 4 }
  0x17   : > { %455 = vmatprep.subr.bf16.mxu0 %v535_v2  ;;  %471 = vmatprep.mubr.msk.bf16.mxu0 %vm536_vm0, %v535_v2  ;;  %v505_v5 = vld [vmem:[%s204_s22 + $0x18] sm:$0xff]   ;;  %v506_v6 = vld [vmem:[%s204_s22 + $0x20] sm:$0xff]   ;;  %v507_v7 = vld [vmem:[%s204_s22 + $0x28] sm:$0xff]  }
  0x18   : > { %456 = vmatpush3.bf16.msra.mxu0 %v502_v1  ;;  %v508_v8 = vld [vmem:[%s204_s22 + $0x30] sm:$0xff]   ;;  %v509_v9 = vld [vmem:[%s204_s22 + $0x38] sm:$0xff]   ;;  %v220_v10 = vld [vmem:[%s578_s18] sm:$0xf] }
  0x19   : > { %457 = vmatprep.subr.bf16.mxu0 %v535_v2  ;;  %v219_v11 = vld [vmem:[#allocation2] sm:$0xff] }
  0x1c   : > { %458 = vmatpush3.bf16.msra.mxu0 %v503_v3 }
  0x1d   : > { %459 = vmatprep.subr.bf16.mxu0 %v535_v2 }
  0x20   : > { %460 = vmatpush3.bf16.msra.mxu0 %v504_v4 }
  0x21   : > { %461 = vmatprep.subr.bf16.mxu0 %v535_v2 }
  0x24   : > { %462 = vmatpush3.bf16.msra.mxu0 %v505_v5 }
  0x25   : > { %463 = vmatprep.subr.bf16.mxu0 %v535_v2 }
  0x28   : > { %464 = vmatpush3.bf16.msra.mxu0 %v506_v6 }
  0x29   : > { %465 = vmatprep.subr.bf16.mxu0 %v535_v2 }
  0x2c   : > { %466 = vmatpush3.bf16.msra.mxu0 %v507_v7 }
  0x2d   : > { %467 = vmatprep.subr.bf16.mxu0 %v535_v2 }
  0x30   : > { %468 = vmatpush3.bf16.msra.mxu0 %v508_v8 }
  0x31   : > { %469 = vmatprep.subr.bf16.mxu0 %v535_v2 }
  0x34   : > { %470 = vmatpush3.bf16.msra.mxu0 %v509_v9 }
  0x37   : > { %472 = vmatmul.mubr.bf16.vlgmr.msra.gmra.mrb[0].mxu0 %v220_v10 }
 0x107   : > { %330 = sbr.rel (%p442_p7) target bundleno = 278 (0x116), region = 36 }
 0x10a   : > { %v319_v12 = vpop.f32.mrb[0].mxu0 }
 0x10b   : > { %v325_v13 = vadd.f32 %v319_v12, %v219_v11  ;;  %v473_v14 = vpop.f32.mrb[1].mxu0 }
 0x10c   : > { %v322_v15 = vpop.f32.mrb[2].mxu0 }
 0x10d   : > { %326 = vst [vmem:[#allocation2] sm:$0xff] %v325_v13  ;;  %v474_v16 = vpop.f32.mrb[3].mxu0 }
 0x114   : > { %v331_v17 = vld [vmem:[#allocation2] sm:$0xff] }
 0x115   : > { %332 = vst [vmem:[%s600_s2] sm:$0xff] %v331_v17 }
 0x116 PF: > { %s12_s11 = sadd.s32 1, %s532_s11   ;;  %s601_s9 = smov %s528_s10 }
 0x117   : > { %p9_p8 = scmp.ge.s32.totalorder %s12_s11, 7   ;;  %s602_s10 = smov %s604_s12 }
 0x119   :  { %11 = sbr.rel (!%p9_p8) target bundleno = 2 (0x2), region = 69 }

// kernel: forward.163
= control target key start
LH: loop header
LB: loop body
LE: loop exit
PB: predicated region body
PF: predicated region fallthrough
CT: control target
= control target key end

     0   :  { %v221_v1 = vmov 0   ;;  %v222_v18 = vmov 0.0   ;;  %v223_v19 = vmov 1983009808   ;;  %v162_v21 = vlaneseq  ;;  %s293_s1 = inlined_call_operand.vmem [shape: bf16[128,256], index: 1, kind: input, shape index: {}]   ;;  %s294_s0 = inlined_call_operand.vmem [shape: bf16[2,128], index: 0, kind: input, shape index: {}]   ;;  %s295_s2 = inlined_call_operand.vmem [shape: f32[2,256], index: 2, kind: output, shape index: {}]  }
   0x1   :  { %v197_v0 = vld [vmem:[%s293_s1 + $0x4] ss:$8 sps:$4 sm:$0xff]   ;;  %147 = vmatprep.mubr.bf16.mxu0 %v221_v1  ;;  %v199_v2 = vld [vmem:[%s293_s1] ss:$8 sps:$4 sm:$0xff]   ;;  %v200_v3 = vld [vmem:[%s293_s1 + $0x14] ss:$8 sps:$4 sm:$0xff]   ;;  %v160_v20 = vunpack.c.l.s4 %v223_v19 }
   0x2   :  { %115 = vmatprep.subr.bf16.mxu0 %v197_v0  ;;  %v202_v4 = vld [vmem:[%s293_s1 + $0x10] ss:$8 sps:$4 sm:$0xff]   ;;  %v203_v5 = vld [vmem:[%s293_s1 + $0x24] ss:$8 sps:$4 sm:$0xff]   ;;  %v205_v6 = vld [vmem:[%s293_s1 + $0x20] ss:$8 sps:$4 sm:$0xff]  }
   0x3   :  { %116 = vmatpush1.bf16.msra.mxu0 %v199_v2  ;;  %v206_v7 = vld [vmem:[%s293_s1 + $0x34] ss:$8 sps:$4 sm:$0xff]   ;;  %v208_v8 = vld [vmem:[%s293_s1 + $0x30] ss:$8 sps:$4 sm:$0xff]   ;;  %v209_v9 = vld [vmem:[%s293_s1 + $0x44] ss:$8 sps:$4 sm:$0xff]   ;;  %v161_v22 = vunpack.c.0.s8 %v160_v20 }
   0x4   :  { %117 = vmatprep.subr.bf16.mxu0 %v200_v3  ;;  %v211_v10 = vld [vmem:[%s293_s1 + $0x40] ss:$8 sps:$4 sm:$0xff]   ;;  %v212_v11 = vld [vmem:[%s293_s1 + $0x54] ss:$8 sps:$4 sm:$0xff]   ;;  %v214_v12 = vld [vmem:[%s293_s1 + $0x50] ss:$8 sps:$4 sm:$0xff]  }
   0x5   :  { %v215_v13 = vld [vmem:[%s293_s1 + $0x64] ss:$8 sps:$4 sm:$0xff]   ;;  %v217_v14 = vld [vmem:[%s293_s1 + $0x60] ss:$8 sps:$4 sm:$0xff]   ;;  %v218_v15 = vld [vmem:[%s293_s1 + $0x74] ss:$8 sps:$4 sm:$0xff]  }
   0x6   :  { %v220_v16 = vld [vmem:[%s293_s1 + $0x70] ss:$8 sps:$4 sm:$0xff]   ;;  %v18_v17 = vld [vmem:[%s294_s0] sm:$0x1]  ;;  %16 = vst [vmem:[#allocation2] sm:$0xf] %v222_v18 }
   0x7   :  { %118 = vmatpush1.bf16.msra.mxu0 %v202_v4  ;;  %v163_v23 = vshrl.u32 %v162_v21, 7 }
   0x8   :  { %119 = vmatprep.subr.bf16.mxu0 %v203_v5 }
   0x9   :  { %v164_v25 = vsub.s32 %v161_v22, %v163_v23 }
   0xb   :  { %120 = vmatpush1.bf16.msra.mxu0 %v205_v6 }
   0xc   :  { %121 = vmatprep.subr.bf16.mxu0 %v206_v7 }
   0xd   :  { %v17_v29 = vld [vmem:[#allocation2] sm:$0xf] }
   0xf   :  { %122 = vmatpush1.bf16.msra.mxu0 %v208_v8 }
  0x10   :  { %123 = vmatprep.subr.bf16.mxu0 %v209_v9 }
  0x13   :  { %124 = vmatpush1.bf16.msra.mxu0 %v211_v10 }
  0x14   :  { %125 = vmatprep.subr.bf16.mxu0 %v212_v11 }
  0x17   :  { %126 = vmatpush1.bf16.msra.mxu0 %v214_v12 }
  0x18   :  { %127 = vmatprep.subr.bf16.mxu0 %v215_v13 }
  0x1b   :  { %128 = vmatpush1.bf16.msra.mxu0 %v217_v14 }
  0x1c   :  { %129 = vmatprep.subr.bf16.mxu0 %v218_v15 }
  0x1f   :  { %130 = vmatpush1.bf16.msra.mxu0 %v220_v16 }
  0x22   :  { %148 = vmatmul.mubr.bf16.vlgmr.msra.gmra.mrb[0].mxu0 %v18_v17 }
  0xf5   :  { %v149_v24 = vpop.f32.mrb[0].mxu0 }
  0xf6   :  { %v151_v26 = vpop.f32.mrb[1].mxu0 }
  0xf7   :  { %v158_v27 = vcombine.low %v149_v24, %v151_v26  ;;  %v153_v28 = vpop.f32.mrb[2].mxu0 }
  0xf8   :  { %v154_v30 = vpop.f32.mrb[3].mxu0 }
  0xf9   :  { %v165_v31 = vrot.slane %v158_v27, %v164_v25 }
  0xfb   :  { %v167_v32 = vadd.f32 %v165_v31, %v17_v29 }
  0xfd   :  { %168 = vst [vmem:[#allocation2] sm:$0xf] %v167_v32 }
 0x104   :  { %v172_v33 = vld [vmem:[#allocation2] sm:$0xf] }
 0x105   :  { %173 = vst [vmem:[%s295_s2] sm:$0xf] %v172_v33 }

// kernel: forward.164
= control target key start
LH: loop header
LB: loop body
LE: loop exit
PB: predicated region body
PF: predicated region fallthrough
CT: control target
= control target key end

     0   :  { %v14_v0 = vlaneseq  ;;  %v104_v6 = vmov 0.0   ;;  %v105_v11 = vmov 1966171168   ;;  %s157_s0 = inlined_call_operand.vmem [shape: f32[8,256], index: 0, kind: input, shape index: {}]   ;;  %s158_s1 = inlined_call_operand.vmem [shape: f32[1,256], index: 1, kind: output, shape index: {0}]   ;;  %s159_s2 = inlined_call_operand.vmem [shape: f32[1,256], index: 2, kind: output, shape index: {1}]  }
   0x1   :  { %v20_v1 = vld [vmem:[%s157_s0] sm:$0xff]  ;;  %v21_v2 = vld [vmem:[%s157_s0 + $0x8] sm:$0xff]  ;;  %v39_v12 = vunpack.c.l.s4 %v105_v11 }
   0x2   :  { %vm127_vm0 = vcmp.lt.s32.totalorder %v14_v0, 256  ;;  %v23_v4 = vrot.slane %v20_v1, 4  ;;  %v29_v5 = vrot.slane %v21_v2, 4  ;;  %v60_v7 = vmul.f32 %v20_v1, %v20_v1 }
   0x3   :  { %18 = vst.msk [vmem:[%s158_s1] sm:$0x3] %vm127_vm0, %v104_v6  ;;  %19 = vst.msk [vmem:[%s159_s2] sm:$0x3] %vm127_vm0, %v104_v6  ;;  %v61_v8 = vmul.f32 %v21_v2, %v21_v2  ;;  %v40_v21 = vunpack.c.0.s8 %v39_v12  ;;  %v42_v22 = vshrl.u32 %v14_v0, 7 }
   0x4   :  { %v24_v9 = vadd.f32 %v23_v4, %v20_v1  ;;  %v30_v10 = vadd.f32 %v29_v5, %v21_v2  ;;  %v62_v13 = vrot.slane %v60_v7, 4 }
   0x5   :  { %v68_v14 = vrot.slane %v61_v8, 4  ;;  %v43_v31 = vsub.s32 %v40_v21, %v42_v22 }
   0x6   :  { %v25_v15 = vrot.slane %v24_v9, 2  ;;  %v31_v16 = vrot.slane %v30_v10, 2  ;;  %v63_v17 = vadd.f32 %v62_v13, %v60_v7 }
   0x7   :  { %v69_v18 = vadd.f32 %v68_v14, %v61_v8 }
   0x8   :  { %v26_v19 = vadd.f32 %v25_v15, %v24_v9  ;;  %v32_v20 = vadd.f32 %v31_v16, %v30_v10  ;;  %v64_v23 = vrot.slane %v63_v17, 2 }
   0x9   :  { %v70_v24 = vrot.slane %v69_v18, 2 }
   0xa   :  { %v27_v25 = vrot.slane %v26_v19, 1  ;;  %v33_v26 = vrot.slane %v32_v20, 1  ;;  %v65_v27 = vadd.f32 %v64_v23, %v63_v17  ;;  %v22_v38 = vld [vmem:[%s158_s1] sm:$0x3] }
   0xb   :  { %v71_v28 = vadd.f32 %v70_v24, %v69_v18  ;;  %v59_v43 = vld [vmem:[%s159_s2] sm:$0x3] }
   0xc   :  { %v28_v29 = vadd.f32 %v27_v25, %v26_v19  ;;  %v34_v30 = vadd.f32 %v33_v26, %v32_v20  ;;  %v66_v32 = vrot.slane %v65_v27, 1 }
   0xd   :  { %v72_v33 = vrot.slane %v71_v28, 1 }
   0xe   :  { %v37_v34 = vcombine.low %v28_v29, %v34_v30  ;;  %v67_v35 = vadd.f32 %v66_v32, %v65_v27 }
   0xf   :  { %v73_v36 = vadd.f32 %v72_v33, %v71_v28 }
  0x10   :  { %v44_v37 = vrot.slane %v37_v34, %v43_v31 }
  0x11   :  { %v76_v39 = vcombine.low %v67_v35, %v73_v36 }
  0x12   :  { %v51_v40 = vrot.slane %v44_v37, %v43_v31 }
  0x13   :  { %v83_v41 = vrot.slane %v76_v39, %v43_v31 }
  0x14   :  { %v53_v42 = vadd.f32 %v51_v40, %v22_v38 }
  0x15   :  { %v90_v44 = vrot.slane %v83_v41, %v43_v31 }
  0x16   :  { %58 = vst.msk [vmem:[%s158_s1] sm:$0x3] %vm127_vm0, %v53_v42 }
  0x17   :  { %v92_v45 = vadd.f32 %v90_v44, %v59_v43 }
  0x19   :  { %93 = vst.msk [vmem:[%s159_s2] sm:$0x3] %vm127_vm0, %v92_v45 }

// kernel: forward.165
= control target key start
LH: loop header
LB: loop body
LE: loop exit
PB: predicated region body
PF: predicated region fallthrough
CT: control target
= control target key end

     0   :  { %v17_v0 = vlaneseq  ;;  %v61_v1 = vmov 1983009808   ;;  %s94_s1 = inlined_call_operand.vmem [shape: f32[1,256], index: 1, kind: input, shape index: {}]   ;;  %s95_s2 = inlined_call_operand.vmem [shape: f32[1,256], index: 2, kind: input, shape index: {}]   ;;  %s96_s0 = inlined_call_operand.vmem [shape: f32[2,256], index: 0, kind: input, shape index: {}]   ;;  %s97_s3 = inlined_call_operand.vmem [shape: f32[2,256], index: 3, kind: output, shape index: {}]  }
   0x1   :  { %v27_v2 = vunpack.c.l.s4 %v61_v1  ;;  %v15_v4 = vld [vmem:[%s94_s1] sm:$0x3] }
   0x2   :  { %v18_v3 = vshrl.u32 %v17_v0, 7  ;;  %v35_v6 = vld [vmem:[%s95_s2] sm:$0x3] }
   0x3   :  { %v28_v5 = vunpack.c.0.s8 %v27_v2  ;;  %v14_v16 = vld [vmem:[%s96_s0] sm:$0xf] }
   0x4   :  { %v19_v7 = vsub.s32 0, %v18_v3  ;;  %v23_v8 = vsub.s32 1, %v18_v3 }
   0x5   :  { %v31_v9 = vsub.s32 %v28_v5, %v18_v3 }
   0x6   :  { %v20_v10 = vrot.slane %v15_v4, %v19_v7  ;;  %v24_v11 = vrot.slane %v15_v4, %v23_v8  ;;  %v40_v12 = vrot.slane %v35_v6, %v19_v7  ;;  %v44_v13 = vrot.slane %v35_v6, %v23_v8 }
   0x8   :  { %v25_v14 = vcombine.low %v20_v10, %v24_v11  ;;  %v45_v15 = vcombine.low %v40_v12, %v44_v13 }
   0xa   :  { %v32_v17 = vrot.slane %v25_v14, %v31_v9  ;;  %v52_v18 = vrot.slane %v45_v15, %v31_v9 }
   0xc   :  { %v34_v19 = vmul.f32 %v32_v17, %v14_v16 }
   0xe   :  { %v54_v20 = vadd.f32 %v52_v18, %v34_v19 }
  0x10   :  { %55 = vst [vmem:[%s97_s3] sm:$0xf] %v54_v20 }

// kernel: forward.135
= control target key start
LH: loop header
LB: loop body
LE: loop exit
PB: predicated region body
PF: predicated region fallthrough
CT: control target
= control target key end

     0   :  { %s552_s9 = smov 0   ;;  %s554_s10 = smov 0   ;;  %s598_s0 = inlined_call_operand.vmem [shape: bf16[8,1152], index: 0, kind: input, shape index: {}]   ;;  %s599_s1 = inlined_call_operand.vmem [shape: bf16[1152,128], index: 1, kind: input, shape index: {}]   ;;  %s600_s2 = inlined_call_operand.vmem [shape: f32[8,128], index: 2, kind: output, shape index: {}]  }
   0x1   :  { %s556_s11 = smov 0  }
   0x2 LB: > { %s24_s12 = sadd.s32 1, %s528_s10  ;;  %p429_p0 = scmp.ge.s32.totalorder %s532_s11, 1  ;;  %s532_s11 = sphi %s556_s11, %s12_s11   ;;  %s528_s10 = sphi %s554_s10, %s602_s10   ;;  %s524_s9 = sphi %s552_s9, %s601_s9  }
   0x3   : > { %p25_p1 = scmp.ge.s32.totalorder %s24_s12, 9  ;;  %p154_p2 = scmp.lt.s32.totalorder %s532_s11, 10 }
   0x5   : > { %s604_s12 = smov (%p25_p1, %s24_s12), 0  ;;  %p155_p3 = pnand %p429_p0, %p154_p2 }
   0x6   : > { %p191_p4 = scmp.lt.s32.totalorder (!%p155_p3), %s524_s9, 8  ;;  %s431_s13 = sshll.u32 (!%p155_p3), %s524_s9, 4 }
   0x7   : > { %158 = sbr.rel (%p155_p3) target bundleno = 278 (0x116), region = 28  ;;  %p198_p5 = scmp.lt.s32.totalorder (!%p155_p3), %s431_s13, 143 }
   0x8   : > { %p433_p6 = scmp.ne.s32.totalorder (!%p155_p3), %s524_s9, 0 }
   0xe   : > { %s192_s14 = scalar_select %p191_p4, %s524_s9, 8 }
   0xf   : > { %s606_s13 = smov (!%p198_p5, %s431_s13), 143  ;;  %217 = sbr.rel (%p433_p6) target bundleno = 22 (0x16), region = 32 }
  0x10   : > { %s430_s15 = sshll.u32 %s192_s14, 2  ;;  %s432_s19 = sshll.u32 %s606_s13, 2  ;;  %v534_v0 = vmov (!%p433_p6), 0.0  }
  0x11   : > { %s578_s18 = scalar_lea.vmem %s598_s0, %s430_s15  ;;  %s204_s22 = scalar_lea.vmem %s599_s1, %s432_s19  ;;  %218 = vst [vmem:[#allocation2] sm:$0xff] (!%p433_p6), %v534_v0 }
  0x16 PF: > { %v502_v1 = vld [vmem:[%s204_s22] sm:$0xff]   ;;  %v535_v2 = vmov 0.0   ;;  %v503_v3 = vld [vmem:[%s204_s22 + $0x8] sm:$0xff]   ;;  %vm536_vm0 = vmmov 0   ;;  %v504_v4 = vld [vmem:[%s204_s22 + $0x10] sm:$0xff]   ;;  %p442_p7 = scmp.ne.s32.totalorder %s524_s9, 8 }
  0x17   : > { %455 = vmatprep.subr.bf16.mxu0 %v535_v2  ;;  %471 = vmatprep.mubr.msk.bf16.mxu0 %vm536_vm0, %v535_v2  ;;  %v505_v5 = vld [vmem:[%s204_s22 + $0x18] sm:$0xff]   ;;  %v506_v6 = vld [vmem:[%s204_s22 + $0x20] sm:$0xff]   ;;  %v507_v7 = vld [vmem:[%s204_s22 + $0x28] sm:$0xff]  }
  0x18   : > { %456 = vmatpush3.bf16.msra.mxu0 %v502_v1  ;;  %v508_v8 = vld [vmem:[%s204_s22 + $0x30] sm:$0xff]   ;;  %v509_v9 = vld [vmem:[%s204_s22 + $0x38] sm:$0xff]   ;;  %v220_v10 = vld [vmem:[%s578_s18] sm:$0xf] }
  0x19   : > { %457 = vmatprep.subr.bf16.mxu0 %v535_v2  ;;  %v219_v11 = vld [vmem:[#allocation2] sm:$0xff] }
  0x1c   : > { %458 = vmatpush3.bf16.msra.mxu0 %v503_v3 }
  0x1d   : > { %459 = vmatprep.subr.bf16.mxu0 %v535_v2 }
  0x20   : > { %460 = vmatpush3.bf16.msra.mxu0 %v504_v4 }
  0x21   : > { %461 = vmatprep.subr.bf16.mxu0 %v535_v2 }
  0x24   : > { %462 = vmatpush3.bf16.msra.mxu0 %v505_v5 }
  0x25   : > { %463 = vmatprep.subr.bf16.mxu0 %v535_v2 }
  0x28   : > { %464 = vmatpush3.bf16.msra.mxu0 %v506_v6 }
  0x29   : > { %465 = vmatprep.subr.bf16.mxu0 %v535_v2 }
  0x2c   : > { %466 = vmatpush3.bf16.msra.mxu0 %v507_v7 }
  0x2d   : > { %467 = vmatprep.subr.bf16.mxu0 %v535_v2 }
  0x30   : > { %468 = vmatpush3.bf16.msra.mxu0 %v508_v8 }
  0x31   : > { %469 = vmatprep.subr.bf16.mxu0 %v535_v2 }
  0x34   : > { %470 = vmatpush3.bf16.msra.mxu0 %v509_v9 }
  0x37   : > { %472 = vmatmul.mubr.bf16.vlgmr.msra.gmra.mrb[0].mxu0 %v220_v10 }
 0x107   : > { %330 = sbr.rel (%p442_p7) target bundleno = 278 (0x116), region = 36 }
 0x10a   : > { %v319_v12 = vpop.f32.mrb[0].mxu0 }
 0x10b   : > { %v325_v13 = vadd.f32 %v319_v12, %v219_v11  ;;  %v473_v14 = vpop.f32.mrb[1].mxu0 }
 0x10c   : > { %v322_v15 = vpop.f32.mrb[2].mxu0 }
 0x10d   : > { %326 = vst [vmem:[#allocation2] sm:$0xff] %v325_v13  ;;  %v474_v16 = vpop.f32.mrb[3].mxu0 }
 0x114   : > { %v331_v17 = vld [vmem:[#allocation2] sm:$0xff] }
 0x115   : > { %332 = vst [vmem:[%s600_s2] sm:$0xff] %v331_v17 }
 0x116 PF: > { %s12_s11 = sadd.s32 1, %s532_s11   ;;  %s601_s9 = smov %s528_s10 }
 0x117   : > { %p9_p8 = scmp.ge.s32.totalorder %s12_s11, 11   ;;  %s602_s10 = smov %s604_s12 }
 0x119   :  { %11 = sbr.rel (!%p9_p8) target bundleno = 2 (0x2), region = 69 }

// kernel: forward.162
= control target key start
LH: loop header
LB: loop body
LE: loop exit
PB: predicated region body
PF: predicated region fallthrough
CT: control target
= control target key end

     0   :  { %s779_s9 = smov 0   ;;  %s781_s10 = smov 0   ;;  %s863_s0 = inlined_call_operand.vmem [shape: bf16[2,2304], index: 0, kind: input, shape index: {}]   ;;  %s864_s1 = inlined_call_operand.vmem [shape: bf16[2304,256], index: 1, kind: input, shape index: {}]   ;;  %s865_s2 = inlined_call_operand.vmem [shape: f32[2,256], index: 2, kind: output, shape index: {}]  }
   0x1   :  { %s783_s11 = smov 0  }
   0x2 LB: > { %s24_s12 = sadd.s32 1, %s755_s10  ;;  %p617_p0 = scmp.ge.s32.totalorder %s759_s11, 1  ;;  %s759_s11 = sphi %s783_s11, %s12_s11   ;;  %s755_s10 = sphi %s781_s10, %s867_s10   ;;  %s751_s9 = sphi %s779_s9, %s866_s9  }
   0x3   : > { %p25_p1 = scmp.ge.s32.totalorder %s24_s12, 9  ;;  %p158_p2 = scmp.lt.s32.totalorder %s759_s11, 10 }
   0x5   : > { %s869_s12 = smov (%p25_p1, %s24_s12), 0  ;;  %p159_p3 = pnand %p617_p0, %p158_p2 }
   0x6   : > { %s618_s13 = sshll.u32 (!%p159_p3), %s751_s9, 1  ;;  %s619_s14 = sshll.u32 (!%p159_p3), %s751_s9, 5 }
   0x7   : > { %162 = sbr.rel (%p159_p3) target bundleno = 316 (0x13c), region = 28  ;;  %p200_p4 = scmp.lt.s32.totalorder (!%p159_p3), %s618_s13, 17 }
   0x8   : > { %p208_p5 = scmp.lt.s32.totalorder (!%p159_p3), %s619_s14, 287  ;;  %p622_p6 = scmp.ne.s32.totalorder (!%p159_p3), %s751_s9, 0 }
   0xe   : > { %s871_s13 = smov (!%p200_p4, %s618_s13), 17  ;;  %s873_s14 = smov (!%p208_p5, %s619_s14), 287 }
   0xf   : > { %s204_s17 = scalar_lea.vmem %s863_s0, %s871_s13  ;;  %s661_s18 = sshll.u32 %s873_s14, 3  ;;  %v761_v0 = vmov (!%p622_p6), 0.0  }
  0x10   : > { %s810_s21 = scalar_lea.vmem %s864_s1, %s661_s18  ;;  %231 = sbr.rel (%p622_p6) target bundleno = 23 (0x17), region = 32  ;;  %232 = vst [vmem:[#allocation2] sm:$0xf] (!%p622_p6), %v761_v0 }
  0x17 PF: > { %v689_v1 = vld [vmem:[%s810_s21 + $0x4] ss:$8 sps:$4 sm:$0xff]   ;;  %v691_v2 = vld [vmem:[%s810_s21] ss:$8 sps:$4 sm:$0xff]   ;;  %v692_v3 = vld [vmem:[%s810_s21 + $0x14] ss:$8 sps:$4 sm:$0xff]   ;;  %v279_v12 = vlaneseq }
  0x18   : > { %452 = vmatprep.subr.bf16.mxu0 %v689_v1  ;;  %v694_v4 = vld [vmem:[%s810_s21 + $0x10] ss:$8 sps:$4 sm:$0xff]   ;;  %v695_v5 = vld [vmem:[%s810_s21 + $0x24] ss:$8 sps:$4 sm:$0xff]   ;;  %v697_v6 = vld [vmem:[%s810_s21 + $0x20] ss:$8 sps:$4 sm:$0xff]  }
  0x19   : > { %453 = vmatpush1.bf16.msra.mxu0 %v691_v2  ;;  %v698_v7 = vld [vmem:[%s810_s21 + $0x34] ss:$8 sps:$4 sm:$0xff]   ;;  %v700_v8 = vld [vmem:[%s810_s21 + $0x30] ss:$8 sps:$4 sm:$0xff]   ;;  %v701_v9 = vld [vmem:[%s810_s21 + $0x44] ss:$8 sps:$4 sm:$0xff]  }
  0x1a   : > { %454 = vmatprep.subr.bf16.mxu0 %v692_v3  ;;  %v762_v10 = vmov 1966171168   ;;  %v703_v13 = vld [vmem:[%s810_s21 + $0x40] ss:$8 sps:$4 sm:$0xff]   ;;  %v704_v14 = vld [vmem:[%s810_s21 + $0x54] ss:$8 sps:$4 sm:$0xff]  }
  0x1b   : > { %v277_v11 = vunpack.c.l.s4 %v762_v10  ;;  %v280_v16 = vshrl.u32 %v279_v12, 7  ;;  %v706_v17 = vld [vmem:[%s810_s21 + $0x50] ss:$8 sps:$4 sm:$0xff]   ;;  %v707_v18 = vld [vmem:[%s810_s21 + $0x64] ss:$8 sps:$4 sm:$0xff]   ;;  %p656_p7 = scmp.ne.s32.totalorder %s751_s9, 8 }
  0x1c   : > { %v623_v20 = vld.sshfl [vmem:[%s204_s17] sm:$0x11 pattern:$0x75316420]  ;;  %v710_v23 = vld [vmem:[%s810_s21 + $0x74] ss:$8 sps:$4 sm:$0xff]  }
  0x1d   : > { %455 = vmatpush1.bf16.msra.mxu0 %v694_v4  ;;  %v278_v15 = vunpack.c.0.s8 %v277_v11  ;;  %v275_v21 = vcombine.high %v623_v20, %v623_v20  ;;  %v709_v22 = vld [vmem:[%s810_s21 + $0x60] ss:$8 sps:$4 sm:$0xff]   ;;  %v712_v25 = vld [vmem:[%s810_s21 + $0x70] ss:$8 sps:$4 sm:$0xff]   ;;  %v713_v26 = vld [vmem:[%s810_s21 + $0x84] ss:$8 sps:$4 sm:$0xff]  }
  0x1e   : > { %456 = vmatprep.subr.bf16.mxu0 %v695_v5  ;;  %v715_v27 = vld [vmem:[%s810_s21 + $0x80] ss:$8 sps:$4 sm:$0xff]   ;;  %v716_v28 = vld [vmem:[%s810_s21 + $0x94] ss:$8 sps:$4 sm:$0xff]   ;;  %v718_v29 = vld [vmem:[%s810_s21 + $0x90] ss:$8 sps:$4 sm:$0xff]  }
  0x1f   : > { %v281_v19 = vsub.s32 %v278_v15, %v280_v16  ;;  %v719_v30 = vld [vmem:[%s810_s21 + $0xa4] ss:$8 sps:$4 sm:$0xff]   ;;  %v721_v31 = vld [vmem:[%s810_s21 + $0xa0] ss:$8 sps:$4 sm:$0xff]   ;;  %v722_v32 = vld [vmem:[%s810_s21 + $0xb4] ss:$8 sps:$4 sm:$0xff]  }
  0x20   : > { %v724_v33 = vld [vmem:[%s810_s21 + $0xb0] ss:$8 sps:$4 sm:$0xff]   ;;  %v725_v34 = vld [vmem:[%s810_s21 + $0xc4] ss:$8 sps:$4 sm:$0xff]   ;;  %v727_v35 = vld [vmem:[%s810_s21 + $0xc0] ss:$8 sps:$4 sm:$0xff]  }
  0x21   : > { %457 = vmatpush1.bf16.msra.mxu0 %v697_v6  ;;  %v289_v24 = vrot.slane %v275_v21, %v281_v19  ;;  %v728_v36 = vld [vmem:[%s810_s21 + $0xd4] ss:$8 sps:$4 sm:$0xff]   ;;  %v730_v37 = vld [vmem:[%s810_s21 + $0xd0] ss:$8 sps:$4 sm:$0xff]   ;;  %v731_v38 = vld [vmem:[%s810_s21 + $0xe4] ss:$8 sps:$4 sm:$0xff]   ;;  %v282_v42 = vrot.slane %v623_v20, %v281_v19 }
  0x22   : > { %458 = vmatprep.subr.bf16.mxu0 %v698_v7  ;;  %v733_v39 = vld [vmem:[%s810_s21 + $0xe0] ss:$8 sps:$4 sm:$0xff]   ;;  %v734_v40 = vld [vmem:[%s810_s21 + $0xf4] ss:$8 sps:$4 sm:$0xff]   ;;  %v736_v41 = vld [vmem:[%s810_s21 + $0xf0] ss:$8 sps:$4 sm:$0xff]  }
  0x23   : > { %484 = vmatprep.mubr.bf16.mxu0 %v289_v24  ;;  %v763_v43 = vmov 1983009808   ;;  %v233_v51 = vld [vmem:[#allocation2] sm:$0xf] }
  0x24   : > { %v497_v44 = vunpack.c.l.s4 %v763_v43 }
  0x25   : > { %459 = vmatpush1.bf16.msra.mxu0 %v700_v8 }
  0x26   : > { %460 = vmatprep.subr.bf16.mxu0 %v701_v9  ;;  %v498_v45 = vunpack.c.0.s8 %v497_v44 }
  0x28   : > { %v501_v47 = vsub.s32 %v498_v45, %v280_v16 }
  0x29   : > { %461 = vmatpush1.bf16.msra.mxu0 %v703_v13 }
  0x2a   : > { %462 = vmatprep.subr.bf16.mxu0 %v704_v14 }
  0x2d   : > { %463 = vmatpush1.bf16.msra.mxu0 %v706_v17 }
  0x2e   : > { %464 = vmatprep.subr.bf16.mxu0 %v707_v18 }
  0x31   : > { %465 = vmatpush1.bf16.msra.mxu0 %v709_v22 }
  0x32   : > { %466 = vmatprep.subr.bf16.mxu0 %v710_v23 }
  0x35   : > { %467 = vmatpush1.bf16.msra.mxu0 %v712_v25 }
  0x36   : > { %468 = vmatprep.subr.bf16.mxu0 %v713_v26 }
  0x39   : > { %469 = vmatpush1.bf16.msra.mxu0 %v715_v27 }
  0x3a   : > { %470 = vmatprep.subr.bf16.mxu0 %v716_v28 }
  0x3d   : > { %471 = vmatpush1.bf16.msra.mxu0 %v718_v29 }
  0x3e   : > { %472 = vmatprep.subr.bf16.mxu0 %v719_v30 }
  0x41   : > { %473 = vmatpush1.bf16.msra.mxu0 %v721_v31 }
  0x42   : > { %474 = vmatprep.subr.bf16.mxu0 %v722_v32 }
  0x45   : > { %475 = vmatpush1.bf16.msra.mxu0 %v724_v33 }
  0x46   : > { %476 = vmatprep.subr.bf16.mxu0 %v725_v34 }
  0x49   : > { %477 = vmatpush1.bf16.msra.mxu0 %v727_v35 }
  0x4a   : > { %478 = vmatprep.subr.bf16.mxu0 %v728_v36 }
  0x4d   : > { %479 = vmatpush1.bf16.msra.mxu0 %v730_v37 }
  0x4e   : > { %480 = vmatprep.subr.bf16.mxu0 %v731_v38 }
  0x51   : > { %481 = vmatpush1.bf16.msra.mxu0 %v733_v39 }
  0x52   : > { %482 = vmatprep.subr.bf16.mxu0 %v734_v40 }
  0x55   : > { %483 = vmatpush1.bf16.msra.mxu0 %v736_v41 }
  0x58   : > { %485 = vmatmul.mubr.bf16.vlgmr.msra.gmra.mrb[0].mxu0 %v282_v42 }
 0x12b   : > { %v486_v46 = vpop.f32.mrb[0].mxu0 }
 0x12c   : > { %v488_v48 = vpop.f32.mrb[1].mxu0 }
 0x12d   : > { %v495_v49 = vcombine.low %v486_v46, %v488_v48  ;;  %v490_v50 = vpop.f32.mrb[2].mxu0  ;;  %509 = sbr.rel (%p656_p7) target bundleno = 316 (0x13c), region = 36 }
 0x12e   : > { %v491_v52 = vpop.f32.mrb[3].mxu0 }
 0x12f   : > { %v502_v53 = vrot.slane %v495_v49, %v501_v47 }
 0x131   : > { %v504_v54 = vadd.f32 %v502_v53, %v233_v51 }
 0x133   : > { %505 = vst [vmem:[#allocation2] sm:$0xf] %v504_v54 }
 0x13a   : > { %v510_v55 = vld [vmem:[#allocation2] sm:$0xf] }
 0x13b   : > { %511 = vst [vmem:[%s865_s2] sm:$0xf] %v510_v55 }
 0x13c PF: > { %s12_s11 = sadd.s32 1, %s759_s11   ;;  %s866_s9 = smov %s755_s10 }
 0x13d   : > { %p9_p8 = scmp.ge.s32.totalorder %s12_s11, 11   ;;  %s867_s10 = smov %s869_s12 }
 0x13f   :  { %11 = sbr.rel (!%p9_p8) target bundleno = 2 (0x2), region = 69 }

// kernel: forward.161
= control target key start
LH: loop header
LB: loop body
LE: loop exit
PB: predicated region body
PF: predicated region fallthrough
CT: control target
= control target key end

     0   :  { %v17_v0 = vlaneseq  ;;  %v62_v1 = vmov 1983009808   ;;  %s95_s1 = inlined_call_operand.vmem [shape: f32[1,256], index: 1, kind: input, shape index: {}]   ;;  %s96_s2 = inlined_call_operand.vmem [shape: f32[1,256], index: 2, kind: input, shape index: {}]   ;;  %s97_s0 = inlined_call_operand.vmem [shape: f32[2,256], index: 0, kind: input, shape index: {}]   ;;  %s98_s3 = inlined_call_operand.vmem [shape: f32[2,256], index: 3, kind: output, shape index: {}]  }
   0x1   :  { %v27_v2 = vunpack.c.l.s4 %v62_v1  ;;  %v15_v4 = vld [vmem:[%s95_s1] sm:$0x3] }
   0x2   :  { %v18_v3 = vshrl.u32 %v17_v0, 7  ;;  %v35_v6 = vld [vmem:[%s96_s2] sm:$0x3] }
   0x3   :  { %v28_v5 = vunpack.c.0.s8 %v27_v2  ;;  %v14_v16 = vld [vmem:[%s97_s0] sm:$0xf] }
   0x4   :  { %v19_v7 = vsub.s32 0, %v18_v3  ;;  %v23_v8 = vsub.s32 1, %v18_v3 }
   0x5   :  { %v31_v9 = vsub.s32 %v28_v5, %v18_v3 }
   0x6   :  { %v20_v10 = vrot.slane %v15_v4, %v19_v7  ;;  %v24_v11 = vrot.slane %v15_v4, %v23_v8  ;;  %v40_v12 = vrot.slane %v35_v6, %v19_v7  ;;  %v44_v13 = vrot.slane %v35_v6, %v23_v8 }
   0x8   :  { %v25_v14 = vcombine.low %v20_v10, %v24_v11  ;;  %v45_v15 = vcombine.low %v40_v12, %v44_v13 }
   0xa   :  { %v32_v17 = vrot.slane %v25_v14, %v31_v9  ;;  %v52_v18 = vrot.slane %v45_v15, %v31_v9 }
   0xc   :  { %v34_v19 = vmul.f32 %v32_v17, %v14_v16 }
   0xe   :  { %v54_v20 = vadd.f32 %v52_v18, %v34_v19 }
  0x10   :  { %v55_v21 = vmax.f32 %v54_v20, 0.0 }
  0x12   :  { %56 = vst [vmem:[%s98_s3] sm:$0xf] %v55_v21 }

// kernel: forward.159
= control target key start
LH: loop header
LB: loop body
LE: loop exit
PB: predicated region body
PF: predicated region fallthrough
CT: control target
= control target key end

     0   :  { %s612_s9 = smov 0   ;;  %s614_s10 = smov 0   ;;  %s681_s0 = inlined_call_operand.vmem [shape: bf16[2,1152], index: 0, kind: input, shape index: {}]   ;;  %s682_s1 = inlined_call_operand.vmem [shape: bf16[1152,256], index: 1, kind: input, shape index: {}]   ;;  %s683_s2 = inlined_call_operand.vmem [shape: f32[2,256], index: 2, kind: output, shape index: {}]  }
   0x1   :  { %s616_s11 = smov 0  }
   0x2 LB: > { %s24_s12 = sadd.s32 1, %s588_s10  ;;  %p492_p0 = scmp.ge.s32.totalorder %s592_s11, 1  ;;  %s592_s11 = sphi %s616_s11, %s12_s11   ;;  %s588_s10 = sphi %s614_s10, %s685_s10   ;;  %s584_s9 = sphi %s612_s9, %s684_s9  }
   0x3   : > { %p25_p1 = scmp.ge.s32.totalorder %s24_s12, 9  ;;  %p156_p2 = scmp.lt.s32.totalorder %s592_s11, 10 }
   0x5   : > { %s687_s12 = smov (%p25_p1, %s24_s12), 0  ;;  %p157_p3 = pnand %p492_p0, %p156_p2 }
   0x6   : > { %p196_p4 = scmp.lt.s32.totalorder (!%p157_p3), %s584_s9, 8  ;;  %s493_s13 = sshll.u32 (!%p157_p3), %s584_s9, 4 }
   0x7   : > { %160 = sbr.rel (%p157_p3) target bundleno = 283 (0x11b), region = 28  ;;  %p203_p5 = scmp.lt.s32.totalorder (!%p157_p3), %s493_s13, 143 }
   0x8   : > { %p496_p6 = scmp.ne.s32.totalorder (!%p157_p3), %s584_s9, 0 }
   0xe   : > { %s635_s14 = scalar_select %p196_p4, %s584_s9, 8 }
   0xf   : > { %s689_s13 = smov (!%p203_p5, %s493_s13), 143  ;;  %227 = sbr.rel (%p496_p6) target bundleno = 22 (0x16), region = 32 }
  0x10   : > { %s200_s17 = scalar_lea.vmem %s681_s0, %s635_s14  ;;  %s518_s18 = sshll.u32 %s689_s13, 3  ;;  %v594_v0 = vmov (!%p496_p6), 0.0  }
  0x11   : > { %s644_s21 = scalar_lea.vmem %s682_s1, %s518_s18  ;;  %228 = vst [vmem:[#allocation2] sm:$0xf] (!%p496_p6), %v594_v0 }
  0x16 PF: > { %v546_v1 = vld [vmem:[%s644_s21 + $0x4] ss:$8 sps:$4 sm:$0xff]   ;;  %v548_v2 = vld [vmem:[%s644_s21] ss:$8 sps:$4 sm:$0xff]   ;;  %v595_v3 = vmov 0   ;;  %v374_v21 = vlaneseq  ;;  %p513_p7 = scmp.ne.s32.totalorder %s584_s9, 8 }
  0x17   : > { %359 = vmatprep.mubr.bf16.mxu0 %v595_v3  ;;  %327 = vmatprep.subr.bf16.mxu0 %v546_v1  ;;  %v549_v4 = vld [vmem:[%s644_s21 + $0x14] ss:$8 sps:$4 sm:$0xff]   ;;  %v551_v5 = vld [vmem:[%s644_s21 + $0x10] ss:$8 sps:$4 sm:$0xff]   ;;  %v552_v6 = vld [vmem:[%s644_s21 + $0x24] ss:$8 sps:$4 sm:$0xff]  }
  0x18   : > { %328 = vmatpush1.bf16.msra.mxu0 %v548_v2  ;;  %v554_v7 = vld [vmem:[%s644_s21 + $0x20] ss:$8 sps:$4 sm:$0xff]   ;;  %v555_v8 = vld [vmem:[%s644_s21 + $0x34] ss:$8 sps:$4 sm:$0xff]   ;;  %v557_v9 = vld [vmem:[%s644_s21 + $0x30] ss:$8 sps:$4 sm:$0xff]  }
  0x19   : > { %329 = vmatprep.subr.bf16.mxu0 %v549_v4  ;;  %v558_v10 = vld [vmem:[%s644_s21 + $0x44] ss:$8 sps:$4 sm:$0xff]   ;;  %v560_v11 = vld [vmem:[%s644_s21 + $0x40] ss:$8 sps:$4 sm:$0xff]   ;;  %v561_v12 = vld [vmem:[%s644_s21 + $0x54] ss:$8 sps:$4 sm:$0xff]  }
  0x1a   : > { %v563_v13 = vld [vmem:[%s644_s21 + $0x50] ss:$8 sps:$4 sm:$0xff]   ;;  %v564_v14 = vld [vmem:[%s644_s21 + $0x64] ss:$8 sps:$4 sm:$0xff]   ;;  %v566_v15 = vld [vmem:[%s644_s21 + $0x60] ss:$8 sps:$4 sm:$0xff]  }
  0x1b   : > { %v567_v16 = vld [vmem:[%s644_s21 + $0x74] ss:$8 sps:$4 sm:$0xff]   ;;  %v569_v17 = vld [vmem:[%s644_s21 + $0x70] ss:$8 sps:$4 sm:$0xff]   ;;  %v230_v18 = vld [vmem:[%s200_s17] sm:$0x1] }
  0x1c   : > { %330 = vmatpush1.bf16.msra.mxu0 %v551_v5  ;;  %v596_v19 = vmov 1983009808   ;;  %v375_v23 = vshrl.u32 %v374_v21, 7  ;;  %v229_v29 = vld [vmem:[#allocation2] sm:$0xf] }
  0x1d   : > { %331 = vmatprep.subr.bf16.mxu0 %v552_v6  ;;  %v372_v20 = vunpack.c.l.s4 %v596_v19 }
  0x1f   : > { %v373_v22 = vunpack.c.0.s8 %v372_v20 }
  0x20   : > { %332 = vmatpush1.bf16.msra.mxu0 %v554_v7 }
  0x21   : > { %333 = vmatprep.subr.bf16.mxu0 %v555_v8  ;;  %v376_v25 = vsub.s32 %v373_v22, %v375_v23 }
  0x24   : > { %334 = vmatpush1.bf16.msra.mxu0 %v557_v9 }
  0x25   : > { %335 = vmatprep.subr.bf16.mxu0 %v558_v10 }
  0x28   : > { %336 = vmatpush1.bf16.msra.mxu0 %v560_v11 }
  0x29   : > { %337 = vmatprep.subr.bf16.mxu0 %v561_v12 }
  0x2c   : > { %338 = vmatpush1.bf16.msra.mxu0 %v563_v13 }
  0x2d   : > { %339 = vmatprep.subr.bf16.mxu0 %v564_v14 }
  0x30   : > { %340 = vmatpush1.bf16.msra.mxu0 %v566_v15 }
  0x31   : > { %341 = vmatprep.subr.bf16.mxu0 %v567_v16 }
  0x34   : > { %342 = vmatpush1.bf16.msra.mxu0 %v569_v17 }
  0x37   : > { %360 = vmatmul.mubr.bf16.vlgmr.msra.gmra.mrb[0].mxu0 %v230_v18 }
 0x10a   : > { %v361_v24 = vpop.f32.mrb[0].mxu0 }
 0x10b   : > { %v363_v26 = vpop.f32.mrb[1].mxu0 }
 0x10c   : > { %v370_v27 = vcombine.low %v361_v24, %v363_v26  ;;  %v365_v28 = vpop.f32.mrb[2].mxu0  ;;  %384 = sbr.rel (%p513_p7) target bundleno = 283 (0x11b), region = 36 }
 0x10d   : > { %v366_v30 = vpop.f32.mrb[3].mxu0 }
 0x10e   : > { %v377_v31 = vrot.slane %v370_v27, %v376_v25 }
 0x110   : > { %v379_v32 = vadd.f32 %v377_v31, %v229_v29 }
 0x112   : > { %380 = vst [vmem:[#allocation2] sm:$0xf] %v379_v32 }
 0x119   : > { %v385_v33 = vld [vmem:[#allocation2] sm:$0xf] }
 0x11a   : > { %386 = vst [vmem:[%s683_s2] sm:$0xf] %v385_v33 }
 0x11b PF: > { %s12_s11 = sadd.s32 1, %s592_s11   ;;  %s684_s9 = smov %s588_s10 }
 0x11c   : > { %p9_p8 = scmp.ge.s32.totalorder %s12_s11, 11   ;;  %s685_s10 = smov %s687_s12 }
 0x11e   :  { %11 = sbr.rel (!%p9_p8) target bundleno = 2 (0x2), region = 69 }

// kernel: forward.167
= control target key start
LH: loop header
LB: loop body
LE: loop exit
PB: predicated region body
PF: predicated region fallthrough
CT: control target
= control target key end

     0   :  { %v20_v0 = vlaneseq  ;;  %v67_v1 = vmov 1983009808   ;;  %s108_s1 = inlined_call_operand.vmem [shape: f32[1,256], index: 1, kind: input, shape index: {}]   ;;  %s109_s2 = inlined_call_operand.vmem [shape: f32[1,256], index: 2, kind: input, shape index: {}]   ;;  %s110_s0 = inlined_call_operand.vmem [shape: f32[2,256], index: 0, kind: input, shape index: {}]   ;;  %s111_s3 = inlined_call_operand.vmem [shape: f32[2,256], index: 3, kind: input, shape index: {}]   ;;  %s112_s4 = inlined_call_operand.vmem [shape: f32[2,256], index: 4, kind: output, shape index: {}]  }
   0x1   :  { %v30_v2 = vunpack.c.l.s4 %v67_v1  ;;  %v18_v4 = vld [vmem:[%s108_s1] sm:$0x3] }
   0x2   :  { %v21_v3 = vshrl.u32 %v20_v0, 7  ;;  %v38_v6 = vld [vmem:[%s109_s2] sm:$0x3] }
   0x3   :  { %v31_v5 = vunpack.c.0.s8 %v30_v2  ;;  %v17_v16 = vld [vmem:[%s110_s0] sm:$0xf] }
   0x4   :  { %v22_v7 = vsub.s32 0, %v21_v3  ;;  %v26_v8 = vsub.s32 1, %v21_v3  ;;  %v58_v20 = vld [vmem:[%s111_s3] sm:$0xf] }
   0x5   :  { %v34_v9 = vsub.s32 %v31_v5, %v21_v3 }
   0x6   :  { %v23_v10 = vrot.slane %v18_v4, %v22_v7  ;;  %v27_v11 = vrot.slane %v18_v4, %v26_v8  ;;  %v43_v12 = vrot.slane %v38_v6, %v22_v7  ;;  %v47_v13 = vrot.slane %v38_v6, %v26_v8 }
   0x8   :  { %v28_v14 = vcombine.low %v23_v10, %v27_v11  ;;  %v48_v15 = vcombine.low %v43_v12, %v47_v13 }
   0xa   :  { %v35_v17 = vrot.slane %v28_v14, %v34_v9  ;;  %v55_v18 = vrot.slane %v48_v15, %v34_v9 }
   0xc   :  { %v37_v19 = vmul.f32 %v35_v17, %v17_v16 }
   0xe   :  { %v57_v21 = vadd.f32 %v55_v18, %v37_v19 }
  0x10   :  { %v59_v22 = vadd.f32 %v58_v20, %v57_v21 }
  0x12   :  { %v60_v23 = vmax.f32 %v59_v22, 0.0 }
  0x14   :  { %61 = vst [vmem:[%s112_s4] sm:$0xf] %v60_v23 }

// kernel: forward.203
= control target key start
LH: loop header
LB: loop body
LE: loop exit
PB: predicated region body
PF: predicated region fallthrough
CT: control target
= control target key end

     0   :  { %v14_v0 = vlaneseq  ;;  %v154_v4 = vmov 1966171168   ;;  %v155_v11 = vmov 0.0   ;;  %s213_s0 = inlined_call_operand.vmem [shape: f32[8,512], index: 0, kind: input, shape index: {}]   ;;  %s214_s1 = inlined_call_operand.vmem [shape: f32[1,512], index: 1, kind: output, shape index: {0}]   ;;  %s215_s2 = inlined_call_operand.vmem [shape: f32[1,512], index: 2, kind: output, shape index: {1}]  }
   0x1   :  { %v20_v1 = vld [vmem:[%s213_s0] sm:$0xff]  ;;  %v21_v2 = vld [vmem:[%s213_s0 + $0x8] sm:$0xff]  ;;  %v22_v3 = vld [vmem:[%s213_s0 + $0x10] sm:$0xff]  ;;  %v56_v5 = vunpack.c.l.s4 %v154_v4 }
   0x2   :  { %vm180_vm0 = vcmp.lt.s32.totalorder %v14_v0, 512  ;;  %v23_v7 = vld [vmem:[%s213_s0 + $0x18] sm:$0xff]  ;;  %v25_v8 = vrot.slane %v20_v1, 4  ;;  %v31_v9 = vrot.slane %v21_v2, 4  ;;  %v37_v10 = vrot.slane %v22_v3, 4 }
   0x3   :  { %18 = vst.msk [vmem:[%s214_s1] sm:$0xf] %vm180_vm0, %v155_v11  ;;  %v43_v12 = vrot.slane %v23_v7, 4  ;;  %v57_v13 = vunpack.c.0.s8 %v56_v5  ;;  %v59_v14 = vshrl.u32 %v14_v0, 7  ;;  %19 = vst.msk [vmem:[%s215_s2] sm:$0xf] %vm180_vm0, %v155_v11  ;;  %v85_v15 = vmul.f32 %v20_v1, %v20_v1 }
   0x4   :  { %v26_v16 = vadd.f32 %v25_v8, %v20_v1  ;;  %v32_v17 = vadd.f32 %v31_v9, %v21_v2  ;;  %v38_v18 = vadd.f32 %v37_v10, %v22_v3  ;;  %v86_v19 = vmul.f32 %v21_v2, %v21_v2 }
   0x5   :  { %v44_v20 = vadd.f32 %v43_v12, %v23_v7  ;;  %v60_v21 = vsub.s32 %v57_v13, %v59_v14  ;;  %v87_v22 = vmul.f32 %v22_v3, %v22_v3  ;;  %v88_v23 = vmul.f32 %v23_v7, %v23_v7 }
   0x6   :  { %v27_v24 = vrot.slane %v26_v16, 2  ;;  %v33_v25 = vrot.slane %v32_v17, 2  ;;  %v39_v26 = vrot.slane %v38_v18, 2  ;;  %v89_v27 = vrot.slane %v85_v15, 4 }
   0x7   :  { %v45_v28 = vrot.slane %v44_v20, 2  ;;  %v95_v29 = vrot.slane %v86_v19, 4  ;;  %v101_v30 = vrot.slane %v87_v22, 4  ;;  %v107_v31 = vrot.slane %v88_v23, 4 }
   0x8   :  { %v28_v32 = vadd.f32 %v27_v24, %v26_v16  ;;  %v34_v33 = vadd.f32 %v33_v25, %v32_v17  ;;  %v40_v34 = vadd.f32 %v39_v26, %v38_v18  ;;  %v90_v35 = vadd.f32 %v89_v27, %v85_v15 }
   0x9   :  { %v46_v36 = vadd.f32 %v45_v28, %v44_v20  ;;  %v96_v37 = vadd.f32 %v95_v29, %v86_v19  ;;  %v102_v38 = vadd.f32 %v101_v30, %v87_v22  ;;  %v108_v39 = vadd.f32 %v107_v31, %v88_v23 }
   0xa   :  { %v29_v40 = vrot.slane %v28_v32, 1  ;;  %v35_v41 = vrot.slane %v34_v33, 1  ;;  %v41_v42 = vrot.slane %v40_v34, 1  ;;  %v91_v43 = vrot.slane %v90_v35, 2  ;;  %v24_v8 = vld [vmem:[%s214_s1] sm:$0xf] }
   0xb   :  { %v47_v44 = vrot.slane %v46_v36, 1  ;;  %v97_v45 = vrot.slane %v96_v37, 2  ;;  %v103_v46 = vrot.slane %v102_v38, 2  ;;  %v109_v47 = vrot.slane %v108_v39, 2  ;;  %v84_v14 = vld [vmem:[%s215_s2] sm:$0xf] }
   0xc   :  { %v30_v48 = vadd.f32 %v29_v40, %v28_v32  ;;  %v36_v49 = vadd.f32 %v35_v41, %v34_v33  ;;  %v42_v50 = vadd.f32 %v41_v42, %v40_v34  ;;  %v92_v51 = vadd.f32 %v91_v43, %v90_v35 }
   0xd   :  { %v48_v52 = vadd.f32 %v47_v44, %v46_v36  ;;  %v98_v53 = vadd.f32 %v97_v45, %v96_v37  ;;  %v104_v54 = vadd.f32 %v103_v46, %v102_v38  ;;  %v110_v55 = vadd.f32 %v109_v47, %v108_v39 }
   0xe   :  { %v53_v56 = vcombine.low %v30_v48, %v36_v49  ;;  %v93_v57 = vrot.slane %v92_v51, 1 }
   0xf   :  { %v54_v58 = vcombine.low %v42_v50, %v48_v52  ;;  %v99_v59 = vrot.slane %v98_v53, 1  ;;  %v105_v60 = vrot.slane %v104_v54, 1  ;;  %v111_v61 = vrot.slane %v110_v55, 1 }
  0x10   :  { %v61_v62 = vrot.slane %v53_v56, %v60_v21  ;;  %v94_v63 = vadd.f32 %v93_v57, %v92_v51 }
  0x11   :  { %v68_v0 = vrot.slane %v54_v58, %v60_v21  ;;  %v100_v1 = vadd.f32 %v99_v59, %v98_v53  ;;  %v106_v2 = vadd.f32 %v105_v60, %v104_v54  ;;  %v112_v3 = vadd.f32 %v111_v61, %v110_v55 }
  0x13   :  { %v69_v4 = vcombine.low %v61_v62, %v68_v0  ;;  %v117_v5 = vcombine.low %v94_v63, %v100_v1  ;;  %v118_v7 = vcombine.low %v106_v2, %v112_v3 }
  0x15   :  { %v76_v9 = vrot.slane %v69_v4, %v60_v21  ;;  %v125_v10 = vrot.slane %v117_v5, %v60_v21  ;;  %v132_v11 = vrot.slane %v118_v7, %v60_v21 }
  0x17   :  { %v78_v12 = vadd.f32 %v76_v9, %v24_v8  ;;  %v133_v13 = vcombine.low %v125_v10, %v132_v11 }
  0x19   :  { %83 = vst.msk [vmem:[%s214_s1] sm:$0xf] %vm180_vm0, %v78_v12  ;;  %v140_v15 = vrot.slane %v133_v13, %v60_v21 }
  0x1b   :  { %v142_v16 = vadd.f32 %v140_v15, %v84_v14 }
  0x1d   :  { %143 = vst.msk [vmem:[%s215_s2] sm:$0xf] %vm180_vm0, %v142_v16 }

// kernel: forward.202
= control target key start
LH: loop header
LB: loop body
LE: loop exit
PB: predicated region body
PF: predicated region fallthrough
CT: control target
= control target key end

     0   :  { %s964_s9 = smov 0   ;;  %s966_s10 = smov 0   ;;  %s1143_s0 = inlined_call_operand.vmem [shape: bf16[2,256], index: 0, kind: input, shape index: {}]   ;;  %s1144_s1 = inlined_call_operand.vmem [shape: bf16[256,512], index: 1, kind: input, shape index: {}]   ;;  %s1145_s2 = inlined_call_operand.vmem [shape: f32[2,512], index: 2, kind: output, shape index: {}]  }
   0x1   :  { %s968_s11 = smov 0   ;;  %s970_s12 = smov 0  }
   0x2   :  { %s972_s13 = smov 0  }
   0x3 LB: > { %s27_s14 = sadd.s32 1, %s940_s12  ;;  %p75_p1 = scmp.ne.s32.totalorder %s932_s10, %s928_s9  ;;  %s944_s13 = sphi %s972_s13, %s12_s13   ;;  %s940_s12 = sphi %s970_s12, %s1149_s12   ;;  %s936_s11 = sphi %s968_s11, %s1148_s11   ;;  %s932_s10 = sphi %s966_s10, %s1147_s10   ;;  %s928_s9 = sphi %s964_s9, %s1146_s9  }
   0x4   : > { %p29_p0 = scmp.ge.s32.totalorder %s27_s14, 2  ;;  %p76_p2 = scmp.eq.s32.totalorder %s944_s13, 0 }
   0x5   : > { %s68_s16 = sadd.s32 1, %s932_s10  ;;  %p771_p5 = scmp.ge.s32.totalorder %s944_s13, 2 }
   0x6   : > { %s1151_s14 = smov (%p29_p0, %s27_s14), 0  ;;  %p77_p3 = por %p76_p2, %p75_p1 }
   0x7   : > { %s64_s15 = ssub.s32 %s940_s12, %s1151_s14  ;;  %141 = sbr.rel (%p771_p5) target bundleno = 34 (0x22), region = 20 }
   0x8   : > { %p66_p4 = scmp.eq.s32.totalorder %s64_s15, 0 }
   0xa   : > { %s999_s17 = scalar_select %p66_p4, %s932_s10, %s68_s16  }
   0xe   : > { %144 = sbr.rel (!%p77_p3) target bundleno = 34 (0x22), region = 24  ;;  %s146_s18 = sand.u32 (%p77_p3), 1, %s932_s10  }
   0xf   : > { %s814_s19 = sshll.u32 (%p77_p3), %s940_s12, 3  ;;  %s772_s20 = sshll.u32 (%p77_p3), %s146_s18, 8 }
  0x10   : > { %s1007_s23 = scalar_lea.vmem (%p77_p3), %s1144_s1, %s814_s19  ;;  %s1012_s24 = scalar_lea.vmem (%p77_p3), [#allocation3], %s772_s20 }
  0x11   : > { %v244_v0 = vld [vmem:[%s1007_s23] sm:$0xff] (%p77_p3)  ;;  %v246_v1 = vld [vmem:[%s1007_s23 + $0x10] sm:$0xff] (%p77_p3) }
  0x12   : > { %v248_v2 = vld [vmem:[%s1007_s23 + $0x20] sm:$0xff] (%p77_p3)  ;;  %245 = vst [vmem:[%s1012_s24] sm:$0xff] (%p77_p3), %v244_v0  ;;  %247 = vst [vmem:[%s1012_s24 + $0x8] sm:$0xff] (%p77_p3), %v246_v1  ;;  %v250_v3 = vld [vmem:[%s1007_s23 + $0x30] sm:$0xff] (%p77_p3) }
  0x13   : > { %249 = vst [vmem:[%s1012_s24 + $0x10] sm:$0xff] (%p77_p3), %v248_v2  ;;  %v252_v4 = vld [vmem:[%s1007_s23 + $0x40] sm:$0xff] (%p77_p3)  ;;  %v254_v5 = vld [vmem:[%s1007_s23 + $0x50] sm:$0xff] (%p77_p3)  ;;  %251 = vst [vmem:[%s1012_s24 + $0x18] sm:$0xff] (%p77_p3), %v250_v3 }
  0x14   : > { %253 = vst [vmem:[%s1012_s24 + $0x20] sm:$0xff] (%p77_p3), %v252_v4  ;;  %255 = vst [vmem:[%s1012_s24 + $0x28] sm:$0xff] (%p77_p3), %v254_v5  ;;  %v256_v6 = vld [vmem:[%s1007_s23 + $0x60] sm:$0xff] (%p77_p3)  ;;  %v258_v7 = vld [vmem:[%s1007_s23 + $0x70] sm:$0xff] (%p77_p3) }
  0x15   : > { %v260_v8 = vld [vmem:[%s1007_s23 + $0x80] sm:$0xff]  ;;  %257 = vst [vmem:[%s1012_s24 + $0x30] sm:$0xff] %v256_v6  ;;  %259 = vst [vmem:[%s1012_s24 + $0x38] sm:$0xff] %v258_v7  ;;  %v262_v9 = vld [vmem:[%s1007_s23 + $0x90] sm:$0xff] }
  0x16   : > { %261 = vst [vmem:[%s1012_s24 + $0x40] sm:$0xff] %v260_v8  ;;  %v264_v10 = vld [vmem:[%s1007_s23 + $0xa0] sm:$0xff]  ;;  %v266_v11 = vld [vmem:[%s1007_s23 + $0xb0] sm:$0xff]  ;;  %263 = vst [vmem:[%s1012_s24 + $0x48] sm:$0xff] %v262_v9 }
  0x17   : > { %265 = vst [vmem:[%s1012_s24 + $0x50] sm:$0xff] %v264_v10  ;;  %267 = vst [vmem:[%s1012_s24 + $0x58] sm:$0xff] %v266_v11  ;;  %v268_v12 = vld [vmem:[%s1007_s23 + $0xc0] sm:$0xff]  ;;  %v270_v13 = vld [vmem:[%s1007_s23 + $0xd0] sm:$0xff] }
  0x18   : > { %v272_v14 = vld [vmem:[%s1007_s23 + $0xe0] sm:$0xff]  ;;  %269 = vst [vmem:[%s1012_s24 + $0x60] sm:$0xff] %v268_v12  ;;  %271 = vst [vmem:[%s1012_s24 + $0x68] sm:$0xff] %v270_v13  ;;  %v274_v15 = vld [vmem:[%s1007_s23 + $0xf0] sm:$0xff] }
  0x19   : > { %273 = vst [vmem:[%s1012_s24 + $0x70] sm:$0xff] %v272_v14  ;;  %v276_v16 = vld [vmem:[%s1007_s23 + $0x100] sm:$0xff]  ;;  %v278_v17 = vld [vmem:[%s1007_s23 + $0x110] sm:$0xff]  ;;  %275 = vst [vmem:[%s1012_s24 + $0x78] sm:$0xff] %v274_v15 }
  0x1a   : > { %277 = vst [vmem:[%s1012_s24 + $0x80] sm:$0xff] %v276_v16  ;;  %279 = vst [vmem:[%s1012_s24 + $0x88] sm:$0xff] %v278_v17  ;;  %v280_v18 = vld [vmem:[%s1007_s23 + $0x120] sm:$0xff]  ;;  %v282_v19 = vld [vmem:[%s1007_s23 + $0x130] sm:$0xff] }
  0x1b   : > { %v284_v20 = vld [vmem:[%s1007_s23 + $0x140] sm:$0xff]  ;;  %281 = vst [vmem:[%s1012_s24 + $0x90] sm:$0xff] %v280_v18  ;;  %283 = vst [vmem:[%s1012_s24 + $0x98] sm:$0xff] %v282_v19  ;;  %v286_v21 = vld [vmem:[%s1007_s23 + $0x150] sm:$0xff] }
  0x1c   : > { %285 = vst [vmem:[%s1012_s24 + $0xa0] sm:$0xff] %v284_v20  ;;  %v288_v22 = vld [vmem:[%s1007_s23 + $0x160] sm:$0xff]  ;;  %v290_v23 = vld [vmem:[%s1007_s23 + $0x170] sm:$0xff]  ;;  %287 = vst [vmem:[%s1012_s24 + $0xa8] sm:$0xff] %v286_v21 }
  0x1d   : > { %289 = vst [vmem:[%s1012_s24 + $0xb0] sm:$0xff] %v288_v22  ;;  %291 = vst [vmem:[%s1012_s24 + $0xb8] sm:$0xff] %v290_v23  ;;  %v292_v24 = vld [vmem:[%s1007_s23 + $0x180] sm:$0xff]  ;;  %v294_v25 = vld [vmem:[%s1007_s23 + $0x190] sm:$0xff] }
  0x1e   : > { %v296_v26 = vld [vmem:[%s1007_s23 + $0x1a0] sm:$0xff]  ;;  %293 = vst [vmem:[%s1012_s24 + $0xc0] sm:$0xff] %v292_v24  ;;  %295 = vst [vmem:[%s1012_s24 + $0xc8] sm:$0xff] %v294_v25  ;;  %v298_v27 = vld [vmem:[%s1007_s23 + $0x1b0] sm:$0xff] }
  0x1f   : > { %297 = vst [vmem:[%s1012_s24 + $0xd0] sm:$0xff] %v296_v26  ;;  %v300_v28 = vld [vmem:[%s1007_s23 + $0x1c0] sm:$0xff]  ;;  %v302_v29 = vld [vmem:[%s1007_s23 + $0x1d0] sm:$0xff]  ;;  %299 = vst [vmem:[%s1012_s24 + $0xd8] sm:$0xff] %v298_v27 }
  0x20   : > { %301 = vst [vmem:[%s1012_s24 + $0xe0] sm:$0xff] %v300_v28  ;;  %303 = vst [vmem:[%s1012_s24 + $0xe8] sm:$0xff] %v302_v29  ;;  %v304_v30 = vld [vmem:[%s1007_s23 + $0x1e0] sm:$0xff]  ;;  %v306_v31 = vld [vmem:[%s1007_s23 + $0x1f0] sm:$0xff] }
  0x21   : > { %305 = vst [vmem:[%s1012_s24 + $0xf0] sm:$0xff] %v304_v30  ;;  %307 = vst [vmem:[%s1012_s24 + $0xf8] sm:$0xff] %v306_v31 }
  0x22 PF: > { %p775_p6 = scmp.ge.s32.totalorder %s944_s13, 1  ;;  %p312_p7 = scmp.lt.s32.totalorder %s944_s13, 3 }
  0x24   : > { %p313_p8 = pnand %p775_p6, %p312_p7 }
  0x25   : > { %s319_s25 = sand.u32 (!%p313_p8), 1, %s928_s9   ;;  %v1081_v32 = vld.sshfl [vmem:[%s1143_s0] sm:$0x11 pattern:$0x75316420] (!%p313_p8)  ;;  %v424_v33 = vlaneseq (!%p313_p8)  ;;  %v947_v10 = vmov (!%p313_p8), 0.0  }
  0x26   : > { %316 = sbr.rel (%p313_p8) target bundleno = 333 (0x14d), region = 62  ;;  %s776_s28 = sshll.u32 (!%p313_p8), %s319_s25, 8  ;;  %v946_v34 = vmov (!%p313_p8), 1966171168   ;;  %v420_v39 = vcombine.high (!%p313_p8), %v1081_v32, %v1081_v32  ;;  %377 = vst [vmem:[#allocation2] sm:$0xf] (!%p313_p8), %v947_v10 }
  0x27   : > { %v422_v35 = vunpack.c.l.s4 (!%p313_p8), %v946_v34  ;;  %v1083_v36 = vshrl.u32 (!%p313_p8), %v424_v33, 7  ;;  %s1085_s29 = scalar_lea.vmem (!%p313_p8), [#allocation3], %s776_s28  ;;  %v948_v11 = vmov (!%p313_p8), 1983009808   ;;  %s777_s30 = sshll.u32 (!%p313_p8), %s936_s11, 1 }
  0x28   : > { %v858_v37 = vld [vmem:[%s1085_s29 + $0x4] ss:$8 sps:$4 sm:$0xff] (!%p313_p8)   ;;  %v860_v38 = vld [vmem:[%s1085_s29] ss:$8 sps:$4 sm:$0xff] (!%p313_p8)   ;;  %v861_v41 = vld [vmem:[%s1085_s29 + $0x14] ss:$8 sps:$4 sm:$0xff] (!%p313_p8)   ;;  %v642_v12 = vunpack.c.l.s4 (!%p313_p8), %v948_v11 }
  0x29   : > { %v423_v40 = vunpack.c.0.s8 (!%p313_p8), %v422_v35  ;;  %597 = vmatprep.subr.bf16.mxu0 (!%p313_p8), %v858_v37  ;;  %v863_v42 = vld [vmem:[%s1085_s29 + $0x10] ss:$8 sps:$4 sm:$0xff] (!%p313_p8)   ;;  %v864_v44 = vld [vmem:[%s1085_s29 + $0x24] ss:$8 sps:$4 sm:$0xff] (!%p313_p8)   ;;  %v866_v46 = vld [vmem:[%s1085_s29 + $0x20] ss:$8 sps:$4 sm:$0xff] (!%p313_p8)  }
  0x2a   : > { %598 = vmatpush1.bf16.msra.mxu0 (!%p313_p8), %v860_v38  ;;  %v867_v47 = vld [vmem:[%s1085_s29 + $0x34] ss:$8 sps:$4 sm:$0xff] (!%p313_p8)   ;;  %v869_v48 = vld [vmem:[%s1085_s29 + $0x30] ss:$8 sps:$4 sm:$0xff] (!%p313_p8)   ;;  %v870_v49 = vld [vmem:[%s1085_s29 + $0x44] ss:$8 sps:$4 sm:$0xff] (!%p313_p8)   ;;  %v643_v13 = vunpack.c.0.s8 (!%p313_p8), %v642_v12 }
  0x2b   : > { %v426_v43 = vsub.s32 (!%p313_p8), %v423_v40, %v1083_v36  ;;  %599 = vmatprep.subr.bf16.mxu0 (!%p313_p8), %v861_v41  ;;  %v872_v50 = vld [vmem:[%s1085_s29 + $0x40] ss:$8 sps:$4 sm:$0xff] (!%p313_p8)   ;;  %v873_v51 = vld [vmem:[%s1085_s29 + $0x54] ss:$8 sps:$4 sm:$0xff] (!%p313_p8)   ;;  %v875_v52 = vld [vmem:[%s1085_s29 + $0x50] ss:$8 sps:$4 sm:$0xff] (!%p313_p8)  }
  0x2c   : > { %v876_v53 = vld [vmem:[%s1085_s29 + $0x64] ss:$8 sps:$4 sm:$0xff] (!%p313_p8)   ;;  %v878_v54 = vld [vmem:[%s1085_s29 + $0x60] ss:$8 sps:$4 sm:$0xff] (!%p313_p8)   ;;  %v879_v55 = vld [vmem:[%s1085_s29 + $0x74] ss:$8 sps:$4 sm:$0xff] (!%p313_p8)   ;;  %v646_v15 = vsub.s32 (!%p313_p8), %v643_v13, %v1083_v36 }
  0x2d   : > { %v434_v45 = vrot.slane %v420_v39, %v426_v43  ;;  %v881_v56 = vld [vmem:[%s1085_s29 + $0x70] ss:$8 sps:$4 sm:$0xff]   ;;  %v882_v57 = vld [vmem:[%s1085_s29 + $0x84] ss:$8 sps:$4 sm:$0xff]   ;;  %v884_v58 = vld [vmem:[%s1085_s29 + $0x80] ss:$8 sps:$4 sm:$0xff]   ;;  %v427_v9 = vrot.slane %v1081_v32, %v426_v43 }
  0x2e   : > { %600 = vmatpush1.bf16.msra.mxu0 %v863_v42  ;;  %v885_v59 = vld [vmem:[%s1085_s29 + $0x94] ss:$8 sps:$4 sm:$0xff]   ;;  %v887_v60 = vld [vmem:[%s1085_s29 + $0x90] ss:$8 sps:$4 sm:$0xff]   ;;  %v888_v61 = vld [vmem:[%s1085_s29 + $0xa4] ss:$8 sps:$4 sm:$0xff]  }
  0x2f   : > { %629 = vmatprep.mubr.bf16.mxu0 %v434_v45  ;;  %601 = vmatprep.subr.bf16.mxu0 %v864_v44  ;;  %v890_v62 = vld [vmem:[%s1085_s29 + $0xa0] ss:$8 sps:$4 sm:$0xff]   ;;  %v891_v63 = vld [vmem:[%s1085_s29 + $0xb4] ss:$8 sps:$4 sm:$0xff]   ;;  %v893_v0 = vld [vmem:[%s1085_s29 + $0xb0] ss:$8 sps:$4 sm:$0xff]  }
  0x30   : > { %v894_v1 = vld [vmem:[%s1085_s29 + $0xc4] ss:$8 sps:$4 sm:$0xff]   ;;  %v896_v2 = vld [vmem:[%s1085_s29 + $0xc0] ss:$8 sps:$4 sm:$0xff]   ;;  %v897_v3 = vld [vmem:[%s1085_s29 + $0xd4] ss:$8 sps:$4 sm:$0xff]  }
  0x31   : > { %v899_v4 = vld [vmem:[%s1085_s29 + $0xd0] ss:$8 sps:$4 sm:$0xff]   ;;  %v900_v5 = vld [vmem:[%s1085_s29 + $0xe4] ss:$8 sps:$4 sm:$0xff]   ;;  %v902_v6 = vld [vmem:[%s1085_s29 + $0xe0] ss:$8 sps:$4 sm:$0xff]  }
  0x32   : > { %602 = vmatpush1.bf16.msra.mxu0 %v866_v46  ;;  %v903_v7 = vld [vmem:[%s1085_s29 + $0xf4] ss:$8 sps:$4 sm:$0xff]   ;;  %v905_v8 = vld [vmem:[%s1085_s29 + $0xf0] ss:$8 sps:$4 sm:$0xff]   ;;  %p366_p9 = scmp.lt.s32.totalorder %s777_s30, 3 }
  0x33   : > { %603 = vmatprep.subr.bf16.mxu0 %v867_v47  ;;  %v378_v19 = vld [vmem:[#allocation2] sm:$0xf] }
  0x34   : > { %s1153_s30 = smov (!%p366_p9, %s777_s30), 3 }
  0x35   : > { %s778_s3 = sshll.u32 %s1153_s30, 1 }
  0x36   : > { %604 = vmatpush1.bf16.msra.mxu0 %v869_v48  ;;  %s371_s6 = scalar_lea.vmem %s1145_s2, %s778_s3 }
  0x37   : > { %605 = vmatprep.subr.bf16.mxu0 %v870_v49 }
  0x3a   : > { %606 = vmatpush1.bf16.msra.mxu0 %v872_v50 }
  0x3b   : > { %607 = vmatprep.subr.bf16.mxu0 %v873_v51 }
  0x3e   : > { %608 = vmatpush1.bf16.msra.mxu0 %v875_v52 }
  0x3f   : > { %609 = vmatprep.subr.bf16.mxu0 %v876_v53 }
  0x42   : > { %610 = vmatpush1.bf16.msra.mxu0 %v878_v54 }
  0x43   : > { %611 = vmatprep.subr.bf16.mxu0 %v879_v55 }
  0x46   : > { %612 = vmatpush1.bf16.msra.mxu0 %v881_v56 }
  0x47   : > { %613 = vmatprep.subr.bf16.mxu0 %v882_v57 }
  0x4a   : > { %614 = vmatpush1.bf16.msra.mxu0 %v884_v58 }
  0x4b   : > { %615 = vmatprep.subr.bf16.mxu0 %v885_v59 }
  0x4e   : > { %616 = vmatpush1.bf16.msra.mxu0 %v887_v60 }
  0x4f   : > { %617 = vmatprep.subr.bf16.mxu0 %v888_v61 }
  0x52   : > { %618 = vmatpush1.bf16.msra.mxu0 %v890_v62 }
  0x53   : > { %619 = vmatprep.subr.bf16.mxu0 %v891_v63 }
  0x56   : > { %620 = vmatpush1.bf16.msra.mxu0 %v893_v0 }
  0x57   : > { %621 = vmatprep.subr.bf16.mxu0 %v894_v1 }
  0x5a   : > { %622 = vmatpush1.bf16.msra.mxu0 %v896_v2 }
  0x5b   : > { %623 = vmatprep.subr.bf16.mxu0 %v897_v3 }
  0x5e   : > { %624 = vmatpush1.bf16.msra.mxu0 %v899_v4 }
  0x5f   : > { %625 = vmatprep.subr.bf16.mxu0 %v900_v5 }
  0x62   : > { %626 = vmatpush1.bf16.msra.mxu0 %v902_v6 }
  0x63   : > { %627 = vmatprep.subr.bf16.mxu0 %v903_v7 }
  0x66   : > { %628 = vmatpush1.bf16.msra.mxu0 %v905_v8 }
  0x69   : > { %630 = vmatmul.mubr.bf16.vlgmr.msra.gmra.mrb[0].mxu0 %v427_v9 }
 0x13c   : > { %v631_v14 = vpop.f32.mrb[0].mxu0 }
 0x13d   : > { %v633_v16 = vpop.f32.mrb[1].mxu0 }
 0x13e   : > { %v640_v17 = vcombine.low %v631_v14, %v633_v16  ;;  %v635_v18 = vpop.f32.mrb[2].mxu0 }
 0x13f   : > { %v636_v20 = vpop.f32.mrb[3].mxu0 }
 0x140   : > { %v647_v21 = vrot.slane %v640_v17, %v646_v15 }
 0x142   : > { %v649_v22 = vadd.f32 %v647_v21, %v378_v19 }
 0x144   : > { %650 = vst [vmem:[#allocation2] sm:$0xf] %v649_v22 }
 0x14b   : > { %v654_v23 = vld [vmem:[#allocation2] sm:$0xf] }
 0x14c   : > { %655 = vst [vmem:[%s371_s6] sm:$0xf] %v654_v23 }
 0x14d PF: > { %s12_s13 = sadd.s32 1, %s944_s13   ;;  %s1146_s9 = smov %s932_s10 }
 0x14e   : > { %p9_p10 = scmp.ge.s32.totalorder %s12_s13, 4   ;;  %s1147_s10 = smov %s999_s17 }
 0x14f   : > { %s1148_s11 = smov %s940_s12  ;;  %s1149_s12 = smov %s1151_s14 }
 0x150   :  { %11 = sbr.rel (!%p9_p10) target bundleno = 3 (0x3), region = 112 }

// kernel: forward.204
= control target key start
LH: loop header
LB: loop body
LE: loop exit
PB: predicated region body
PF: predicated region fallthrough
CT: control target
= control target key end

     0   :  { %v17_v0 = vlaneseq  ;;  %v95_v1 = vmov 1983009808   ;;  %s128_s1 = inlined_call_operand.vmem [shape: f32[1,512], index: 1, kind: input, shape index: {}]   ;;  %s129_s2 = inlined_call_operand.vmem [shape: f32[1,512], index: 2, kind: input, shape index: {}]   ;;  %s130_s0 = inlined_call_operand.vmem [shape: f32[2,512], index: 0, kind: input, shape index: {}]   ;;  %s131_s3 = inlined_call_operand.vmem [shape: f32[2,512], index: 3, kind: output, shape index: {}]  }
   0x1   :  { %v36_v2 = vunpack.c.l.s4 %v95_v1  ;;  %v15_v4 = vld [vmem:[%s128_s1] sm:$0xf] }
   0x2   :  { %v18_v3 = vshrl.u32 %v17_v0, 7  ;;  %v52_v10 = vld [vmem:[%s129_s2] sm:$0xf] }
   0x3   :  { %v37_v5 = vunpack.c.0.s8 %v36_v2  ;;  %v14_v26 = vld [vmem:[%s130_s0] sm:$0xff] }
   0x4   :  { %v19_v6 = vsub.s32 0, %v18_v3  ;;  %v23_v7 = vsub.s32 1, %v18_v3  ;;  %v27_v8 = vsub.s32 2, %v18_v3  ;;  %v31_v9 = vsub.s32 3, %v18_v3 }
   0x5   :  { %v40_v11 = vsub.s32 %v37_v5, %v18_v3 }
   0x6   :  { %v20_v12 = vrot.slane %v15_v4, %v19_v6  ;;  %v24_v13 = vrot.slane %v15_v4, %v23_v7  ;;  %v28_v14 = vrot.slane %v15_v4, %v27_v8  ;;  %v32_v15 = vrot.slane %v15_v4, %v31_v9 }
   0x7   :  { %v57_v16 = vrot.slane %v52_v10, %v19_v6  ;;  %v61_v17 = vrot.slane %v52_v10, %v23_v7  ;;  %v65_v18 = vrot.slane %v52_v10, %v27_v8  ;;  %v69_v19 = vrot.slane %v52_v10, %v31_v9 }
   0x8   :  { %v33_v20 = vcombine.low %v20_v12, %v24_v13  ;;  %v34_v21 = vcombine.low %v28_v14, %v32_v15 }
   0x9   :  { %v70_v22 = vcombine.low %v57_v16, %v61_v17  ;;  %v71_v23 = vcombine.low %v65_v18, %v69_v19 }
   0xa   :  { %v41_v24 = vrot.slane %v33_v20, %v40_v11  ;;  %v48_v25 = vrot.slane %v34_v21, %v40_v11 }
   0xb   :  { %v78_v27 = vrot.slane %v70_v22, %v40_v11  ;;  %v85_v28 = vrot.slane %v71_v23, %v40_v11 }
   0xc   :  { %v49_v29 = vcombine.low %v41_v24, %v48_v25 }
   0xd   :  { %v86_v30 = vcombine.low %v78_v27, %v85_v28 }
   0xe   :  { %v51_v31 = vmul.f32 %v49_v29, %v14_v26 }
  0x10   :  { %v88_v32 = vadd.f32 %v86_v30, %v51_v31 }
  0x12   :  { %89 = vst [vmem:[%s131_s3] sm:$0xff] %v88_v32 }

// kernel: forward.200
= control target key start
LH: loop header
LB: loop body
LE: loop exit
PB: predicated region body
PF: predicated region fallthrough
CT: control target
= control target key end

     0   :  { %v17_v0 = vlaneseq  ;;  %v96_v1 = vmov 1983009808   ;;  %s129_s1 = inlined_call_operand.vmem [shape: f32[1,512], index: 1, kind: input, shape index: {}]   ;;  %s130_s2 = inlined_call_operand.vmem [shape: f32[1,512], index: 2, kind: input, shape index: {}]   ;;  %s131_s0 = inlined_call_operand.vmem [shape: f32[2,512], index: 0, kind: input, shape index: {}]   ;;  %s132_s3 = inlined_call_operand.vmem [shape: f32[2,512], index: 3, kind: output, shape index: {}]  }
   0x1   :  { %v36_v2 = vunpack.c.l.s4 %v96_v1  ;;  %v15_v4 = vld [vmem:[%s129_s1] sm:$0xf] }
   0x2   :  { %v18_v3 = vshrl.u32 %v17_v0, 7  ;;  %v52_v10 = vld [vmem:[%s130_s2] sm:$0xf] }
   0x3   :  { %v37_v5 = vunpack.c.0.s8 %v36_v2  ;;  %v14_v26 = vld [vmem:[%s131_s0] sm:$0xff] }
   0x4   :  { %v19_v6 = vsub.s32 0, %v18_v3  ;;  %v23_v7 = vsub.s32 1, %v18_v3  ;;  %v27_v8 = vsub.s32 2, %v18_v3  ;;  %v31_v9 = vsub.s32 3, %v18_v3 }
   0x5   :  { %v40_v11 = vsub.s32 %v37_v5, %v18_v3 }
   0x6   :  { %v20_v12 = vrot.slane %v15_v4, %v19_v6  ;;  %v24_v13 = vrot.slane %v15_v4, %v23_v7  ;;  %v28_v14 = vrot.slane %v15_v4, %v27_v8  ;;  %v32_v15 = vrot.slane %v15_v4, %v31_v9 }
   0x7   :  { %v57_v16 = vrot.slane %v52_v10, %v19_v6  ;;  %v61_v17 = vrot.slane %v52_v10, %v23_v7  ;;  %v65_v18 = vrot.slane %v52_v10, %v27_v8  ;;  %v69_v19 = vrot.slane %v52_v10, %v31_v9 }
   0x8   :  { %v33_v20 = vcombine.low %v20_v12, %v24_v13  ;;  %v34_v21 = vcombine.low %v28_v14, %v32_v15 }
   0x9   :  { %v70_v22 = vcombine.low %v57_v16, %v61_v17  ;;  %v71_v23 = vcombine.low %v65_v18, %v69_v19 }
   0xa   :  { %v41_v24 = vrot.slane %v33_v20, %v40_v11  ;;  %v48_v25 = vrot.slane %v34_v21, %v40_v11 }
   0xb   :  { %v78_v27 = vrot.slane %v70_v22, %v40_v11  ;;  %v85_v28 = vrot.slane %v71_v23, %v40_v11 }
   0xc   :  { %v49_v29 = vcombine.low %v41_v24, %v48_v25 }
   0xd   :  { %v86_v30 = vcombine.low %v78_v27, %v85_v28 }
   0xe   :  { %v51_v31 = vmul.f32 %v49_v29, %v14_v26 }
  0x10   :  { %v88_v32 = vadd.f32 %v86_v30, %v51_v31 }
  0x12   :  { %v89_v33 = vmax.f32 %v88_v32, 0.0 }
  0x14   :  { %90 = vst [vmem:[%s132_s3] sm:$0xff] %v89_v33 }

// kernel: forward.198
= control target key start
LH: loop header
LB: loop body
LE: loop exit
PB: predicated region body
PF: predicated region fallthrough
CT: control target
= control target key end

     0   :  { %s1001_s9 = smov 0   ;;  %s1003_s10 = smov 0   ;;  %s1208_s0 = inlined_call_operand.vmem [shape: bf16[2,2304], index: 0, kind: input, shape index: {}]   ;;  %s1209_s1 = inlined_call_operand.vmem [shape: bf16[2304,512], index: 1, kind: input, shape index: {}]   ;;  %s1210_s2 = inlined_call_operand.vmem [shape: f32[2,512], index: 2, kind: output, shape index: {}]  }
   0x1   :  { %s1005_s11 = smov 0   ;;  %s1007_s12 = smov 0  }
   0x2   :  { %s1009_s13 = smov 0   ;;  %s1011_s14 = smov 0  }
   0x3   :  { %s1013_s15 = smov 0  }
   0x4 LB: > { %s24_s16 = sadd.s32 1, %s973_s13  ;;  %s27_s17 = sadd.s32 1, %s977_s14  ;;  %s981_s15 = sphi %s1013_s15, %s12_s15   ;;  %s977_s14 = sphi %s1011_s14, %s1216_s14   ;;  %s973_s13 = sphi %s1009_s13, %s1215_s13   ;;  %s969_s12 = sphi %s1007_s12, %s1214_s12   ;;  %s965_s11 = sphi %s1005_s11, %s1213_s11   ;;  %s961_s10 = sphi %s1003_s10, %s1212_s10   ;;  %s957_s9 = sphi %s1001_s9, %s1211_s9  }
   0x5   : > { %p25_p0 = scmp.ge.s32.totalorder %s24_s16, 9  ;;  %p75_p1 = scmp.ne.s32.totalorder %s961_s10, %s957_s9 }
   0x6   : > { %p76_p2 = scmp.eq.s32.totalorder %s981_s15, 0  ;;  %s68_s21 = sadd.s32 1, %s961_s10 }
   0x7   : > { %s1218_s16 = smov (%p25_p0, %s24_s16), 0  ;;  %s1220_s17 = smov (!%p25_p0, %s27_s17), %s977_s14 }
   0x8   : > { %p77_p3 = por %p76_p2, %p75_p1  ;;  %p29_p4 = scmp.ge.s32.totalorder %s1220_s17, 2 }
   0x9   : > { %s63_s18 = ssub.s32 %s973_s13, %s1218_s16  ;;  %p771_p6 = scmp.ge.s32.totalorder %s981_s15, 18 }
   0xa   : > { %s1222_s17 = smov (%p29_p4, %s1220_s17), 0 }
   0xb   : > { %s64_s19 = ssub.s32 %s977_s14, %s1222_s17  ;;  %129 = sbr.rel (%p771_p6) target bundleno = 41 (0x29), region = 16 }
   0xc   : > { %s65_s20 = sor.u32 %s64_s19, %s63_s18 }
   0xd   : > { %p66_p5 = scmp.eq.s32.totalorder %s65_s20, 0 }
   0xf   : > { %s1052_s22 = scalar_select %p66_p5, %s961_s10, %s68_s21  }
  0x12   : > { %144 = sbr.rel (!%p77_p3) target bundleno = 41 (0x29), region = 24  ;;  %s146_s23 = sand.u32 (%p77_p3), 1, %s961_s10  }
  0x13   : > { %s774_s24 = sshll.u32 (%p77_p3), %s977_s14, 1  ;;  %s772_s25 = sshll.u32 (%p77_p3), %s146_s23, 8 }
  0x14   : > { %s819_s26 = sshll.u32 (%p77_p3), %s973_s13, 7  ;;  %s1066_s4 = scalar_lea.vmem (%p77_p3), [#allocation3], %s772_s25 }
  0x15   : > { %s152_s27 = sadd.s32 (%p77_p3), %s819_s26, %s774_s24 }
  0x16   : > { %s776_s28 = sshll.u32 (%p77_p3), %s152_s27, 2 }
  0x17   : > { %s1061_s3 = scalar_lea.vmem (%p77_p3), %s1209_s1, %s776_s28 }
  0x18   : > { %v244_v0 = vld [vmem:[%s1061_s3] sm:$0xff] (%p77_p3)  ;;  %v246_v1 = vld [vmem:[%s1061_s3 + $0x10] sm:$0xff] (%p77_p3) }
  0x19   : > { %v248_v2 = vld [vmem:[%s1061_s3 + $0x20] sm:$0xff]  ;;  %245 = vst [vmem:[%s1066_s4] sm:$0xff] %v244_v0  ;;  %247 = vst [vmem:[%s1066_s4 + $0x8] sm:$0xff] %v246_v1  ;;  %v250_v3 = vld [vmem:[%s1061_s3 + $0x30] sm:$0xff] }
  0x1a   : > { %249 = vst [vmem:[%s1066_s4 + $0x10] sm:$0xff] %v248_v2  ;;  %v252_v4 = vld [vmem:[%s1061_s3 + $0x40] sm:$0xff]  ;;  %v254_v5 = vld [vmem:[%s1061_s3 + $0x50] sm:$0xff]  ;;  %251 = vst [vmem:[%s1066_s4 + $0x18] sm:$0xff] %v250_v3 }
  0x1b   : > { %253 = vst [vmem:[%s1066_s4 + $0x20] sm:$0xff] %v252_v4  ;;  %255 = vst [vmem:[%s1066_s4 + $0x28] sm:$0xff] %v254_v5  ;;  %v256_v6 = vld [vmem:[%s1061_s3 + $0x60] sm:$0xff]  ;;  %v258_v7 = vld [vmem:[%s1061_s3 + $0x70] sm:$0xff] }
  0x1c   : > { %v260_v8 = vld [vmem:[%s1061_s3 + $0x80] sm:$0xff]  ;;  %257 = vst [vmem:[%s1066_s4 + $0x30] sm:$0xff] %v256_v6  ;;  %259 = vst [vmem:[%s1066_s4 + $0x38] sm:$0xff] %v258_v7  ;;  %v262_v9 = vld [vmem:[%s1061_s3 + $0x90] sm:$0xff] }
  0x1d   : > { %261 = vst [vmem:[%s1066_s4 + $0x40] sm:$0xff] %v260_v8  ;;  %v264_v10 = vld [vmem:[%s1061_s3 + $0xa0] sm:$0xff]  ;;  %v266_v11 = vld [vmem:[%s1061_s3 + $0xb0] sm:$0xff]  ;;  %263 = vst [vmem:[%s1066_s4 + $0x48] sm:$0xff] %v262_v9 }
  0x1e   : > { %265 = vst [vmem:[%s1066_s4 + $0x50] sm:$0xff] %v264_v10  ;;  %267 = vst [vmem:[%s1066_s4 + $0x58] sm:$0xff] %v266_v11  ;;  %v268_v12 = vld [vmem:[%s1061_s3 + $0xc0] sm:$0xff]  ;;  %v270_v13 = vld [vmem:[%s1061_s3 + $0xd0] sm:$0xff] }
  0x1f   : > { %v272_v14 = vld [vmem:[%s1061_s3 + $0xe0] sm:$0xff]  ;;  %269 = vst [vmem:[%s1066_s4 + $0x60] sm:$0xff] %v268_v12  ;;  %271 = vst [vmem:[%s1066_s4 + $0x68] sm:$0xff] %v270_v13  ;;  %v274_v15 = vld [vmem:[%s1061_s3 + $0xf0] sm:$0xff] }
  0x20   : > { %273 = vst [vmem:[%s1066_s4 + $0x70] sm:$0xff] %v272_v14  ;;  %v276_v16 = vld [vmem:[%s1061_s3 + $0x100] sm:$0xff]  ;;  %v278_v17 = vld [vmem:[%s1061_s3 + $0x110] sm:$0xff]  ;;  %275 = vst [vmem:[%s1066_s4 + $0x78] sm:$0xff] %v274_v15 }
  0x21   : > { %277 = vst [vmem:[%s1066_s4 + $0x80] sm:$0xff] %v276_v16  ;;  %279 = vst [vmem:[%s1066_s4 + $0x88] sm:$0xff] %v278_v17  ;;  %v280_v18 = vld [vmem:[%s1061_s3 + $0x120] sm:$0xff]  ;;  %v282_v19 = vld [vmem:[%s1061_s3 + $0x130] sm:$0xff] }
  0x22   : > { %v284_v20 = vld [vmem:[%s1061_s3 + $0x140] sm:$0xff]  ;;  %281 = vst [vmem:[%s1066_s4 + $0x90] sm:$0xff] %v280_v18  ;;  %283 = vst [vmem:[%s1066_s4 + $0x98] sm:$0xff] %v282_v19  ;;  %v286_v21 = vld [vmem:[%s1061_s3 + $0x150] sm:$0xff] }
  0x23   : > { %285 = vst [vmem:[%s1066_s4 + $0xa0] sm:$0xff] %v284_v20  ;;  %v288_v22 = vld [vmem:[%s1061_s3 + $0x160] sm:$0xff]  ;;  %v290_v23 = vld [vmem:[%s1061_s3 + $0x170] sm:$0xff]  ;;  %287 = vst [vmem:[%s1066_s4 + $0xa8] sm:$0xff] %v286_v21 }
  0x24   : > { %289 = vst [vmem:[%s1066_s4 + $0xb0] sm:$0xff] %v288_v22  ;;  %291 = vst [vmem:[%s1066_s4 + $0xb8] sm:$0xff] %v290_v23  ;;  %v292_v24 = vld [vmem:[%s1061_s3 + $0x180] sm:$0xff]  ;;  %v294_v25 = vld [vmem:[%s1061_s3 + $0x190] sm:$0xff] }
  0x25   : > { %v296_v26 = vld [vmem:[%s1061_s3 + $0x1a0] sm:$0xff]  ;;  %293 = vst [vmem:[%s1066_s4 + $0xc0] sm:$0xff] %v292_v24  ;;  %295 = vst [vmem:[%s1066_s4 + $0xc8] sm:$0xff] %v294_v25  ;;  %v298_v27 = vld [vmem:[%s1061_s3 + $0x1b0] sm:$0xff] }
  0x26   : > { %297 = vst [vmem:[%s1066_s4 + $0xd0] sm:$0xff] %v296_v26  ;;  %v300_v28 = vld [vmem:[%s1061_s3 + $0x1c0] sm:$0xff]  ;;  %v302_v29 = vld [vmem:[%s1061_s3 + $0x1d0] sm:$0xff]  ;;  %299 = vst [vmem:[%s1066_s4 + $0xd8] sm:$0xff] %v298_v27 }
  0x27   : > { %301 = vst [vmem:[%s1066_s4 + $0xe0] sm:$0xff] %v300_v28  ;;  %303 = vst [vmem:[%s1066_s4 + $0xe8] sm:$0xff] %v302_v29  ;;  %v304_v30 = vld [vmem:[%s1061_s3 + $0x1e0] sm:$0xff]  ;;  %v306_v31 = vld [vmem:[%s1061_s3 + $0x1f0] sm:$0xff] }
  0x28   : > { %305 = vst [vmem:[%s1066_s4 + $0xf0] sm:$0xff] %v304_v30  ;;  %307 = vst [vmem:[%s1066_s4 + $0xf8] sm:$0xff] %v306_v31 }
  0x29 PF: > { %p777_p7 = scmp.ge.s32.totalorder %s981_s15, 1  ;;  %p312_p8 = scmp.lt.s32.totalorder %s981_s15, 19 }
  0x2b   : > { %p313_p9 = pnand %p777_p7, %p312_p8 }
  0x2c   : > { %s319_s5 = sand.u32 (!%p313_p9), 1, %s957_s9   ;;  %s779_s6 = sshll.u32 (!%p313_p9), %s965_s11, 1 }
  0x2d   : > { %316 = sbr.rel (%p313_p9) target bundleno = 354 (0x162), region = 62  ;;  %s778_s7 = sshll.u32 (!%p313_p9), %s319_s5, 8 }
  0x2e   : > { %p355_p10 = scmp.lt.s32.totalorder (!%p313_p9), %s779_s6, 17  ;;  %s780_s8 = sshll.u32 (!%p313_p9), %s969_s12, 1 }
  0x2f   : > { %p366_p11 = scmp.lt.s32.totalorder (!%p313_p9), %s780_s8, 3  ;;  %s1145_s9 = scalar_lea.vmem (!%p313_p9), [#allocation3], %s778_s7 }
  0x30   : > { %p782_p12 = scmp.ne.s32.totalorder (!%p313_p9), %s965_s11, 0 }
  0x34   : > { %s1224_s6 = smov (!%p355_p10, %s779_s6), 17  ;;  %s1226_s8 = smov (!%p366_p11, %s780_s8), 3 }
  0x35   : > { %s359_s20 = scalar_lea.vmem %s1208_s0, %s1224_s6  ;;  %s781_s21 = sshll.u32 %s1226_s8, 1  ;;  %v983_v32 = vmov (!%p782_p12), 0.0  }
  0x36   : > { %s1143_s25 = scalar_lea.vmem %s1210_s2, %s781_s21  ;;  %376 = sbr.rel (%p782_p12) target bundleno = 61 (0x3d), region = 70  ;;  %377 = vst [vmem:[#allocation2] sm:$0xf] (!%p782_p12), %v983_v32 }
  0x3d PF: > { %v879_v33 = vld [vmem:[%s1145_s9 + $0x4] ss:$8 sps:$4 sm:$0xff]   ;;  %v881_v34 = vld [vmem:[%s1145_s9] ss:$8 sps:$4 sm:$0xff]   ;;  %v882_v35 = vld [vmem:[%s1145_s9 + $0x14] ss:$8 sps:$4 sm:$0xff]   ;;  %v424_v44 = vlaneseq }
  0x3e   : > { %597 = vmatprep.subr.bf16.mxu0 %v879_v33  ;;  %v884_v36 = vld [vmem:[%s1145_s9 + $0x10] ss:$8 sps:$4 sm:$0xff]   ;;  %v885_v37 = vld [vmem:[%s1145_s9 + $0x24] ss:$8 sps:$4 sm:$0xff]   ;;  %v887_v38 = vld [vmem:[%s1145_s9 + $0x20] ss:$8 sps:$4 sm:$0xff]  }
  0x3f   : > { %598 = vmatpush1.bf16.msra.mxu0 %v881_v34  ;;  %v888_v39 = vld [vmem:[%s1145_s9 + $0x34] ss:$8 sps:$4 sm:$0xff]   ;;  %v890_v40 = vld [vmem:[%s1145_s9 + $0x30] ss:$8 sps:$4 sm:$0xff]   ;;  %v891_v41 = vld [vmem:[%s1145_s9 + $0x44] ss:$8 sps:$4 sm:$0xff]  }
  0x40   : > { %599 = vmatprep.subr.bf16.mxu0 %v882_v35  ;;  %v984_v42 = vmov 1966171168   ;;  %v893_v45 = vld [vmem:[%s1145_s9 + $0x40] ss:$8 sps:$4 sm:$0xff]   ;;  %v894_v46 = vld [vmem:[%s1145_s9 + $0x54] ss:$8 sps:$4 sm:$0xff]  }
  0x41   : > { %v422_v43 = vunpack.c.l.s4 %v984_v42  ;;  %v425_v48 = vshrl.u32 %v424_v44, 7  ;;  %v896_v49 = vld [vmem:[%s1145_s9 + $0x50] ss:$8 sps:$4 sm:$0xff]   ;;  %v897_v50 = vld [vmem:[%s1145_s9 + $0x64] ss:$8 sps:$4 sm:$0xff]   ;;  %p816_p13 = scmp.ne.s32.totalorder %s965_s11, 8 }
  0x42   : > { %v783_v52 = vld.sshfl [vmem:[%s359_s20] sm:$0x11 pattern:$0x75316420]  ;;  %v899_v54 = vld [vmem:[%s1145_s9 + $0x60] ss:$8 sps:$4 sm:$0xff]  }
  0x43   : > { %600 = vmatpush1.bf16.msra.mxu0 %v884_v36  ;;  %v423_v47 = vunpack.c.0.s8 %v422_v43  ;;  %v420_v53 = vcombine.high %v783_v52, %v783_v52  ;;  %v900_v55 = vld [vmem:[%s1145_s9 + $0x74] ss:$8 sps:$4 sm:$0xff]   ;;  %v902_v57 = vld [vmem:[%s1145_s9 + $0x70] ss:$8 sps:$4 sm:$0xff]   ;;  %v903_v58 = vld [vmem:[%s1145_s9 + $0x84] ss:$8 sps:$4 sm:$0xff]  }
  0x44   : > { %601 = vmatprep.subr.bf16.mxu0 %v885_v37  ;;  %v905_v59 = vld [vmem:[%s1145_s9 + $0x80] ss:$8 sps:$4 sm:$0xff]   ;;  %v906_v60 = vld [vmem:[%s1145_s9 + $0x94] ss:$8 sps:$4 sm:$0xff]   ;;  %v908_v61 = vld [vmem:[%s1145_s9 + $0x90] ss:$8 sps:$4 sm:$0xff]  }
  0x45   : > { %v426_v51 = vsub.s32 %v423_v47, %v425_v48  ;;  %v909_v62 = vld [vmem:[%s1145_s9 + $0xa4] ss:$8 sps:$4 sm:$0xff]   ;;  %v911_v63 = vld [vmem:[%s1145_s9 + $0xa0] ss:$8 sps:$4 sm:$0xff]   ;;  %v912_v0 = vld [vmem:[%s1145_s9 + $0xb4] ss:$8 sps:$4 sm:$0xff]  }
  0x46   : > { %v914_v1 = vld [vmem:[%s1145_s9 + $0xb0] ss:$8 sps:$4 sm:$0xff]   ;;  %v915_v2 = vld [vmem:[%s1145_s9 + $0xc4] ss:$8 sps:$4 sm:$0xff]   ;;  %v917_v3 = vld [vmem:[%s1145_s9 + $0xc0] ss:$8 sps:$4 sm:$0xff]  }
  0x47   : > { %602 = vmatpush1.bf16.msra.mxu0 %v887_v38  ;;  %v434_v56 = vrot.slane %v420_v53, %v426_v51  ;;  %v918_v4 = vld [vmem:[%s1145_s9 + $0xd4] ss:$8 sps:$4 sm:$0xff]   ;;  %v920_v5 = vld [vmem:[%s1145_s9 + $0xd0] ss:$8 sps:$4 sm:$0xff]   ;;  %v921_v6 = vld [vmem:[%s1145_s9 + $0xe4] ss:$8 sps:$4 sm:$0xff]   ;;  %v427_v10 = vrot.slane %v783_v52, %v426_v51 }
  0x48   : > { %603 = vmatprep.subr.bf16.mxu0 %v888_v39  ;;  %v923_v7 = vld [vmem:[%s1145_s9 + $0xe0] ss:$8 sps:$4 sm:$0xff]   ;;  %v924_v8 = vld [vmem:[%s1145_s9 + $0xf4] ss:$8 sps:$4 sm:$0xff]   ;;  %v926_v9 = vld [vmem:[%s1145_s9 + $0xf0] ss:$8 sps:$4 sm:$0xff]  }
  0x49   : > { %629 = vmatprep.mubr.bf16.mxu0 %v434_v56  ;;  %v985_v11 = vmov 1983009808   ;;  %v378_v19 = vld [vmem:[#allocation2] sm:$0xf] }
  0x4a   : > { %v642_v12 = vunpack.c.l.s4 %v985_v11 }
  0x4b   : > { %604 = vmatpush1.bf16.msra.mxu0 %v890_v40 }
  0x4c   : > { %605 = vmatprep.subr.bf16.mxu0 %v891_v41  ;;  %v643_v13 = vunpack.c.0.s8 %v642_v12 }
  0x4e   : > { %v646_v15 = vsub.s32 %v643_v13, %v425_v48 }
  0x4f   : > { %606 = vmatpush1.bf16.msra.mxu0 %v893_v45 }
  0x50   : > { %607 = vmatprep.subr.bf16.mxu0 %v894_v46 }
  0x53   : > { %608 = vmatpush1.bf16.msra.mxu0 %v896_v49 }
  0x54   : > { %609 = vmatprep.subr.bf16.mxu0 %v897_v50 }
  0x57   : > { %610 = vmatpush1.bf16.msra.mxu0 %v899_v54 }
  0x58   : > { %611 = vmatprep.subr.bf16.mxu0 %v900_v55 }
  0x5b   : > { %612 = vmatpush1.bf16.msra.mxu0 %v902_v57 }
  0x5c   : > { %613 = vmatprep.subr.bf16.mxu0 %v903_v58 }
  0x5f   : > { %614 = vmatpush1.bf16.msra.mxu0 %v905_v59 }
  0x60   : > { %615 = vmatprep.subr.bf16.mxu0 %v906_v60 }
  0x63   : > { %616 = vmatpush1.bf16.msra.mxu0 %v908_v61 }
  0x64   : > { %617 = vmatprep.subr.bf16.mxu0 %v909_v62 }
  0x67   : > { %618 = vmatpush1.bf16.msra.mxu0 %v911_v63 }
  0x68   : > { %619 = vmatprep.subr.bf16.mxu0 %v912_v0 }
  0x6b   : > { %620 = vmatpush1.bf16.msra.mxu0 %v914_v1 }
  0x6c   : > { %621 = vmatprep.subr.bf16.mxu0 %v915_v2 }
  0x6f   : > { %622 = vmatpush1.bf16.msra.mxu0 %v917_v3 }
  0x70   : > { %623 = vmatprep.subr.bf16.mxu0 %v918_v4 }
  0x73   : > { %624 = vmatpush1.bf16.msra.mxu0 %v920_v5 }
  0x74   : > { %625 = vmatprep.subr.bf16.mxu0 %v921_v6 }
  0x77   : > { %626 = vmatpush1.bf16.msra.mxu0 %v923_v7 }
  0x78   : > { %627 = vmatprep.subr.bf16.mxu0 %v924_v8 }
  0x7b   : > { %628 = vmatpush1.bf16.msra.mxu0 %v926_v9 }
  0x7e   : > { %630 = vmatmul.mubr.bf16.vlgmr.msra.gmra.mrb[0].mxu0 %v427_v10 }
 0x151   : > { %v631_v14 = vpop.f32.mrb[0].mxu0 }
 0x152   : > { %v633_v16 = vpop.f32.mrb[1].mxu0 }
 0x153   : > { %v640_v17 = vcombine.low %v631_v14, %v633_v16  ;;  %v635_v18 = vpop.f32.mrb[2].mxu0  ;;  %654 = sbr.rel (%p816_p13) target bundleno = 354 (0x162), region = 74 }
 0x154   : > { %v636_v20 = vpop.f32.mrb[3].mxu0 }
 0x155   : > { %v647_v21 = vrot.slane %v640_v17, %v646_v15 }
 0x157   : > { %v649_v22 = vadd.f32 %v647_v21, %v378_v19 }
 0x159   : > { %650 = vst [vmem:[#allocation2] sm:$0xf] %v649_v22 }
 0x160   : > { %v655_v23 = vld [vmem:[#allocation2] sm:$0xf] }
 0x161   : > { %656 = vst [vmem:[%s1143_s25] sm:$0xf] %v655_v23 }
 0x162 PF: > { %s12_s15 = sadd.s32 1, %s981_s15   ;;  %s1211_s9 = smov %s961_s10 }
 0x163   : > { %p9_p0 = scmp.ge.s32.totalorder %s12_s15, 20   ;;  %s1212_s10 = smov %s1052_s22 }
 0x164   : > { %s1213_s11 = smov %s973_s13  ;;  %s1214_s12 = smov %s977_s14 }
 0x165   : > { %s1215_s13 = smov %s1218_s16  ;;  %s1216_s14 = smov %s1222_s17 }
 0x166   :  { %11 = sbr.rel (!%p9_p0) target bundleno = 4 (0x4), region = 112 }

// kernel: forward.206
= control target key start
LH: loop header
LB: loop body
LE: loop exit
PB: predicated region body
PF: predicated region fallthrough
CT: control target
= control target key end

     0   :  { %v20_v0 = vlaneseq  ;;  %v101_v1 = vmov 1983009808   ;;  %s142_s1 = inlined_call_operand.vmem [shape: f32[1,512], index: 1, kind: input, shape index: {}]   ;;  %s143_s2 = inlined_call_operand.vmem [shape: f32[1,512], index: 2, kind: input, shape index: {}]   ;;  %s144_s0 = inlined_call_operand.vmem [shape: f32[2,512], index: 0, kind: input, shape index: {}]   ;;  %s145_s3 = inlined_call_operand.vmem [shape: f32[2,512], index: 3, kind: input, shape index: {}]   ;;  %s146_s4 = inlined_call_operand.vmem [shape: f32[2,512], index: 4, kind: output, shape index: {}]  }
   0x1   :  { %v39_v2 = vunpack.c.l.s4 %v101_v1  ;;  %v18_v4 = vld [vmem:[%s142_s1] sm:$0xf] }
   0x2   :  { %v21_v3 = vshrl.u32 %v20_v0, 7  ;;  %v55_v10 = vld [vmem:[%s143_s2] sm:$0xf] }
   0x3   :  { %v40_v5 = vunpack.c.0.s8 %v39_v2  ;;  %v17_v26 = vld [vmem:[%s144_s0] sm:$0xff] }
   0x4   :  { %v22_v6 = vsub.s32 0, %v21_v3  ;;  %v26_v7 = vsub.s32 1, %v21_v3  ;;  %v30_v8 = vsub.s32 2, %v21_v3  ;;  %v34_v9 = vsub.s32 3, %v21_v3  ;;  %v92_v32 = vld [vmem:[%s145_s3] sm:$0xff] }
   0x5   :  { %v43_v11 = vsub.s32 %v40_v5, %v21_v3 }
   0x6   :  { %v23_v12 = vrot.slane %v18_v4, %v22_v6  ;;  %v27_v13 = vrot.slane %v18_v4, %v26_v7  ;;  %v31_v14 = vrot.slane %v18_v4, %v30_v8  ;;  %v35_v15 = vrot.slane %v18_v4, %v34_v9 }
   0x7   :  { %v60_v16 = vrot.slane %v55_v10, %v22_v6  ;;  %v64_v17 = vrot.slane %v55_v10, %v26_v7  ;;  %v68_v18 = vrot.slane %v55_v10, %v30_v8  ;;  %v72_v19 = vrot.slane %v55_v10, %v34_v9 }
   0x8   :  { %v36_v20 = vcombine.low %v23_v12, %v27_v13  ;;  %v37_v21 = vcombine.low %v31_v14, %v35_v15 }
   0x9   :  { %v73_v22 = vcombine.low %v60_v16, %v64_v17  ;;  %v74_v23 = vcombine.low %v68_v18, %v72_v19 }
   0xa   :  { %v44_v24 = vrot.slane %v36_v20, %v43_v11  ;;  %v51_v25 = vrot.slane %v37_v21, %v43_v11 }
   0xb   :  { %v81_v27 = vrot.slane %v73_v22, %v43_v11  ;;  %v88_v28 = vrot.slane %v74_v23, %v43_v11 }
   0xc   :  { %v52_v29 = vcombine.low %v44_v24, %v51_v25 }
   0xd   :  { %v89_v30 = vcombine.low %v81_v27, %v88_v28 }
   0xe   :  { %v54_v31 = vmul.f32 %v52_v29, %v17_v26 }
  0x10   :  { %v91_v33 = vadd.f32 %v89_v30, %v54_v31 }
  0x12   :  { %v93_v34 = vadd.f32 %v92_v32, %v91_v33 }
  0x14   :  { %v94_v35 = vmax.f32 %v93_v34, 0.0 }
  0x16   :  { %95 = vst [vmem:[%s146_s4] sm:$0xff] %v94_v35 }

// kernel: forward.201
= control target key start
LH: loop header
LB: loop body
LE: loop exit
PB: predicated region body
PF: predicated region fallthrough
CT: control target
= control target key end

     0   :  { %s1448_s9 = smov 0   ;;  %s1450_s10 = smov 0   ;;  %s1755_s0 = inlined_call_operand.vmem [shape: bf16[2,4608], index: 0, kind: input, shape index: {}]   ;;  %s1756_s1 = inlined_call_operand.vmem [shape: bf16[4608,512], index: 1, kind: input, shape index: {}]   ;;  %s1757_s2 = inlined_call_operand.vmem [shape: f32[2,512], index: 2, kind: output, shape index: {}]  }
   0x1   :  { %s1452_s11 = smov 0   ;;  %s1454_s12 = smov 0  }
   0x2   :  { %s1456_s13 = smov 0   ;;  %s1458_s14 = smov 0  }
   0x3   :  { %s1460_s15 = smov 0  }
   0x4 LB: > { %s24_s16 = sadd.s32 1, %s1420_s13  ;;  %s27_s17 = sadd.s32 1, %s1424_s14  ;;  %s1428_s15 = sphi %s1460_s15, %s12_s15   ;;  %s1424_s14 = sphi %s1458_s14, %s1763_s14   ;;  %s1420_s13 = sphi %s1456_s13, %s1762_s13   ;;  %s1416_s12 = sphi %s1454_s12, %s1761_s12   ;;  %s1412_s11 = sphi %s1452_s11, %s1760_s11   ;;  %s1408_s10 = sphi %s1450_s10, %s1759_s10   ;;  %s1404_s9 = sphi %s1448_s9, %s1758_s9  }
   0x5   : > { %p25_p0 = scmp.ge.s32.totalorder %s24_s16, 9  ;;  %p75_p1 = scmp.ne.s32.totalorder %s1408_s10, %s1404_s9 }
   0x6   : > { %p76_p2 = scmp.eq.s32.totalorder %s1428_s15, 0  ;;  %s68_s21 = sadd.s32 1, %s1408_s10 }
   0x7   : > { %s1765_s16 = smov (%p25_p0, %s24_s16), 0  ;;  %s1767_s17 = smov (!%p25_p0, %s27_s17), %s1424_s14 }
   0x8   : > { %p77_p3 = por %p76_p2, %p75_p1  ;;  %p29_p4 = scmp.ge.s32.totalorder %s1767_s17, 2 }
   0x9   : > { %s63_s18 = ssub.s32 %s1420_s13, %s1765_s16  ;;  %p1136_p6 = scmp.ge.s32.totalorder %s1428_s15, 18 }
   0xa   : > { %s1769_s17 = smov (%p29_p4, %s1767_s17), 0 }
   0xb   : > { %s64_s19 = ssub.s32 %s1424_s14, %s1769_s17  ;;  %129 = sbr.rel (%p1136_p6) target bundleno = 57 (0x39), region = 16 }
   0xc   : > { %s65_s20 = sor.u32 %s64_s19, %s63_s18 }
   0xd   : > { %p66_p5 = scmp.eq.s32.totalorder %s65_s20, 0 }
   0xf   : > { %s1499_s22 = scalar_select %p66_p5, %s1408_s10, %s68_s21  }
  0x12   : > { %144 = sbr.rel (!%p77_p3) target bundleno = 57 (0x39), region = 24  ;;  %s146_s23 = sand.u32 (%p77_p3), 1, %s1408_s10  }
  0x13   : > { %s1139_s24 = sshll.u32 (%p77_p3), %s1424_s14, 1  ;;  %s1137_s25 = sshll.u32 (%p77_p3), %s146_s23, 9 }
  0x14   : > { %s1216_s26 = sshll.u32 (%p77_p3), %s1420_s13, 8  ;;  %s1513_s4 = scalar_lea.vmem (%p77_p3), [#allocation3], %s1137_s25 }
  0x15   : > { %s152_s27 = sadd.s32 (%p77_p3), %s1216_s26, %s1139_s24 }
  0x16   : > { %s1141_s28 = sshll.u32 (%p77_p3), %s152_s27, 2 }
  0x17   : > { %s1508_s3 = scalar_lea.vmem (%p77_p3), %s1756_s1, %s1141_s28 }
  0x18   : > { %v308_v0 = vld [vmem:[%s1508_s3] sm:$0xff] (%p77_p3)  ;;  %v310_v1 = vld [vmem:[%s1508_s3 + $0x10] sm:$0xff] (%p77_p3) }
  0x19   : > { %v312_v2 = vld [vmem:[%s1508_s3 + $0x20] sm:$0xff]  ;;  %309 = vst [vmem:[%s1513_s4] sm:$0xff] %v308_v0  ;;  %311 = vst [vmem:[%s1513_s4 + $0x8] sm:$0xff] %v310_v1  ;;  %v314_v3 = vld [vmem:[%s1508_s3 + $0x30] sm:$0xff] }
  0x1a   : > { %313 = vst [vmem:[%s1513_s4 + $0x10] sm:$0xff] %v312_v2  ;;  %v316_v4 = vld [vmem:[%s1508_s3 + $0x40] sm:$0xff]  ;;  %v318_v5 = vld [vmem:[%s1508_s3 + $0x50] sm:$0xff]  ;;  %315 = vst [vmem:[%s1513_s4 + $0x18] sm:$0xff] %v314_v3 }
  0x1b   : > { %317 = vst [vmem:[%s1513_s4 + $0x20] sm:$0xff] %v316_v4  ;;  %319 = vst [vmem:[%s1513_s4 + $0x28] sm:$0xff] %v318_v5  ;;  %v320_v6 = vld [vmem:[%s1508_s3 + $0x60] sm:$0xff]  ;;  %v322_v7 = vld [vmem:[%s1508_s3 + $0x70] sm:$0xff] }
  0x1c   : > { %v324_v8 = vld [vmem:[%s1508_s3 + $0x80] sm:$0xff]  ;;  %321 = vst [vmem:[%s1513_s4 + $0x30] sm:$0xff] %v320_v6  ;;  %323 = vst [vmem:[%s1513_s4 + $0x38] sm:$0xff] %v322_v7  ;;  %v326_v9 = vld [vmem:[%s1508_s3 + $0x90] sm:$0xff] }
  0x1d   : > { %325 = vst [vmem:[%s1513_s4 + $0x40] sm:$0xff] %v324_v8  ;;  %v328_v10 = vld [vmem:[%s1508_s3 + $0xa0] sm:$0xff]  ;;  %v330_v11 = vld [vmem:[%s1508_s3 + $0xb0] sm:$0xff]  ;;  %327 = vst [vmem:[%s1513_s4 + $0x48] sm:$0xff] %v326_v9 }
  0x1e   : > { %329 = vst [vmem:[%s1513_s4 + $0x50] sm:$0xff] %v328_v10  ;;  %331 = vst [vmem:[%s1513_s4 + $0x58] sm:$0xff] %v330_v11  ;;  %v332_v12 = vld [vmem:[%s1508_s3 + $0xc0] sm:$0xff]  ;;  %v334_v13 = vld [vmem:[%s1508_s3 + $0xd0] sm:$0xff] }
  0x1f   : > { %v336_v14 = vld [vmem:[%s1508_s3 + $0xe0] sm:$0xff]  ;;  %333 = vst [vmem:[%s1513_s4 + $0x60] sm:$0xff] %v332_v12  ;;  %335 = vst [vmem:[%s1513_s4 + $0x68] sm:$0xff] %v334_v13  ;;  %v338_v15 = vld [vmem:[%s1508_s3 + $0xf0] sm:$0xff] }
  0x20   : > { %337 = vst [vmem:[%s1513_s4 + $0x70] sm:$0xff] %v336_v14  ;;  %v340_v16 = vld [vmem:[%s1508_s3 + $0x100] sm:$0xff]  ;;  %v342_v17 = vld [vmem:[%s1508_s3 + $0x110] sm:$0xff]  ;;  %339 = vst [vmem:[%s1513_s4 + $0x78] sm:$0xff] %v338_v15 }
  0x21   : > { %341 = vst [vmem:[%s1513_s4 + $0x80] sm:$0xff] %v340_v16  ;;  %343 = vst [vmem:[%s1513_s4 + $0x88] sm:$0xff] %v342_v17  ;;  %v344_v18 = vld [vmem:[%s1508_s3 + $0x120] sm:$0xff]  ;;  %v346_v19 = vld [vmem:[%s1508_s3 + $0x130] sm:$0xff] }
  0x22   : > { %v348_v20 = vld [vmem:[%s1508_s3 + $0x140] sm:$0xff]  ;;  %345 = vst [vmem:[%s1513_s4 + $0x90] sm:$0xff] %v344_v18  ;;  %347 = vst [vmem:[%s1513_s4 + $0x98] sm:$0xff] %v346_v19  ;;  %v350_v21 = vld [vmem:[%s1508_s3 + $0x150] sm:$0xff] }
  0x23   : > { %349 = vst [vmem:[%s1513_s4 + $0xa0] sm:$0xff] %v348_v20  ;;  %v352_v22 = vld [vmem:[%s1508_s3 + $0x160] sm:$0xff]  ;;  %v354_v23 = vld [vmem:[%s1508_s3 + $0x170] sm:$0xff]  ;;  %351 = vst [vmem:[%s1513_s4 + $0xa8] sm:$0xff] %v350_v21 }
  0x24   : > { %353 = vst [vmem:[%s1513_s4 + $0xb0] sm:$0xff] %v352_v22  ;;  %355 = vst [vmem:[%s1513_s4 + $0xb8] sm:$0xff] %v354_v23  ;;  %v356_v24 = vld [vmem:[%s1508_s3 + $0x180] sm:$0xff]  ;;  %v358_v25 = vld [vmem:[%s1508_s3 + $0x190] sm:$0xff] }
  0x25   : > { %v360_v26 = vld [vmem:[%s1508_s3 + $0x1a0] sm:$0xff]  ;;  %357 = vst [vmem:[%s1513_s4 + $0xc0] sm:$0xff] %v356_v24  ;;  %359 = vst [vmem:[%s1513_s4 + $0xc8] sm:$0xff] %v358_v25  ;;  %v362_v27 = vld [vmem:[%s1508_s3 + $0x1b0] sm:$0xff] }
  0x26   : > { %361 = vst [vmem:[%s1513_s4 + $0xd0] sm:$0xff] %v360_v26  ;;  %v364_v28 = vld [vmem:[%s1508_s3 + $0x1c0] sm:$0xff]  ;;  %v366_v29 = vld [vmem:[%s1508_s3 + $0x1d0] sm:$0xff]  ;;  %363 = vst [vmem:[%s1513_s4 + $0xd8] sm:$0xff] %v362_v27 }
  0x27   : > { %365 = vst [vmem:[%s1513_s4 + $0xe0] sm:$0xff] %v364_v28  ;;  %367 = vst [vmem:[%s1513_s4 + $0xe8] sm:$0xff] %v366_v29  ;;  %v368_v30 = vld [vmem:[%s1508_s3 + $0x1e0] sm:$0xff]  ;;  %v370_v31 = vld [vmem:[%s1508_s3 + $0x1f0] sm:$0xff] }
  0x28   : > { %v372_v32 = vld [vmem:[%s1508_s3 + $0x200] sm:$0xff]  ;;  %369 = vst [vmem:[%s1513_s4 + $0xf0] sm:$0xff] %v368_v30  ;;  %371 = vst [vmem:[%s1513_s4 + $0xf8] sm:$0xff] %v370_v31  ;;  %v374_v33 = vld [vmem:[%s1508_s3 + $0x210] sm:$0xff] }
  0x29   : > { %373 = vst [vmem:[%s1513_s4 + $0x100] sm:$0xff] %v372_v32  ;;  %v376_v34 = vld [vmem:[%s1508_s3 + $0x220] sm:$0xff]  ;;  %v378_v35 = vld [vmem:[%s1508_s3 + $0x230] sm:$0xff]  ;;  %375 = vst [vmem:[%s1513_s4 + $0x108] sm:$0xff] %v374_v33 }
  0x2a   : > { %377 = vst [vmem:[%s1513_s4 + $0x110] sm:$0xff] %v376_v34  ;;  %379 = vst [vmem:[%s1513_s4 + $0x118] sm:$0xff] %v378_v35  ;;  %v380_v36 = vld [vmem:[%s1508_s3 + $0x240] sm:$0xff]  ;;  %v382_v37 = vld [vmem:[%s1508_s3 + $0x250] sm:$0xff] }
  0x2b   : > { %v384_v38 = vld [vmem:[%s1508_s3 + $0x260] sm:$0xff]  ;;  %381 = vst [vmem:[%s1513_s4 + $0x120] sm:$0xff] %v380_v36  ;;  %383 = vst [vmem:[%s1513_s4 + $0x128] sm:$0xff] %v382_v37  ;;  %v386_v39 = vld [vmem:[%s1508_s3 + $0x270] sm:$0xff] }
  0x2c   : > { %385 = vst [vmem:[%s1513_s4 + $0x130] sm:$0xff] %v384_v38  ;;  %v388_v40 = vld [vmem:[%s1508_s3 + $0x280] sm:$0xff]  ;;  %v390_v41 = vld [vmem:[%s1508_s3 + $0x290] sm:$0xff]  ;;  %387 = vst [vmem:[%s1513_s4 + $0x138] sm:$0xff] %v386_v39 }
  0x2d   : > { %389 = vst [vmem:[%s1513_s4 + $0x140] sm:$0xff] %v388_v40  ;;  %391 = vst [vmem:[%s1513_s4 + $0x148] sm:$0xff] %v390_v41  ;;  %v392_v42 = vld [vmem:[%s1508_s3 + $0x2a0] sm:$0xff]  ;;  %v394_v43 = vld [vmem:[%s1508_s3 + $0x2b0] sm:$0xff] }
  0x2e   : > { %v396_v44 = vld [vmem:[%s1508_s3 + $0x2c0] sm:$0xff]  ;;  %393 = vst [vmem:[%s1513_s4 + $0x150] sm:$0xff] %v392_v42  ;;  %395 = vst [vmem:[%s1513_s4 + $0x158] sm:$0xff] %v394_v43  ;;  %v398_v45 = vld [vmem:[%s1508_s3 + $0x2d0] sm:$0xff] }
  0x2f   : > { %397 = vst [vmem:[%s1513_s4 + $0x160] sm:$0xff] %v396_v44  ;;  %v400_v46 = vld [vmem:[%s1508_s3 + $0x2e0] sm:$0xff]  ;;  %v402_v47 = vld [vmem:[%s1508_s3 + $0x2f0] sm:$0xff]  ;;  %399 = vst [vmem:[%s1513_s4 + $0x168] sm:$0xff] %v398_v45 }
  0x30   : > { %401 = vst [vmem:[%s1513_s4 + $0x170] sm:$0xff] %v400_v46  ;;  %403 = vst [vmem:[%s1513_s4 + $0x178] sm:$0xff] %v402_v47  ;;  %v404_v48 = vld [vmem:[%s1508_s3 + $0x300] sm:$0xff]  ;;  %v406_v49 = vld [vmem:[%s1508_s3 + $0x310] sm:$0xff] }
  0x31   : > { %v408_v50 = vld [vmem:[%s1508_s3 + $0x320] sm:$0xff]  ;;  %405 = vst [vmem:[%s1513_s4 + $0x180] sm:$0xff] %v404_v48  ;;  %407 = vst [vmem:[%s1513_s4 + $0x188] sm:$0xff] %v406_v49  ;;  %v410_v51 = vld [vmem:[%s1508_s3 + $0x330] sm:$0xff] }
  0x32   : > { %409 = vst [vmem:[%s1513_s4 + $0x190] sm:$0xff] %v408_v50  ;;  %v412_v52 = vld [vmem:[%s1508_s3 + $0x340] sm:$0xff]  ;;  %v414_v53 = vld [vmem:[%s1508_s3 + $0x350] sm:$0xff]  ;;  %411 = vst [vmem:[%s1513_s4 + $0x198] sm:$0xff] %v410_v51 }
  0x33   : > { %413 = vst [vmem:[%s1513_s4 + $0x1a0] sm:$0xff] %v412_v52  ;;  %415 = vst [vmem:[%s1513_s4 + $0x1a8] sm:$0xff] %v414_v53  ;;  %v416_v54 = vld [vmem:[%s1508_s3 + $0x360] sm:$0xff]  ;;  %v418_v55 = vld [vmem:[%s1508_s3 + $0x370] sm:$0xff] }
  0x34   : > { %v420_v56 = vld [vmem:[%s1508_s3 + $0x380] sm:$0xff]  ;;  %417 = vst [vmem:[%s1513_s4 + $0x1b0] sm:$0xff] %v416_v54  ;;  %419 = vst [vmem:[%s1513_s4 + $0x1b8] sm:$0xff] %v418_v55  ;;  %v422_v57 = vld [vmem:[%s1508_s3 + $0x390] sm:$0xff] }
  0x35   : > { %421 = vst [vmem:[%s1513_s4 + $0x1c0] sm:$0xff] %v420_v56  ;;  %v424_v58 = vld [vmem:[%s1508_s3 + $0x3a0] sm:$0xff]  ;;  %v426_v59 = vld [vmem:[%s1508_s3 + $0x3b0] sm:$0xff]  ;;  %423 = vst [vmem:[%s1513_s4 + $0x1c8] sm:$0xff] %v422_v57 }
  0x36   : > { %425 = vst [vmem:[%s1513_s4 + $0x1d0] sm:$0xff] %v424_v58  ;;  %427 = vst [vmem:[%s1513_s4 + $0x1d8] sm:$0xff] %v426_v59  ;;  %v428_v60 = vld [vmem:[%s1508_s3 + $0x3c0] sm:$0xff]  ;;  %v430_v61 = vld [vmem:[%s1508_s3 + $0x3d0] sm:$0xff] }
  0x37   : > { %v432_v62 = vld [vmem:[%s1508_s3 + $0x3e0] sm:$0xff]  ;;  %429 = vst [vmem:[%s1513_s4 + $0x1e0] sm:$0xff] %v428_v60  ;;  %431 = vst [vmem:[%s1513_s4 + $0x1e8] sm:$0xff] %v430_v61  ;;  %v434_v63 = vld [vmem:[%s1508_s3 + $0x3f0] sm:$0xff] }
  0x38   : > { %433 = vst [vmem:[%s1513_s4 + $0x1f0] sm:$0xff] %v432_v62  ;;  %435 = vst [vmem:[%s1513_s4 + $0x1f8] sm:$0xff] %v434_v63 }
  0x39 PF: > { %p1142_p7 = scmp.ge.s32.totalorder %s1428_s15, 1  ;;  %p440_p8 = scmp.lt.s32.totalorder %s1428_s15, 19 }
  0x3b   : > { %p441_p9 = pnand %p1142_p7, %p440_p8 }
  0x3c   : > { %s447_s5 = sand.u32 (!%p441_p9), 1, %s1404_s9   ;;  %s1144_s6 = sshll.u32 (!%p441_p9), %s1412_s11, 2 }
  0x3d   : > { %444 = sbr.rel (%p441_p9) target bundleno = 373 (0x175), region = 62  ;;  %s1143_s7 = sshll.u32 (!%p441_p9), %s447_s5, 9 }
  0x3e   : > { %p483_p10 = scmp.lt.s32.totalorder (!%p441_p9), %s1144_s6, 35  ;;  %s1145_s8 = sshll.u32 (!%p441_p9), %s1416_s12, 1 }
  0x3f   : > { %p494_p11 = scmp.lt.s32.totalorder (!%p441_p9), %s1145_s8, 3  ;;  %s1656_s9 = scalar_lea.vmem (!%p441_p9), [#allocation3], %s1143_s7 }
  0x40   : > { %p1147_p12 = scmp.ne.s32.totalorder (!%p441_p9), %s1412_s11, 0 }
  0x44   : > { %s1771_s6 = smov (!%p483_p10, %s1144_s6), 35  ;;  %s1773_s8 = smov (!%p494_p11, %s1145_s8), 3 }
  0x45   : > { %s487_s20 = scalar_lea.vmem %s1755_s0, %s1771_s6  ;;  %s1146_s21 = sshll.u32 %s1773_s8, 1  ;;  %v1430_v0 = vmov (!%p1147_p12), 0.0  }
  0x46   : > { %s1654_s25 = scalar_lea.vmem %s1757_s2, %s1146_s21  ;;  %504 = sbr.rel (%p1147_p12) target bundleno = 77 (0x4d), region = 70  ;;  %505 = vst [vmem:[#allocation2] sm:$0xf] (!%p1147_p12), %v1430_v0 }
  0x4d PF: > { %v1278_v1 = vld [vmem:[%s1656_s9 + $0x4] ss:$8 sps:$4 sm:$0xff]   ;;  %v1282_v3 = vld [vmem:[%s1656_s9] ss:$8 sps:$4 sm:$0xff]   ;;  %v1284_v5 = vld [vmem:[%s1656_s9 + $0x14] ss:$8 sps:$4 sm:$0xff]   ;;  %v584_v41 = vlaneseq }
  0x4e   : > { %v1280_v2 = vld [vmem:[%s1656_s9 + $0x104] ss:$8 sps:$4 sm:$0xff]   ;;  %921 = vmatprep.subr.bf16.mxu1 %v1278_v1  ;;  %v1283_v4 = vld [vmem:[%s1656_s9 + $0x100] ss:$8 sps:$4 sm:$0xff]   ;;  %v1286_v6 = vld [vmem:[%s1656_s9 + $0x114] ss:$8 sps:$4 sm:$0xff]  }
  0x4f   : > { %962 = vmatprep.subr.bf16.mxu0 %v1280_v2  ;;  %922 = vmatpush1.bf16.msra.mxu1 %v1282_v3  ;;  %v1288_v7 = vld [vmem:[%s1656_s9 + $0x10] ss:$8 sps:$4 sm:$0xff]   ;;  %v1290_v9 = vld [vmem:[%s1656_s9 + $0x24] ss:$8 sps:$4 sm:$0xff]   ;;  %v1294_v11 = vld [vmem:[%s1656_s9 + $0x20] ss:$8 sps:$4 sm:$0xff]  }
  0x50   : > { %963 = vmatpush1.bf16.msra.mxu0 %v1283_v4  ;;  %923 = vmatprep.subr.bf16.mxu1 %v1284_v5  ;;  %v1289_v8 = vld [vmem:[%s1656_s9 + $0x110] ss:$8 sps:$4 sm:$0xff]   ;;  %v1292_v10 = vld [vmem:[%s1656_s9 + $0x124] ss:$8 sps:$4 sm:$0xff]   ;;  %v1295_v12 = vld [vmem:[%s1656_s9 + $0x120] ss:$8 sps:$4 sm:$0xff]  }
  0x51   : > { %964 = vmatprep.subr.bf16.mxu0 %v1286_v6  ;;  %v1296_v13 = vld [vmem:[%s1656_s9 + $0x34] ss:$8 sps:$4 sm:$0xff]   ;;  %v1300_v15 = vld [vmem:[%s1656_s9 + $0x30] ss:$8 sps:$4 sm:$0xff]   ;;  %v1302_v17 = vld [vmem:[%s1656_s9 + $0x44] ss:$8 sps:$4 sm:$0xff]  }
  0x52   : > { %v1298_v14 = vld [vmem:[%s1656_s9 + $0x134] ss:$8 sps:$4 sm:$0xff]   ;;  %v1301_v16 = vld [vmem:[%s1656_s9 + $0x130] ss:$8 sps:$4 sm:$0xff]   ;;  %v1304_v18 = vld [vmem:[%s1656_s9 + $0x144] ss:$8 sps:$4 sm:$0xff]  }
  0x53   : > { %924 = vmatpush1.bf16.msra.mxu1 %v1288_v7  ;;  %v1306_v19 = vld [vmem:[%s1656_s9 + $0x40] ss:$8 sps:$4 sm:$0xff]   ;;  %v1308_v21 = vld [vmem:[%s1656_s9 + $0x54] ss:$8 sps:$4 sm:$0xff]   ;;  %v1312_v23 = vld [vmem:[%s1656_s9 + $0x50] ss:$8 sps:$4 sm:$0xff]  }
  0x54   : > { %965 = vmatpush1.bf16.msra.mxu0 %v1289_v8  ;;  %925 = vmatprep.subr.bf16.mxu1 %v1290_v9  ;;  %v1307_v20 = vld [vmem:[%s1656_s9 + $0x140] ss:$8 sps:$4 sm:$0xff]   ;;  %v1310_v22 = vld [vmem:[%s1656_s9 + $0x154] ss:$8 sps:$4 sm:$0xff]   ;;  %v1313_v24 = vld [vmem:[%s1656_s9 + $0x150] ss:$8 sps:$4 sm:$0xff]  }
  0x55   : > { %966 = vmatprep.subr.bf16.mxu0 %v1292_v10  ;;  %v1314_v25 = vld [vmem:[%s1656_s9 + $0x64] ss:$8 sps:$4 sm:$0xff]   ;;  %v1318_v27 = vld [vmem:[%s1656_s9 + $0x60] ss:$8 sps:$4 sm:$0xff]   ;;  %v1320_v29 = vld [vmem:[%s1656_s9 + $0x74] ss:$8 sps:$4 sm:$0xff]  }
  0x56   : > { %v1316_v26 = vld [vmem:[%s1656_s9 + $0x164] ss:$8 sps:$4 sm:$0xff]   ;;  %v1319_v28 = vld [vmem:[%s1656_s9 + $0x160] ss:$8 sps:$4 sm:$0xff]   ;;  %v1322_v30 = vld [vmem:[%s1656_s9 + $0x174] ss:$8 sps:$4 sm:$0xff]  }
  0x57   : > { %926 = vmatpush1.bf16.msra.mxu1 %v1294_v11  ;;  %v1324_v31 = vld [vmem:[%s1656_s9 + $0x70] ss:$8 sps:$4 sm:$0xff]   ;;  %v1326_v33 = vld [vmem:[%s1656_s9 + $0x84] ss:$8 sps:$4 sm:$0xff]   ;;  %v1330_v35 = vld [vmem:[%s1656_s9 + $0x80] ss:$8 sps:$4 sm:$0xff]  }
  0x58   : > { %967 = vmatpush1.bf16.msra.mxu0 %v1295_v12  ;;  %927 = vmatprep.subr.bf16.mxu1 %v1296_v13  ;;  %v1325_v32 = vld [vmem:[%s1656_s9 + $0x170] ss:$8 sps:$4 sm:$0xff]   ;;  %v1328_v34 = vld [vmem:[%s1656_s9 + $0x184] ss:$8 sps:$4 sm:$0xff]   ;;  %v1331_v36 = vld [vmem:[%s1656_s9 + $0x180] ss:$8 sps:$4 sm:$0xff]  }
  0x59   : > { %968 = vmatprep.subr.bf16.mxu0 %v1298_v14  ;;  %v1332_v37 = vld [vmem:[%s1656_s9 + $0x94] ss:$8 sps:$4 sm:$0xff]   ;;  %v1431_v39 = vmov 1966171168   ;;  %v1336_v42 = vld [vmem:[%s1656_s9 + $0x90] ss:$8 sps:$4 sm:$0xff]  }
  0x5a   : > { %v1334_v38 = vld [vmem:[%s1656_s9 + $0x194] ss:$8 sps:$4 sm:$0xff]   ;;  %v582_v40 = vunpack.c.l.s4 %v1431_v39  ;;  %v1337_v43 = vld [vmem:[%s1656_s9 + $0x190] ss:$8 sps:$4 sm:$0xff]   ;;  %v1338_v44 = vld [vmem:[%s1656_s9 + $0xa4] ss:$8 sps:$4 sm:$0xff]  }
  0x5b   : > { %928 = vmatpush1.bf16.msra.mxu1 %v1300_v15  ;;  %v1340_v45 = vld [vmem:[%s1656_s9 + $0x1a4] ss:$8 sps:$4 sm:$0xff]   ;;  %v1701_v47 = vshrl.u32 %v584_v41, 7  ;;  %v1342_v48 = vld [vmem:[%s1656_s9 + $0xa0] ss:$8 sps:$4 sm:$0xff]   ;;  %p1213_p13 = scmp.ne.s32.totalorder %s1412_s11, 8 }
  0x5c   : > { %969 = vmatpush1.bf16.msra.mxu0 %v1301_v16  ;;  %929 = vmatprep.subr.bf16.mxu1 %v1302_v17  ;;  %v583_v46 = vunpack.c.0.s8 %v582_v40  ;;  %v1343_v49 = vld [vmem:[%s1656_s9 + $0x1a0] ss:$8 sps:$4 sm:$0xff]   ;;  %v1344_v50 = vld [vmem:[%s1656_s9 + $0xb4] ss:$8 sps:$4 sm:$0xff]   ;;  %v1348_v54 = vld [vmem:[%s1656_s9 + $0xb0] ss:$8 sps:$4 sm:$0xff]  }
  0x5d   : > { %970 = vmatprep.subr.bf16.mxu0 %v1304_v18  ;;  %v1346_v51 = vld [vmem:[%s1656_s9 + $0x1b4] ss:$8 sps:$4 sm:$0xff]   ;;  %v1349_v55 = vld [vmem:[%s1656_s9 + $0x1b0] ss:$8 sps:$4 sm:$0xff]   ;;  %v1350_v57 = vld [vmem:[%s1656_s9 + $0xc4] ss:$8 sps:$4 sm:$0xff]  }
  0x5e   : > { %v586_v52 = vsub.s32 %v583_v46, %v1701_v47  ;;  %v1148_v53 = vld.sshfl [vmem:[%s487_s20] sm:$0x33 pattern:$0x75316420]  ;;  %v1352_v58 = vld [vmem:[%s1656_s9 + $0x1c4] ss:$8 sps:$4 sm:$0xff]  }
  0x5f   : > { %930 = vmatpush1.bf16.msra.mxu1 %v1306_v19  ;;  %v580_v56 = vcombine.high %v1148_v53, %v1148_v53  ;;  %v1354_v60 = vld [vmem:[%s1656_s9 + $0xc0] ss:$8 sps:$4 sm:$0xff]   ;;  %v1356_v63 = vld [vmem:[%s1656_s9 + $0xd4] ss:$8 sps:$4 sm:$0xff]   ;;  %v1360_v1 = vld [vmem:[%s1656_s9 + $0xd0] ss:$8 sps:$4 sm:$0xff]  }
  0x60   : > { %971 = vmatpush1.bf16.msra.mxu0 %v1307_v20  ;;  %931 = vmatprep.subr.bf16.mxu1 %v1308_v21  ;;  %v1355_v61 = vld [vmem:[%s1656_s9 + $0x1c0] ss:$8 sps:$4 sm:$0xff]   ;;  %v1358_v0 = vld [vmem:[%s1656_s9 + $0x1d4] ss:$8 sps:$4 sm:$0xff]   ;;  %v1361_v2 = vld [vmem:[%s1656_s9 + $0x1d0] ss:$8 sps:$4 sm:$0xff]   ;;  %v587_v9 = vrot.slane %v1148_v53, %v586_v52 }
  0x61   : > { %972 = vmatprep.subr.bf16.mxu0 %v1310_v22  ;;  %v594_v59 = vrot.slane %v580_v56, %v586_v52  ;;  %v1362_v3 = vld [vmem:[%s1656_s9 + $0xe4] ss:$8 sps:$4 sm:$0xff]   ;;  %v1366_v5 = vld [vmem:[%s1656_s9 + $0xe0] ss:$8 sps:$4 sm:$0xff]   ;;  %v1368_v7 = vld [vmem:[%s1656_s9 + $0xf4] ss:$8 sps:$4 sm:$0xff]  }
  0x62   : > { %v1364_v4 = vld [vmem:[%s1656_s9 + $0x1e4] ss:$8 sps:$4 sm:$0xff]   ;;  %v1367_v6 = vld [vmem:[%s1656_s9 + $0x1e0] ss:$8 sps:$4 sm:$0xff]   ;;  %v1370_v8 = vld [vmem:[%s1656_s9 + $0x1f4] ss:$8 sps:$4 sm:$0xff]   ;;  %v595_v12 = vcombine.high %v587_v9, %v587_v9 }
  0x63   : > { %932 = vmatpush1.bf16.msra.mxu1 %v1312_v23  ;;  %v596_v62 = vcombine.high %v594_v59, %v594_v59  ;;  %953 = vmatprep.mubr.bf16.mxu1 %v594_v59  ;;  %v1372_v10 = vld [vmem:[%s1656_s9 + $0xf0] ss:$8 sps:$4 sm:$0xff]   ;;  %v1432_v13 = vmov 1983009808  }
  0x64   : > { %973 = vmatpush1.bf16.msra.mxu0 %v1313_v24  ;;  %933 = vmatprep.subr.bf16.mxu1 %v1314_v25  ;;  %v1373_v11 = vld [vmem:[%s1656_s9 + $0x1f0] ss:$8 sps:$4 sm:$0xff]   ;;  %v1007_v14 = vunpack.c.l.s4 %v1432_v13 }
  0x65   : > { %974 = vmatprep.subr.bf16.mxu0 %v1316_v26  ;;  %994 = vmatprep.mubr.bf16.mxu0 %v596_v62 }
  0x66   : > { %v1008_v15 = vunpack.c.0.s8 %v1007_v14 }
  0x67   : > { %934 = vmatpush1.bf16.msra.mxu1 %v1318_v27 }
  0x68   : > { %975 = vmatpush1.bf16.msra.mxu0 %v1319_v28  ;;  %935 = vmatprep.subr.bf16.mxu1 %v1320_v29  ;;  %v1011_v22 = vsub.s32 %v1008_v15, %v1701_v47  ;;  %v506_v28 = vld [vmem:[#allocation2] sm:$0xf] }
  0x69   : > { %976 = vmatprep.subr.bf16.mxu0 %v1322_v30 }
  0x6b   : > { %936 = vmatpush1.bf16.msra.mxu1 %v1324_v31 }
  0x6c   : > { %977 = vmatpush1.bf16.msra.mxu0 %v1325_v32  ;;  %937 = vmatprep.subr.bf16.mxu1 %v1326_v33 }
  0x6d   : > { %978 = vmatprep.subr.bf16.mxu0 %v1328_v34 }
  0x6f   : > { %938 = vmatpush1.bf16.msra.mxu1 %v1330_v35 }
  0x70   : > { %979 = vmatpush1.bf16.msra.mxu0 %v1331_v36  ;;  %939 = vmatprep.subr.bf16.mxu1 %v1332_v37 }
  0x71   : > { %980 = vmatprep.subr.bf16.mxu0 %v1334_v38 }
  0x73   : > { %940 = vmatpush1.bf16.msra.mxu1 %v1336_v42 }
  0x74   : > { %981 = vmatpush1.bf16.msra.mxu0 %v1337_v43  ;;  %941 = vmatprep.subr.bf16.mxu1 %v1338_v44 }
  0x75   : > { %982 = vmatprep.subr.bf16.mxu0 %v1340_v45 }
  0x77   : > { %942 = vmatpush1.bf16.msra.mxu1 %v1342_v48 }
  0x78   : > { %983 = vmatpush1.bf16.msra.mxu0 %v1343_v49  ;;  %943 = vmatprep.subr.bf16.mxu1 %v1344_v50 }
  0x79   : > { %984 = vmatprep.subr.bf16.mxu0 %v1346_v51 }
  0x7b   : > { %944 = vmatpush1.bf16.msra.mxu1 %v1348_v54 }
  0x7c   : > { %985 = vmatpush1.bf16.msra.mxu0 %v1349_v55  ;;  %945 = vmatprep.subr.bf16.mxu1 %v1350_v57 }
  0x7d   : > { %986 = vmatprep.subr.bf16.mxu0 %v1352_v58 }
  0x7f   : > { %946 = vmatpush1.bf16.msra.mxu1 %v1354_v60 }
  0x80   : > { %987 = vmatpush1.bf16.msra.mxu0 %v1355_v61  ;;  %947 = vmatprep.subr.bf16.mxu1 %v1356_v63 }
  0x81   : > { %988 = vmatprep.subr.bf16.mxu0 %v1358_v0 }
  0x83   : > { %948 = vmatpush1.bf16.msra.mxu1 %v1360_v1 }
  0x84   : > { %989 = vmatpush1.bf16.msra.mxu0 %v1361_v2  ;;  %949 = vmatprep.subr.bf16.mxu1 %v1362_v3 }
  0x85   : > { %990 = vmatprep.subr.bf16.mxu0 %v1364_v4 }
  0x87   : > { %950 = vmatpush1.bf16.msra.mxu1 %v1366_v5 }
  0x88   : > { %991 = vmatpush1.bf16.msra.mxu0 %v1367_v6  ;;  %951 = vmatprep.subr.bf16.mxu1 %v1368_v7 }
  0x89   : > { %992 = vmatprep.subr.bf16.mxu0 %v1370_v8 }
  0x8b   : > { %952 = vmatpush1.bf16.msra.mxu1 %v1372_v10 }
  0x8c   : > { %993 = vmatpush1.bf16.msra.mxu0 %v1373_v11 }
  0x8e   : > { %954 = vmatmul.mubr.bf16.vlgmr.msra.gmra.mrb[0].mxu1 %v587_v9 }
  0x8f   : > { %995 = vmatmul.mubr.bf16.vlgmr.msra.gmra.mrb[0].mxu0 %v595_v12 }
 0x161   : > { %v955_v16 = vpop.f32.mrb[0].mxu1 }
 0x162   : > { %v996_v17 = vpop.f32.mrb[0].mxu0  ;;  %v957_v19 = vpop.f32.mrb[1].mxu1 }
 0x163   : > { %v997_v18 = vadd.f32 %v996_v17, %v955_v16  ;;  %v998_v20 = vpop.f32.mrb[1].mxu0  ;;  %v959_v23 = vpop.f32.mrb[2].mxu1 }
 0x164   : > { %v999_v21 = vadd.f32 %v998_v20, %v957_v19  ;;  %v1000_v24 = vpop.f32.mrb[2].mxu0  ;;  %v960_v25 = vpop.f32.mrb[3].mxu1 }
 0x165   : > { %v1001_v26 = vpop.f32.mrb[3].mxu0 }
 0x166   : > { %v1005_v27 = vcombine.low %v997_v18, %v999_v21  ;;  %1019 = sbr.rel (%p1213_p13) target bundleno = 373 (0x175), region = 74 }
 0x168   : > { %v1012_v29 = vrot.slane %v1005_v27, %v1011_v22 }
 0x16a   : > { %v1014_v30 = vadd.f32 %v1012_v29, %v506_v28 }
 0x16c   : > { %1015 = vst [vmem:[#allocation2] sm:$0xf] %v1014_v30 }
 0x173   : > { %v1020_v31 = vld [vmem:[#allocation2] sm:$0xf] }
 0x174   : > { %1021 = vst [vmem:[%s1654_s25] sm:$0xf] %v1020_v31 }
 0x175 PF: > { %s12_s15 = sadd.s32 1, %s1428_s15   ;;  %s1758_s9 = smov %s1408_s10 }
 0x176   : > { %p9_p0 = scmp.ge.s32.totalorder %s12_s15, 20   ;;  %s1759_s10 = smov %s1499_s22 }
 0x177   : > { %s1760_s11 = smov %s1420_s13  ;;  %s1761_s12 = smov %s1424_s14 }
 0x178   : > { %s1762_s13 = smov %s1765_s16  ;;  %s1763_s14 = smov %s1769_s17 }
 0x179   :  { %11 = sbr.rel (!%p9_p0) target bundleno = 4 (0x4), region = 112 }

// kernel: forward.219
= control target key start
LH: loop header
LB: loop body
LE: loop exit
PB: predicated region body
PF: predicated region fallthrough
CT: control target
= control target key end

     0   :  { %v100_v30 = vlaneseq  ;;  %v556_v34 = vmov 1966171168   ;;  %s696_s0 = inlined_call_operand.vmem [shape: bf16[2,512], index: 0, kind: input, shape index: {}]   ;;  %s697_s1 = inlined_call_operand.vmem [shape: bf16[512,10], index: 1, kind: input, shape index: {}]   ;;  %s698_s2 = inlined_call_operand.vmem [shape: f32[1,10], index: 2, kind: input, shape index: {}]   ;;  %s699_s3 = inlined_call_operand.hbm [shape: f32[2,10], index: 3, kind: output, shape index: {}]  }
   0x1   :  { %v500_v0 = vld [vmem:[%s697_s1 + $0x40] sm:$0xff]   ;;  %v504_v4 = vld [vmem:[%s697_s1 + $0x48] sm:$0xff]   ;;  %v508_v8 = vld [vmem:[%s697_s1 + $0x50] sm:$0xff]   ;;  %v98_v35 = vunpack.c.l.s4 %v556_v34 }
   0x2   :  { %v501_v1 = vld [vmem:[%s697_s1 + $0xc0] sm:$0xff]   ;;  %453 = vmatprep.subr.bf16.mxu0 %v500_v0  ;;  %v505_v5 = vld [vmem:[%s697_s1 + $0xc8] sm:$0xff]   ;;  %v509_v9 = vld [vmem:[%s697_s1 + $0xd0] sm:$0xff]   ;;  %v101_v36 = vshrl.u32 %v100_v30, 7 }
   0x3   :  { %v502_v2 = vld [vmem:[%s697_s1] sm:$0xff]   ;;  %475 = vmatprep.subr.bf16.mxu1 %v501_v1  ;;  %v506_v6 = vld [vmem:[%s697_s1 + $0x8] sm:$0xff]   ;;  %v510_v10 = vld [vmem:[%s697_s1 + $0x10] sm:$0xff]  }
   0x4   :  { %v503_v3 = vld [vmem:[%s697_s1 + $0x80] sm:$0xff]   ;;  %454 = vmatpush3.bf16.msra.mxu0 %v502_v2  ;;  %v507_v7 = vld [vmem:[%s697_s1 + $0x88] sm:$0xff]   ;;  %v511_v11 = vld [vmem:[%s697_s1 + $0x90] sm:$0xff]  }
   0x5   :  { %476 = vmatpush3.bf16.msra.mxu1 %v503_v3  ;;  %455 = vmatprep.subr.bf16.mxu0 %v504_v4  ;;  %v512_v12 = vld [vmem:[%s697_s1 + $0x58] sm:$0xff]   ;;  %v516_v16 = vld [vmem:[%s697_s1 + $0x60] sm:$0xff]   ;;  %v520_v20 = vld [vmem:[%s697_s1 + $0x68] sm:$0xff]  }
   0x6   :  { %477 = vmatprep.subr.bf16.mxu1 %v505_v5  ;;  %v513_v13 = vld [vmem:[%s697_s1 + $0xd8] sm:$0xff]   ;;  %v517_v17 = vld [vmem:[%s697_s1 + $0xe0] sm:$0xff]   ;;  %v521_v21 = vld [vmem:[%s697_s1 + $0xe8] sm:$0xff]  }
   0x7   :  { %v514_v14 = vld [vmem:[%s697_s1 + $0x18] sm:$0xff]   ;;  %v518_v18 = vld [vmem:[%s697_s1 + $0x20] sm:$0xff]   ;;  %v522_v22 = vld [vmem:[%s697_s1 + $0x28] sm:$0xff]  }
   0x8   :  { %456 = vmatpush3.bf16.msra.mxu0 %v506_v6  ;;  %v515_v15 = vld [vmem:[%s697_s1 + $0x98] sm:$0xff]   ;;  %v519_v19 = vld [vmem:[%s697_s1 + $0xa0] sm:$0xff]   ;;  %v523_v23 = vld [vmem:[%s697_s1 + $0xa8] sm:$0xff]  }
   0x9   :  { %478 = vmatpush3.bf16.msra.mxu1 %v507_v7  ;;  %457 = vmatprep.subr.bf16.mxu0 %v508_v8  ;;  %v524_v24 = vld [vmem:[%s697_s1 + $0x70] sm:$0xff]   ;;  %v528_v28 = vld [vmem:[%s697_s1 + $0x78] sm:$0xff]   ;;  %v419_v33 = vld.sshfl [vmem:[%s696_s0] sm:$0x33 pattern:$0x75316420] }
   0xa   :  { %479 = vmatprep.subr.bf16.mxu1 %v509_v9  ;;  %v525_v25 = vld [vmem:[%s697_s1 + $0xf0] sm:$0xff]   ;;  %v529_v29 = vld [vmem:[%s697_s1 + $0xf8] sm:$0xff]  }
   0xb   :  { %v526_v26 = vld [vmem:[%s697_s1 + $0x30] sm:$0xff]   ;;  %v530_v31 = vld [vmem:[%s697_s1 + $0x38] sm:$0xff]  }
   0xc   :  { %458 = vmatpush3.bf16.msra.mxu0 %v510_v10  ;;  %v527_v27 = vld [vmem:[%s697_s1 + $0xb0] sm:$0xff]   ;;  %v531_v32 = vld [vmem:[%s697_s1 + $0xb8] sm:$0xff]  }
   0xd   :  { %480 = vmatpush3.bf16.msra.mxu1 %v511_v11  ;;  %459 = vmatprep.subr.bf16.mxu0 %v512_v12 }
   0xe   :  { %481 = vmatprep.subr.bf16.mxu1 %v513_v13 }
  0x10   :  { %460 = vmatpush3.bf16.msra.mxu0 %v514_v14 }
  0x11   :  { %482 = vmatpush3.bf16.msra.mxu1 %v515_v15  ;;  %461 = vmatprep.subr.bf16.mxu0 %v516_v16 }
  0x12   :  { %483 = vmatprep.subr.bf16.mxu1 %v517_v17 }
  0x14   :  { %462 = vmatpush3.bf16.msra.mxu0 %v518_v18 }
  0x15   :  { %484 = vmatpush3.bf16.msra.mxu1 %v519_v19  ;;  %463 = vmatprep.subr.bf16.mxu0 %v520_v20 }
  0x16   :  { %485 = vmatprep.subr.bf16.mxu1 %v521_v21 }
  0x18   :  { %464 = vmatpush3.bf16.msra.mxu0 %v522_v22 }
  0x19   :  { %486 = vmatpush3.bf16.msra.mxu1 %v523_v23  ;;  %465 = vmatprep.subr.bf16.mxu0 %v524_v24 }
  0x1a   :  { %487 = vmatprep.subr.bf16.mxu1 %v525_v25 }
  0x1c   :  { %466 = vmatpush3.bf16.msra.mxu0 %v526_v26 }
  0x1d   :  { %488 = vmatpush3.bf16.msra.mxu1 %v527_v27  ;;  %467 = vmatprep.subr.bf16.mxu0 %v528_v28 }
  0x1e   :  { %489 = vmatprep.subr.bf16.mxu1 %v529_v29 }
  0x20   :  { %468 = vmatpush3.bf16.msra.mxu0 %v530_v31 }
  0x21   :  { %490 = vmatpush3.bf16.msra.mxu1 %v531_v32 }
  0x22   :  { %8 = vsyncpa [#allocation4], 0  ;;  %v96_v37 = vcombine.high %v419_v33, %v419_v33  ;;  %v99_v38 = vunpack.c.0.s8 %v98_v35  ;;  %vm20_vm0 = vcmask 74752   ;;  %v557_v44 = vmov 0.0   ;;  %v452_v58 = vld [vmem:[%s698_s2] ss:$0 sm:$0xff] }
  0x23   :  { %21 = vst.msk [vmem:[#allocation2] sm:$0x3] %vm20_vm0, %v557_v44  ;;  %s558_s24 = smov [#allocation3]  }
  0x24   :  { %v102_v39 = vsub.s32 %v99_v38, %v101_v36  ;;  %s411_s25 = sshll.u32 %s558_s24, 4  ;;  %s412_s25 = int_to_ptr.vmem [resolvable:$true] %s411_s25 }
  0x25   :  { %s532_s26 = scalar_lea.vmem %s412_s25, 32  ;;  %p537_p1 = scmp.lt.s32.totalorder %s412_s25, %s412_s25 }
  0x26   :  { %v110_v40 = vrot.slane %v96_v37, %v102_v39  ;;  %v103_v41 = vrot.slane %v419_v33, %v102_v39  ;;  %p533_p0 = scmp.ne.s32.totalorder %s412_s25, %s532_s26  ;;  %p538_p2 = scmp.lt.s32.totalorder %s532_s26, %s532_s26 }
  0x28   :  { %341 = vmatprep.mubr.bf16.mxu0 %v110_v40  ;;  %v112_v42 = vcombine.high %v110_v40, %v110_v40  ;;  %v111_v43 = vcombine.high %v103_v41, %v103_v41  ;;  %p539_p3 = por %p538_p2, %p537_p1 }
  0x29   :  { %342 = vmatmul.mubr.bf16.vlgmr.msra.gmra.mrb[0].mxu0 %v103_v41 }
  0x2a   :  { %381 = vmatprep.mubr.bf16.mxu1 %v112_v42  ;;  %v22_v55 = vld [vmem:[#allocation2] sm:$0x3]  ;;  %p540_p4 = pnand %p539_p3, %p533_p0 }
  0x2b   :  { %382 = vmatmul.mubr.bf16.vlgmr.msra.gmra.mrb[0].mxu1 %v111_v43 }
  0xfc   :  { %v469_v45 = vpop.f32.mrb[0].mxu0 }
  0xfd   :  { %v470_v46 = vpop.f32.mrb[1].mxu0 }
  0xfe   :  { %v491_v47 = vpop.f32.mrb[0].mxu1  ;;  %v471_v48 = vadd.f32 %v470_v46, %v469_v45  ;;  %v472_v49 = vpop.f32.mrb[2].mxu0 }
  0xff   :  { %v492_v50 = vpop.f32.mrb[1].mxu1  ;;  %v473_v51 = vpop.f32.mrb[3].mxu0 }
 0x100   :  { %v493_v52 = vadd.f32 %v492_v50, %v491_v47  ;;  %v494_v53 = vpop.f32.mrb[2].mxu1 }
 0x101   :  { %v495_v54 = vpop.f32.mrb[3].mxu1 }
 0x102   :  { %v384_v56 = vadd.f32 %v493_v52, %v471_v48 }
 0x104   :  { %v389_v57 = vadd.f32 %v384_v56, %v22_v55 }
 0x106   :  { %391 = vst.msk [vmem:[#allocation2] sm:$0x3] %vm20_vm0, %v389_v57 }
 0x10d   :  { %v395_v59 = vld [vmem:[#allocation2] sm:$0x3] }
 0x10e   :  { %v403_v60 = vadd.f32 %v452_v58, %v395_v59 }
 0x110   :  { %404 = vst.msk [vmem:[#allocation3] sm:$0x3] %vm20_vm0, %v403_v60 }
 0x111   :  { %543 = shalt.err (!%p540_p4)
}
 0x112   :  { %s544_s29 = scalar_lea.hbm %s699_s3, 32 }
 0x113   :  { %p545_p5 = scmp.ne.s32.totalorder %s699_s3, %s544_s29  ;;  %p548_p6 = scmp.lt.u32.totalorder %s544_s29, %s699_s3 }
 0x115   :  { %p550_p7 = pnand %p548_p6, %p545_p5 }
 0x117   :  { %553 = shalt.err (!%p550_p7)
}
 0x118   :  { %414 = dma.vmem_to_hbm [thread:$0]  %s412_s25, 32, %s699_s3, [#allocation4]  }
 0x119   :  { %554 = dma.done.wait [#allocation4], 32  }
 0x11a   :  { %555 = vsyncadd [#allocation4], 4294967264 }
 0x11b   :  { %418 = vsyncpa [#allocation4], 1 }

</bundles_post_ra>
